<compile_context>
chip_gen: v5e
topology: v5e:2x2
jax: 0.10.0
libtpu: 0.0.40
codegen_flags: <defaults>
</compile_context>

<pallas_src>
import math
import functools

import jax
import jax.numpy as jnp
from jax.experimental import pallas as pl
from jax.experimental.pallas import tpu as pltpu


def _round_up(n, m):
    return ((n + m - 1) // m) * m


# ---------------- kernel ----------------

def _sinpos_kernel(x_ref, freq_ref, phase_ref, o_ref):
    # x_ref:     (tn, 1)   timesteps for this row tile (f32)
    # freq_ref:  (1, dim)  [f_0..f_{h-1}, f_0..f_{h-1}]
    # phase_ref: (1, dim)  [0]*half + [pi/2]*half
    # o_ref:     (tn, dim) lane-dense output tile
    ang = x_ref[...] * freq_ref[...] + phase_ref[...]      # (tn, dim) broadcast
    o_ref[...] = jnp.sin(ang).astype(o_ref.dtype)          # one transcendental pass


# ---------------- wrapper ----------------

def sinusoidal_pos_emb(x, dim, *, block_n=1024, out_dtype=jnp.float32):
    """x: (N,) timesteps -> (N, dim) embedding (matches the PyTorch module)."""
    if dim % 2 != 0:
        raise ValueError(f"SinusoidalPosEmb requires an even dim, got {dim}")
    if dim < 4:
        # half_dim - 1 == 0 -> log(10000)/(half-1) divides by zero in the spec
        raise ValueError(f"SinusoidalPosEmb requires dim >= 4, got {dim}")

    n = x.shape[0]
    half = dim // 2
    scale = math.log(10000.0) / (half - 1)

    freqs = jnp.exp(jnp.arange(half, dtype=jnp.float32) * -scale)            # (half,)
    freq_row = jnp.concatenate([freqs, freqs]).reshape(1, dim)               # (1, dim)
    phase_row = jnp.concatenate(
        [jnp.zeros((half,), jnp.float32),
         jnp.full((half,), jnp.float32(math.pi / 2.0), jnp.float32)]
    ).reshape(1, dim)                                                         # (1, dim)

    # rows on sublanes, dim on lanes
    x2 = x.reshape(n, 1).astype(jnp.float32)

    # Row-tile selection:
    #   * multiple of 8 (sublane constraint)
    #   * <= ~4 MiB per output buffer so 2x double-buffered tiles sit far under
    #     the scoped-VMEM defaults (16 MiB v5e / 32 MiB v6e/v7x)
    #   * at least 2 grid steps when possible so the "parallel" axis can shard
    #     across v7x's two TensorCores
    per_buf_budget_bytes = 4 * 1024 * 1024
    rows_budget = max(8, (per_buf_budget_bytes // (dim * 4)) // 8 * 8)
    tn = min(block_n, _round_up(n, 8), rows_budget)
    if n > 8 and pl.cdiv(n, tn) < 2:
        tn = max(8, _round_up(pl.cdiv(n, 2), 8))

    # NOTE: for best store performance dim should be a multiple of 128
    # (lane-dense, unmasked stores); other dims are still correct.
    out = pl.pallas_call(
        _sinpos_kernel,
        out_shape=jax.ShapeDtypeStruct((n, dim), out_dtype),
        grid=(pl.cdiv(n, tn),),
        in_specs=[pl.BlockSpec((tn, 1), lambda i: (i, 0)),
                  pl.BlockSpec((1, dim), lambda i: (0, 0)),
                  pl.BlockSpec((1, dim), lambda i: (0, 0))],
        out_specs=pl.BlockSpec((tn, dim), lambda i: (i, 0)),
        compiler_params=pltpu.CompilerParams(
            dimension_semantics=("parallel",)),
    )(x2, freq_row, phase_row)

    return out


# ---------------- pure-JAX reference ----------------

def reference_forward(x, dim):
    half = dim // 2
    scale = math.log(10000.0) / (half - 1)
    freqs = jnp.exp(jnp.arange(half, dtype=jnp.float32) * -scale)
    ang = x.astype(jnp.float32)[:, None] * freqs[None, :]
    return jnp.concatenate([jnp.sin(ang), jnp.cos(ang)], axis=-1)


if __name__ == "__main__":
    key = jax.random.PRNGKey(0)

    # 500 timesteps (non-multiple of the tile -> exercises the ragged last
    # block, which Pallas clips on writeback), embedding dim 128 (lane-dense).
    N, DIM = 500, 128
    x = jax.random.uniform(key, (N,), jnp.float32, minval=0.0, maxval=1000.0)

    emb_fn = jax.jit(sinusoidal_pos_emb,
                     static_argnames=("dim", "block_n", "out_dtype"))
    out = emb_fn(x, dim=DIM)
    out = jax.block_until_ready(out)

    ref = reference_forward(x, DIM)
    assert out.shape == (N, DIM), out.shape
    err = float(jnp.max(jnp.abs(out - ref)))
    # 1e-4 tolerance: the cos half is computed as sin(theta + pi/2); the f32
    # add rounds by up to ~0.5*ulp(1000) ~= 3e-5 in the argument (plus the
    # usual few-1e-6 transcendental approximation differences).
    assert jnp.allclose(out, ref, atol=1e-4, rtol=0.0), err

    print("KERNEL_OK")
</pallas_src>

<mosaic_0001>
module attributes {stable_mosaic.version = 11 : i64} {
  func.func @_sinpos_kernel(%arg0: i32, %arg1: memref<256x1xf32, #tpu.memory_space<vmem>>, %arg2: memref<1x128xf32, #tpu.memory_space<vmem>>, %arg3: memref<1x128xf32, #tpu.memory_space<vmem>>, %arg4: memref<256x128xf32, #tpu.memory_space<vmem>>) attributes {dimension_semantics = [#tpu.dimension_semantics<parallel>], iteration_bounds = array<i64: 2>, scalar_prefetch = 0 : i64, scratch_operands = 0 : i64, tpu.core_type = #tpu.core_type<tc>, window_params = [{transform_indices = @transform_0, window_bounds = array<i64: 256, 1>}, {pipeline_mode = #tpu.pipeline_mode<synchronous>, transform_indices = @transform_1, window_bounds = array<i64: 1, 128>}, {pipeline_mode = #tpu.pipeline_mode<synchronous>, transform_indices = @transform_2, window_bounds = array<i64: 1, 128>}, {transform_indices = @transform_3, window_bounds = array<i64: 256, 128>}]} {
    %c0 = arith.constant 0 : index
    %c0_0 = arith.constant 0 : index
    %0 = vector.load %arg1[%c0, %c0_0] : memref<256x1xf32, #tpu.memory_space<vmem>>, vector<256x1xf32>
    %c0_1 = arith.constant 0 : index
    %c0_2 = arith.constant 0 : index
    %1 = vector.load %arg2[%c0_1, %c0_2] : memref<1x128xf32, #tpu.memory_space<vmem>>, vector<1x128xf32>
    %2 = vector.broadcast %0 : vector<256x1xf32> to vector<256x128xf32>
    %3 = vector.broadcast %1 : vector<1x128xf32> to vector<256x128xf32>
    %4 = arith.mulf %2, %3 : vector<256x128xf32>
    %c0_3 = arith.constant 0 : index
    %c0_4 = arith.constant 0 : index
    %5 = vector.load %arg3[%c0_3, %c0_4] : memref<1x128xf32, #tpu.memory_space<vmem>>, vector<1x128xf32>
    %6 = vector.broadcast %5 : vector<1x128xf32> to vector<256x128xf32>
    %7 = arith.addf %4, %6 : vector<256x128xf32>
    %8 = math.sin %7 : vector<256x128xf32>
    %c0_5 = arith.constant 0 : index
    %c0_6 = arith.constant 0 : index
    %9 = vector.load %arg4[%c0_5, %c0_6] : memref<256x128xf32, #tpu.memory_space<vmem>>, vector<256x128xf32>
    tpu.vector_store %arg4[%c0_5, %c0_6], %8 {strides = array<i32>} : memref<256x128xf32, #tpu.memory_space<vmem>>, vector<256x128xf32>,
    return
  }
  func.func @transform_0(%arg0: i32) -> (i32, i32) {
    %c0_i32 = arith.constant 0 : i32
    %c0_i32_0 = arith.constant 0 : i32
    return %arg0, %c0_i32 : i32, i32
  }
  func.func @transform_1(%arg0: i32) -> (i32, i32) {
    %c0_i32 = arith.constant 0 : i32
    %c0_i32_0 = arith.constant 0 : i32
    %c0_i32_1 = arith.constant 0 : i32
    return %c0_i32, %c0_i32_0 : i32, i32
  }
  func.func @transform_2(%arg0: i32) -> (i32, i32) {
    %c0_i32 = arith.constant 0 : i32
    %c0_i32_0 = arith.constant 0 : i32
    %c0_i32_1 = arith.constant 0 : i32
    return %c0_i32, %c0_i32_0 : i32, i32
  }
  func.func @transform_3(%arg0: i32) -> (i32, i32) {
    %c0_i32 = arith.constant 0 : i32
    %c0_i32_0 = arith.constant 0 : i32
    return %arg0, %c0_i32 : i32, i32
  }
}

</mosaic_0001>

<bundles_post_ra>
// kernel: sinusoidal_pos_emb.1
= control target key start
LH: loop header
LB: loop body
LE: loop exit
PB: predicated region body
PF: predicated region fallthrough
CT: control target
= control target key end

     0   :  { %8 = vsyncpa [#allocation3], 0  ;;  %s9714_s0 = inlined_call_operand.vmem [shape: f32[500,1], index: 0, kind: input, shape index: {}]   ;;  %s9715_s1 = inlined_call_operand.vmem [shape: f32[1,128], index: 1, kind: input, shape index: {}]   ;;  %s9716_s2 = inlined_call_operand.vmem [shape: f32[1,128], index: 2, kind: input, shape index: {}]   ;;  %s9717_s3 = inlined_call_operand.hbm [shape: f32[500,128], index: 3, kind: output, shape index: {}]  }
   0x1   :  { %10 = vsyncpa [#allocation3 + $0x1], 0  ;;  %s5819_s12 = smov 0   ;;  %s5821_s13 = smov 0  }
   0x2   :  { %s5823_s14 = smov 0   ;;  %s5825_s15 = smov 0  }
   0x3 LB: > { %s5840_s16 = sadd.s32 4294967295, %s5787_s15   ;;  %s5537_s17 = sadd.s32 4294967294, %s5787_s15   ;;  %s5787_s15 = sphi %s5825_s15, %s9784_s15   ;;  %s5783_s14 = sphi %s5823_s14, %s9783_s14   ;;  %s5779_s13 = sphi %s5821_s13, %s9782_s13   ;;  %s5775_s12 = sphi %s5819_s12, %s9781_s12  }
   0x4   : > { %s5844_s18 = sadd.s32 1, %s5787_s15   ;;  %s91_s19 = sadd.s32 1, %s5783_s14 }
   0x5   : > { %s88_s20 = ssub.s32 %s5787_s15, %s5844_s18  ;;  %p101_p0 = scmp.ne.s32.totalorder %s5783_s14, %s5779_s13 }
   0x6   : > { %p89_p1 = scmp.eq.s32.totalorder %s88_s20, 0  ;;  %p102_p2 = scmp.eq.s32.totalorder %s5840_s16, 1 }
   0x7   : > { %p107_p3 = scmp.ne.s32.totalorder %s5779_s13, %s5775_s12  ;;  %p108_p4 = scmp.eq.s32.totalorder %s5537_s17, 1 }
   0x8   : > { %s5855_s21 = scalar_select %p89_p1, %s5783_s14, %s91_s19  }
   0x9   : > { %p5857_p5 = por %p102_p2, %p101_p0  ;;  %p5861_p6 = por %p108_p4, %p107_p3 }
   0xa   : > { %p5540_p7 = scmp.ge.s32.totalorder %s5787_s15, 1  ;;  %p149_p8 = scmp.lt.s32.totalorder %s5787_s15, 3 }
   0xc   : > { %p150_p9 = pnand %p5540_p7, %p149_p8 }
   0xd   : > { %s5868_s24 = sshll.u32 (!%p150_p9), %s5840_s16, 5  ;;  %s174_s7 = sand.u32 (!%p150_p9), 1, %s5779_s13  }
   0xe   : > { %153 = sbr.rel (%p150_p9) target bundleno = 1421 (0x58d), region = 32  ;;  %p182_p10 = scmp.lt.s32.totalorder (!%p150_p9), %s5868_s24, 62 }
   0xf   : > { %s5541_s8 = sshll.u32 (!%p150_p9), %s174_s7, 8 }
  0x10   : > { %s6199_s9 = scalar_lea.vmem (!%p150_p9), [#allocation2], %s5541_s8 }
  0x13   : > { %v5789_v0 = vmov 0   ;;  %s183_s25 = scalar_select %p182_p10, %s5868_s24, 62  ;;  %v5915_v33 = vld [vmem:[%s9715_s1] ss:$0 sm:$0xff]  ;;  %v5790_v52 = vmov 683565275  }
  0x14   : > { %5699 = vset.pattern.permute.xlu2 %v5789_v0  ;;  %5698 = vset.pattern.permute.xlu1 %v5789_v0  ;;  %v5921_v36 = vld [vmem:[%s9716_s2] ss:$0 sm:$0xff]  ;;  %v5791_v55 = vmov 2475754826   ;;  %v5792_v58 = vmov 2131351028  }
  0x15   : > { %5697 = vset.pattern.permute.xlu0 %v5789_v0  ;;  %s5543_s26 = sshll.u32 %s183_s25, 3  ;;  %v5793_v61 = vmov 2102212464   ;;  %s5461_s30 = ssub.s32 (%p5857_p5), 63, %s5868_s24 }
  0x16   : > { %s5878_s29 = scalar_lea.vmem %s9714_s0, %s5543_s26  ;;  %p5462_p11 = scmp.lt.s32.totalorder (%p5857_p5), %s5461_s30, 32 }
  0x17   : > { %v200_v1 = vld [vmem:[%s5878_s29 + $0x20] sm:$0xff]  ;;  %v198_v2 = vld [vmem:[%s5878_s29 + $0x10] sm:$0xff]  ;;  %v201_v4 = vld [vmem:[%s5878_s29 + $0x28] sm:$0xff] }
  0x18   : > { %v196_v3 = vld [vmem:[%s5878_s29] sm:$0xff]  ;;  %251 = vperm.xlu2 %5699, %v200_v1   ;;  %241 = vperm.xlu1 %5698, %v198_v2   ;;  %v199_v5 = vld [vmem:[%s5878_s29 + $0x18] sm:$0xff]  ;;  %v197_v6 = vld [vmem:[%s5878_s29 + $0x8] sm:$0xff]  ;;  %v5794_v1 = vmov 920167782  }
  0x19   : > { %231 = vperm.xlu0 %5697, %v196_v3   ;;  %v204_v7 = vld [vmem:[%s5878_s29 + $0x40] sm:$0xff]  ;;  %v203_v8 = vld [vmem:[%s5878_s29 + $0x38] sm:$0xff]  ;;  %v202_v9 = vld [vmem:[%s5878_s29 + $0x30] sm:$0xff]  ;;  %v5795_v3 = vmov 1326507024  }
  0x1a   : > { %v207_v10 = vld [vmem:[%s5878_s29 + $0x58] sm:$0xff]  ;;  %v206_v11 = vld [vmem:[%s5878_s29 + $0x50] sm:$0xff]  ;;  %v205_v12 = vld [vmem:[%s5878_s29 + $0x48] sm:$0xff] }
  0x1b   : > { %v210_v13 = vld [vmem:[%s5878_s29 + $0x70] sm:$0xff]  ;;  %v209_v14 = vld [vmem:[%s5878_s29 + $0x68] sm:$0xff]  ;;  %v208_v15 = vld [vmem:[%s5878_s29 + $0x60] sm:$0xff] }
  0x1c   : > { %v213_v16 = vld [vmem:[%s5878_s29 + $0x88] sm:$0xff]  ;;  %v212_v17 = vld [vmem:[%s5878_s29 + $0x80] sm:$0xff]  ;;  %v211_v18 = vld [vmem:[%s5878_s29 + $0x78] sm:$0xff] }
  0x1d   : > { %v216_v19 = vld [vmem:[%s5878_s29 + $0xa0] sm:$0xff]  ;;  %v215_v20 = vld [vmem:[%s5878_s29 + $0x98] sm:$0xff]  ;;  %v214_v21 = vld [vmem:[%s5878_s29 + $0x90] sm:$0xff] }
  0x1e   : > { %v219_v22 = vld [vmem:[%s5878_s29 + $0xb8] sm:$0xff]  ;;  %v218_v23 = vld [vmem:[%s5878_s29 + $0xb0] sm:$0xff]  ;;  %v217_v24 = vld [vmem:[%s5878_s29 + $0xa8] sm:$0xff] }
  0x1f   : > { %v222_v25 = vld [vmem:[%s5878_s29 + $0xd0] sm:$0xff]  ;;  %v221_v26 = vld [vmem:[%s5878_s29 + $0xc8] sm:$0xff]  ;;  %v220_v27 = vld [vmem:[%s5878_s29 + $0xc0] sm:$0xff] }
  0x20   : > { %256 = vperm.xlu2 %5699, %v201_v4   ;;  %246 = vperm.xlu1 %5698, %v199_v5   ;;  %v225_v28 = vld [vmem:[%s5878_s29 + $0xe8] sm:$0xff]  ;;  %v224_v29 = vld [vmem:[%s5878_s29 + $0xe0] sm:$0xff]  ;;  %v223_v30 = vld [vmem:[%s5878_s29 + $0xd8] sm:$0xff] }
  0x21   : > { %236 = vperm.xlu0 %5697, %v197_v6   ;;  %v227_v31 = vld [vmem:[%s5878_s29 + $0xf8] sm:$0xff]  ;;  %v226_v32 = vld [vmem:[%s5878_s29 + $0xf0] sm:$0xff]  ;;  %s9653_s29 = scalar_lea.sflag [#allocation3], %s174_s7 }
  0x28   : > { %271 = vperm.xlu2 %5699, %v204_v7   ;;  %266 = vperm.xlu1 %5698, %v203_v8  }
  0x29   : > { %261 = vperm.xlu0 %5697, %v202_v9  }
  0x30   : > { %286 = vperm.xlu2 %5699, %v207_v10   ;;  %281 = vperm.xlu1 %5698, %v206_v11  }
  0x31   : > { %276 = vperm.xlu0 %5697, %v205_v12  }
  0x38   : > { %301 = vperm.xlu2 %5699, %v210_v13   ;;  %296 = vperm.xlu1 %5698, %v209_v14  }
  0x39   : > { %291 = vperm.xlu0 %5697, %v208_v15  }
  0x40   : > { %316 = vperm.xlu2 %5699, %v213_v16   ;;  %311 = vperm.xlu1 %5698, %v212_v17  }
  0x41   : > { %306 = vperm.xlu0 %5697, %v211_v18  }
  0x48   : > { %331 = vperm.xlu2 %5699, %v216_v19   ;;  %326 = vperm.xlu1 %5698, %v215_v20  }
  0x49   : > { %321 = vperm.xlu0 %5697, %v214_v21  }
  0x50   : > { %346 = vperm.xlu2 %5699, %v219_v22   ;;  %341 = vperm.xlu1 %5698, %v218_v23  }
  0x51   : > { %336 = vperm.xlu0 %5697, %v217_v24  }
  0x58   : > { %361 = vperm.xlu2 %5699, %v222_v25   ;;  %356 = vperm.xlu1 %5698, %v221_v26  }
  0x59   : > { %351 = vperm.xlu0 %5697, %v220_v27  }
  0x60   : > { %376 = vperm.xlu2 %5699, %v225_v28   ;;  %371 = vperm.xlu1 %5698, %v224_v29  }
  0x61   : > { %366 = vperm.xlu0 %5697, %v223_v30  }
  0x68   : > { %386 = vperm.xlu1 %5698, %v227_v31  }
  0x69   : > { %381 = vperm.xlu0 %5697, %v226_v32  }
  0x8a   : > { %v242_v15 = vpop.permute.xlu1 %241 }
  0x8b   : > { %v232_v34 = vpop.permute.xlu0 %231  ;;  %v394_v24 = vmul.f32 %v5915_v33, %v242_v15 }
  0x8c   : > { %v392_v35 = vmul.f32 %v5915_v33, %v232_v34 }
  0x8e   : > { %v5924_v37 = vadd.f32 %v5921_v36, %v392_v35 }
  0x90   : > { %v463_v38 = vand.u32 2139095040, %v5924_v37  ;;  %v460_v43 = vand.u32 2147483647, %v5924_v37 }
  0x92   : > { %v464_v39 = vshrl.u32 %v463_v38, 23  ;;  %v467_v46 = vand.u32 8388607, %v460_v43 }
  0x93   : > { %v237_v40 = vpop.permute.xlu0 %236 }
  0x94   : > { %v5544_v41 = vadd.s32 4294967169, %v464_v39  ;;  %v393_v42 = vmul.f32 %v5915_v33, %v237_v40  ;;  %v468_v50 = vor.u32 8388608, %v467_v46  ;;  %v5976_v40 = vadd.f32 %v5921_v36, %v394_v24 }
  0x96   : > { %v470_v44 = vadd.s32 1, %v5544_v41  ;;  %v5930_v45 = vadd.f32 %v5921_v36, %v393_v42  ;;  %v5951_v13 = vshll.u32 %v468_v50, 8 }
  0x98   : > { %vm471_vm0 = vcmp.gt.s32.totalorder %v470_v44, 0  ;;  %v618_v54 = vand.u32 2139095040, %v5930_v45  ;;  %v509_v21 = vand.u32 65535, %v5951_v13  ;;  %v510_v27 = vshrl.u32 %v5951_v13, 16 }
  0x99   : > { %v472_v47 = vsel %vm471_vm0, %v470_v44, 0 }
  0x9a   : > { %v474_v48 = vand.u32 31, %v472_v47  ;;  %v5934_v51 = vshrl.u32 %v472_v47, 5  ;;  %v619_v10 = vshrl.u32 %v618_v54, 23 }
  0x9c   : > { %v475_v49 = vsub.s32 32, %v474_v48  ;;  %v477_v53 = vshll.u32 %v5790_v52, %v474_v48  ;;  %v480_v57 = vshll.u32 %v5791_v55, %v474_v48  ;;  %v483_v60 = vshll.u32 %v5792_v58, %v474_v48 }
  0x9d   : > { %v486_v63 = vshll.u32 %v5793_v61, %v474_v48  ;;  %v489_v7 = vshll.u32 %v5794_v1, %v474_v48  ;;  %vm492_vm1 = vcmp.lt.s32.totalorder %v5934_v51, 1  ;;  %vm495_vm2 = vcmp.lt.s32.totalorder %v5934_v51, 4 }
  0x9e   : > { %v478_v56 = vshrl.u32 %v5791_v55, %v475_v49  ;;  %v481_v59 = vshrl.u32 %v5792_v58, %v475_v49  ;;  %v484_v62 = vshrl.u32 %v5793_v61, %v475_v49  ;;  %v487_v2 = vshrl.u32 %v5794_v1, %v475_v49 }
  0x9f   : > { %v490_v4 = vshrl.u32 %v5795_v3, %v475_v49  ;;  %vm494_vm3 = vcmp.lt.s32.totalorder %v5934_v51, 3  ;;  %vm493_vm4 = vcmp.lt.s32.totalorder %v5934_v51, 2  ;;  %v5547_v19 = vadd.s32 4294967169, %v619_v10 }
  0xa0   : > { %v479_v5 = vor.u32 %v478_v56, %v477_v53  ;;  %v482_v6 = vor.u32 %v481_v59, %v480_v57  ;;  %v485_v8 = vor.u32 %v484_v62, %v483_v60  ;;  %v488_v9 = vor.u32 %v487_v2, %v486_v63 }
  0xa1   : > { %v491_v11 = vor.u32 %v490_v4, %v489_v7  ;;  %v625_v32 = vadd.s32 1, %v5547_v19  ;;  %v476_v34 = vshrl.u32 %v5790_v52, %v475_v49  ;;  %v615_v63 = vand.u32 2147483647, %v5930_v45 }
  0xa2   : > { %v500_v12 = vsel %vm492_vm1, %v479_v5, %v482_v6  ;;  %v501_v14 = vsel %vm495_vm2, %v488_v9, 920167782  ;;  %v504_v18 = vsel %vm492_vm1, %v482_v6, %v485_v8  ;;  %v497_v29 = vsel %vm495_vm2, %v485_v8, 2102212464 }
  0xa3   : > { %v502_v16 = vsel %vm494_vm3, %v485_v8, %v501_v14  ;;  %v505_v20 = vsel %vm495_vm2, %v491_v11, 1326507024  ;;  %v496_v42 = vsel %vm492_vm1, %v476_v34, %v479_v5  ;;  %v498_v44 = vsel %vm494_vm3, %v482_v6, %v497_v29 }
  0xa4   : > { %v503_v17 = vsel %vm493_vm4, %v500_v12, %v502_v16  ;;  %v506_v25 = vsel %vm494_vm3, %v488_v9, %v505_v20  ;;  %vm626_vm6 = vcmp.gt.s32.totalorder %v625_v32, 0  ;;  %v773_v5 = vand.u32 2139095040, %v5976_v40 }
  0xa5   : > { %v533_v22 = vand.u32 65535, %v503_v17  ;;  %v534_v23 = vshrl.u32 %v503_v17, 16  ;;  %v507_v26 = vsel %vm493_vm4, %v504_v18, %v506_v25  ;;  %v627_v2 = vsel %vm626_vm6, %v625_v32, 0 }
  0xa6   : > { %v511_v30 = vand.u32 65535, %v507_v26  ;;  %v512_v31 = vshrl.u32 %v507_v26, 16  ;;  %v499_v6 = vsel %vm493_vm4, %v496_v42, %v498_v44  ;;  %v629_v9 = vand.u32 31, %v627_v2 }
  0xa7   : > { %v536_v28 = vmul.u32 %v534_v23, %v509_v21  ;;  %v535_v35 = vmul.u32 %v533_v22, %v509_v21  ;;  %v537_v38 = vmul.u32 %v533_v22, %v510_v27  ;;  %v538_v50 = vmul.u32 %v534_v23, %v510_v27 }
  0xa8   : > { %v514_v41 = vmul.u32 %v512_v31, %v509_v21  ;;  %v515_v46 = vmul.u32 %v511_v30, %v510_v27  ;;  %v513_v47 = vmul.u32 %v511_v30, %v509_v21  ;;  %v516_v49 = vmul.u32 %v512_v31, %v510_v27 }
  0xa9   : > { %v539_v39 = vshll.u32 %v536_v28, 16  ;;  %v541_v54 = vshll.u32 %v537_v38, 16  ;;  %v540_v12 = vshrl.u32 %v536_v28, 16  ;;  %v622_v15 = vand.u32 8388607, %v615_v63 }
  0xaa   : > { %v517_v48 = vshll.u32 %v514_v41, 16  ;;  %v519_v53 = vshll.u32 %v515_v46, 16  ;;  %v518_v10 = vshrl.u32 %v514_v41, 16  ;;  %v5992_v16 = vsub.s32 32, %v629_v9 }
  0xab   : > { %vm543_vm5 = vc.u32 %v535_v35, %v539_v39  ;;  %v545_v59 = vadd.s32 %v539_v39, %v535_v35  ;;  %v520_v17 = vshrl.u32 %v515_v46, 16  ;;  %v542_v19 = vshrl.u32 %v537_v38, 16 }
  0xac   : > { %v544_v56 = vsel %vm543_vm5, 1, %v5789_v0  ;;  %vm521_vm7 = vc.u32 %v513_v47, %v517_v48  ;;  %v523_v57 = vadd.s32 %v517_v48, %v513_v47  ;;  %v553_v21 = vmul.u32 %v5951_v13, %v499_v6 }
  0xad   : > { %v546_v60 = vadd.s32 %v544_v56, %v538_v50  ;;  %v522_v62 = vsel %vm521_vm7, 1, %v5789_v0  ;;  %vm547_vm9 = vc.u32 %v545_v59, %v541_v54  ;;  %v5994_v51 = vadd.s32 %v545_v59, %v541_v54 }
  0xae   : > { %v524_v4 = vadd.s32 %v522_v62, %v516_v49  ;;  %vm525_vm8 = vc.u32 %v523_v57, %v519_v53  ;;  %v548_v8 = vsel %vm547_vm9, 1, %v5789_v0  ;;  %v633_v22 = vshrl.u32 %v5791_v55, %v5992_v16 }
  0xaf   : > { %v526_v7 = vsel %vm525_vm8, 1, %v5789_v0  ;;  %v550_v14 = vadd.s32 %v548_v8, %v546_v60  ;;  %v774_v23 = vshrl.u32 %v773_v5, 23  ;;  %v636_v26 = vshrl.u32 %v5792_v58, %v5992_v16 }
  0xb0   : > { %v528_v11 = vadd.s32 %v526_v7, %v524_v4  ;;  %v639_v27 = vshrl.u32 %v5793_v61, %v5992_v16  ;;  %v623_v28 = vor.u32 8388608, %v622_v15  ;;  %v632_v29 = vshll.u32 %v5790_v52, %v629_v9 }
  0xb1   : > { %v551_v20 = vadd.s32 %v550_v14, %v540_v12  ;;  %v635_v30 = vshll.u32 %v5791_v55, %v629_v9  ;;  %v642_v13 = vshrl.u32 %v5794_v1, %v5992_v16  ;;  %v638_v32 = vshll.u32 %v5792_v58, %v629_v9 }
  0xb2   : > { %v529_v18 = vadd.s32 %v528_v11, %v518_v10  ;;  %v641_v34 = vshll.u32 %v5793_v61, %v629_v9  ;;  %v6013_v35 = vshrl.u32 %v627_v2, 5  ;;  %v634_v38 = vor.u32 %v633_v22, %v632_v29 }
  0xb3   : > { %v552_v25 = vadd.s32 %v551_v20, %v542_v19  ;;  %v644_v39 = vshll.u32 %v5794_v1, %v629_v9  ;;  %v645_v41 = vshrl.u32 %v5795_v3, %v5992_v16  ;;  %v637_v44 = vor.u32 %v636_v26, %v635_v30 }
  0xb4   : > { %v5999_v24 = vadd.s32 %v529_v18, %v520_v17  ;;  %v640_v46 = vor.u32 %v639_v27, %v638_v32  ;;  %v643_v47 = vor.u32 %v642_v13, %v641_v34  ;;  %v6018_v49 = vshll.u32 %v623_v28, 8 }
  0xb5   : > { %v556_v31 = vadd.s32 1, %v552_v25  ;;  %v646_v50 = vor.u32 %v645_v41, %v644_v39  ;;  %v5550_v53 = vadd.s32 4294967169, %v774_v23  ;;  %vm647_vm11 = vcmp.lt.s32.totalorder %v6013_v35, 1 }
  0xb6   : > { %vm555_vm10 = vc.u32 %v5999_v24, %v5994_v51  ;;  %vm649_vm12 = vcmp.lt.s32.totalorder %v6013_v35, 3  ;;  %vm650_vm13 = vcmp.lt.s32.totalorder %v6013_v35, 4  ;;  %v655_v56 = vsel %vm647_vm11, %v634_v38, %v637_v44 }
  0xb7   : > { %v557_v42 = vsel %vm555_vm10, %v556_v31, %v552_v25  ;;  %v656_v57 = vsel %vm650_vm13, %v643_v47, 920167782  ;;  %v659_v59 = vsel %vm647_vm11, %v637_v44, %v640_v46  ;;  %v660_v60 = vsel %vm650_vm13, %v646_v50, 1326507024 }
  0xb8   : > { %v558_v48 = vadd.s32 %v557_v42, %v553_v21  ;;  %vm648_vm14 = vcmp.lt.s32.totalorder %v6013_v35, 2  ;;  %v657_v2 = vsel %vm649_vm12, %v640_v46, %v656_v57  ;;  %v661_v4 = vsel %vm649_vm12, %v643_v47, %v660_v60 }
  0xb9   : > { %v662_v5 = vsel %vm648_vm14, %v659_v59, %v661_v4  ;;  %v658_v7 = vsel %vm648_vm14, %v655_v56, %v657_v2  ;;  %v664_v10 = vand.u32 65535, %v6018_v49  ;;  %v665_v11 = vshrl.u32 %v6018_v49, 16 }
  0xba   : > { %v559_v54 = vadd.s32 536870912, %v558_v48  ;;  %v666_v8 = vand.u32 65535, %v662_v5  ;;  %v667_v9 = vshrl.u32 %v662_v5, 16  ;;  %v780_v12 = vadd.s32 1, %v5550_v53 }
  0xbb   : > { %v689_v18 = vshrl.u32 %v658_v7, 16  ;;  %v688_v26 = vand.u32 65535, %v658_v7  ;;  %v631_v30 = vshrl.u32 %v5790_v52, %v5992_v16  ;;  %v652_v32 = vsel %vm650_vm13, %v640_v46, 2102212464 }
  0xbc   : > { %v6031_v62 = vshrl.u32 %v559_v54, 30  ;;  %v669_v15 = vmul.u32 %v667_v9, %v664_v10  ;;  %v670_v17 = vmul.u32 %v666_v8, %v665_v11  ;;  %v668_v20 = vmul.u32 %v666_v8, %v664_v10 }
  0xbd   : > { %vm781_vm0 = vcmp.gt.s32.totalorder %v780_v12, 0  ;;  %v671_v23 = vmul.u32 %v667_v9, %v665_v11  ;;  %v691_v29 = vmul.u32 %v689_v18, %v664_v10  ;;  %v554_v39 = vadd.s32 %v5994_v51, %v5999_v24 }
  0xbe   : > { %v561_v6 = vshll.u32 %v6031_v62, 30  ;;  %v672_v21 = vshll.u32 %v669_v15, 16  ;;  %v674_v25 = vshll.u32 %v670_v17, 16  ;;  %v692_v42 = vmul.u32 %v688_v26, %v665_v11 }
  0xbf   : > { %v782_v47 = vsel %vm781_vm0, %v780_v12, 0  ;;  %v651_v16 = vsel %vm647_vm11, %v631_v30, %v634_v38  ;;  %v694_v50 = vshll.u32 %v691_v29, 16  ;;  %v584_v54 = vsub.s32 4, %v6031_v62 }
  0xc0   : > { %v562_v14 = vsub.s32 %v558_v48, %v561_v6  ;;  %vm676_vm1 = vc.u32 %v668_v20, %v672_v21  ;;  %v678_v28 = vadd.s32 %v672_v21, %v668_v20  ;;  %v653_v46 = vsel %vm649_vm12, %v637_v44, %v652_v32  ;;  %v252_v44 = vpop.permute.xlu2 %251 }
  0xc1   : > { %v677_v13 = vsel %vm676_vm1, 1, %v5789_v0  ;;  %v690_v56 = vmul.u32 %v688_v26, %v664_v10  ;;  %v673_v24 = vshrl.u32 %v669_v15, 16  ;;  %v693_v59 = vmul.u32 %v689_v18, %v665_v11 }
  0xc2   : > { %vm563_vm15 = vcmp.lt.s32.totalorder %v562_v14, 0  ;;  %v564_v19 = vsub.s32 0, %v562_v14  ;;  %v679_v34 = vadd.s32 %v677_v13, %v671_v23  ;;  %vm680_vm2 = vc.u32 %v678_v28, %v674_v25 }
  0xc3   : > { %v681_v41 = vsel %vm680_vm2, 1, %v5789_v0  ;;  %v696_v2 = vshll.u32 %v692_v42, 16  ;;  %vm698_vm4 = vc.u32 %v690_v56, %v694_v50  ;;  %v700_v4 = vadd.s32 %v694_v50, %v690_v56 }
  0xc4   : > { %v565_v22 = vsel %vm563_vm15, %v564_v19, %v562_v14  ;;  %v683_v48 = vadd.s32 %v681_v41, %v679_v34  ;;  %v699_v7 = vsel %vm698_vm4, 1, %v5789_v0  ;;  %vm462_vm5 = vcmp.lt.s32.totalorder %v5924_v37, 0 }
  0xc5   : > { %v566_v27 = vclz %v565_v22  ;;  %v701_v8 = vadd.s32 %v699_v7, %v693_v59  ;;  %vm702_vm6 = vc.u32 %v700_v4, %v696_v2  ;;  %v784_v9 = vand.u32 31, %v782_v47 }
  0xc6   : > { %v684_v38 = vadd.s32 %v683_v48, %v673_v24  ;;  %v675_v19 = vshrl.u32 %v670_v17, 16  ;;  %v703_v11 = vsel %vm702_vm6, 1, %v5789_v0  ;;  %v695_v15 = vshrl.u32 %v691_v29, 16 }
  0xc7   : > { %v5545_v31 = vadd.s32 4294967294, %v566_v27  ;;  %v705_v18 = vadd.s32 %v703_v11, %v701_v8  ;;  %v770_v20 = vand.u32 2147483647, %v5976_v40  ;;  %v585_v22 = vsel %vm462_vm5, %v584_v54, %v6031_v62 }
  0xc8   : > { %v6068_v23 = vadd.s32 %v684_v38, %v675_v19  ;;  %v6070_v25 = vsub.s32 32, %v784_v9  ;;  %v396_v17 = vmul.f32 %v5915_v33, %v252_v44  ;;  %v697_v26 = vshrl.u32 %v692_v42, 16 }
  0xc9   : > { %vm5546_vm3 = vcmp.lt.s32.totalorder %v5545_v31, 0  ;;  %v706_v27 = vadd.s32 %v705_v18, %v695_v15  ;;  %vm6075_vm7 = vcmp.le.f32.partialorder %v460_v43, 0.7853982  ;;  %v6079_v30 = vadd.s32 %v700_v4, %v696_v2 }
  0xca   : > { %v569_v53 = vsel %vm5546_vm3, 0, %v5545_v31  ;;  %v587_v62 = vsel %vm6075_vm7, 0, %v585_v22  ;;  %v777_v32 = vand.u32 8388607, %v770_v20  ;;  %v791_v43 = vshrl.u32 %v5792_v58, %v6070_v25 }
  0xcb   : > { %v570_v57 = vsub.s32 32, %v569_v53  ;;  %v574_v51 = vsub.s32 4294967266, %v569_v53  ;;  %v571_v60 = vshll.u32 %v562_v14, %v569_v53  ;;  %v654_v14 = vsel %vm648_vm14, %v651_v16, %v653_v46 }
  0xcc   : > { %v707_v13 = vadd.s32 %v706_v27, %v697_v26  ;;  %v708_v31 = vmul.u32 %v6018_v49, %v654_v14  ;;  %vm710_vm8 = vc.u32 %v6068_v23, %v6079_v30  ;;  %v797_v42 = vshrl.u32 %v5794_v1, %v6070_v25 }
  0xcd   : > { %v572_v5 = vshrl.u32 %v554_v39, %v570_v57  ;;  %v575_v6 = vadd.s32 127, %v574_v51  ;;  %v794_v39 = vshrl.u32 %v5793_v61, %v6070_v25  ;;  %v799_v16 = vshll.u32 %v5794_v1, %v784_v9 }
  0xce   : > { %v711_v41 = vadd.s32 1, %v707_v13  ;;  %v800_v49 = vshrl.u32 %v5795_v3, %v6070_v25  ;;  %v6097_v50 = vshrl.u32 %v782_v47, 5  ;;  %v790_v53 = vshll.u32 %v5791_v55, %v784_v9 }
  0xcf   : > { %v573_v10 = vor.u32 %v572_v5, %v571_v60  ;;  %v576_v12 = vshll.u32 %v575_v6, 23  ;;  %v793_v54 = vshll.u32 %v5792_v58, %v784_v9  ;;  %v788_v56 = vshrl.u32 %v5791_v55, %v6070_v25 }
  0xd0   : > { %v712_v46 = vsel %vm710_vm8, %v711_v41, %v707_v13  ;;  %v796_v57 = vshll.u32 %v5793_v61, %v784_v9  ;;  %v801_v51 = vor.u32 %v800_v49, %v799_v16  ;;  %v6106_v60 = vor.u32 %v791_v43, %v790_v53 }
  0xd1   : > { %v577_v21 = vor.u32 4788187, %v576_v12  ;;  %v580_v29 = vcvt.s32.f32 %v573_v10  ;;  %v713_v59 = vadd.s32 %v712_v46, %v708_v31  ;;  %v6108_v2 = vor.u32 %v794_v39, %v793_v54  ;;  %v247_v12 = vpop.permute.xlu1 %246 }
  0xd2   : > { %v778_v4 = vor.u32 8388608, %v777_v32  ;;  %v787_v5 = vshll.u32 %v5790_v52, %v784_v9  ;;  %v798_v6 = vor.u32 %v797_v42, %v796_v57  ;;  %v604_v7 = vadd.s32 3, %v587_v62 }
  0xd3   : > { %v578_v28 = vand.u32 2147483647, %v577_v21  ;;  %v714_v8 = vadd.s32 536870912, %v713_v59  ;;  %vm805_vm9 = vcmp.lt.s32.totalorder %v6097_v50, 4  ;;  %vm802_vm10 = vcmp.lt.s32.totalorder %v6097_v50, 1 }
  0xd4   : > { %v6119_v44 = vor.u32 %v788_v56, %v787_v5  ;;  %vm804_vm11 = vcmp.lt.s32.totalorder %v6097_v50, 3  ;;  %v815_v10 = vsel %vm805_vm9, %v801_v51, 1326507024  ;;  %v814_v14 = vsel %vm802_vm10, %v6106_v60, %v6108_v2 }
  0xd5   : > { %v581_v34 = vmul.f32 %v580_v29, %v578_v28  ;;  %v6125_v11 = vshrl.u32 %v714_v8, 30  ;;  %v811_v15 = vsel %vm805_vm9, %v798_v6, 920167782  ;;  %v816_v18 = vsel %vm804_vm11, %v798_v6, %v815_v10 }
  0xd6   : > { %v6135_v21 = vshll.u32 %v778_v4, 8  ;;  %vm803_vm12 = vcmp.lt.s32.totalorder %v6097_v50, 2  ;;  %v395_v35 = vmul.f32 %v5915_v33, %v247_v12  ;;  %v6141_v28 = vadd.f32 %v5921_v36, %v396_v17 }
  0xd7   : > { %v582_v48 = vxor.u32 2147483648, %v581_v34  ;;  %v716_v27 = vshll.u32 %v6125_v11, 30  ;;  %v605_v29 = vand.u32 3, %v604_v7  ;;  %v817_v62 = vsel %vm803_vm12, %v814_v14, %v816_v18 }
  0xd8   : > { %v812_v33 = vsel %vm804_vm11, %v6108_v2, %v811_v15  ;;  %v819_v17 = vand.u32 65535, %v6135_v21  ;;  %v821_v43 = vand.u32 65535, %v817_v62  ;;  %v822_v39 = vshrl.u32 %v817_v62, 16 }
  0xd9   : > { %v583_v24 = vsel %vm462_vm5, %v582_v48, %v581_v34  ;;  %v6145_v32 = vsub.s32 %v713_v59, %v716_v27  ;;  %v810_v34 = vsel %vm802_vm10, %v6119_v44, %v6106_v60  ;;  %v6158_v49 = vadd.f32 %v5921_v36, %v395_v35 }
  0xda   : > { %v6113_v47 = vsel %vm6075_vm7, %v5924_v37, %v583_v24  ;;  %vm607_vm14 = vcmp.eq.s32.totalorder %v605_v29, 0  ;;  %v820_v48 = vshrl.u32 %v6135_v21, 16  ;;  %v6161_v53 = vmul.u32 %v822_v39, %v819_v17 }
  0xdb   : > { %v588_v38 = vmul.f32 %v6113_v47, %v6113_v47  ;;  %vm718_vm13 = vcmp.lt.s32.totalorder %v6145_v32, 0  ;;  %v719_v16 = vsub.s32 0, %v6145_v32  ;;  %vm606_vm15 = vcmp.lt.s32.totalorder %v605_v29, 2 }
  0xdc   : > { %v813_v57 = vsel %vm803_vm12, %v810_v34, %v812_v33  ;;  %vm603_vm0 = vweird.f32 %v5924_v37  ;;  %vm610_vm1 = vcmp.eq.s32.totalorder %v605_v29, 2  ;;  %v6167_v36 = vmul.u32 %v821_v43, %v820_v48 }
  0xdd   : > { %v589_v19 = vmul.f32 -0.001358992, %v588_v38  ;;  %v596_v9 = vmul.f32 -0.00019511016, %v588_v38  ;;  %v720_v56 = vsel %vm718_vm13, %v719_v16, %v6145_v32  ;;  %v827_v24 = vshll.u32 %v6161_v53, 16 }
  0xde   : > { %v721_v51 = vclz %v720_v56  ;;  %v709_v5 = vadd.s32 %v6079_v30, %v6068_v23  ;;  %v823_v6 = vmul.u32 %v821_v43, %v819_v17  ;;  %v739_v7 = vsub.s32 4, %v6125_v11 }
  0xdf   : > { %v590_v22 = vadd.f32 0.041655596, %v589_v19  ;;  %v597_v26 = vadd.f32 0.008332121, %v596_v9  ;;  %v826_v8 = vmul.u32 %v822_v39, %v820_v48  ;;  %v843_v10 = vand.u32 65535, %v813_v57 }
  0xe0   : > { %vm617_vm2 = vcmp.lt.s32.totalorder %v5930_v45, 0  ;;  %vm831_vm3 = vc.u32 %v823_v6, %v827_v24  ;;  %v833_v9 = vadd.s32 %v827_v24, %v823_v6  ;;  %v829_v14 = vshll.u32 %v6167_v36, 16 }
  0xe1   : > { %v591_v13 = vmul.f32 %v590_v22, %v588_v38  ;;  %v598_v31 = vmul.f32 %v597_v26, %v588_v38  ;;  %v832_v23 = vsel %vm831_vm3, 1, %v5789_v0  ;;  %v844_v30 = vshrl.u32 %v813_v57, 16 }
  0xe2   : > { %v834_v26 = vadd.s32 %v832_v23, %v826_v8  ;;  %vm835_vm5 = vc.u32 %v833_v9, %v829_v14  ;;  %vm6185_vm6 = vcmp.le.f32.partialorder %v615_v63, 0.7853982  ;;  %v847_v33 = vmul.u32 %v843_v10, %v820_v48 }
  0xe3   : > { %v592_v41 = vadd.f32 -0.4999988, %v591_v13  ;;  %v599_v42 = vadd.f32 -0.16666654, %v598_v31  ;;  %v836_v31 = vsel %vm835_vm5, 1, %v5789_v0  ;;  %v846_v34 = vmul.u32 %v844_v30, %v819_v17 }
  0xe4   : > { %v786_v16 = vshrl.u32 %v5790_v52, %v6070_v25  ;;  %v807_v57 = vsel %vm805_vm9, %v6108_v2, 2102212464  ;;  %v828_v29 = vshrl.u32 %v6161_v53, 16  ;;  %v851_v37 = vshll.u32 %v847_v33, 16 }
  0xe5   : > { %v593_v54 = vmul.f32 %v592_v41, %v588_v38  ;;  %v600_v46 = vmul.f32 %v599_v42, %v588_v38  ;;  %v5548_v38 = vadd.s32 4294967294, %v721_v51  ;;  %v838_v42 = vadd.s32 %v836_v31, %v834_v26 }
  0xe6   : > { %v849_v63 = vshll.u32 %v846_v34, 16  ;;  %v848_v51 = vmul.u32 %v844_v30, %v820_v48  ;;  %v740_v25 = vsel %vm617_vm2, %v739_v7, %v6125_v11  ;;  %v830_v2 = vshrl.u32 %v6167_v36, 16 }
  0xe7   : > { %v594_v59 = vadd.f32 1.0, %v593_v54  ;;  %v601_v4 = vadd.f32 1.0, %v600_v46  ;;  %vm5549_vm4 = vcmp.lt.s32.totalorder %v5548_v38, 0  ;;  %v845_v54 = vmul.u32 %v843_v10, %v819_v17 }
  0xe8   : > { %v724_v22 = vsel %vm5549_vm4, 0, %v5548_v38  ;;  %v839_v17 = vadd.s32 %v838_v42, %v828_v29  ;;  %v925_v53 = vand.u32 2147483647, %v6158_v49  ;;  %v928_v8 = vand.u32 2139095040, %v6158_v49 }
  0xe9   : > { %v602_v12 = vmul.f32 %v601_v4, %v6113_v47  ;;  %v611_v19 = vxor.u32 2147483648, %v594_v59  ;;  %v725_v27 = vsub.s32 32, %v724_v22  ;;  %v726_v47 = vshll.u32 %v6145_v32, %v724_v22 }
  0xea   : > { %v729_v35 = vsub.s32 4294967266, %v724_v22  ;;  %vm853_vm7 = vc.u32 %v845_v54, %v849_v63  ;;  %v855_v24 = vadd.s32 %v849_v63, %v845_v54  ;;  %v806_v10 = vsel %vm802_vm10, %v786_v16, %v6119_v44 }
  0xeb   : > { %v608_v15 = vxor.u32 2147483648, %v602_v12  ;;  %v612_v18 = vsel %vm610_vm1, %v611_v19, %v602_v12  ;;  %v727_v39 = vshrl.u32 %v709_v5, %v725_v27  ;;  %v854_v4 = vsel %vm853_vm7, 1, %v5789_v0 }
  0xec   : > { %v730_v41 = vadd.s32 127, %v729_v35  ;;  %v856_v5 = vadd.s32 %v854_v4, %v848_v51  ;;  %vm857_vm8 = vc.u32 %v855_v24, %v851_v37  ;;  %v808_v11 = vsel %vm804_vm11, %v6106_v60, %v807_v57 }
  0xed   : > { %v609_v62 = vsel %vm607_vm14, %v594_v59, %v608_v15  ;;  %v728_v46 = vor.u32 %v727_v39, %v726_v47  ;;  %v858_v48 = vsel %vm857_vm8, 1, %v5789_v0  ;;  %v850_v7 = vshrl.u32 %v846_v34, 16 }
  0xee   : > { %v613_v43 = vsel %vm606_vm15, %v609_v62, %v612_v18  ;;  %v731_v56 = vshll.u32 %v730_v41, 23  ;;  %v860_v36 = vadd.s32 %v858_v48, %v856_v5  ;;  %v742_v19 = vsel %vm6185_vm6, 0, %v740_v25 }
  0xef   : > { %v614_v32 = vsel %vm603_vm0, nan, %v613_v43  ;;  %v735_v38 = vcvt.s32.f32 %v728_v46  ;;  %v840_v9 = vadd.s32 %v839_v17, %v830_v2  ;;  %v929_v14 = vshrl.u32 %v928_v8, 23 }
  0xf0   : > { %5420 = vst [vmem:[%s6199_s9] sm:$0xff] %v614_v32  ;;  %v732_v59 = vor.u32 4788187, %v731_v56  ;;  %v852_v23 = vshrl.u32 %v847_v33, 16  ;;  %v861_v30 = vadd.s32 %v860_v36, %v850_v7  ;;  %v932_v15 = vand.u32 8388607, %v925_v53 }
  0xf1   : > { %v1083_v18 = vand.u32 2139095040, %v6141_v28  ;;  %v859_v22 = vadd.s32 %v855_v24, %v851_v37  ;;  %v5553_v26 = vadd.s32 4294967169, %v929_v14  ;;  %v809_v60 = vsel %vm803_vm12, %v806_v10, %v808_v11 }
  0xf2   : > { %v733_v6 = vand.u32 2147483647, %v732_v59  ;;  %v862_v27 = vadd.s32 %v861_v30, %v852_v23  ;;  %v759_v35 = vadd.s32 3, %v742_v19  ;;  %v933_v33 = vor.u32 8388608, %v932_v15 }
  0xf3   : > { %vm865_vm9 = vc.u32 %v840_v9, %v859_v22  ;;  %v935_v62 = vadd.s32 1, %v5553_v26  ;;  %v1084_v43 = vshrl.u32 %v1083_v18, 23  ;;  %v863_v41 = vmul.u32 %v6135_v21, %v809_v60 }
  0xf4   : > { %v736_v12 = vmul.f32 %v735_v38, %v733_v6  ;;  %v866_v34 = vadd.s32 1, %v862_v27  ;;  %v1080_v63 = vand.u32 2147483647, %v6141_v28  ;;  %v6230_v46 = vand.u32 3, %v759_v35 }
  0xf5   : > { %vm936_vm10 = vcmp.gt.s32.totalorder %v935_v62, 0  ;;  %v6232_v57 = vshll.u32 %v933_v33, 8  ;;  %v5556_v13 = vadd.s32 4294967169, %v1084_v43  ;;  %v6236_v21 = vadd.s32 %v859_v22, %v840_v9 }
  0xf6   : > { %v737_v44 = vxor.u32 2147483648, %v736_v12  ;;  %v867_v50 = vsel %vm865_vm9, %v866_v34, %v862_v27  ;;  %v937_v42 = vsel %vm936_vm10, %v935_v62, 0  ;;  %v6242_v2 = vand.u32 8388607, %v1080_v63 }
  0xf7   : > { %v868_v54 = vadd.s32 %v867_v50, %v863_v41  ;;  %v939_v56 = vand.u32 31, %v937_v42  ;;  %v6234_v24 = vshrl.u32 %v937_v42, 5  ;;  %v6246_v6 = vand.u32 65535, %v6232_v57 }
  0xf8   : > { %v738_v47 = vsel %vm617_vm2, %v737_v44, %v736_v12  ;;  %v6249_v38 = vshrl.u32 %v6232_v57, 16  ;;  %v6251_v48 = vadd.s32 1, %v5556_v13  ;;  %vm765_vm11 = vcmp.eq.s32.totalorder %v6230_v46, 2 }
  0xf9   : > { %v741_v31 = vsel %vm6185_vm6, %v5930_v45, %v738_v47  ;;  %v869_v37 = vadd.s32 536870912, %v868_v54  ;;  %v940_v59 = vsub.s32 32, %v939_v56  ;;  %vm957_vm12 = vcmp.lt.s32.totalorder %v6234_v24, 1 }
  0xfa   : > { %v743_v39 = vmul.f32 %v741_v31, %v741_v31  ;;  %vm762_vm13 = vcmp.eq.s32.totalorder %v6230_v46, 0  ;;  %v948_v12 = vshll.u32 %v5792_v58, %v939_v56  ;;  %vm761_vm14 = vcmp.lt.s32.totalorder %v6230_v46, 2 }
  0xfb   : > { %v6238_v4 = vshrl.u32 %v869_v37, 30  ;;  %v949_v5 = vshrl.u32 %v5793_v61, %v940_v59  ;;  %v943_v7 = vshrl.u32 %v5791_v55, %v940_v59  ;;  %v946_v36 = vshrl.u32 %v5792_v58, %v940_v59 }
  0xfc   : > { %v744_v32 = vmul.f32 -0.001358992, %v743_v39  ;;  %v751_v16 = vmul.f32 -0.00019511016, %v743_v39  ;;  %v952_v19 = vshrl.u32 %v5794_v1, %v940_v59  ;;  %v942_v30 = vshll.u32 %v5790_v52, %v939_v56 }
  0xfd   : > { %v871_v11 = vshll.u32 %v6238_v4, 30  ;;  %vm758_vm15 = vweird.f32 %v5930_v45  ;;  %v945_v15 = vshll.u32 %v5791_v55, %v939_v56  ;;  %v950_v18 = vor.u32 %v949_v5, %v948_v12 }
  0xfe   : > { %v745_v29 = vadd.f32 0.041655596, %v744_v32  ;;  %v752_v51 = vadd.f32 0.008332121, %v751_v16  ;;  %v951_v44 = vshll.u32 %v5793_v61, %v939_v56  ;;  %v955_v22 = vshrl.u32 %v5795_v3, %v940_v59 }
  0xff   : > { %v6262_v23 = vsub.s32 %v868_v54, %v871_v11  ;;  %vm772_vm0 = vcmp.lt.s32.totalorder %v5976_v40, 0  ;;  %v944_v47 = vor.u32 %v943_v7, %v942_v30  ;;  %v947_v35 = vor.u32 %v946_v36, %v945_v15 }
 0x100   : > { %v746_v25 = vmul.f32 %v745_v29, %v743_v39  ;;  %v753_v17 = vmul.f32 %v752_v51, %v743_v39  ;;  %v953_v62 = vor.u32 %v952_v19, %v951_v44  ;;  %v954_v34 = vshll.u32 %v5794_v1, %v939_v56 }
 0x101   : > { %vm873_vm1 = vcmp.lt.s32.totalorder %v6262_v23, 0  ;;  %v874_v27 = vsub.s32 0, %v6262_v23  ;;  %vm960_vm2 = vcmp.lt.s32.totalorder %v6234_v24, 4  ;;  %vm6277_vm3 = vcmp.le.f32.partialorder %v770_v20, 0.7853982 }
 0x102   : > { %v747_v8 = vadd.f32 -0.4999988, %v746_v25  ;;  %v754_v10 = vadd.f32 -0.16666654, %v753_v17  ;;  %v941_v42 = vshrl.u32 %v5790_v52, %v940_v59  ;;  %v956_v32 = vor.u32 %v955_v22, %v954_v34 }
 0x103   : > { %v962_v16 = vsel %vm960_vm2, %v950_v18, 2102212464  ;;  %vm1091_vm4 = vcmp.gt.s32.totalorder %v6251_v48, 0  ;;  %v894_v54 = vsub.s32 4, %v6238_v4  ;;  %vm958_vm5 = vcmp.lt.s32.totalorder %v6234_v24, 2 }
 0x104   : > { %v748_v9 = vmul.f32 %v747_v8, %v743_v39  ;;  %v755_v14 = vmul.f32 %v754_v10, %v743_v39  ;;  %v875_v39 = vsel %vm873_vm1, %v874_v27, %v6262_v23  ;;  %vm959_vm6 = vcmp.lt.s32.totalorder %v6234_v24, 3 }
 0x105   : > { %v876_v50 = vclz %v875_v39  ;;  %v961_v13 = vsel %vm957_vm12, %v941_v42, %v944_v47  ;;  %v965_v29 = vsel %vm957_vm12, %v944_v47, %v947_v35  ;;  %v963_v37 = vsel %vm959_vm6, %v947_v35, %v962_v16 }
 0x106   : > { %v749_v26 = vadd.f32 1.0, %v748_v9  ;;  %v756_v60 = vadd.f32 1.0, %v755_v14  ;;  %v966_v59 = vsel %vm960_vm2, %v953_v62, 920167782  ;;  %v969_v25 = vsel %vm957_vm12, %v947_v35, %v950_v18 }
 0x107   : > { %v5551_v56 = vadd.s32 4294967294, %v876_v50  ;;  %v967_v5 = vsel %vm959_vm6, %v950_v18, %v966_v59  ;;  %v970_v8 = vsel %vm960_vm2, %v956_v32, 1326507024  ;;  %v6317_v19 = vsel %vm772_vm0, %v894_v54, %v6238_v4 }
 0x108   : > { %v757_v33 = vmul.f32 %v756_v60, %v741_v31  ;;  %v766_v43 = vxor.u32 2147483648, %v749_v26  ;;  %v968_v7 = vsel %vm958_vm5, %v965_v29, %v967_v5  ;;  %v971_v36 = vsel %vm959_vm6, %v953_v62, %v970_v8 }
 0x109   : > { %vm5552_vm7 = vcmp.lt.s32.totalorder %v5551_v56, 0  ;;  %v972_v9 = vsel %vm958_vm5, %v969_v25, %v971_v36  ;;  %v6324_v45 = vsel %vm958_vm5, %v961_v13, %v963_v37  ;;  %v999_v15 = vshrl.u32 %v968_v7, 16 }
 0x10a   : > { %v763_v31 = vxor.u32 2147483648, %v757_v33  ;;  %v767_v20 = vsel %vm765_vm11, %v766_v43, %v757_v33  ;;  %v879_v11 = vsel %vm5552_vm7, 0, %v5551_v56  ;;  %v976_v14 = vand.u32 65535, %v972_v9 }
 0x10b   : > { %v880_v12 = vsub.s32 32, %v879_v11  ;;  %v884_v46 = vsub.s32 4294967266, %v879_v11  ;;  %v977_v30 = vshrl.u32 %v972_v9, 16  ;;  %v881_v18 = vshll.u32 %v6262_v23, %v879_v11 }
 0x10c   : > { %v764_v51 = vsel %vm762_vm13, %v749_v26, %v763_v31  ;;  %v998_v26 = vand.u32 65535, %v968_v7  ;;  %v897_v4 = vsel %vm6277_vm3, 0, %v6317_v19  ;;  %v980_v27 = vmul.u32 %v976_v14, %v6249_v38 }
 0x10d   : > { %v768_v17 = vsel %vm761_vm14, %v764_v51, %v767_v20  ;;  %v882_v44 = vshrl.u32 %v6236_v21, %v880_v12  ;;  %v885_v22 = vadd.s32 127, %v884_v46  ;;  %v979_v60 = vmul.u32 %v977_v30, %v6246_v6 }
 0x10e   : > { %v769_v10 = vsel %vm758_vm15, nan, %v768_v17  ;;  %v1088_v24 = vor.u32 8388608, %v6242_v2  ;;  %v1001_v62 = vmul.u32 %v999_v15, %v6246_v6  ;;  %v1018_v23 = vmul.u32 %v6232_v57, %v6324_v45  ;;  %v257_v45 = vpop.permute.xlu2 %256 }
 0x10f   : > { %5421 = vst [vmem:[%s6199_s9 + $0x8] sm:$0xff] %v769_v10  ;;  %v883_v47 = vor.u32 %v882_v44, %v881_v18  ;;  %v886_v35 = vshll.u32 %v885_v22, 23  ;;  %v978_v21 = vmul.u32 %v976_v14, %v6246_v6  ;;  %v981_v34 = vmul.u32 %v977_v30, %v6249_v38 }
 0x110   : > { %v982_v33 = vshll.u32 %v979_v60, 16  ;;  %v1092_v43 = vsel %vm1091_vm4, %v6251_v48, 0  ;;  %v984_v50 = vshll.u32 %v980_v27, 16  ;;  %v1000_v42 = vmul.u32 %v998_v26, %v6246_v6 }
 0x111   : > { %v887_v39 = vor.u32 4788187, %v886_v35  ;;  %v1002_v32 = vmul.u32 %v998_v26, %v6249_v38  ;;  %v890_v16 = vcvt.s32.f32 %v883_v47  ;;  %v1004_v54 = vshll.u32 %v1001_v62, 16 }
 0x112   : > { %vm986_vm8 = vc.u32 %v978_v21, %v982_v33  ;;  %v988_v31 = vadd.s32 %v982_v33, %v978_v21  ;;  %v1003_v13 = vmul.u32 %v999_v15, %v6249_v38  ;;  %v983_v59 = vshrl.u32 %v979_v60, 16 }
 0x113   : > { %v888_v20 = vand.u32 2147483647, %v887_v39  ;;  %v987_v56 = vsel %vm986_vm8, 1, %v5789_v0  ;;  %v1006_v29 = vshll.u32 %v1002_v32, 16  ;;  %vm1008_vm10 = vc.u32 %v1000_v42, %v1004_v54 }
 0x114   : > { %v989_v51 = vadd.s32 %v987_v56, %v981_v34  ;;  %vm990_vm9 = vc.u32 %v988_v31, %v984_v50  ;;  %v1010_v48 = vadd.s32 %v1004_v54, %v1000_v42  ;;  %v1009_v25 = vsel %vm1008_vm10, 1, %v5789_v0 }
 0x115   : > { %v891_v37 = vmul.f32 %v890_v16, %v888_v20  ;;  %v991_v6 = vsel %vm990_vm9, 1, %v5789_v0  ;;  %v985_v17 = vshrl.u32 %v980_v27, 16  ;;  %v1011_v8 = vadd.s32 %v1009_v25, %v1003_v13 }
 0x116   : > { %v993_v5 = vadd.s32 %v991_v6, %v989_v51  ;;  %vm1012_vm11 = vc.u32 %v1010_v48, %v1006_v29  ;;  %v6349_v7 = vshrl.u32 %v1092_v43, 5  ;;  %v1094_v38 = vand.u32 31, %v1092_v43 }
 0x117   : > { %v892_v10 = vxor.u32 2147483648, %v891_v37  ;;  %v1013_v11 = vsel %vm1012_vm11, 1, %v5789_v0  ;;  %v1005_v12 = vshrl.u32 %v1001_v62, 16  ;;  %v1007_v46 = vshrl.u32 %v1002_v32, 16 }
 0x118   : > { %v994_v36 = vadd.s32 %v993_v5, %v983_v59  ;;  %v1015_v9 = vadd.s32 %v1013_v11, %v1011_v8  ;;  %v6353_v30 = vadd.s32 %v1010_v48, %v1006_v29  ;;  %v6355_v15 = vsub.s32 32, %v1094_v38 }
 0x119   : > { %v893_v14 = vsel %vm772_vm0, %v892_v10, %v891_v37  ;;  %v1097_v18 = vshll.u32 %v5790_v52, %v1094_v38  ;;  %v1100_v60 = vshll.u32 %v5791_v55, %v1094_v38  ;;  %vm1112_vm12 = vcmp.lt.s32.totalorder %v6349_v7, 1 }
 0x11a   : > { %v896_v44 = vsel %vm6277_vm3, %v5976_v40, %v893_v14  ;;  %v6361_v22 = vadd.s32 %v994_v36, %v985_v17  ;;  %v1016_v26 = vadd.s32 %v1015_v9, %v1005_v12  ;;  %v1098_v47 = vshrl.u32 %v5791_v55, %v6355_v15  ;;  %v6424_v14 = vld [vmem:[%s9715_s1] ss:$0 sm:$0xff] }
 0x11b   : > { %v898_v27 = vmul.f32 %v896_v44, %v896_v44  ;;  %v1101_v35 = vshrl.u32 %v5792_v58, %v6355_v15  ;;  %v1103_v21 = vshll.u32 %v5792_v58, %v1094_v38  ;;  %v1104_v34 = vshrl.u32 %v5793_v61, %v6355_v15 }
 0x11c   : > { %v1017_v62 = vadd.s32 %v1016_v26, %v1007_v46  ;;  %vm1114_vm13 = vcmp.lt.s32.totalorder %v6349_v7, 3  ;;  %vm1020_vm14 = vc.u32 %v6361_v22, %v6353_v30  ;;  %v6375_v39 = vor.u32 %v1098_v47, %v1097_v18 }
 0x11d   : > { %v899_v33 = vmul.f32 -0.001358992, %v898_v27  ;;  %v906_v43 = vmul.f32 -0.00019511016, %v898_v27  ;;  %v6377_v42 = vor.u32 %v1101_v35, %v1100_v60  ;;  %v1106_v32 = vshll.u32 %v5793_v61, %v1094_v38 }
 0x11e   : > { %v1021_v50 = vadd.s32 1, %v1017_v62  ;;  %v1107_v16 = vshrl.u32 %v5794_v1, %v6355_v15  ;;  %v1109_v20 = vshll.u32 %v5794_v1, %v1094_v38  ;;  %v1110_v56 = vshrl.u32 %v5795_v3, %v6355_v15 }
 0x11f   : > { %v900_v31 = vadd.f32 0.041655596, %v899_v33  ;;  %v907_v54 = vadd.f32 0.008332121, %v906_v43  ;;  %v6385_v29 = vor.u32 %v1104_v34, %v1103_v21  ;;  %vm1115_vm15 = vcmp.lt.s32.totalorder %v6349_v7, 4 }
 0x120   : > { %v1022_v13 = vsel %vm1020_vm14, %v1021_v50, %v1017_v62  ;;  %v1108_v51 = vor.u32 %v1107_v16, %v1106_v32  ;;  %v1111_v6 = vor.u32 %v1110_v56, %v1109_v20  ;;  %v914_v25 = vadd.s32 3, %v897_v4 }
 0x121   : > { %v901_v48 = vmul.f32 %v900_v31, %v898_v27  ;;  %v908_v37 = vmul.f32 %v907_v54, %v898_v27  ;;  %v1023_v59 = vadd.s32 %v1022_v13, %v1018_v23  ;;  %vm1113_vm0 = vcmp.lt.s32.totalorder %v6349_v7, 2  ;;  %v262_v7 = vpop.permute.xlu0 %261 }
 0x122   : > { %v1120_v17 = vsel %vm1112_vm12, %v6375_v39, %v6377_v42  ;;  %v1121_v5 = vsel %vm1115_vm15, %v1108_v51, 920167782  ;;  %v1124_v19 = vsel %vm1112_vm12, %v6377_v42, %v6385_v29  ;;  %v1125_v4 = vsel %vm1115_vm15, %v1111_v6, 1326507024 }
 0x123   : > { %v902_v8 = vadd.f32 -0.4999988, %v901_v48  ;;  %v909_v10 = vadd.f32 -0.16666654, %v908_v37  ;;  %v1024_v57 = vadd.s32 536870912, %v1023_v59  ;;  %v1122_v41 = vsel %vm1114_vm13, %v6385_v29, %v1121_v5 }
 0x124   : > { %v6413_v23 = vshll.u32 %v1088_v24, 8  ;;  %v1123_v12 = vsel %vm1113_vm0, %v1120_v17, %v1122_v41  ;;  %v915_v46 = vand.u32 3, %v914_v25  ;;  %v1126_v9 = vsel %vm1114_vm13, %v1108_v51, %v1125_v4 }
 0x125   : > { %v903_v11 = vmul.f32 %v902_v8, %v898_v27  ;;  %v910_v38 = vmul.f32 %v909_v10, %v898_v27  ;;  %v6415_v36 = vshrl.u32 %v1024_v57, 30  ;;  %v397_v2 = vmul.f32 %v6424_v14, %v257_v45  ;;  %v6439_v10 = vld [vmem:[%s9716_s2] ss:$0 sm:$0xff] }
 0x126   : > { %v1127_v60 = vsel %vm1113_vm0, %v1124_v19, %v1126_v9  ;;  %v1129_v27 = vand.u32 65535, %v6413_v23  ;;  %v1130_v47 = vshrl.u32 %v6413_v23, 16  ;;  %v1154_v35 = vshrl.u32 %v1123_v12, 16 }
 0x127   : > { %v904_v24 = vadd.f32 1.0, %v903_v11  ;;  %v911_v18 = vadd.f32 1.0, %v910_v38  ;;  %v1026_v26 = vshll.u32 %v6415_v36, 30  ;;  %vm913_vm1 = vweird.f32 %v5976_v40 }
 0x128   : > { %vm916_vm2 = vcmp.lt.s32.totalorder %v915_v46, 2  ;;  %v1131_v33 = vand.u32 65535, %v1127_v60  ;;  %v1132_v43 = vshrl.u32 %v1127_v60, 16  ;;  %v1153_v50 = vand.u32 65535, %v1123_v12 }
 0x129   : > { %v912_v62 = vmul.f32 %v911_v18, %v896_v44  ;;  %v921_v21 = vxor.u32 2147483648, %v904_v24  ;;  %v1027_v34 = vsub.s32 %v1023_v59, %v1026_v26  ;;  %vm917_vm3 = vcmp.eq.s32.totalorder %v915_v46, 0 }
 0x12a   : > { %vm920_vm5 = vcmp.eq.s32.totalorder %v915_v46, 2  ;;  %v1134_v31 = vmul.u32 %v1132_v43, %v1129_v27  ;;  %v1135_v54 = vmul.u32 %v1131_v33, %v1130_v47  ;;  %v1156_v20 = vmul.u32 %v1154_v35, %v1129_v27 }
 0x12b   : > { %v918_v32 = vxor.u32 2147483648, %v912_v62  ;;  %vm1028_vm4 = vcmp.lt.s32.totalorder %v1027_v34, 0  ;;  %v1029_v16 = vsub.s32 0, %v1027_v34  ;;  %v922_v13 = vsel %vm920_vm5, %v921_v21, %v912_v62 }
 0x12c   : > { %v1133_v51 = vmul.u32 %v1131_v33, %v1129_v27  ;;  %v1137_v59 = vshll.u32 %v1134_v31, 16  ;;  %v1157_v6 = vmul.u32 %v1153_v50, %v1130_v47  ;;  %v1136_v17 = vmul.u32 %v1132_v43, %v1130_v47 }
 0x12d   : > { %v919_v56 = vsel %vm917_vm3, %v904_v24, %v918_v32  ;;  %v1030_v44 = vsel %vm1028_vm4, %v1029_v16, %v1027_v34  ;;  %v1139_v5 = vshll.u32 %v1135_v54, 16  ;;  %v1155_v8 = vmul.u32 %v1153_v50, %v1129_v27 }
 0x12e   : > { %v923_v48 = vsel %vm916_vm2, %v919_v56, %v922_v13  ;;  %v1031_v37 = vclz %v1030_v44  ;;  %v6442_v57 = vadd.f32 %v6439_v10, %v397_v2  ;;  %v1019_v45 = vadd.s32 %v6353_v30, %v6361_v22 }
 0x12f   : > { %v924_v25 = vsel %vm913_vm1, nan, %v923_v48  ;;  %v1096_v19 = vshrl.u32 %v5790_v52, %v6355_v15  ;;  %vm1141_vm6 = vc.u32 %v1133_v51, %v1137_v59  ;;  %v1143_v40 = vadd.s32 %v1137_v59, %v1133_v51 }
 0x130   : > { %v5554_v41 = vadd.s32 4294967294, %v1031_v37  ;;  %5422 = vst [vmem:[%s6199_s9 + $0x10] sm:$0xff] %v924_v25  ;;  %v1158_v4 = vmul.u32 %v1154_v35, %v1130_v47  ;;  %v1159_v11 = vshll.u32 %v1156_v20, 16  ;;  %v1138_v38 = vshrl.u32 %v1134_v31, 16 }
 0x131   : > { %v1142_v12 = vsel %vm1141_vm6, 1, %v5789_v0  ;;  %v1161_v46 = vshll.u32 %v1157_v6, 16  ;;  %vm1145_vm8 = vc.u32 %v1143_v40, %v1139_v5  ;;  %v1117_v15 = vsel %vm1115_vm15, %v6385_v29, 2102212464 }
 0x132   : > { %vm5555_vm7 = vcmp.lt.s32.totalorder %v5554_v41, 0  ;;  %v1144_v2 = vadd.s32 %v1142_v12, %v1136_v17  ;;  %vm1163_vm9 = vc.u32 %v1155_v8, %v1159_v11  ;;  %v1146_v22 = vsel %vm1145_vm8, 1, %v5789_v0 }
 0x133   : > { %v1034_v9 = vsel %vm5555_vm7, 0, %v5554_v41  ;;  %v1140_v18 = vshrl.u32 %v1135_v54, 16  ;;  %v1164_v60 = vsel %vm1163_vm9, 1, %v5789_v0  ;;  %v1165_v27 = vadd.s32 %v1159_v11, %v1155_v8 }
 0x134   : > { %v1035_v24 = vsub.s32 32, %v1034_v9  ;;  %v1039_v30 = vsub.s32 4294967266, %v1034_v9  ;;  %v1148_v26 = vadd.s32 %v1146_v22, %v1144_v2  ;;  %v1036_v47 = vshll.u32 %v1027_v34, %v1034_v9 }
 0x135   : > { %v1166_v21 = vadd.s32 %v1164_v60, %v1158_v4  ;;  %v1116_v33 = vsel %vm1112_vm12, %v1096_v19, %v6375_v39  ;;  %v1160_v50 = vshrl.u32 %v1156_v20, 16  ;;  %vm1167_vm10 = vc.u32 %v1165_v27, %v1161_v46 }
 0x136   : > { %v1037_v35 = vshrl.u32 %v1019_v45, %v1035_v24  ;;  %v1040_v62 = vadd.s32 127, %v1039_v30  ;;  %v1149_v43 = vadd.s32 %v1148_v26, %v1138_v38  ;;  %v1118_v16 = vsel %vm1114_vm13, %v6377_v42, %v1117_v15 }
 0x137   : > { %v1168_v31 = vsel %vm1167_vm10, 1, %v5789_v0  ;;  %v1049_v34 = vsub.s32 4, %v6415_v36  ;;  %v1162_v54 = vshrl.u32 %v1157_v6, 16  ;;  %v1238_v13 = vand.u32 2139095040, %v6442_v57 }
 0x138   : > { %v1038_v32 = vor.u32 %v1037_v35, %v1036_v47  ;;  %v1041_v29 = vshll.u32 %v1040_v62, 23  ;;  %v1170_v56 = vadd.s32 %v1168_v31, %v1166_v21  ;;  %v1150_v51 = vadd.s32 %v1149_v43, %v1140_v18 }
 0x139   : > { %v1169_v39 = vadd.s32 %v1165_v27, %v1161_v46  ;;  %v1119_v20 = vsel %vm1113_vm0, %v1116_v33, %v1118_v16  ;;  %v1235_v37 = vand.u32 2147483647, %v6442_v57  ;;  %v1239_v59 = vshrl.u32 %v1238_v13, 23 }
 0x13a   : > { %v1042_v44 = vor.u32 4788187, %v1041_v29  ;;  %v1171_v48 = vadd.s32 %v1170_v56, %v1160_v50  ;;  %vm927_vm11 = vcmp.lt.s32.totalorder %v6158_v49, 0  ;;  %v1045_v25 = vcvt.s32.f32 %v1038_v32 }
 0x13b   : > { %v1050_v6 = vsel %vm927_vm11, %v1049_v34, %v6415_v36  ;;  %v5559_v5 = vadd.s32 4294967169, %v1239_v59  ;;  %v1173_v45 = vmul.u32 %v6413_v23, %v1119_v20  ;;  %vm1175_vm12 = vc.u32 %v1150_v51, %v1169_v39 }
 0x13c   : > { %v1043_v42 = vand.u32 2147483647, %v1042_v44  ;;  %v1172_v17 = vadd.s32 %v1171_v48, %v1162_v54  ;;  %vm926_vm13 = vcmp.le.f32.partialorder %v925_v53, 0.7853982  ;;  %v1242_v19 = vand.u32 8388607, %v1235_v37 }
 0x13d   : > { %v1245_v40 = vadd.s32 1, %v5559_v5  ;;  %v1052_v11 = vsel %vm926_vm13, 0, %v1050_v6  ;;  %v398_v36 = vmul.f32 %v6424_v14, %v262_v7  ;;  %v6491_v50 = vadd.s32 %v1169_v39, %v1150_v51 }
 0x13e   : > { %v1046_v8 = vmul.f32 %v1045_v25, %v1043_v42  ;;  %v1176_v41 = vadd.s32 1, %v1172_v17  ;;  %v1069_v2 = vadd.s32 3, %v1052_v11  ;;  %v1243_v53 = vor.u32 8388608, %v1242_v19 }
 0x13f   : > { %vm1246_vm14 = vcmp.gt.s32.totalorder %v1245_v40, 0  ;;  %v6481_v18 = vadd.f32 %v6439_v10, %v398_v36  ;;  %vm1068_vm4 = vweird.f32 %v6158_v49  ;;  %vm1082_vm5 = vcmp.lt.s32.totalorder %v6141_v28, 0 }
 0x140   : > { %v1047_v4 = vxor.u32 2147483648, %v1046_v8  ;;  %v1177_v38 = vsel %vm1175_vm12, %v1176_v41, %v1172_v17  ;;  %v1247_v46 = vsel %vm1246_vm14, %v1245_v40, 0  ;;  %v6485_v47 = vand.u32 3, %v1069_v2 }
 0x141   : > { %v1178_v23 = vadd.s32 %v1177_v38, %v1173_v45  ;;  %v1249_v24 = vand.u32 31, %v1247_v46  ;;  %v6489_v21 = vshll.u32 %v1243_v53, 8  ;;  %v6500_v44 = vshrl.u32 %v1247_v46, 5 }
 0x142   : > { %v1048_v12 = vsel %vm927_vm11, %v1047_v4, %v1046_v8  ;;  %vm1075_vm15 = vcmp.eq.s32.totalorder %v6485_v47, 2  ;;  %vm1072_vm1 = vcmp.eq.s32.totalorder %v6485_v47, 0  ;;  %vm1071_vm2 = vcmp.lt.s32.totalorder %v6485_v47, 2 }
 0x143   : > { %v1051_v9 = vsel %vm926_vm13, %v6158_v49, %v1048_v12  ;;  %v1179_v15 = vadd.s32 536870912, %v1178_v23  ;;  %v1250_v22 = vsub.s32 32, %v1249_v24  ;;  %v1252_v35 = vshll.u32 %v5790_v52, %v1249_v24 }
 0x144   : > { %v1053_v30 = vmul.f32 %v1051_v9, %v1051_v9  ;;  %v1255_v29 = vshll.u32 %v5791_v55, %v1249_v24  ;;  %v1261_v31 = vshll.u32 %v5793_v61, %v1249_v24  ;;  %v1258_v39 = vshll.u32 %v5792_v58, %v1249_v24 }
 0x145   : > { %v6483_v27 = vshrl.u32 %v1179_v15, 30  ;;  %v1253_v62 = vshrl.u32 %v5791_v55, %v1250_v22  ;;  %v1256_v16 = vshrl.u32 %v5792_v58, %v1250_v22  ;;  %v1262_v34 = vshrl.u32 %v5794_v1, %v1250_v22 }
 0x146   : > { %v1054_v26 = vmul.f32 -0.001358992, %v1053_v30  ;;  %v1061_v60 = vmul.f32 -0.00019511016, %v1053_v30  ;;  %v1259_v20 = vshrl.u32 %v5793_v61, %v1250_v22  ;;  %v6508_v48 = vand.u32 65535, %v6489_v21 }
 0x147   : > { %v1181_v32 = vshll.u32 %v6483_v27, 30  ;;  %v6503_v51 = vor.u32 %v1253_v62, %v1252_v35  ;;  %v6513_v6 = vor.u32 %v1256_v16, %v1255_v29  ;;  %v1263_v17 = vor.u32 %v1262_v34, %v1261_v31 }
 0x148   : > { %v1055_v33 = vadd.f32 0.041655596, %v1054_v26  ;;  %v1062_v43 = vadd.f32 0.008332121, %v1061_v60  ;;  %v1264_v5 = vshll.u32 %v5794_v1, %v1249_v24  ;;  %v1265_v8 = vshrl.u32 %v5795_v3, %v1250_v22 }
 0x149   : > { %v6498_v13 = vsub.s32 %v1178_v23, %v1181_v32  ;;  %vm1267_vm3 = vcmp.lt.s32.totalorder %v6500_v44, 1  ;;  %v1260_v40 = vor.u32 %v1259_v20, %v1258_v39  ;;  %vm1270_vm6 = vcmp.lt.s32.totalorder %v6500_v44, 4 }
 0x14a   : > { %v1056_v54 = vmul.f32 %v1055_v33, %v1053_v30  ;;  %v1063_v56 = vmul.f32 %v1062_v43, %v1053_v30  ;;  %v1285_v4 = vshrl.u32 %v6489_v21, 16  ;;  %vm1269_vm7 = vcmp.lt.s32.totalorder %v6500_v44, 3 }
 0x14b   : > { %vm1183_vm0 = vcmp.lt.s32.totalorder %v6498_v13, 0  ;;  %v1184_v25 = vsub.s32 0, %v6498_v13  ;;  %v1390_v36 = vand.u32 2147483647, %v6481_v18  ;;  %v1266_v23 = vor.u32 %v1265_v8, %v1264_v5 }
 0x14c   : > { %v1057_v59 = vadd.f32 -0.4999988, %v1056_v54  ;;  %v1064_v42 = vadd.f32 -0.16666654, %v1063_v56  ;;  %vm1268_vm8 = vcmp.lt.s32.totalorder %v6500_v44, 2  ;;  %v1275_v46 = vsel %vm1267_vm3, %v6503_v51, %v6513_v6 }
 0x14d   : > { %v1185_v41 = vsel %vm1183_vm0, %v1184_v25, %v6498_v13  ;;  %vm6533_vm9 = vcmp.le.f32.partialorder %v1080_v63, 0.7853982  ;;  %v1276_v15 = vsel %vm1270_vm6, %v1263_v17, 920167782  ;;  %v1204_v26 = vsub.s32 4, %v6483_v27 }
 0x14e   : > { %v1058_v45 = vmul.f32 %v1057_v59, %v1053_v30  ;;  %v1065_v7 = vmul.f32 %v1064_v42, %v1053_v30  ;;  %v1186_v19 = vclz %v1185_v41  ;;  %v6538_v30 = vshrl.u32 %v5790_v52, %v1250_v22 }
 0x14f   : > { %v1277_v60 = vsel %vm1269_vm7, %v1260_v40, %v1276_v15  ;;  %v1280_v29 = vsel %vm1270_vm6, %v1266_v23, 1326507024  ;;  %v1205_v42 = vsel %vm1082_vm5, %v1204_v26, %v6483_v27  ;;  %v1272_v27 = vsel %vm1270_vm6, %v1260_v40, 2102212464 }
 0x150   : > { %v1059_v11 = vadd.f32 1.0, %v1058_v45  ;;  %v1066_v38 = vadd.f32 1.0, %v1065_v7  ;;  %v5557_v12 = vadd.s32 4294967294, %v1186_v19  ;;  %v1278_v22 = vsel %vm1268_vm8, %v1275_v46, %v1277_v60 }
 0x151   : > { %v1281_v31 = vsel %vm1269_vm7, %v1263_v17, %v1280_v29  ;;  %v1308_v34 = vand.u32 65535, %v1278_v22  ;;  %v1309_v54 = vshrl.u32 %v1278_v22, 16  ;;  %v1397_v24 = vand.u32 8388607, %v1390_v36 }
 0x152   : > { %v1067_v2 = vmul.f32 %v1066_v38, %v1051_v9  ;;  %v1076_v53 = vxor.u32 2147483648, %v1059_v11  ;;  %vm5558_vm10 = vcmp.lt.s32.totalorder %v5557_v12, 0  ;;  %v1279_v9 = vsel %vm1267_vm3, %v6513_v6, %v1260_v40 }
 0x153   : > { %v1189_v62 = vsel %vm5558_vm10, 0, %v5557_v12  ;;  %v1311_v47 = vmul.u32 %v1309_v54, %v6508_v48  ;;  %v1312_v45 = vmul.u32 %v1308_v34, %v1285_v4  ;;  %v1310_v49 = vmul.u32 %v1308_v34, %v6508_v48 }
 0x154   : > { %v1073_v63 = vxor.u32 2147483648, %v1067_v2  ;;  %v1077_v35 = vsel %vm1075_vm15, %v1076_v53, %v1067_v2  ;;  %v1190_v33 = vsub.s32 32, %v1189_v62  ;;  %v1191_v43 = vshll.u32 %v6498_v13, %v1189_v62 }
 0x155   : > { %v1194_v32 = vsub.s32 4294967266, %v1189_v62  ;;  %v1282_v13 = vsel %vm1268_vm8, %v1279_v9, %v1281_v31  ;;  %v1314_v38 = vshll.u32 %v1311_v47, 16  ;;  %v1313_v2 = vmul.u32 %v1309_v54, %v1285_v4 }
 0x156   : > { %v1074_v16 = vsel %vm1072_vm1, %v1059_v11, %v1073_v63  ;;  %v1192_v39 = vshrl.u32 %v6491_v50, %v1190_v33  ;;  %v1286_v25 = vand.u32 65535, %v1282_v13  ;;  %v1287_v17 = vshrl.u32 %v1282_v13, 16 }
 0x157   : > { %v1078_v56 = vsel %vm1071_vm2, %v1074_v16, %v1077_v35  ;;  %v1195_v20 = vadd.s32 127, %v1194_v32  ;;  %v1207_v11 = vsel %vm6533_vm9, 0, %v1205_v42  ;;  %v1316_v60 = vshll.u32 %v1312_v45, 16 }
 0x158   : > { %v1079_v59 = vsel %vm1068_vm4, nan, %v1078_v56  ;;  %v1193_v5 = vor.u32 %v1192_v39, %v1191_v43  ;;  %v1288_v50 = vmul.u32 %v1286_v25, %v6508_v48  ;;  %v1289_v7 = vmul.u32 %v1287_v17, %v6508_v48 }
 0x159   : > { %v1196_v8 = vshll.u32 %v1195_v20, 23  ;;  %5423 = vst [vmem:[%s6199_s9 + $0x18] sm:$0xff] %v1079_v59  ;;  %v1290_v41 = vmul.u32 %v1286_v25, %v1285_v4  ;;  %v1291_v12 = vmul.u32 %v1287_v17, %v1285_v4  ;;  %vm1318_vm12 = vc.u32 %v1310_v49, %v1314_v38 }
 0x15a   : > { %v1292_v23 = vshll.u32 %v1289_v7, 16  ;;  %v1200_v15 = vcvt.s32.f32 %v1193_v5  ;;  %v1293_v26 = vshrl.u32 %v1289_v7, 16  ;;  %v1320_v48 = vadd.s32 %v1314_v38, %v1310_v49 }
 0x15b   : > { %v1197_v19 = vor.u32 4788187, %v1196_v8  ;;  %v1294_v46 = vshll.u32 %v1290_v41, 16  ;;  %v1315_v62 = vshrl.u32 %v1311_v47, 16  ;;  %v1319_v22 = vsel %vm1318_vm12, 1, %v5789_v0 }
 0x15c   : > { %vm1296_vm11 = vc.u32 %v1288_v50, %v1292_v23  ;;  %v1298_v9 = vadd.s32 %v1292_v23, %v1288_v50  ;;  %v1321_v33 = vadd.s32 %v1319_v22, %v1313_v2  ;;  %vm1322_vm14 = vc.u32 %v1320_v48, %v1316_v60  ;;  %v267_v50 = vpop.permute.xlu1 %266  ;;  %v272_v23 = vpop.permute.xlu2 %271 }
 0x15d   : > { %v1198_v53 = vand.u32 2147483647, %v1197_v19  ;;  %v1297_v35 = vsel %vm1296_vm11, 1, %v5789_v0  ;;  %v1295_v4 = vshrl.u32 %v1290_v41, 16  ;;  %v1323_v29 = vsel %vm1322_vm14, 1, %v5789_v0 }
 0x15e   : > { %v1299_v40 = vadd.s32 %v1297_v35, %v1291_v12  ;;  %vm1300_vm13 = vc.u32 %v1298_v9, %v1294_v46  ;;  %v1317_v31 = vshrl.u32 %v1312_v45, 16  ;;  %v1325_v34 = vadd.s32 %v1323_v29, %v1321_v33 }
 0x15f   : > { %v1201_v63 = vmul.f32 %v1200_v15, %v1198_v53  ;;  %v1301_v32 = vsel %vm1300_vm13, 1, %v5789_v0  ;;  %v1393_v54 = vand.u32 2139095040, %v6481_v18  ;;  %v1271_v39 = vsel %vm1267_vm3, %v6538_v30, %v6503_v51 }
 0x160   : > { %v1303_v16 = vadd.s32 %v1301_v32, %v1299_v40  ;;  %v1273_v20 = vsel %vm1269_vm7, %v6513_v6, %v1272_v27  ;;  %v6592_v13 = vadd.s32 %v1320_v48, %v1316_v60  ;;  %v1326_v25 = vadd.s32 %v1325_v34, %v1315_v62 }
 0x161   : > { %v1202_v43 = vxor.u32 2147483648, %v1201_v63  ;;  %v1394_v17 = vshrl.u32 %v1393_v54, 23  ;;  %v1224_v8 = vadd.s32 3, %v1207_v11  ;;  %v1274_v47 = vsel %vm1268_vm8, %v1271_v39, %v1273_v20 }
 0x162   : > { %v1304_v42 = vadd.s32 %v1303_v16, %v1293_v26  ;;  %v1327_v51 = vadd.s32 %v1326_v25, %v1317_v31  ;;  %v1328_v11 = vmul.u32 %v6489_v21, %v1274_v47  ;;  %v399_v44 = vmul.f32 %v6424_v14, %v267_v50 }
 0x163   : > { %v1203_v56 = vsel %vm1082_vm5, %v1202_v43, %v1201_v63  ;;  %v5562_v30 = vadd.s32 4294967169, %v1394_v17  ;;  %v1225_v38 = vand.u32 3, %v1224_v8  ;;  %v1398_v26 = vor.u32 8388608, %v1397_v24 }
 0x164   : > { %v1206_v59 = vsel %vm6533_vm9, %v6141_v28, %v1203_v56  ;;  %v1305_v45 = vadd.s32 %v1304_v42, %v1295_v4  ;;  %v1331_v41 = vadd.s32 1, %v1327_v51  ;;  %v6605_v35 = vmul.f32 %v6424_v14, %v272_v23 }
 0x165   : > { %v1208_v5 = vmul.f32 %v1206_v59, %v1206_v59  ;;  %v1400_v49 = vadd.s32 1, %v5562_v30  ;;  %v6608_v21 = vadd.f32 %v6439_v10, %v399_v44  ;;  %vm1226_vm1 = vcmp.lt.s32.totalorder %v1225_v38, 2 }
 0x166   : > { %vm1330_vm15 = vc.u32 %v1305_v45, %v6592_v13  ;;  %vm1227_vm2 = vcmp.eq.s32.totalorder %v1225_v38, 0  ;;  %vm1223_vm3 = vweird.f32 %v6141_v28  ;;  %v6621_v32 = vshll.u32 %v1398_v26, 8 }
 0x167   : > { %v1209_v7 = vmul.f32 -0.001358992, %v1208_v5  ;;  %v1216_v6 = vmul.f32 -0.00019511016, %v1208_v5  ;;  %v1332_v12 = vsel %vm1330_vm15, %v1331_v41, %v1327_v51  ;;  %vm1401_vm0 = vcmp.gt.s32.totalorder %v1400_v49, 0 }
 0x168   : > { %v1333_v53 = vadd.s32 %v1332_v12, %v1328_v11  ;;  %v1402_v15 = vsel %vm1401_vm0, %v1400_v49, 0  ;;  %vm1230_vm5 = vcmp.eq.s32.totalorder %v1225_v38, 2  ;;  %v1329_v41 = vadd.s32 %v6592_v13, %v1305_v45 }
 0x169   : > { %v1210_v19 = vadd.f32 0.041655596, %v1209_v7  ;;  %v1217_v27 = vadd.f32 0.008332121, %v1216_v6  ;;  %v1404_v60 = vand.u32 31, %v1402_v15  ;;  %v6615_v43 = vshrl.u32 %v1402_v15, 5 }
 0x16a   : > { %v1334_v63 = vadd.s32 536870912, %v1333_v53  ;;  %v1548_v24 = vand.u32 2139095040, %v6608_v21  ;;  %vm1237_vm6 = vcmp.lt.s32.totalorder %v6442_v57, 0  ;;  %v1439_v38 = vand.u32 65535, %v6621_v32 }
 0x16b   : > { %v1211_v46 = vmul.f32 %v1210_v19, %v1208_v5  ;;  %v1218_v2 = vmul.f32 %v1217_v27, %v1208_v5  ;;  %v6610_v62 = vsub.s32 32, %v1404_v60  ;;  %v1407_v34 = vshll.u32 %v5790_v52, %v1404_v60 }
 0x16c   : > { %v6612_v33 = vshrl.u32 %v1334_v63, 30  ;;  %v1410_v54 = vshll.u32 %v5791_v55, %v1404_v60  ;;  %v1416_v39 = vshll.u32 %v5793_v61, %v1404_v60  ;;  %v1419_v6 = vshll.u32 %v5794_v1, %v1404_v60 }
 0x16d   : > { %v1212_v9 = vadd.f32 -0.4999988, %v1211_v46  ;;  %v1219_v48 = vadd.f32 -0.16666654, %v1218_v2  ;;  %v1408_v4 = vshrl.u32 %v5791_v55, %v6610_v62  ;;  %v1411_v14 = vshrl.u32 %v5792_v58, %v6610_v62 }
 0x16e   : > { %v1336_v31 = vshll.u32 %v6612_v33, 30  ;;  %v1414_v56 = vshrl.u32 %v5793_v61, %v6610_v62  ;;  %v1417_v20 = vshrl.u32 %v5794_v1, %v6610_v62  ;;  %v1420_v30 = vshrl.u32 %v5795_v3, %v6610_v62 }
 0x16f   : > { %v1213_v22 = vmul.f32 %v1212_v9, %v1208_v5  ;;  %v1220_v40 = vmul.f32 %v1219_v48, %v1208_v5  ;;  %v1413_v5 = vshll.u32 %v5792_v58, %v1404_v60  ;;  %v1409_v8 = vor.u32 %v1408_v4, %v1407_v34 }
 0x170   : > { %v1337_v17 = vsub.s32 %v1333_v53, %v1336_v31  ;;  %v6632_v47 = vor.u32 %v1411_v14, %v1410_v54  ;;  %v1418_v51 = vor.u32 %v1417_v20, %v1416_v39  ;;  %v1421_v11 = vor.u32 %v1420_v30, %v1419_v6 }
 0x171   : > { %v1214_v29 = vadd.f32 1.0, %v1213_v22  ;;  %v1221_v16 = vadd.f32 1.0, %v1220_v40  ;;  %vm1422_vm7 = vcmp.lt.s32.totalorder %v6615_v43, 1  ;;  %vm1425_vm8 = vcmp.lt.s32.totalorder %v6615_v43, 4 }
 0x172   : > { %vm1338_vm4 = vcmp.lt.s32.totalorder %v1337_v17, 0  ;;  %v1339_v7 = vsub.s32 0, %v1337_v17  ;;  %v1430_v45 = vsel %vm1422_vm7, %v1409_v8, %v6632_v47  ;;  %v1431_v23 = vsel %vm1425_vm8, %v1418_v51, 920167782 }
 0x173   : > { %v1222_v42 = vmul.f32 %v1221_v16, %v1206_v59  ;;  %v1231_v25 = vxor.u32 2147483648, %v1214_v29  ;;  %v1415_v59 = vor.u32 %v1414_v56, %v1413_v5  ;;  %vm1424_vm9 = vcmp.lt.s32.totalorder %v6615_v43, 3 }
 0x174   : > { %v1340_v27 = vsel %vm1338_vm4, %v1339_v7, %v1337_v17  ;;  %v1440_v2 = vshrl.u32 %v6621_v32, 16  ;;  %v1549_v53 = vshrl.u32 %v1548_v24, 23  ;;  %vm1423_vm10 = vcmp.lt.s32.totalorder %v6615_v43, 2 }
 0x175   : > { %v1228_v50 = vxor.u32 2147483648, %v1222_v42  ;;  %v1232_v19 = vsel %vm1230_vm5, %v1231_v25, %v1222_v42  ;;  %v1341_v12 = vclz %v1340_v27  ;;  %v1432_v28 = vsel %vm1424_vm9, %v1415_v59, %v1431_v23 }
 0x176   : > { %v1434_v15 = vsel %vm1422_vm7, %v6632_v47, %v1415_v59  ;;  %v1435_v26 = vsel %vm1425_vm8, %v1421_v11, 1326507024  ;;  %v1359_v60 = vsub.s32 4, %v6612_v33  ;;  %v1433_v9 = vsel %vm1423_vm10, %v1430_v45, %v1432_v28 }
 0x177   : > { %v1229_v49 = vsel %vm1227_vm2, %v1214_v29, %v1228_v50  ;;  %v5560_v46 = vadd.s32 4294967294, %v1341_v12  ;;  %v1436_v48 = vsel %vm1424_vm9, %v1418_v51, %v1435_v26  ;;  %v1463_v40 = vand.u32 65535, %v1433_v9 }
 0x178   : > { %v1233_v44 = vsel %vm1226_vm1, %v1229_v49, %v1232_v19  ;;  %v1437_v22 = vsel %vm1423_vm10, %v1434_v15, %v1436_v48  ;;  %v1464_v4 = vshrl.u32 %v1433_v9, 16  ;;  %v5565_v31 = vadd.s32 4294967169, %v1549_v53 }
 0x179   : > { %v1234_v13 = vsel %vm1223_vm3, nan, %v1233_v44  ;;  %vm5561_vm11 = vcmp.lt.s32.totalorder %v5560_v46, 0  ;;  %v1441_v16 = vand.u32 65535, %v1437_v22  ;;  %v1406_v54 = vshrl.u32 %v5790_v52, %v6610_v62 }
 0x17a   : > { %5424 = vst [vmem:[%s6199_s9 + $0x20] sm:$0xff] %v1234_v13  ;;  %v1344_v63 = vsel %vm5561_vm11, 0, %v5560_v46  ;;  %v1442_v56 = vshrl.u32 %v1437_v22, 16  ;;  %v1466_v39 = vmul.u32 %v1464_v4, %v1439_v38  ;;  %v1467_v5 = vmul.u32 %v1463_v40, %v1440_v2 }
 0x17b   : > { %v1345_v14 = vsub.s32 32, %v1344_v63  ;;  %v1349_v29 = vsub.s32 4294967266, %v1344_v63  ;;  %v1346_v34 = vshll.u32 %v1337_v17, %v1344_v63  ;;  %v1445_v25 = vmul.u32 %v1441_v16, %v1440_v2 }
 0x17c   : > { %v1360_v51 = vsel %vm1237_vm6, %v1359_v60, %v6612_v33  ;;  %v1426_v30 = vsel %vm1422_vm7, %v1406_v54, %v1409_v8  ;;  %v1444_v50 = vmul.u32 %v1442_v56, %v1439_v38  ;;  %v1469_v7 = vshll.u32 %v1466_v39, 16 }
 0x17d   : > { %v1347_v20 = vshrl.u32 %v1329_v41, %v1345_v14  ;;  %v1350_v42 = vadd.s32 127, %v1349_v29  ;;  %v1427_v62 = vsel %vm1425_vm8, %v1415_v59, 2102212464  ;;  %v1465_v24 = vmul.u32 %v1463_v40, %v1439_v38 }
 0x17e   : > { %vm6681_vm12 = vcmp.le.f32.partialorder %v1235_v37, 0.7853982  ;;  %v1443_v49 = vmul.u32 %v1441_v16, %v1439_v38  ;;  %v1446_v19 = vmul.u32 %v1442_v56, %v1440_v2  ;;  %v1447_v33 = vshll.u32 %v1444_v50, 16 }
 0x17f   : > { %v1348_v6 = vor.u32 %v1347_v20, %v1346_v34  ;;  %v1351_v17 = vshll.u32 %v1350_v42, 23  ;;  %v1468_v27 = vmul.u32 %v1464_v4, %v1440_v2  ;;  %v1449_v8 = vshll.u32 %v1445_v25, 16 }
 0x180   : > { %v1471_v44 = vshll.u32 %v1467_v5, 16  ;;  %vm1473_vm13 = vc.u32 %v1465_v24, %v1469_v7  ;;  %vm1451_vm14 = vc.u32 %v1443_v49, %v1447_v33  ;;  %v1453_v12 = vadd.s32 %v1447_v33, %v1443_v49 }
 0x181   : > { %v1352_v11 = vor.u32 4788187, %v1351_v17  ;;  %v1474_v13 = vsel %vm1473_vm13, 1, %v5789_v0  ;;  %v1475_v59 = vadd.s32 %v1469_v7, %v1465_v24  ;;  %v1355_v23 = vcvt.s32.f32 %v1348_v6 }
 0x182   : > { %v1452_v37 = vsel %vm1451_vm14, 1, %v5789_v0  ;;  %v1476_v46 = vadd.s32 %v1474_v13, %v1468_v27  ;;  %v1428_v38 = vsel %vm1424_vm9, %v6632_v47, %v1427_v62  ;;  %vm1455_vm15 = vc.u32 %v1453_v12, %v1449_v8 }
 0x183   : > { %v1353_v45 = vand.u32 2147483647, %v1352_v11  ;;  %v1454_v53 = vadd.s32 %v1452_v37, %v1446_v19  ;;  %vm1477_vm0 = vc.u32 %v1475_v59, %v1471_v44  ;;  %v1456_v28 = vsel %vm1455_vm15, 1, %v5789_v0 }
 0x184   : > { %v1478_v15 = vsel %vm1477_vm0, 1, %v5789_v0  ;;  %v1555_v26 = vadd.s32 1, %v5565_v31  ;;  %v1448_v60 = vshrl.u32 %v1444_v50, 16  ;;  %v1470_v48 = vshrl.u32 %v1466_v39, 16 }
 0x185   : > { %v1356_v2 = vmul.f32 %v1355_v23, %v1353_v45  ;;  %v1458_v9 = vadd.s32 %v1456_v28, %v1454_v53  ;;  %v1480_v63 = vadd.s32 %v1478_v15, %v1476_v46  ;;  %v1450_v40 = vshrl.u32 %v1445_v25, 16 }
 0x186   : > { %v1545_v4 = vand.u32 2147483647, %v6608_v21  ;;  %vm1556_vm1 = vcmp.gt.s32.totalorder %v1555_v26, 0  ;;  %v1472_v47 = vshrl.u32 %v1467_v5, 16  ;;  %v1362_v54 = vsel %vm6681_vm12, 0, %v1360_v51 }
 0x187   : > { %v1357_v22 = vxor.u32 2147483648, %v1356_v2  ;;  %v1459_v14 = vadd.s32 %v1458_v9, %v1448_v60  ;;  %v1481_v29 = vadd.s32 %v1480_v63, %v1470_v48  ;;  %v1557_v16 = vsel %vm1556_vm1, %v1555_v26, 0 }
 0x188   : > { %v1429_v31 = vsel %vm1423_vm10, %v1426_v30, %v1428_v38  ;;  %v1559_v56 = vand.u32 31, %v1557_v16  ;;  %v6704_v42 = vadd.s32 %v1475_v59, %v1471_v44  ;;  %v6708_v5 = vadd.f32 %v6439_v10, %v6605_v35 }
 0x189   : > { %v1358_v34 = vsel %vm1237_vm6, %v1357_v22, %v1356_v2  ;;  %v6702_v20 = vadd.s32 %v1459_v14, %v1450_v40  ;;  %v1482_v25 = vadd.s32 %v1481_v29, %v1472_v47  ;;  %v1552_v51 = vand.u32 8388607, %v1545_v4 }
 0x18a   : > { %v1361_v39 = vsel %vm6681_vm12, %v6442_v57, %v1358_v34  ;;  %v6712_v43 = vsub.s32 32, %v1559_v56  ;;  %v1379_v30 = vadd.s32 3, %v1362_v54  ;;  %v1483_v7 = vmul.u32 %v6621_v32, %v1429_v31 }
 0x18b   : > { %v1363_v50 = vmul.f32 %v1361_v39, %v1361_v39  ;;  %vm1485_vm2 = vc.u32 %v6702_v20, %v6704_v42  ;;  %v1486_v6 = vadd.s32 1, %v1482_v25  ;;  %v6717_v24 = vshrl.u32 %v1557_v16, 5 }
 0x18c   : > { %v1562_v10 = vshll.u32 %v5790_v52, %v1559_v56  ;;  %v1563_v41 = vshrl.u32 %v5791_v55, %v6712_v43  ;;  %v1566_v49 = vshrl.u32 %v5792_v58, %v6712_v43  ;;  %v1569_v32 = vshrl.u32 %v5793_v61, %v6712_v43 }
 0x18d   : > { %v1364_v17 = vmul.f32 -0.001358992, %v1363_v50  ;;  %v1371_v62 = vmul.f32 -0.00019511016, %v1363_v50  ;;  %v1487_v35 = vsel %vm1485_vm2, %v1486_v6, %v1482_v25  ;;  %v1565_v11 = vshll.u32 %v5791_v55, %v1559_v56 }
 0x18e   : > { %v1488_v27 = vadd.s32 %v1487_v35, %v1483_v7  ;;  %v1568_v8 = vshll.u32 %v5792_v58, %v1559_v56  ;;  %v1571_v44 = vshll.u32 %v5793_v61, %v1559_v56  ;;  %v1572_v12 = vshrl.u32 %v5794_v1, %v6712_v43 }
 0x18f   : > { %v1365_v19 = vadd.f32 0.041655596, %v1364_v17  ;;  %v1372_v33 = vadd.f32 0.008332121, %v1371_v62  ;;  %v1574_v13 = vshll.u32 %v5794_v1, %v1559_v56  ;;  %v1575_v37 = vshrl.u32 %v5795_v3, %v6712_v43 }
 0x190   : > { %v1489_v23 = vadd.s32 536870912, %v1488_v27  ;;  %v1564_v46 = vor.u32 %v1563_v41, %v1562_v10  ;;  %v6734_v38 = vor.u32 %v1566_v49, %v1565_v11  ;;  %v1570_v53 = vor.u32 %v1569_v32, %v1568_v8 }
 0x191   : > { %v1366_v59 = vmul.f32 %v1365_v19, %v1363_v50  ;;  %v1373_v45 = vmul.f32 %v1372_v33, %v1363_v50  ;;  %v1573_v2 = vor.u32 %v1572_v12, %v1571_v44  ;;  %v1576_v60 = vor.u32 %v1575_v37, %v1574_v13 }
 0x192   : > { %v6736_v26 = vshrl.u32 %v1489_v23, 30  ;;  %v1380_v9 = vand.u32 3, %v1379_v30  ;;  %v1553_v48 = vor.u32 8388608, %v1552_v51  ;;  %vm1577_vm3 = vcmp.lt.s32.totalorder %v6717_v24, 1 }
 0x193   : > { %v1367_v28 = vadd.f32 -0.4999988, %v1366_v59  ;;  %v1374_v15 = vadd.f32 -0.16666654, %v1373_v45  ;;  %v1703_v63 = vand.u32 2139095040, %v6708_v5  ;;  %vm1580_vm4 = vcmp.lt.s32.totalorder %v6717_v24, 4 }
 0x194   : > { %v1491_v14 = vshll.u32 %v6736_v26, 30  ;;  %vm1378_vm5 = vweird.f32 %v6442_v57  ;;  %vm1579_vm6 = vcmp.lt.s32.totalorder %v6717_v24, 3  ;;  %v1585_v47 = vsel %vm1577_vm3, %v1564_v46, %v6734_v38 }
 0x195   : > { %v1368_v22 = vmul.f32 %v1367_v28, %v1363_v50  ;;  %v1375_v40 = vmul.f32 %v1374_v15, %v1363_v50  ;;  %v1586_v29 = vsel %vm1580_vm4, %v1573_v2, 920167782  ;;  %v1590_v16 = vsel %vm1580_vm4, %v1576_v60, 1326507024 }
 0x196   : > { %v1492_v31 = vsub.s32 %v1488_v27, %v1491_v14  ;;  %v1589_v56 = vsel %vm1577_vm3, %v6734_v38, %v1570_v53  ;;  %vm1578_vm7 = vcmp.lt.s32.totalorder %v6717_v24, 2  ;;  %v1587_v25 = vsel %vm1579_vm6, %v1570_v53, %v1586_v29 }
 0x197   : > { %v1369_v34 = vadd.f32 1.0, %v1368_v22  ;;  %v1376_v54 = vadd.f32 1.0, %v1375_v40  ;;  %v1591_v50 = vsel %vm1579_vm6, %v1573_v2, %v1590_v16  ;;  %v6759_v51 = vshll.u32 %v1553_v48, 8 }
 0x198   : > { %vm1493_vm8 = vcmp.lt.s32.totalorder %v1492_v31, 0  ;;  %v1494_v6 = vsub.s32 0, %v1492_v31  ;;  %vm1381_vm9 = vcmp.lt.s32.totalorder %v1380_v9, 2  ;;  %vm1382_vm10 = vcmp.eq.s32.totalorder %v1380_v9, 0 }
 0x199   : > { %v1377_v30 = vmul.f32 %v1376_v54, %v1361_v39  ;;  %v1386_v7 = vxor.u32 2147483648, %v1369_v34  ;;  %v1588_v17 = vsel %vm1578_vm7, %v1585_v47, %v1587_v25  ;;  %v1592_v62 = vsel %vm1578_vm7, %v1589_v56, %v1591_v50 }
 0x19a   : > { %vm1385_vm11 = vcmp.eq.s32.totalorder %v1380_v9, 2  ;;  %v1495_v35 = vsel %vm1493_vm8, %v1494_v6, %v1492_v31  ;;  %v1596_v41 = vand.u32 65535, %v1592_v62  ;;  %v1594_v32 = vand.u32 65535, %v6759_v51 }
 0x19b   : > { %v1383_v10 = vxor.u32 2147483648, %v1377_v30  ;;  %v1496_v49 = vclz %v1495_v35  ;;  %v1595_v39 = vshrl.u32 %v6759_v51, 16  ;;  %v1597_v19 = vshrl.u32 %v1592_v62, 16 }
 0x19c   : > { %v1387_v27 = vsel %vm1385_vm11, %v1386_v7, %v1377_v30  ;;  %v1561_v11 = vshrl.u32 %v5790_v52, %v6712_v43  ;;  %v1619_v8 = vshrl.u32 %v1588_v17, 16  ;;  %v1618_v59 = vand.u32 65535, %v1588_v17 }
 0x19d   : > { %v1384_v33 = vsel %vm1382_vm10, %v1369_v34, %v1383_v10  ;;  %v5563_v12 = vadd.s32 4294967294, %v1496_v49  ;;  %v1600_v13 = vmul.u32 %v1596_v41, %v1595_v39  ;;  %v1484_v23 = vadd.s32 %v6704_v42, %v6702_v20 }
 0x19e   : > { %v1388_v44 = vsel %vm1381_vm9, %v1384_v33, %v1387_v27  ;;  %v1599_v37 = vmul.u32 %v1597_v19, %v1594_v32  ;;  %v1704_v2 = vshrl.u32 %v1703_v63, 23  ;;  %v1581_v28 = vsel %vm1577_vm3, %v1561_v11, %v1564_v46 }
 0x19f   : > { %v1389_v45 = vsel %vm1378_vm5, nan, %v1388_v44  ;;  %vm5564_vm12 = vcmp.lt.s32.totalorder %v5563_v12, 0  ;;  %v1582_v43 = vsel %vm1580_vm4, %v1570_v53, 2102212464  ;;  %v1598_v15 = vmul.u32 %v1596_v41, %v1594_v32 }
 0x1a0   : > { %5425 = vst [vmem:[%s6199_s9 + $0x28] sm:$0xff] %v1389_v45  ;;  %v1499_v60 = vsel %vm5564_vm12, 0, %v5563_v12  ;;  %v1601_v9 = vmul.u32 %v1597_v19, %v1595_v39  ;;  %v1602_v48 = vshll.u32 %v1599_v37, 16  ;;  %v1621_v22 = vmul.u32 %v1619_v8, %v1594_v32 }
 0x1a1   : > { %v1500_v57 = vsub.s32 32, %v1499_v60  ;;  %v1504_v40 = vsub.s32 4294967266, %v1499_v60  ;;  %v1604_v14 = vshll.u32 %v1600_v13, 16  ;;  %v1620_v47 = vmul.u32 %v1618_v59, %v1594_v32 }
 0x1a2   : > { %vm1606_vm13 = vc.u32 %v1598_v15, %v1602_v48  ;;  %v1608_v20 = vadd.s32 %v1602_v48, %v1598_v15  ;;  %v1622_v42 = vmul.u32 %v1618_v59, %v1595_v39  ;;  %v1624_v63 = vshll.u32 %v1621_v22, 16 }
 0x1a3   : > { %v1501_v29 = vshll.u32 %v1492_v31, %v1499_v60  ;;  %v1502_v16 = vshrl.u32 %v1484_v23, %v1500_v57  ;;  %v1505_v46 = vadd.s32 127, %v1504_v40  ;;  %v1607_v34 = vsel %vm1606_vm13, 1, %v5789_v0 }
 0x1a4   : > { %v1603_v53 = vshrl.u32 %v1599_v37, 16  ;;  %v1609_v54 = vadd.s32 %v1607_v34, %v1601_v9  ;;  %vm1610_vm14 = vc.u32 %v1608_v20, %v1604_v14  ;;  %v1623_v56 = vmul.u32 %v1619_v8, %v1595_v39 }
 0x1a5   : > { %v1503_v25 = vor.u32 %v1502_v16, %v1501_v29  ;;  %v1506_v50 = vshll.u32 %v1505_v46, 23  ;;  %v1611_v30 = vsel %vm1610_vm14, 1, %v5789_v0  ;;  %vm1628_vm15 = vc.u32 %v1620_v47, %v1624_v63 }
 0x1a6   : > { %v1613_v7 = vadd.s32 %v1611_v30, %v1609_v54  ;;  %v1626_v6 = vshll.u32 %v1622_v42, 16  ;;  %v1629_v17 = vsel %vm1628_vm15, 1, %v5789_v0  ;;  %v1630_v62 = vadd.s32 %v1624_v63, %v1620_v47 }
 0x1a7   : > { %v1507_v10 = vor.u32 4788187, %v1506_v50  ;;  %v1514_v31 = vsub.s32 4, %v6736_v26  ;;  %v1631_v35 = vadd.s32 %v1629_v17, %v1623_v56  ;;  %v5568_v41 = vadd.s32 4294967169, %v1704_v2 }
 0x1a8   : > { %v1583_v49 = vsel %vm1579_vm6, %v6734_v38, %v1582_v43  ;;  %v1605_v32 = vshrl.u32 %v1600_v13, 16  ;;  %v1614_v39 = vadd.s32 %v1613_v7, %v1603_v53  ;;  %vm1632_vm0 = vc.u32 %v1630_v62, %v1626_v6 }
 0x1a9   : > { %v1508_v19 = vand.u32 2147483647, %v1507_v10  ;;  %v1510_v33 = vcvt.s32.f32 %v1503_v25  ;;  %v1633_v27 = vsel %vm1632_vm0, 1, %v5789_v0  ;;  %v1710_v11 = vadd.s32 1, %v5568_v41 }
 0x1aa   : > { %v6787_v8 = vadd.s32 %v1614_v39, %v1605_v32  ;;  %v1625_v44 = vshrl.u32 %v1621_v22, 16  ;;  %v1635_v12 = vadd.s32 %v1633_v27, %v1631_v35  ;;  %v1700_v59 = vand.u32 2147483647, %v6708_v5 }
 0x1ab   : > { %vm1392_vm1 = vcmp.lt.s32.totalorder %v6481_v18, 0  ;;  %v1511_v45 = vmul.f32 %v1510_v33, %v1508_v19  ;;  %v1584_v38 = vsel %vm1578_vm7, %v1581_v28, %v1583_v49  ;;  %vm1711_vm2 = vcmp.gt.s32.totalorder %v1710_v11, 0 }
 0x1ac   : > { %v1627_v13 = vshrl.u32 %v1622_v42, 16  ;;  %v6793_v23 = vadd.s32 %v1630_v62, %v1626_v6  ;;  %v1636_v37 = vadd.s32 %v1635_v12, %v1625_v44  ;;  %v1712_v2 = vsel %vm1711_vm2, %v1710_v11, 0  ;;  %v282_v11 = vpop.permute.xlu1 %281  ;;  %v277_v44 = vpop.permute.xlu0 %276 }
 0x1ad   : > { %vm6797_vm3 = vcmp.le.f32.partialorder %v1390_v36, 0.7853982  ;;  %v1512_v15 = vxor.u32 2147483648, %v1511_v45  ;;  %v1515_v60 = vsel %vm1392_vm1, %v1514_v31, %v6736_v26  ;;  %v1714_v9 = vand.u32 31, %v1712_v2 }
 0x1ae   : > { %v1637_v24 = vadd.s32 %v1636_v37, %v1627_v13  ;;  %v1638_v28 = vmul.u32 %v6759_v51, %v1584_v38  ;;  %vm1640_vm4 = vc.u32 %v6787_v8, %v6793_v23  ;;  %v1707_v48 = vand.u32 8388607, %v1700_v59 }
 0x1af   : > { %v1513_v36 = vsel %vm1392_vm1, %v1512_v15, %v1511_v45  ;;  %v6811_v22 = vshrl.u32 %v1712_v2, 5  ;;  %v6813_v57 = vsub.s32 32, %v1714_v9  ;;  %v1717_v40 = vshll.u32 %v5790_v52, %v1714_v9 }
 0x1b0   : > { %v1516_v26 = vsel %vm6797_vm3, %v6481_v18, %v1513_v36  ;;  %v1641_v51 = vadd.s32 1, %v1637_v24  ;;  %v1720_v14 = vshll.u32 %v5791_v55, %v1714_v9  ;;  %v1726_v47 = vshll.u32 %v5793_v61, %v1714_v9 }
 0x1b1   : > { %v1518_v20 = vmul.f32 %v1516_v26, %v1516_v26  ;;  %v1718_v42 = vshrl.u32 %v5791_v55, %v6813_v57  ;;  %v1721_v63 = vshrl.u32 %v5792_v58, %v6813_v57  ;;  %v1723_v29 = vshll.u32 %v5792_v58, %v1714_v9 }
 0x1b2   : > { %v1642_v16 = vsel %vm1640_vm4, %v1641_v51, %v1637_v24  ;;  %v1724_v46 = vshrl.u32 %v5793_v61, %v6813_v57  ;;  %v1727_v34 = vshrl.u32 %v5794_v1, %v6813_v57  ;;  %v1729_v53 = vshll.u32 %v5794_v1, %v1714_v9 }
 0x1b3   : > { %v1519_v54 = vmul.f32 -0.001358992, %v1518_v20  ;;  %v1526_v56 = vmul.f32 -0.00019511016, %v1518_v20  ;;  %v1643_v25 = vadd.s32 %v1642_v16, %v1638_v28  ;;  %v1517_v50 = vsel %vm6797_vm3, 0, %v1515_v60 }
 0x1b4   : > { %v1708_v30 = vor.u32 8388608, %v1707_v48  ;;  %v1728_v7 = vor.u32 %v1727_v34, %v1726_v47  ;;  %v1730_v6 = vshrl.u32 %v5795_v3, %v6813_v57  ;;  %v6835_v31 = vor.u32 %v1718_v42, %v1717_v40  ;;  %v6870_v28 = vld [vmem:[%s9715_s1] ss:$0 sm:$0xff] }
 0x1b5   : > { %v1520_v17 = vadd.f32 0.041655596, %v1519_v54  ;;  %v1527_v62 = vadd.f32 0.008332121, %v1526_v56  ;;  %v1644_v10 = vadd.s32 536870912, %v1643_v25  ;;  %v6837_v35 = vor.u32 %v1721_v63, %v1720_v14 }
 0x1b6   : > { %v6839_v41 = vor.u32 %v1724_v46, %v1723_v29  ;;  %v1731_v49 = vor.u32 %v1730_v6, %v1729_v53  ;;  %vm1735_vm5 = vcmp.lt.s32.totalorder %v6811_v22, 4  ;;  %vm1732_vm6 = vcmp.lt.s32.totalorder %v6811_v22, 1  ;;  %v6890_v56 = vld [vmem:[%s9716_s2] ss:$0 sm:$0xff] }
 0x1b7   : > { %v1521_v32 = vmul.f32 %v1520_v17, %v1518_v20  ;;  %v1528_v39 = vmul.f32 %v1527_v62, %v1518_v20  ;;  %v6842_v19 = vshrl.u32 %v1644_v10, 30  ;;  %v1534_v33 = vadd.s32 3, %v1517_v50 }
 0x1b8   : > { %vm1734_vm7 = vcmp.lt.s32.totalorder %v6811_v22, 3  ;;  %v1741_v27 = vsel %vm1735_vm5, %v1728_v7, 920167782  ;;  %v6849_v13 = vshll.u32 %v1708_v30, 8  ;;  %vm1733_vm8 = vcmp.lt.s32.totalorder %v6811_v22, 2 }
 0x1b9   : > { %v1522_v12 = vadd.f32 -0.4999988, %v1521_v32  ;;  %v1529_v45 = vadd.f32 -0.16666654, %v1528_v39  ;;  %v1646_v38 = vshll.u32 %v6842_v19, 30  ;;  %v1740_v37 = vsel %vm1732_vm6, %v6835_v31, %v6837_v35 }
 0x1ba   : > { %v1744_v2 = vsel %vm1732_vm6, %v6837_v35, %v6839_v41  ;;  %v1745_v43 = vsel %vm1735_vm5, %v1731_v49, 1326507024  ;;  %v1742_v24 = vsel %vm1734_vm7, %v6839_v41, %v1741_v27  ;;  %v401_v48 = vmul.f32 %v6870_v28, %v277_v44 }
 0x1bb   : > { %v1523_v15 = vmul.f32 %v1522_v12, %v1518_v20  ;;  %v1530_v60 = vmul.f32 %v1529_v45, %v1518_v20  ;;  %v6862_v9 = vsub.s32 %v1643_v25, %v1646_v38  ;;  %v6874_v36 = vmul.f32 %v6870_v28, %v282_v11 }
 0x1bc   : > { %v1535_v40 = vand.u32 3, %v1534_v33  ;;  %v1746_v51 = vsel %vm1734_vm7, %v1728_v7, %v1745_v43  ;;  %v1743_v42 = vsel %vm1733_vm8, %v1740_v37, %v1742_v24  ;;  %v1749_v29 = vand.u32 65535, %v6849_v13 }
 0x1bd   : > { %v1524_v14 = vadd.f32 1.0, %v1523_v15  ;;  %v1531_v47 = vadd.f32 1.0, %v1530_v60  ;;  %vm1648_vm9 = vcmp.lt.s32.totalorder %v6862_v9, 0  ;;  %v1649_v20 = vsub.s32 0, %v6862_v9 }
 0x1be   : > { %v1747_v63 = vsel %vm1733_vm8, %v1744_v2, %v1746_v51  ;;  %v1750_v16 = vshrl.u32 %v6849_v13, 16  ;;  %v6893_v25 = vadd.f32 %v6890_v56, %v401_v48  ;;  %vm1533_vm10 = vweird.f32 %v6481_v18 }
 0x1bf   : > { %v1532_v46 = vmul.f32 %v1531_v47, %v1516_v26  ;;  %v1541_v34 = vxor.u32 2147483648, %v1524_v14  ;;  %v1650_v53 = vsel %vm1648_vm9, %v1649_v20, %v6862_v9  ;;  %v1751_v54 = vand.u32 65535, %v1747_v63 }
 0x1c0   : > { %v1651_v50 = vclz %v1650_v53  ;;  %v1752_v30 = vshrl.u32 %v1747_v63, 16  ;;  %vm1536_vm11 = vcmp.lt.s32.totalorder %v1535_v40, 2  ;;  %vm1537_vm12 = vcmp.eq.s32.totalorder %v1535_v40, 0 }
 0x1c1   : > { %v1538_v7 = vxor.u32 2147483648, %v1532_v46  ;;  %v6896_v26 = vmul.u32 %v1751_v54, %v1750_v16  ;;  %vm1540_vm13 = vcmp.eq.s32.totalorder %v1535_v40, 2  ;;  %v1773_v17 = vand.u32 65535, %v1743_v42 }
 0x1c2   : > { %v5566_v6 = vadd.s32 4294967294, %v1651_v50  ;;  %v1774_v62 = vshrl.u32 %v1743_v42, 16  ;;  %v1542_v49 = vsel %vm1540_vm13, %v1541_v34, %v1532_v46  ;;  %v1753_v32 = vmul.u32 %v1751_v54, %v1749_v29 }
 0x1c3   : > { %v1539_v10 = vsel %vm1537_vm12, %v1524_v14, %v1538_v7  ;;  %v1754_v39 = vmul.u32 %v1752_v30, %v1749_v29  ;;  %v1639_v27 = vadd.s32 %v6793_v23, %v6787_v8  ;;  %v1756_v11 = vmul.u32 %v1752_v30, %v1750_v16 }
 0x1c4   : > { %v1543_v33 = vsel %vm1536_vm11, %v1539_v10, %v1542_v49  ;;  %vm5567_vm14 = vcmp.lt.s32.totalorder %v5566_v6, 0  ;;  %v1759_v38 = vshll.u32 %v6896_v26, 16  ;;  %v1775_v43 = vmul.u32 %v1773_v17, %v1749_v29 }
 0x1c5   : > { %v1544_v44 = vsel %vm1533_vm10, nan, %v1543_v33  ;;  %v1654_v12 = vsel %vm5567_vm14, 0, %v5566_v6  ;;  %v1757_v45 = vshll.u32 %v1754_v39, 16  ;;  %v1776_v15 = vmul.u32 %v1774_v62, %v1749_v29 }
 0x1c6   : > { %v1655_v37 = vsub.s32 32, %v1654_v12  ;;  %v1659_v2 = vsub.s32 4294967266, %v1654_v12  ;;  %5426 = vst [vmem:[%s6199_s9 + $0x30] sm:$0xff] %v1544_v44  ;;  %vm1547_vm15 = vcmp.lt.s32.totalorder %v6608_v21, 0  ;;  %v1656_v60 = vshll.u32 %v6862_v9, %v1654_v12 }
 0x1c7   : > { %vm1761_vm0 = vc.u32 %v1753_v32, %v1757_v45  ;;  %v1763_v8 = vadd.s32 %v1757_v45, %v1753_v32  ;;  %v1777_v23 = vmul.u32 %v1773_v17, %v1750_v16  ;;  %v1779_v40 = vshll.u32 %v1776_v15, 16 }
 0x1c8   : > { %v1657_v24 = vshrl.u32 %v1639_v27, %v1655_v37  ;;  %v1660_v48 = vadd.s32 127, %v1659_v2  ;;  %v1762_v18 = vsel %vm1761_vm0, 1, %v5789_v0  ;;  %v1778_v14 = vmul.u32 %v1774_v62, %v1750_v16 }
 0x1c9   : > { %v1764_v51 = vadd.s32 %v1762_v18, %v1756_v11  ;;  %vm1765_vm1 = vc.u32 %v1763_v8, %v1759_v38  ;;  %v1781_v47 = vshll.u32 %v1777_v23, 16  ;;  %v1716_v63 = vshrl.u32 %v5790_v52, %v6813_v57 }
 0x1ca   : > { %v1658_v20 = vor.u32 %v1657_v24, %v1656_v60  ;;  %v1661_v42 = vshll.u32 %v1660_v48, 23  ;;  %v1766_v29 = vsel %vm1765_vm1, 1, %v5789_v0  ;;  %v1758_v9 = vshrl.u32 %v1754_v39, 16 }
 0x1cb   : > { %v1768_v46 = vadd.s32 %v1766_v29, %v1764_v51  ;;  %vm1783_vm2 = vc.u32 %v1775_v43, %v1779_v40  ;;  %v1785_v34 = vadd.s32 %v1779_v40, %v1775_v43  ;;  %v1669_v54 = vsub.s32 4, %v6842_v19 }
 0x1cc   : > { %v1662_v53 = vor.u32 4788187, %v1661_v42  ;;  %v1737_v50 = vsel %vm1735_vm5, %v6839_v41, 2102212464  ;;  %v1784_v16 = vsel %vm1783_vm2, 1, %v5789_v0  ;;  %v1665_v17 = vcvt.s32.f32 %v1658_v20 }
 0x1cd   : > { %v1769_v30 = vadd.s32 %v1768_v46, %v1758_v9  ;;  %v1786_v7 = vadd.s32 %v1784_v16, %v1778_v14  ;;  %vm1787_vm3 = vc.u32 %v1785_v34, %v1781_v47  ;;  %v1855_v57 = vand.u32 2147483647, %v6893_v25 }
 0x1ce   : > { %v1663_v6 = vand.u32 2147483647, %v1662_v53  ;;  %v1760_v62 = vshrl.u32 %v6896_v26, 16  ;;  %v1788_v10 = vsel %vm1787_vm3, 1, %v5789_v0  ;;  %v1736_v49 = vsel %vm1732_vm6, %v1716_v63, %v6835_v31 }
 0x1cf   : > { %v1780_v32 = vshrl.u32 %v1776_v15, 16  ;;  %v1790_v39 = vadd.s32 %v1788_v10, %v1786_v7  ;;  %v1858_v41 = vand.u32 2139095040, %v6893_v25  ;;  %v1670_v27 = vsel %vm1547_vm15, %v1669_v54, %v6842_v19  ;;  %v287_v15 = vpop.permute.xlu2 %286 }
 0x1d0   : > { %v1666_v33 = vmul.f32 %v1665_v17, %v1663_v6  ;;  %v1738_v11 = vsel %vm1734_vm7, %v6837_v35, %v1737_v50  ;;  %v1770_v26 = vadd.s32 %v1769_v30, %v1760_v62  ;;  %v1782_v44 = vshrl.u32 %v1777_v23, 16 }
 0x1d1   : > { %v1791_v12 = vadd.s32 %v1790_v39, %v1780_v32  ;;  %v1859_v45 = vshrl.u32 %v1858_v41, 23  ;;  %v1862_v31 = vand.u32 8388607, %v1855_v57  ;;  %v1789_v37 = vadd.s32 %v1785_v34, %v1781_v47 }
 0x1d2   : > { %v1667_v38 = vxor.u32 2147483648, %v1666_v33  ;;  %vm6932_vm4 = vcmp.le.f32.partialorder %v1545_v4, 0.7853982  ;;  %v1739_v19 = vsel %vm1733_vm8, %v1736_v49, %v1738_v11  ;;  %v6940_v60 = vadd.f32 %v6890_v56, %v6874_v36 }
 0x1d3   : > { %v1792_v43 = vadd.s32 %v1791_v12, %v1782_v44  ;;  %v5571_v35 = vadd.s32 4294967169, %v1859_v45  ;;  %v1672_v23 = vsel %vm6932_vm4, 0, %v1670_v27  ;;  %vm1795_vm5 = vc.u32 %v1770_v26, %v1789_v37 }
 0x1d4   : > { %v1668_v8 = vsel %vm1547_vm15, %v1667_v38, %v1666_v33  ;;  %v1863_v24 = vor.u32 8388608, %v1862_v31  ;;  %v1793_v40 = vmul.u32 %v6849_v13, %v1739_v19  ;;  %v403_v36 = vmul.f32 %v6870_v28, %v287_v15 }
 0x1d5   : > { %v1671_v4 = vsel %vm6932_vm4, %v6608_v21, %v1668_v8  ;;  %v1796_v22 = vadd.s32 1, %v1792_v43  ;;  %v1865_v48 = vadd.s32 1, %v5571_v35  ;;  %v1689_v51 = vadd.s32 3, %v1672_v23 }
 0x1d6   : > { %v1673_v18 = vmul.f32 %v1671_v4, %v1671_v4  ;;  %v6951_v9 = vshll.u32 %v1863_v24, 8  ;;  %v2010_v46 = vand.u32 2147483647, %v6940_v60  ;;  %v2013_v34 = vand.u32 2139095040, %v6940_v60 }
 0x1d7   : > { %v1797_v14 = vsel %vm1795_vm5, %v1796_v22, %v1792_v43  ;;  %vm1866_vm6 = vcmp.gt.s32.totalorder %v1865_v48, 0  ;;  %v6956_v13 = vadd.f32 %v6890_v56, %v403_v36  ;;  %v1690_v16 = vand.u32 3, %v1689_v51 }
 0x1d8   : > { %v1674_v47 = vmul.f32 -0.001358992, %v1673_v18  ;;  %v1681_v20 = vmul.f32 -0.00019511016, %v1673_v18  ;;  %v1798_v42 = vadd.s32 %v1797_v14, %v1793_v40  ;;  %v1867_v63 = vsel %vm1866_vm6, %v1865_v48, 0 }
 0x1d9   : > { %v1869_v29 = vand.u32 31, %v1867_v63  ;;  %v6958_v17 = vadd.s32 %v1789_v37, %v1770_v26  ;;  %vm1702_vm7 = vcmp.lt.s32.totalorder %v6708_v5, 0  ;;  %v6962_v10 = vand.u32 65535, %v6951_v9 }
 0x1da   : > { %v1675_v53 = vadd.f32 0.041655596, %v1674_v47  ;;  %v1682_v54 = vadd.f32 0.008332121, %v1681_v20  ;;  %v1799_v50 = vadd.s32 536870912, %v1798_v42  ;;  %v6965_v49 = vshrl.u32 %v6951_v9, 16 }
 0x1db   : > { %v1870_v30 = vsub.s32 32, %v1869_v29  ;;  %v2014_v32 = vshrl.u32 %v2013_v34, 23  ;;  %v6969_v39 = vand.u32 8388607, %v2010_v46  ;;  %v6971_v11 = vshrl.u32 %v1867_v63, 5 }
 0x1dc   : > { %v1676_v7 = vmul.f32 %v1675_v53, %v1673_v18  ;;  %v1683_v6 = vmul.f32 %v1682_v54, %v1673_v18  ;;  %v1800_v62 = vshrl.u32 %v1799_v50, 30  ;;  %vm1692_vm8 = vcmp.eq.s32.totalorder %v1690_v16, 0 }
 0x1dd   : > { %vm1695_vm9 = vcmp.eq.s32.totalorder %v1690_v16, 2  ;;  %v1872_v26 = vshll.u32 %v5790_v52, %v1869_v29  ;;  %v1873_v44 = vshrl.u32 %v5791_v55, %v1870_v30  ;;  %v1876_v12 = vshrl.u32 %v5792_v58, %v1870_v30 }
 0x1de   : > { %v1677_v41 = vadd.f32 -0.4999988, %v1676_v7  ;;  %v1684_v33 = vadd.f32 -0.16666654, %v1683_v6  ;;  %v1801_v27 = vshll.u32 %v1800_v62, 30  ;;  %v1882_v45 = vshrl.u32 %v5794_v1, %v1870_v30 }
 0x1df   : > { %vm1691_vm10 = vcmp.lt.s32.totalorder %v1690_v16, 2  ;;  %v1875_v2 = vshll.u32 %v5791_v55, %v1869_v29  ;;  %vm1688_vm11 = vweird.f32 %v6608_v21  ;;  %v1824_v19 = vsub.s32 4, %v1800_v62 }
 0x1e0   : > { %v1678_v31 = vmul.f32 %v1677_v41, %v1673_v18  ;;  %v1685_v38 = vmul.f32 %v1684_v33, %v1673_v18  ;;  %v1802_v37 = vsub.s32 %v1798_v42, %v1801_v27  ;;  %v1879_v43 = vshrl.u32 %v5793_v61, %v1870_v30 }
 0x1e1   : > { %v1881_v35 = vshll.u32 %v5793_v61, %v1869_v29  ;;  %v1885_v15 = vshrl.u32 %v5795_v3, %v1870_v30  ;;  %v1874_v24 = vor.u32 %v1873_v44, %v1872_v26  ;;  %v1877_v48 = vor.u32 %v1876_v12, %v1875_v2 }
 0x1e2   : > { %v1679_v8 = vadd.f32 1.0, %v1678_v31  ;;  %v1686_v23 = vadd.f32 1.0, %v1685_v38  ;;  %vm1803_vm12 = vcmp.lt.s32.totalorder %v1802_v37, 0  ;;  %v1804_v22 = vsub.s32 0, %v1802_v37 }
 0x1e3   : > { %v1878_v18 = vshll.u32 %v5792_v58, %v1869_v29  ;;  %v1883_v40 = vor.u32 %v1882_v45, %v1881_v35  ;;  %v1884_v47 = vshll.u32 %v5794_v1, %v1869_v29  ;;  %vm6986_vm13 = vcmp.le.f32.partialorder %v1700_v59, 0.7853982 }
 0x1e4   : > { %v1687_v36 = vmul.f32 %v1686_v23, %v1671_v4  ;;  %v1696_v51 = vxor.u32 2147483648, %v1679_v8  ;;  %v1805_v14 = vsel %vm1803_vm12, %v1804_v22, %v1802_v37  ;;  %v1871_v63 = vshrl.u32 %v5790_v52, %v1870_v30 }
 0x1e5   : > { %v1806_v42 = vclz %v1805_v14  ;;  %v1880_v34 = vor.u32 %v1879_v43, %v1878_v18  ;;  %v5574_v53 = vadd.s32 4294967169, %v2014_v32  ;;  %v6993_v50 = vsel %vm1702_vm7, %v1824_v19, %v1800_v62 }
 0x1e6   : > { %v1693_v54 = vxor.u32 2147483648, %v1687_v36  ;;  %v1886_v4 = vor.u32 %v1885_v15, %v1884_v47  ;;  %vm1887_vm14 = vcmp.lt.s32.totalorder %v6971_v11, 1  ;;  %vm1888_vm15 = vcmp.lt.s32.totalorder %v6971_v11, 2 }
 0x1e7   : > { %v5569_v29 = vadd.s32 4294967294, %v1806_v42  ;;  %vm1890_vm0 = vcmp.lt.s32.totalorder %v6971_v11, 4  ;;  %v1895_v59 = vsel %vm1887_vm14, %v1874_v24, %v1877_v48  ;;  %v1697_v7 = vsel %vm1695_vm9, %v1696_v51, %v1687_v36 }
 0x1e8   : > { %v1694_v30 = vsel %vm1692_vm8, %v1679_v8, %v1693_v54  ;;  %vm1889_vm1 = vcmp.lt.s32.totalorder %v6971_v11, 3  ;;  %v1896_v6 = vsel %vm1890_vm0, %v1883_v40, 920167782  ;;  %v1899_v41 = vsel %vm1887_vm14, %v1877_v48, %v1880_v34 }
 0x1e9   : > { %v1698_v62 = vsel %vm1691_vm10, %v1694_v30, %v1697_v7  ;;  %vm5570_vm2 = vcmp.lt.s32.totalorder %v5569_v29, 0  ;;  %v1897_v32 = vsel %vm1889_vm1, %v1880_v34, %v1896_v6  ;;  %v1900_v44 = vsel %vm1890_vm0, %v1886_v4, 1326507024 }
 0x1ea   : > { %v1699_v33 = vsel %vm1688_vm11, nan, %v1698_v62  ;;  %v1809_v27 = vsel %vm5570_vm2, 0, %v5569_v29  ;;  %v1898_v26 = vsel %vm1888_vm15, %v1895_v59, %v1897_v32  ;;  %v1892_v45 = vsel %vm1890_vm0, %v1880_v34, 2102212464 }
 0x1eb   : > { %v1810_v12 = vsub.s32 32, %v1809_v27  ;;  %v1814_v16 = vsub.s32 4294967266, %v1809_v27  ;;  %v1901_v31 = vsel %vm1889_vm1, %v1883_v40, %v1900_v44  ;;  %5427 = vst [vmem:[%s6199_s9 + $0x38] sm:$0xff] %v1699_v33  ;;  %v1811_v38 = vshll.u32 %v1802_v37, %v1809_v27 }
 0x1ec   : > { %v1902_v21 = vsel %vm1888_vm15, %v1899_v41, %v1901_v31  ;;  %v1928_v2 = vand.u32 65535, %v1898_v26  ;;  %v1929_v19 = vshrl.u32 %v1898_v26, 16  ;;  %v1827_v23 = vsel %vm6986_vm13, 0, %v6993_v50 }
 0x1ed   : > { %v1812_v43 = vshrl.u32 %v6958_v17, %v1810_v12  ;;  %v1815_v35 = vadd.s32 127, %v1814_v16  ;;  %v1906_v15 = vand.u32 65535, %v1902_v21  ;;  %v1907_v8 = vshrl.u32 %v1902_v21, 16 }
 0x1ee   : > { %v1931_v22 = vmul.u32 %v1929_v19, %v6962_v10  ;;  %v1932_v18 = vmul.u32 %v1928_v2, %v6965_v49  ;;  %v2020_v40 = vadd.s32 1, %v5574_v53  ;;  %v1891_v51 = vsel %vm1887_vm14, %v1871_v63, %v1874_v24 }
 0x1ef   : > { %v1813_v37 = vor.u32 %v1812_v43, %v1811_v38  ;;  %v1816_v36 = vshll.u32 %v1815_v35, 23  ;;  %v1909_v14 = vmul.u32 %v1907_v8, %v6962_v10  ;;  %v1893_v17 = vsel %vm1889_vm1, %v1877_v48, %v1892_v45 }
 0x1f0   : > { %v1910_v47 = vmul.u32 %v1906_v15, %v6965_v49  ;;  %v1930_v42 = vmul.u32 %v1928_v2, %v6962_v10  ;;  %v1934_v34 = vshll.u32 %v1931_v22, 16  ;;  %v1908_v50 = vmul.u32 %v1906_v15, %v6962_v10 }
 0x1f1   : > { %v1817_v54 = vor.u32 4788187, %v1816_v36  ;;  %v1912_v4 = vshll.u32 %v1909_v14, 16  ;;  %v1933_v53 = vmul.u32 %v1929_v19, %v6965_v49  ;;  %v1820_v29 = vcvt.s32.f32 %v1813_v37 }
 0x1f2   : > { %v1911_v59 = vmul.u32 %v1907_v8, %v6965_v49  ;;  %v1914_v24 = vshll.u32 %v1910_v47, 16  ;;  %v1936_v63 = vshll.u32 %v1932_v18, 16  ;;  %vm1938_vm4 = vc.u32 %v1930_v42, %v1934_v34 }
 0x1f3   : > { %v1818_v30 = vand.u32 2147483647, %v1817_v54  ;;  %vm1916_vm3 = vc.u32 %v1908_v50, %v1912_v4  ;;  %v1918_v7 = vadd.s32 %v1912_v4, %v1908_v50  ;;  %v1939_v6 = vsel %vm1938_vm4, 1, %v5789_v0 }
 0x1f4   : > { %v1917_v48 = vsel %vm1916_vm3, 1, %v5789_v0  ;;  %v1940_v62 = vadd.s32 %v1934_v34, %v1930_v42  ;;  %vm2021_vm5 = vcmp.gt.s32.totalorder %v2020_v40, 0  ;;  %v1941_v41 = vadd.s32 %v1939_v6, %v1933_v53 }
 0x1f5   : > { %v1821_v32 = vmul.f32 %v1820_v29, %v1818_v30  ;;  %v1919_v10 = vadd.s32 %v1917_v48, %v1911_v59  ;;  %vm1920_vm6 = vc.u32 %v1918_v7, %v1914_v24  ;;  %v1894_v33 = vsel %vm1888_vm15, %v1891_v51, %v1893_v17 }
 0x1f6   : > { %v1921_v49 = vsel %vm1920_vm6, 1, %v5789_v0  ;;  %vm1942_vm8 = vc.u32 %v1940_v62, %v1936_v63  ;;  %v2022_v27 = vsel %vm2021_vm5, %v2020_v40, 0  ;;  %v1913_v44 = vshrl.u32 %v1909_v14, 16 }
 0x1f7   : > { %v1822_v26 = vxor.u32 2147483648, %v1821_v32  ;;  %v1923_v12 = vadd.s32 %v1921_v49, %v1919_v10  ;;  %v1943_v16 = vsel %vm1942_vm8, 1, %v5789_v0  ;;  %v1844_v45 = vadd.s32 3, %v1827_v23 }
 0x1f8   : > { %v1935_v31 = vshrl.u32 %v1931_v22, 16  ;;  %v1945_v38 = vadd.s32 %v1943_v16, %v1941_v41  ;;  %v2024_v21 = vand.u32 31, %v2022_v27  ;;  %v1915_v19 = vshrl.u32 %v1910_v47, 16 }
 0x1f9   : > { %v1823_v2 = vsel %vm1702_vm7, %v1822_v26, %v1821_v32  ;;  %v1924_v43 = vadd.s32 %v1923_v12, %v1913_v44  ;;  %v1948_v11 = vmul.u32 %v6951_v9, %v1894_v33  ;;  %v1937_v15 = vshrl.u32 %v1932_v18, 16 }
 0x1fa   : > { %v1826_v35 = vsel %vm6986_vm13, %v6708_v5, %v1823_v2  ;;  %v1946_v8 = vadd.s32 %v1945_v38, %v1935_v31  ;;  %v7051_v40 = vsub.s32 32, %v2024_v21  ;;  %v7055_v22 = vadd.s32 %v1940_v62, %v1936_v63 }
 0x1fb   : > { %v1828_v37 = vmul.f32 %v1826_v35, %v1826_v35  ;;  %v7053_v23 = vadd.s32 %v1924_v43, %v1915_v19  ;;  %v7057_v36 = vshrl.u32 %v2022_v27, 5  ;;  %v2027_v14 = vshll.u32 %v5790_v52, %v2024_v21 }
 0x1fc   : > { %v1947_v51 = vadd.s32 %v1946_v8, %v1937_v15  ;;  %v2030_v9 = vshll.u32 %v5791_v55, %v2024_v21  ;;  %v2031_v20 = vshrl.u32 %v5792_v58, %v7051_v40  ;;  %v2033_v47 = vshll.u32 %v5792_v58, %v2024_v21 }
 0x1fd   : > { %v1829_v17 = vmul.f32 -0.001358992, %v1828_v37  ;;  %v1836_v18 = vmul.f32 -0.00019511016, %v1828_v37  ;;  %vm1950_vm7 = vc.u32 %v7053_v23, %v7055_v22  ;;  %v2028_v34 = vshrl.u32 %v5791_v55, %v7051_v40 }
 0x1fe   : > { %v1951_v42 = vadd.s32 1, %v1947_v51  ;;  %v7068_v54 = vor.u32 %v2031_v20, %v2030_v9  ;;  %v2034_v50 = vshrl.u32 %v5793_v61, %v7051_v40  ;;  %v2036_v29 = vshll.u32 %v5793_v61, %v2024_v21 }
 0x1ff   : > { %v1830_v4 = vadd.f32 0.041655596, %v1829_v17  ;;  %v1837_v53 = vadd.f32 0.008332121, %v1836_v18  ;;  %v2037_v59 = vshrl.u32 %v5794_v1, %v7051_v40  ;;  %v2039_v30 = vshll.u32 %v5794_v1, %v2024_v21 }
 0x200   : > { %v1952_v24 = vsel %vm1950_vm7, %v1951_v42, %v1947_v51  ;;  %v7075_v63 = vor.u32 %v2034_v50, %v2033_v47  ;;  %v2040_v7 = vshrl.u32 %v5795_v3, %v7051_v40  ;;  %v1845_v10 = vand.u32 3, %v1844_v45 }
 0x201   : > { %v1831_v48 = vmul.f32 %v1830_v4, %v1828_v37  ;;  %v1838_v6 = vmul.f32 %v1837_v53, %v1828_v37  ;;  %v1953_v62 = vadd.s32 %v1952_v24, %v1948_v11  ;;  %v2038_v32 = vor.u32 %v2037_v59, %v2036_v29 }
 0x202   : > { %v2018_v41 = vor.u32 8388608, %v6969_v39  ;;  %v2029_v33 = vor.u32 %v2028_v34, %v2027_v14  ;;  %v2041_v49 = vor.u32 %v2040_v7, %v2039_v30  ;;  %vm2045_vm9 = vcmp.lt.s32.totalorder %v7057_v36, 4 }
 0x203   : > { %v1832_v27 = vadd.f32 -0.4999988, %v1831_v48  ;;  %v1839_v26 = vadd.f32 -0.16666654, %v1838_v6  ;;  %v1954_v44 = vadd.s32 536870912, %v1953_v62  ;;  %vm2042_vm10 = vcmp.lt.s32.totalorder %v7057_v36, 1 }
 0x204   : > { %vm2044_vm11 = vcmp.lt.s32.totalorder %v7057_v36, 3  ;;  %v2051_v12 = vsel %vm2045_vm9, %v2038_v32, 920167782  ;;  %v2055_v16 = vsel %vm2045_vm9, %v2041_v49, 1326507024  ;;  %v2054_v38 = vsel %vm2042_vm10, %v7068_v54, %v7075_v63 }
 0x205   : > { %v1833_v45 = vmul.f32 %v1832_v27, %v1828_v37  ;;  %v1840_v31 = vmul.f32 %v1839_v26, %v1828_v37  ;;  %v7088_v39 = vshrl.u32 %v1954_v44, 30  ;;  %vm2043_vm12 = vcmp.lt.s32.totalorder %v7057_v36, 2 }
 0x206   : > { %v2050_v21 = vsel %vm2042_vm10, %v2029_v33, %v7068_v54  ;;  %v2056_v2 = vsel %vm2044_vm11, %v2038_v32, %v2055_v16  ;;  %v7100_v19 = vshll.u32 %v2018_v41, 8  ;;  %v2052_v8 = vsel %vm2044_vm11, %v7075_v63, %v2051_v12 }
 0x207   : > { %v1834_v43 = vadd.f32 1.0, %v1833_v45  ;;  %v1841_v11 = vadd.f32 1.0, %v1840_v31  ;;  %v1956_v15 = vshll.u32 %v7088_v39, 30  ;;  %vm1843_vm13 = vweird.f32 %v6708_v5 }
 0x208   : > { %vm1846_vm14 = vcmp.lt.s32.totalorder %v1845_v10, 2  ;;  %v2057_v37 = vsel %vm2043_vm12, %v2054_v38, %v2056_v2  ;;  %v2168_v51 = vand.u32 2139095040, %v6956_v13  ;;  %vm1850_vm15 = vcmp.eq.s32.totalorder %v1845_v10, 2 }
 0x209   : > { %v1842_v14 = vmul.f32 %v1841_v11, %v1826_v35  ;;  %v1851_v9 = vxor.u32 2147483648, %v1834_v43  ;;  %v1957_v20 = vsub.s32 %v1953_v62, %v1956_v15  ;;  %v2053_v17 = vsel %vm2043_vm12, %v2050_v21, %v2052_v8 }
 0x20a   : > { %v2059_v18 = vand.u32 65535, %v7100_v19  ;;  %v2061_v47 = vand.u32 65535, %v2057_v37  ;;  %v2062_v42 = vshrl.u32 %v2057_v37, 16  ;;  %v2060_v4 = vshrl.u32 %v7100_v19, 16 }
 0x20b   : > { %v1848_v34 = vxor.u32 2147483648, %v1842_v14  ;;  %vm1958_vm0 = vcmp.lt.s32.totalorder %v1957_v20, 0  ;;  %v1959_v50 = vsub.s32 0, %v1957_v20  ;;  %vm1847_vm1 = vcmp.eq.s32.totalorder %v1845_v10, 0 }
 0x20c   : > { %v1852_v53 = vsel %vm1850_vm15, %v1851_v9, %v1842_v14  ;;  %v2026_v35 = vshrl.u32 %v5790_v52, %v7051_v40  ;;  %v2064_v29 = vmul.u32 %v2062_v42, %v2059_v18  ;;  %v2065_v30 = vmul.u32 %v2061_v47, %v2060_v4 }
 0x20d   : > { %v1849_v59 = vsel %vm1847_vm1, %v1834_v43, %v1848_v34  ;;  %v1960_v24 = vsel %vm1958_vm0, %v1959_v50, %v1957_v20  ;;  %v2084_v7 = vshrl.u32 %v2053_v17, 16  ;;  %v2083_v32 = vand.u32 65535, %v2053_v17 }
 0x20e   : > { %v1853_v48 = vsel %vm1846_vm14, %v1849_v59, %v1852_v53  ;;  %v1961_v6 = vclz %v1960_v24  ;;  %v2067_v62 = vshll.u32 %v2064_v29, 16  ;;  %v1949_v49 = vadd.s32 %v7055_v22, %v7053_v23 }
 0x20f   : > { %v1854_v41 = vsel %vm1843_vm13, nan, %v1853_v48  ;;  %v2063_v27 = vmul.u32 %v2061_v47, %v2059_v18  ;;  %v2169_v26 = vshrl.u32 %v2168_v51, 23  ;;  %v2046_v44 = vsel %vm2042_vm10, %v2026_v35, %v2029_v33 }
 0x210   : > { %v5572_v40 = vadd.s32 4294967294, %v1961_v6  ;;  %v2047_v10 = vsel %vm2045_vm9, %v7075_v63, 2102212464  ;;  %v2066_v12 = vmul.u32 %v2062_v42, %v2060_v4  ;;  %5428 = vst [vmem:[%s6199_s9 + $0x40] sm:$0xff] %v1854_v41  ;;  %v2069_v16 = vshll.u32 %v2065_v30, 16  ;;  %v297_v6 = vpop.permute.xlu1 %296 }
 0x211   : > { %vm2071_vm2 = vc.u32 %v2063_v27, %v2067_v62  ;;  %v2073_v45 = vadd.s32 %v2067_v62, %v2063_v27  ;;  %v2086_v5 = vmul.u32 %v2084_v7, %v2059_v18  ;;  %v2068_v31 = vshrl.u32 %v2064_v29, 16 }
 0x212   : > { %vm5573_vm3 = vcmp.lt.s32.totalorder %v5572_v40, 0  ;;  %v2072_v23 = vsel %vm2071_vm2, 1, %v5789_v0  ;;  %v2087_v22 = vmul.u32 %v2083_v32, %v2060_v4  ;;  %v2085_v63 = vmul.u32 %v2083_v32, %v2059_v18 }
 0x213   : > { %v1964_v38 = vsel %vm5573_vm3, 0, %v5572_v40  ;;  %v2074_v21 = vadd.s32 %v2072_v23, %v2066_v12  ;;  %vm2075_vm4 = vc.u32 %v2073_v45, %v2069_v16  ;;  %v2089_v2 = vshll.u32 %v2086_v5, 16 }
 0x214   : > { %v1965_v33 = vsub.s32 32, %v1964_v38  ;;  %v1969_v43 = vsub.s32 4294967266, %v1964_v38  ;;  %v2076_v11 = vsel %vm2075_vm4, 1, %v5789_v0  ;;  %v1966_v15 = vshll.u32 %v1957_v20, %v1964_v38  ;;  %v292_v38 = vpop.permute.xlu0 %291 }
 0x215   : > { %v2078_v8 = vadd.s32 %v2076_v11, %v2074_v21  ;;  %v2088_v37 = vmul.u32 %v2084_v7, %v2060_v4  ;;  %v2091_v51 = vshll.u32 %v2087_v22, 16  ;;  %vm2093_vm5 = vc.u32 %v2085_v63, %v2089_v2 }
 0x216   : > { %v1967_v14 = vshrl.u32 %v1949_v49, %v1965_v33  ;;  %v1970_v9 = vadd.s32 127, %v1969_v43  ;;  %v2095_v17 = vadd.s32 %v2089_v2, %v2085_v63  ;;  %v2048_v47 = vsel %vm2044_vm11, %v7068_v54, %v2047_v10 }
 0x217   : > { %v2079_v42 = vadd.s32 %v2078_v8, %v2068_v31  ;;  %v2094_v34 = vsel %vm2093_vm5, 1, %v5789_v0  ;;  %v5577_v50 = vadd.s32 4294967169, %v2169_v26  ;;  %v1979_v20 = vsub.s32 4, %v7088_v39 }
 0x218   : > { %v1968_v53 = vor.u32 %v1967_v14, %v1966_v15  ;;  %v1971_v35 = vshll.u32 %v1970_v9, 23  ;;  %v2096_v29 = vadd.s32 %v2094_v34, %v2088_v37  ;;  %vm2097_vm6 = vc.u32 %v2095_v17, %v2091_v51 }
 0x219   : > { %v2070_v18 = vshrl.u32 %v2065_v30, 16  ;;  %v2098_v4 = vsel %vm2097_vm6, 1, %v5789_v0  ;;  %v2090_v24 = vshrl.u32 %v2086_v5, 16  ;;  %v2175_v48 = vadd.s32 1, %v5577_v50 }
 0x21a   : > { %v1972_v59 = vor.u32 4788187, %v1971_v35  ;;  %v2100_v7 = vadd.s32 %v2098_v4, %v2096_v29  ;;  %vm1857_vm8 = vcmp.lt.s32.totalorder %v6893_v25, 0  ;;  %v2049_v54 = vsel %vm2043_vm12, %v2046_v44, %v2048_v47 }
 0x21b   : > { %v7138_v62 = vadd.s32 %v2079_v42, %v2070_v18  ;;  %v2092_v32 = vshrl.u32 %v2087_v22, 16  ;;  %v1975_v49 = vcvt.s32.f32 %v1968_v53  ;;  %vm2176_vm7 = vcmp.gt.s32.totalorder %v2175_v48, 0 }
 0x21c   : > { %v1973_v41 = vand.u32 2147483647, %v1972_v59  ;;  %v2101_v27 = vadd.s32 %v2100_v7, %v2090_v24  ;;  %v1980_v30 = vsel %vm1857_vm8, %v1979_v20, %v7088_v39  ;;  %v7143_v26 = vadd.s32 %v2095_v17, %v2091_v51 }
 0x21d   : > { %v2177_v40 = vsel %vm2176_vm7, %v2175_v48, 0  ;;  %v405_v10 = vmul.f32 %v6870_v28, %v297_v6  ;;  %vm7148_vm9 = vcmp.le.f32.partialorder %v1855_v57, 0.7853982  ;;  %v2103_v45 = vmul.u32 %v7100_v19, %v2049_v54 }
 0x21e   : > { %v1976_v12 = vmul.f32 %v1975_v49, %v1973_v41  ;;  %v2102_v16 = vadd.s32 %v2101_v27, %v2092_v32  ;;  %v2179_v36 = vand.u32 31, %v2177_v40  ;;  %vm2105_vm10 = vc.u32 %v7138_v62, %v7143_v26 }
 0x21f   : > { %v2165_v39 = vand.u32 2147483647, %v6956_v13  ;;  %v1982_v31 = vsel %vm7148_vm9, 0, %v1980_v30  ;;  %v7160_v21 = vshrl.u32 %v2177_v40, 5  ;;  %v404_v14 = vmul.f32 %v6870_v28, %v292_v38 }
 0x220   : > { %v1977_v5 = vxor.u32 2147483648, %v1976_v12  ;;  %v2106_v23 = vadd.s32 1, %v2102_v16  ;;  %v7158_v22 = vsub.s32 32, %v2179_v36  ;;  %v2182_v57 = vshll.u32 %v5790_v52, %v2179_v36 }
 0x221   : > { %v2185_v2 = vshll.u32 %v5791_v55, %v2179_v36  ;;  %v2188_v19 = vshll.u32 %v5792_v58, %v2179_v36  ;;  %v2191_v63 = vshll.u32 %v5793_v61, %v2179_v36  ;;  %v1999_v17 = vadd.s32 3, %v1982_v31 }
 0x222   : > { %v1978_v33 = vsel %vm1857_vm8, %v1977_v5, %v1976_v12  ;;  %v2107_v43 = vsel %vm2105_vm10, %v2106_v23, %v2102_v16  ;;  %v2183_v11 = vshrl.u32 %v5791_v55, %v7158_v22  ;;  %v2186_v37 = vshrl.u32 %v5792_v58, %v7158_v22 }
 0x223   : > { %v1981_v15 = vsel %vm7148_vm9, %v6893_v25, %v1978_v33  ;;  %v2108_v8 = vadd.s32 %v2107_v43, %v2103_v45  ;;  %v2189_v51 = vshrl.u32 %v5793_v61, %v7158_v22  ;;  %v2192_v47 = vshrl.u32 %v5794_v1, %v7158_v22 }
 0x224   : > { %v1983_v9 = vmul.f32 %v1981_v15, %v1981_v15  ;;  %v2172_v34 = vand.u32 8388607, %v2165_v39  ;;  %v2194_v50 = vshll.u32 %v5794_v1, %v2179_v36  ;;  %v2195_v53 = vshrl.u32 %v5795_v3, %v7158_v22 }
 0x225   : > { %v2109_v42 = vadd.s32 536870912, %v2108_v8  ;;  %v7185_v20 = vor.u32 %v2183_v11, %v2182_v57  ;;  %v2193_v18 = vor.u32 %v2192_v47, %v2191_v63  ;;  %v7189_v4 = vor.u32 %v2186_v37, %v2185_v2 }
 0x226   : > { %v1984_v35 = vmul.f32 -0.001358992, %v1983_v9  ;;  %v1991_v29 = vmul.f32 -0.00019511016, %v1983_v9  ;;  %v7191_v59 = vor.u32 %v2189_v51, %v2188_v19  ;;  %vm2200_vm11 = vcmp.lt.s32.totalorder %v7160_v21, 4 }
 0x227   : > { %v7187_v28 = vshrl.u32 %v2109_v42, 30  ;;  %vm2197_vm12 = vcmp.lt.s32.totalorder %v7160_v21, 1  ;;  %vm2199_vm13 = vcmp.lt.s32.totalorder %v7160_v21, 3  ;;  %v7197_v48 = vadd.f32 %v6890_v56, %v405_v10 }
 0x228   : > { %v1985_v24 = vadd.f32 0.041655596, %v1984_v35  ;;  %v1992_v7 = vadd.f32 0.008332121, %v1991_v29  ;;  %v2173_v54 = vor.u32 8388608, %v2172_v34  ;;  %v2196_v32 = vor.u32 %v2195_v53, %v2194_v50 }
 0x229   : > { %v2111_v6 = vshll.u32 %v7187_v28, 30  ;;  %v2000_v27 = vand.u32 3, %v1999_v17  ;;  %v2206_v30 = vsel %vm2200_vm11, %v2193_v18, 920167782  ;;  %vm2198_vm14 = vcmp.lt.s32.totalorder %v7160_v21, 2 }
 0x22a   : > { %v1986_v41 = vmul.f32 %v1985_v24, %v1983_v9  ;;  %v1993_v49 = vmul.f32 %v1992_v7, %v1983_v9  ;;  %v2205_v10 = vsel %vm2197_vm12, %v7185_v20, %v7189_v4  ;;  %v2207_v12 = vsel %vm2199_vm13, %v7191_v59, %v2206_v30 }
 0x22b   : > { %v7202_v40 = vsub.s32 %v2108_v8, %v2111_v6  ;;  %v7213_v16 = vadd.f32 %v6890_v56, %v404_v14  ;;  %v2209_v45 = vsel %vm2197_vm12, %v7189_v4, %v7191_v59  ;;  %v2210_v31 = vsel %vm2200_vm11, %v2196_v32, 1326507024 }
 0x22c   : > { %v1987_v36 = vadd.f32 -0.4999988, %v1986_v41  ;;  %v1994_v44 = vadd.f32 -0.16666654, %v1993_v49  ;;  %v7223_v23 = vshll.u32 %v2173_v54, 8  ;;  %vm2001_vm0 = vcmp.lt.s32.totalorder %v2000_v27, 2 }
 0x22d   : > { %vm2113_vm15 = vcmp.lt.s32.totalorder %v7202_v40, 0  ;;  %v2114_v5 = vsub.s32 0, %v7202_v40  ;;  %v2208_v56 = vsel %vm2198_vm14, %v2205_v10, %v2207_v12  ;;  %v2211_v2 = vsel %vm2199_vm13, %v2193_v18, %v2210_v31 }
 0x22e   : > { %v1988_v38 = vmul.f32 %v1987_v36, %v1983_v9  ;;  %v1995_v57 = vmul.f32 %v1994_v44, %v1983_v9  ;;  %vm1998_vm1 = vweird.f32 %v6893_v25  ;;  %vm2002_vm2 = vcmp.eq.s32.totalorder %v2000_v27, 0 }
 0x22f   : > { %vm2005_vm3 = vcmp.eq.s32.totalorder %v2000_v27, 2  ;;  %v2115_v19 = vsel %vm2113_vm15, %v2114_v5, %v7202_v40  ;;  %v2212_v33 = vsel %vm2198_vm14, %v2209_v45, %v2211_v2  ;;  %v2214_v37 = vand.u32 65535, %v7223_v23 }
 0x230   : > { %v1989_v43 = vadd.f32 1.0, %v1988_v38  ;;  %v1996_v11 = vadd.f32 1.0, %v1995_v57  ;;  %v2116_v63 = vclz %v2115_v19  ;;  %v2216_v8 = vand.u32 65535, %v2212_v33 }
 0x231   : > { %v2215_v51 = vshrl.u32 %v7223_v23, 16  ;;  %v2217_v14 = vshrl.u32 %v2212_v33, 16  ;;  %v2239_v9 = vshrl.u32 %v2208_v56, 16  ;;  %v2104_v42 = vadd.s32 %v7143_v26, %v7138_v62 }
 0x232   : > { %v1997_v17 = vmul.f32 %v1996_v11, %v1981_v15  ;;  %v2006_v47 = vxor.u32 2147483648, %v1989_v43  ;;  %v5575_v34 = vadd.s32 4294967294, %v2116_v63  ;;  %v2181_v50 = vshrl.u32 %v5790_v52, %v7158_v22 }
 0x233   : > { %v2219_v53 = vmul.u32 %v2217_v14, %v2214_v37  ;;  %v2220_v35 = vmul.u32 %v2216_v8, %v2215_v51  ;;  %v2238_v29 = vand.u32 65535, %v2208_v56  ;;  %v2218_v24 = vmul.u32 %v2216_v8, %v2214_v37 }
 0x234   : > { %v2003_v18 = vxor.u32 2147483648, %v1997_v17  ;;  %vm5576_vm4 = vcmp.lt.s32.totalorder %v5575_v34, 0  ;;  %v2221_v7 = vmul.u32 %v2217_v14, %v2215_v51  ;;  %v2007_v6 = vsel %vm2005_vm3, %v2006_v47, %v1997_v17 }
 0x235   : > { %v2119_v54 = vsel %vm5576_vm4, 0, %v5575_v34  ;;  %v2222_v32 = vshll.u32 %v2219_v53, 16  ;;  %v2241_v15 = vmul.u32 %v2239_v9, %v2214_v37  ;;  %v2224_v26 = vshll.u32 %v2220_v35, 16 }
 0x236   : > { %v2004_v41 = vsel %vm2002_vm2, %v1989_v43, %v2003_v18  ;;  %v2120_v49 = vsub.s32 32, %v2119_v54  ;;  %v2124_v62 = vsub.s32 4294967266, %v2119_v54  ;;  %v2121_v30 = vshll.u32 %v7202_v40, %v2119_v54 }
 0x237   : > { %v2008_v22 = vsel %vm2001_vm0, %v2004_v41, %v2007_v6  ;;  %vm2226_vm5 = vc.u32 %v2218_v24, %v2222_v32  ;;  %v2228_v10 = vadd.s32 %v2222_v32, %v2218_v24  ;;  %vm2012_vm6 = vcmp.lt.s32.totalorder %v6940_v60, 0 }
 0x238   : > { %v2009_v12 = vsel %vm1998_vm1, nan, %v2008_v22  ;;  %v2122_v36 = vshrl.u32 %v2104_v42, %v2120_v49  ;;  %v2125_v44 = vadd.s32 127, %v2124_v62  ;;  %v2227_v45 = vsel %vm2226_vm5, 1, %v5789_v0  ;;  %v302_v62 = vpop.permute.xlu2 %301 }
 0x239   : > { %v2229_v5 = vadd.s32 %v2227_v45, %v2221_v7  ;;  %vm2230_vm8 = vc.u32 %v2228_v10, %v2224_v26  ;;  %v2240_v31 = vmul.u32 %v2238_v29, %v2214_v37  ;;  %v2242_v38 = vmul.u32 %v2238_v29, %v2215_v51  ;;  %5429 = vst [vmem:[%s6199_s9 + $0x48] sm:$0xff] %v2009_v12  ;;  %v7287_v45 = vld [vmem:[%s9715_s1] ss:$0 sm:$0xff] }
 0x23a   : > { %v2123_v27 = vor.u32 %v2122_v36, %v2121_v30  ;;  %v2126_v57 = vshll.u32 %v2125_v44, 23  ;;  %v2231_v40 = vsel %vm2230_vm8, 1, %v5789_v0  ;;  %v2244_v56 = vshll.u32 %v2241_v15, 16 }
 0x23b   : > { %v2202_v25 = vsel %vm2200_vm11, %v7191_v59, 2102212464  ;;  %v2223_v2 = vshrl.u32 %v2219_v53, 16  ;;  %v2233_v19 = vadd.s32 %v2231_v40, %v2229_v5  ;;  %v2243_v33 = vmul.u32 %v2239_v9, %v2215_v51 }
 0x23c   : > { %v2127_v43 = vor.u32 4788187, %v2126_v57  ;;  %v2246_v11 = vshll.u32 %v2242_v38, 16  ;;  %vm2248_vm7 = vc.u32 %v2240_v31, %v2244_v56  ;;  %v2250_v63 = vadd.s32 %v2244_v56, %v2240_v31 }
 0x23d   : > { %v2130_v8 = vcvt.s32.f32 %v2123_v27  ;;  %v2134_v37 = vsub.s32 4, %v7187_v28  ;;  %v2234_v14 = vadd.s32 %v2233_v19, %v2223_v2  ;;  %v2249_v17 = vsel %vm2248_vm7, 1, %v5789_v0 }
 0x23e   : > { %v2128_v47 = vand.u32 2147483647, %v2127_v43  ;;  %v2251_v42 = vadd.s32 %v2249_v17, %v2243_v33  ;;  %vm2252_vm9 = vc.u32 %v2250_v63, %v2246_v11  ;;  %v2320_v34 = vand.u32 2147483647, %v7213_v16 }
 0x23f   : > { %v2201_v59 = vsel %vm2197_vm12, %v2181_v50, %v7185_v20  ;;  %v2203_v51 = vsel %vm2199_vm13, %v7189_v4, %v2202_v25  ;;  %v2225_v9 = vshrl.u32 %v2220_v35, 16  ;;  %v2253_v53 = vsel %vm2252_vm9, 1, %v5789_v0 }
 0x240   : > { %v2131_v29 = vmul.f32 %v2130_v8, %v2128_v47  ;;  %v2245_v18 = vshrl.u32 %v2241_v15, 16  ;;  %v2255_v24 = vadd.s32 %v2253_v53, %v2251_v42  ;;  %v2323_v7 = vand.u32 2139095040, %v7213_v16 }
 0x241   : > { %v2135_v6 = vsel %vm2012_vm6, %v2134_v37, %v7187_v28  ;;  %v2235_v54 = vadd.s32 %v2234_v14, %v2225_v9  ;;  %v2247_v32 = vshrl.u32 %v2242_v38, 16  ;;  %v2327_v4 = vand.u32 8388607, %v2320_v34 }
 0x242   : > { %v2132_v41 = vxor.u32 2147483648, %v2131_v29  ;;  %v2256_v20 = vadd.s32 %v2255_v24, %v2245_v18  ;;  %v2324_v50 = vshrl.u32 %v2323_v7, 23  ;;  %vm7270_vm10 = vcmp.le.f32.partialorder %v2010_v46, 0.7853982 }
 0x243   : > { %v2204_v15 = vsel %vm2198_vm14, %v2201_v59, %v2203_v51  ;;  %v2254_v49 = vadd.s32 %v2250_v63, %v2246_v11  ;;  %v2478_v28 = vand.u32 2139095040, %v7197_v48  ;;  %v2137_v22 = vsel %vm7270_vm10, 0, %v2135_v6 }
 0x244   : > { %v2133_v26 = vsel %vm2012_vm6, %v2132_v41, %v2131_v29  ;;  %v2257_v30 = vadd.s32 %v2256_v20, %v2247_v32  ;;  %v5580_v10 = vadd.s32 4294967169, %v2324_v50  ;;  %v2328_v36 = vor.u32 8388608, %v2327_v4 }
 0x245   : > { %v2136_v46 = vsel %vm7270_vm10, %v6940_v60, %v2133_v26  ;;  %vm2260_vm11 = vc.u32 %v2235_v54, %v2254_v49  ;;  %v406_v5 = vmul.f32 %v7287_v45, %v302_v62  ;;  %v2154_v31 = vadd.s32 3, %v2137_v22 }
 0x246   : > { %v2138_v12 = vmul.f32 %v2136_v46, %v2136_v46  ;;  %v2261_v21 = vadd.s32 1, %v2257_v30  ;;  %v2330_v44 = vadd.s32 1, %v5580_v10  ;;  %v2258_v38 = vmul.u32 %v7223_v23, %v2204_v15  ;;  %v7299_v23 = vld [vmem:[%s9716_s2] ss:$0 sm:$0xff] }
 0x247   : > { %v2479_v27 = vshrl.u32 %v2478_v28, 23  ;;  %v2475_v19 = vand.u32 2147483647, %v7197_v48  ;;  %v7292_v63 = vshll.u32 %v2328_v36, 8  ;;  %v7294_v8 = vand.u32 3, %v2154_v31 }
 0x248   : > { %v2139_v57 = vmul.f32 -0.001358992, %v2138_v12  ;;  %v2146_v40 = vmul.f32 -0.00019511016, %v2138_v12  ;;  %v2262_v56 = vsel %vm2260_vm11, %v2261_v21, %v2257_v30  ;;  %vm2331_vm12 = vcmp.gt.s32.totalorder %v2330_v44, 0 }
 0x249   : > { %v2263_v25 = vadd.s32 %v2262_v56, %v2258_v38  ;;  %v2332_v2 = vsel %vm2331_vm12, %v2330_v44, 0  ;;  %v5583_v14 = vadd.s32 4294967169, %v2479_v27  ;;  %v7302_v17 = vadd.f32 %v7299_v23, %v406_v5 }
 0x24a   : > { %v2140_v33 = vadd.f32 0.041655596, %v2139_v57  ;;  %v2147_v43 = vadd.f32 0.008332121, %v2146_v40  ;;  %v2334_v11 = vand.u32 31, %v2332_v2  ;;  %vm2167_vm13 = vcmp.lt.s32.totalorder %v6956_v13, 0 }
 0x24b   : > { %v2264_v37 = vadd.s32 536870912, %v2263_v25  ;;  %v7305_v51 = vadd.s32 %v2254_v49, %v2235_v54  ;;  %v7309_v53 = vand.u32 8388607, %v2475_v19  ;;  %v7312_v24 = vand.u32 65535, %v7292_v63 }
 0x24c   : > { %v2141_v47 = vmul.f32 %v2140_v33, %v2138_v12  ;;  %v2148_v42 = vmul.f32 %v2147_v43, %v2138_v12  ;;  %v2335_v59 = vsub.s32 32, %v2334_v11  ;;  %v7315_v7 = vshrl.u32 %v7292_v63, 16 }
 0x24d   : > { %v2265_v9 = vshrl.u32 %v2264_v37, 30  ;;  %vm2157_vm14 = vcmp.eq.s32.totalorder %v7294_v8, 0  ;;  %vm2160_vm15 = vcmp.eq.s32.totalorder %v7294_v8, 2  ;;  %v7319_v54 = vshrl.u32 %v2332_v2, 5 }
 0x24e   : > { %v2142_v29 = vadd.f32 -0.4999988, %v2141_v47  ;;  %v2149_v18 = vadd.f32 -0.16666654, %v2148_v42  ;;  %v2338_v32 = vshrl.u32 %v5791_v55, %v2335_v59  ;;  %v7322_v41 = vadd.s32 1, %v5583_v14 }
 0x24f   : > { %v2266_v6 = vshll.u32 %v2265_v9, 30  ;;  %vm2156_vm0 = vcmp.lt.s32.totalorder %v7294_v8, 2  ;;  %v2337_v4 = vshll.u32 %v5790_v52, %v2334_v11  ;;  %v2341_v35 = vshrl.u32 %v5792_v58, %v2335_v59 }
 0x250   : > { %v2143_v20 = vmul.f32 %v2142_v29, %v2138_v12  ;;  %v2150_v50 = vmul.f32 %v2149_v18, %v2138_v12  ;;  %vm2153_vm1 = vweird.f32 %v6940_v60  ;;  %v2340_v49 = vshll.u32 %v5791_v55, %v2334_v11 }
 0x251   : > { %v7328_v15 = vsub.s32 %v2263_v25, %v2266_v6  ;;  %v2344_v28 = vshrl.u32 %v5793_v61, %v2335_v59  ;;  %v2347_v62 = vshrl.u32 %v5794_v1, %v2335_v59  ;;  %v2289_v30 = vsub.s32 4, %v2265_v9 }
 0x252   : > { %v2144_v26 = vadd.f32 1.0, %v2143_v20  ;;  %v2151_v22 = vadd.f32 1.0, %v2150_v50  ;;  %v2343_v10 = vshll.u32 %v5792_v58, %v2334_v11  ;;  %v2339_v21 = vor.u32 %v2338_v32, %v2337_v4 }
 0x253   : > { %vm2268_vm2 = vcmp.lt.s32.totalorder %v7328_v15, 0  ;;  %v2269_v12 = vsub.s32 0, %v7328_v15  ;;  %v2346_v36 = vshll.u32 %v5793_v61, %v2334_v11  ;;  %v2342_v31 = vor.u32 %v2341_v35, %v2340_v49 }
 0x254   : > { %v2152_v44 = vmul.f32 %v2151_v22, %v2136_v46  ;;  %v2161_v5 = vxor.u32 2147483648, %v2144_v26  ;;  %v2350_v38 = vshrl.u32 %v5795_v3, %v2335_v59  ;;  %v2345_v57 = vor.u32 %v2344_v28, %v2343_v10 }
 0x255   : > { %v2270_v27 = vsel %vm2268_vm2, %v2269_v12, %v7328_v15  ;;  %v2348_v40 = vor.u32 %v2347_v62, %v2346_v36  ;;  %v2349_v56 = vshll.u32 %v5794_v1, %v2334_v11  ;;  %v7342_v33 = vsel %vm2167_vm13, %v2289_v30, %v2265_v9 }
 0x256   : > { %v2158_v25 = vxor.u32 2147483648, %v2152_v44  ;;  %v2271_v2 = vclz %v2270_v27  ;;  %v2336_v43 = vshrl.u32 %v5790_v52, %v2335_v59  ;;  %vm7347_vm3 = vcmp.le.f32.partialorder %v2165_v39, 0.7853982 }
 0x257   : > { %v2351_v37 = vor.u32 %v2350_v38, %v2349_v56  ;;  %vm2352_vm4 = vcmp.lt.s32.totalorder %v7319_v54, 1  ;;  %vm2353_vm5 = vcmp.lt.s32.totalorder %v7319_v54, 2  ;;  %vm2354_vm6 = vcmp.lt.s32.totalorder %v7319_v54, 3 }
 0x258   : > { %v2159_v11 = vsel %vm2157_vm14, %v2144_v26, %v2158_v25  ;;  %v2162_v14 = vsel %vm2160_vm15, %v2161_v5, %v2152_v44  ;;  %v5578_v47 = vadd.s32 4294967294, %v2271_v2  ;;  %vm2355_vm8 = vcmp.lt.s32.totalorder %v7319_v54, 4 }
 0x259   : > { %v2163_v39 = vsel %vm2156_vm0, %v2159_v11, %v2162_v14  ;;  %v2357_v42 = vsel %vm2355_vm8, %v2345_v57, 2102212464  ;;  %v2360_v59 = vsel %vm2352_vm4, %v2339_v21, %v2342_v31  ;;  %v2361_v9 = vsel %vm2355_vm8, %v2348_v40, 920167782 }
 0x25a   : > { %v2164_v29 = vsel %vm2153_vm1, nan, %v2163_v39  ;;  %vm5579_vm7 = vcmp.lt.s32.totalorder %v5578_v47, 0  ;;  %v2356_v18 = vsel %vm2352_vm4, %v2336_v43, %v2339_v21  ;;  %v2362_v6 = vsel %vm2354_vm6, %v2345_v57, %v2361_v9 }
 0x25b   : > { %v2274_v32 = vsel %vm5579_vm7, 0, %v5578_v47  ;;  %v2363_v8 = vsel %vm2353_vm5, %v2360_v59, %v2362_v6  ;;  %v2364_v20 = vsel %vm2352_vm4, %v2342_v31, %v2345_v57  ;;  %v2365_v50 = vsel %vm2355_vm8, %v2351_v37, 1326507024  ;;  %5430 = vst [vmem:[%s6199_s9 + $0x50] sm:$0xff] %v2164_v29 }
 0x25c   : > { %v2275_v4 = vsub.s32 32, %v2274_v32  ;;  %v2279_v35 = vsub.s32 4294967266, %v2274_v32  ;;  %v2358_v60 = vsel %vm2354_vm6, %v2342_v31, %v2357_v42  ;;  %v2366_v49 = vsel %vm2354_vm6, %v2348_v40, %v2365_v50 }
 0x25d   : > { %v2276_v28 = vshll.u32 %v7328_v15, %v2274_v32  ;;  %v2367_v62 = vsel %vm2353_vm5, %v2364_v20, %v2366_v49  ;;  %v2393_v26 = vand.u32 65535, %v2363_v8  ;;  %v2394_v22 = vshrl.u32 %v2363_v8, 16 }
 0x25e   : > { %v2277_v30 = vshrl.u32 %v7305_v51, %v2275_v4  ;;  %v2280_v10 = vadd.s32 127, %v2279_v35  ;;  %v2371_v12 = vand.u32 65535, %v2367_v62  ;;  %v2372_v21 = vshrl.u32 %v2367_v62, 16 }
 0x25f   : > { %v2396_v36 = vmul.u32 %v2394_v22, %v7312_v24  ;;  %v2397_v44 = vmul.u32 %v2393_v26, %v7315_v7  ;;  %v2483_v5 = vor.u32 8388608, %v7309_v53  ;;  %vm2486_vm9 = vcmp.gt.s32.totalorder %v7322_v41, 0 }
 0x260   : > { %v2278_v31 = vor.u32 %v2277_v30, %v2276_v28  ;;  %v2281_v15 = vshll.u32 %v2280_v10, 23  ;;  %v2292_v38 = vsel %vm7347_vm3, 0, %v7342_v33  ;;  %v2374_v27 = vmul.u32 %v2372_v21, %v7312_v24 }
 0x261   : > { %v7392_v51 = vsel %vm2353_vm5, %v2356_v18, %v2358_v60  ;;  %v2375_v57 = vmul.u32 %v2371_v12, %v7315_v7  ;;  %v2395_v40 = vmul.u32 %v2393_v26, %v7312_v24  ;;  %v2399_v56 = vshll.u32 %v2396_v36, 16 }
 0x262   : > { %v2282_v25 = vor.u32 4788187, %v2281_v15  ;;  %v2373_v2 = vmul.u32 %v2371_v12, %v7312_v24  ;;  %v2377_v43 = vshll.u32 %v2374_v27, 16  ;;  %v2398_v37 = vmul.u32 %v2394_v22, %v7315_v7 }
 0x263   : > { %v2285_v11 = vcvt.s32.f32 %v2278_v31  ;;  %v2376_v33 = vmul.u32 %v2372_v21, %v7315_v7  ;;  %v2379_v14 = vshll.u32 %v2375_v57, 16  ;;  %v2401_v47 = vshll.u32 %v2397_v44, 16 }
 0x264   : > { %v2283_v39 = vand.u32 2147483647, %v2282_v25  ;;  %vm2381_vm10 = vc.u32 %v2373_v2, %v2377_v43  ;;  %v2383_v54 = vadd.s32 %v2377_v43, %v2373_v2  ;;  %vm2403_vm11 = vc.u32 %v2395_v40, %v2399_v56 }
 0x265   : > { %v2382_v42 = vsel %vm2381_vm10, 1, %v5789_v0  ;;  %v2404_v59 = vsel %vm2403_vm11, 1, %v5789_v0  ;;  %v2405_v9 = vadd.s32 %v2399_v56, %v2395_v40  ;;  %v2487_v24 = vsel %vm2486_vm9, %v7322_v41, 0 }
 0x266   : > { %v2286_v29 = vmul.f32 %v2285_v11, %v2283_v39  ;;  %v2384_v18 = vadd.s32 %v2382_v42, %v2376_v33  ;;  %vm2385_vm12 = vc.u32 %v2383_v54, %v2379_v14  ;;  %v2406_v6 = vadd.s32 %v2404_v59, %v2398_v37 }
 0x267   : > { %v2378_v7 = vshrl.u32 %v2374_v27, 16  ;;  %v2386_v32 = vsel %vm2385_vm12, 1, %v5789_v0  ;;  %vm2407_vm14 = vc.u32 %v2405_v9, %v2401_v47  ;;  %v2633_v8 = vand.u32 2139095040, %v7302_v17 }
 0x268   : > { %v2287_v20 = vxor.u32 2147483648, %v2286_v29  ;;  %v2388_v50 = vadd.s32 %v2386_v32, %v2384_v18  ;;  %v2408_v4 = vsel %vm2407_vm14, 1, %v5789_v0  ;;  %v2489_v35 = vand.u32 31, %v2487_v24 }
 0x269   : > { %v2309_v60 = vadd.s32 3, %v2292_v38  ;;  %v2400_v49 = vshrl.u32 %v2396_v36, 16  ;;  %v2410_v28 = vadd.s32 %v2408_v4, %v2406_v6  ;;  %v2413_v41 = vmul.u32 %v7292_v63, %v7392_v51 }
 0x26a   : > { %v2288_v62 = vsel %vm2167_vm13, %v2287_v20, %v2286_v29  ;;  %v2380_v26 = vshrl.u32 %v2375_v57, 16  ;;  %v2389_v22 = vadd.s32 %v2388_v50, %v2378_v7  ;;  %v7411_v30 = vsub.s32 32, %v2489_v35 }
 0x26b   : > { %v2291_v10 = vsel %vm7347_vm3, %v6956_v13, %v2288_v62  ;;  %v2402_v12 = vshrl.u32 %v2397_v44, 16  ;;  %v7416_v21 = vadd.s32 %v2405_v9, %v2401_v47  ;;  %v2411_v31 = vadd.s32 %v2410_v28, %v2400_v49 }
 0x26c   : > { %v2293_v36 = vmul.f32 %v2291_v10, %v2291_v10  ;;  %v7418_v15 = vadd.s32 %v2389_v22, %v2380_v26  ;;  %v7420_v38 = vshrl.u32 %v2487_v24, 5  ;;  %v2493_v63 = vshrl.u32 %v5791_v55, %v7411_v30 }
 0x26d   : > { %v2412_v27 = vadd.s32 %v2411_v31, %v2402_v12  ;;  %v2492_v51 = vshll.u32 %v5790_v52, %v2489_v35  ;;  %v2496_v57 = vshrl.u32 %v5792_v58, %v7411_v30  ;;  %v2499_v46 = vshrl.u32 %v5793_v61, %v7411_v30 }
 0x26e   : > { %v2294_v44 = vmul.f32 -0.001358992, %v2293_v36  ;;  %v2301_v40 = vmul.f32 -0.00019511016, %v2293_v36  ;;  %vm2415_vm13 = vc.u32 %v7418_v15, %v7416_v21  ;;  %v2495_v56 = vshll.u32 %v5791_v55, %v2489_v35 }
 0x26f   : > { %v2416_v25 = vadd.s32 1, %v2412_v27  ;;  %v7432_v2 = vor.u32 %v2493_v63, %v2492_v51  ;;  %v2498_v43 = vshll.u32 %v5792_v58, %v2489_v35  ;;  %v2501_v37 = vshll.u32 %v5793_v61, %v2489_v35 }
 0x270   : > { %v2295_v11 = vadd.f32 0.041655596, %v2294_v44  ;;  %v2302_v33 = vadd.f32 0.008332121, %v2301_v40  ;;  %v7436_v14 = vor.u32 %v2496_v57, %v2495_v56  ;;  %v2502_v47 = vshrl.u32 %v5794_v1, %v7411_v30 }
 0x271   : > { %v2417_v39 = vsel %vm2415_vm13, %v2416_v25, %v2412_v27  ;;  %v2500_v54 = vor.u32 %v2499_v46, %v2498_v43  ;;  %v2504_v42 = vshll.u32 %v5794_v1, %v2489_v35  ;;  %v2505_v59 = vshrl.u32 %v5795_v3, %v7411_v30 }
 0x272   : > { %v2296_v9 = vmul.f32 %v2295_v11, %v2293_v36  ;;  %v2303_v24 = vmul.f32 %v2302_v33, %v2293_v36  ;;  %v2418_v29 = vadd.s32 %v2417_v39, %v2413_v41  ;;  %v2503_v18 = vor.u32 %v2502_v47, %v2501_v37 }
 0x273   : > { %v2310_v6 = vand.u32 3, %v2309_v60  ;;  %v2506_v7 = vor.u32 %v2505_v59, %v2504_v42  ;;  %vm2507_vm15 = vcmp.lt.s32.totalorder %v7420_v38, 1  ;;  %vm2509_vm0 = vcmp.lt.s32.totalorder %v7420_v38, 3 }
 0x274   : > { %v2297_v32 = vadd.f32 -0.4999988, %v2296_v9  ;;  %v2304_v20 = vadd.f32 -0.16666654, %v2303_v24  ;;  %v2419_v50 = vadd.s32 536870912, %v2418_v29  ;;  %vm2510_vm1 = vcmp.lt.s32.totalorder %v7420_v38, 4 }
 0x275   : > { %v2515_v4 = vsel %vm2507_vm15, %v7432_v2, %v7436_v14  ;;  %v2516_v35 = vsel %vm2510_vm1, %v2503_v18, 920167782  ;;  %v2519_v60 = vsel %vm2507_vm15, %v7436_v14, %v2500_v54  ;;  %v2520_v49 = vsel %vm2510_vm1, %v2506_v7, 1326507024 }
 0x276   : > { %v2298_v28 = vmul.f32 %v2297_v32, %v2293_v36  ;;  %v2305_v41 = vmul.f32 %v2304_v20, %v2293_v36  ;;  %v7457_v62 = vshrl.u32 %v2419_v50, 30  ;;  %v2517_v26 = vsel %vm2509_vm0, %v2500_v54, %v2516_v35 }
 0x277   : > { %vm2308_vm2 = vweird.f32 %v6956_v13  ;;  %vm2508_vm3 = vcmp.lt.s32.totalorder %v7420_v38, 2  ;;  %v2521_v22 = vsel %vm2509_vm0, %v2503_v18, %v2520_v49  ;;  %v7467_v12 = vshll.u32 %v2483_v5, 8 }
 0x278   : > { %v2299_v31 = vadd.f32 1.0, %v2298_v28  ;;  %v2306_v63 = vadd.f32 1.0, %v2305_v41  ;;  %v2421_v36 = vshll.u32 %v7457_v62, 30  ;;  %v2518_v27 = vsel %vm2508_vm3, %v2515_v4, %v2517_v26 }
 0x279   : > { %vm2311_vm4 = vcmp.lt.s32.totalorder %v2310_v6, 2  ;;  %vm2312_vm5 = vcmp.eq.s32.totalorder %v2310_v6, 0  ;;  %v2522_v51 = vsel %vm2508_vm3, %v2519_v60, %v2521_v22  ;;  %v2634_v57 = vshrl.u32 %v2633_v8, 23 }
 0x27a   : > { %v2307_v46 = vmul.f32 %v2306_v63, %v2291_v10  ;;  %vm2315_vm6 = vcmp.eq.s32.totalorder %v2310_v6, 2  ;;  %v2316_v53 = vxor.u32 2147483648, %v2299_v31  ;;  %v2422_v5 = vsub.s32 %v2418_v29, %v2421_v36 }
 0x27b   : > { %v2524_v44 = vand.u32 65535, %v7467_v12  ;;  %v2526_v40 = vand.u32 65535, %v2522_v51  ;;  %v2527_v56 = vshrl.u32 %v2522_v51, 16  ;;  %v2549_v25 = vshrl.u32 %v2518_v27, 16 }
 0x27c   : > { %v2313_v43 = vxor.u32 2147483648, %v2307_v46  ;;  %vm2423_vm8 = vcmp.lt.s32.totalorder %v2422_v5, 0  ;;  %v2424_v37 = vsub.s32 0, %v2422_v5  ;;  %v2525_v11 = vshrl.u32 %v7467_v12, 16 }
 0x27d   : > { %v2491_v33 = vshrl.u32 %v5790_v52, %v7411_v30  ;;  %v2512_v8 = vsel %vm2510_vm1, %v2500_v54, 2102212464  ;;  %v2529_v10 = vmul.u32 %v2527_v56, %v2524_v44  ;;  %v2548_v47 = vand.u32 65535, %v2518_v27 }
 0x27e   : > { %v2314_v39 = vsel %vm2312_vm5, %v2299_v31, %v2313_v43  ;;  %v2317_v42 = vsel %vm2315_vm6, %v2316_v53, %v2307_v46  ;;  %v2425_v59 = vsel %vm2423_vm8, %v2424_v37, %v2422_v5  ;;  %v2530_v9 = vmul.u32 %v2526_v40, %v2525_v11 }
 0x27f   : > { %v2318_v24 = vsel %vm2311_vm4, %v2314_v39, %v2317_v42  ;;  %v2426_v29 = vclz %v2425_v59  ;;  %v2532_v18 = vshll.u32 %v2529_v10, 16  ;;  %v2551_v7 = vmul.u32 %v2549_v25, %v2524_v44  ;;  %v312_v39 = vpop.permute.xlu1 %311 }
 0x280   : > { %v2319_v30 = vsel %vm2308_vm2, nan, %v2318_v24  ;;  %v2414_v54 = vadd.s32 %v7416_v21, %v7418_v15  ;;  %v2511_v32 = vsel %vm2507_vm15, %v2491_v33, %v7432_v2  ;;  %v2528_v20 = vmul.u32 %v2526_v40, %v2524_v44 }
 0x281   : > { %v5581_v50 = vadd.s32 4294967294, %v2426_v29  ;;  %v2513_v6 = vsel %vm2509_vm0, %v7436_v14, %v2512_v8  ;;  %v2531_v4 = vmul.u32 %v2527_v56, %v2525_v11  ;;  %v2550_v35 = vmul.u32 %v2548_v47, %v2524_v44  ;;  %5431 = vst [vmem:[%s6199_s9 + $0x58] sm:$0xff] %v2319_v30 }
 0x282   : > { %v2534_v60 = vshll.u32 %v2530_v9, 16  ;;  %vm2536_vm7 = vc.u32 %v2528_v20, %v2532_v18  ;;  %v2538_v13 = vadd.s32 %v2532_v18, %v2528_v20  ;;  %v2552_v49 = vmul.u32 %v2548_v47, %v2525_v11 }
 0x283   : > { %vm5582_vm9 = vcmp.lt.s32.totalorder %v5581_v50, 0  ;;  %v2533_v28 = vshrl.u32 %v2529_v10, 16  ;;  %v2537_v21 = vsel %vm2536_vm7, 1, %v5789_v0  ;;  %v2554_v15 = vshll.u32 %v2551_v7, 16 }
 0x284   : > { %v2429_v41 = vsel %vm5582_vm9, 0, %v5581_v50  ;;  %v2539_v2 = vadd.s32 %v2537_v21, %v2531_v4  ;;  %vm2540_vm10 = vc.u32 %v2538_v13, %v2534_v60  ;;  %v2553_v26 = vmul.u32 %v2549_v25, %v2525_v11 }
 0x285   : > { %v2430_v22 = vsub.s32 32, %v2429_v41  ;;  %v2434_v31 = vsub.s32 4294967266, %v2429_v41  ;;  %v2541_v14 = vsel %vm2540_vm10, 1, %v5789_v0  ;;  %v2556_v63 = vshll.u32 %v2552_v49, 16 }
 0x286   : > { %v2431_v36 = vshll.u32 %v2422_v5, %v2429_v41  ;;  %v2543_v27 = vadd.s32 %v2541_v14, %v2539_v2  ;;  %vm2558_vm11 = vc.u32 %v2550_v35, %v2554_v15  ;;  %v2560_v51 = vadd.s32 %v2554_v15, %v2550_v35 }
 0x287   : > { %v2432_v46 = vshrl.u32 %v2414_v54, %v2430_v22  ;;  %v2435_v53 = vadd.s32 127, %v2434_v31  ;;  %v2559_v44 = vsel %vm2558_vm11, 1, %v5789_v0  ;;  %v5586_v40 = vadd.s32 4294967169, %v2634_v57 }
 0x288   : > { %v2444_v56 = vsub.s32 4, %v7457_v62  ;;  %v2544_v43 = vadd.s32 %v2543_v27, %v2533_v28  ;;  %v2561_v37 = vadd.s32 %v2559_v44, %v2553_v26  ;;  %vm2562_vm12 = vc.u32 %v2560_v51, %v2556_v63 }
 0x289   : > { %v2433_v25 = vor.u32 %v2432_v46, %v2431_v36  ;;  %v2436_v11 = vshll.u32 %v2435_v53, 23  ;;  %v2535_v33 = vshrl.u32 %v2530_v9, 16  ;;  %v2563_v8 = vsel %vm2562_vm12, 1, %v5789_v0  ;;  %v307_v53 = vpop.permute.xlu0 %306 }
 0x28a   : > { %vm2322_vm14 = vcmp.lt.s32.totalorder %v7213_v16, 0  ;;  %v2555_v5 = vshrl.u32 %v2551_v7, 16  ;;  %v2565_v10 = vadd.s32 %v2563_v8, %v2561_v37  ;;  %v2640_v47 = vadd.s32 1, %v5586_v40 }
 0x28b   : > { %v2437_v42 = vor.u32 4788187, %v2436_v11  ;;  %v2514_v57 = vsel %vm2508_vm3, %v2511_v32, %v2513_v6  ;;  %v7504_v59 = vadd.s32 %v2544_v43, %v2535_v33  ;;  %v2630_v24 = vand.u32 2147483647, %v7302_v17 }
 0x28c   : > { %v2445_v9 = vsel %vm2322_vm14, %v2444_v56, %v7457_v62  ;;  %v2557_v29 = vshrl.u32 %v2552_v49, 16  ;;  %v2566_v18 = vadd.s32 %v2565_v10, %v2555_v5  ;;  %vm2641_vm13 = vcmp.gt.s32.totalorder %v2640_v47, 0 }
 0x28d   : > { %v2438_v30 = vand.u32 2147483647, %v2437_v42  ;;  %v2440_v7 = vcvt.s32.f32 %v2433_v25  ;;  %v7510_v54 = vadd.s32 %v2560_v51, %v2556_v63  ;;  %v2642_v20 = vsel %vm2641_vm13, %v2640_v47, 0 }
 0x28e   : > { %v408_v50 = vmul.f32 %v7287_v45, %v312_v39  ;;  %v2567_v38 = vadd.s32 %v2566_v18, %v2557_v29  ;;  %v2644_v32 = vand.u32 31, %v2642_v20  ;;  %vm7515_vm15 = vcmp.le.f32.partialorder %v2320_v34, 0.7853982 }
 0x28f   : > { %v2441_v4 = vmul.f32 %v2440_v7, %v2438_v30  ;;  %v2568_v62 = vmul.u32 %v7467_v12, %v2514_v57  ;;  %vm2570_vm0 = vc.u32 %v7504_v59, %v7510_v54  ;;  %v2447_v35 = vsel %vm7515_vm15, 0, %v2445_v9 }
 0x290   : > { %v2571_v60 = vadd.s32 1, %v2567_v38  ;;  %v2637_v13 = vand.u32 8388607, %v2630_v24  ;;  %v7526_v49 = vsub.s32 32, %v2644_v32  ;;  %v7528_v34 = vshrl.u32 %v2642_v20, 5 }
 0x291   : > { %v2442_v28 = vxor.u32 2147483648, %v2441_v4  ;;  %v2647_v21 = vshll.u32 %v5790_v52, %v2644_v32  ;;  %v2650_v15 = vshll.u32 %v5791_v55, %v2644_v32  ;;  %v2656_v26 = vshll.u32 %v5793_v61, %v2644_v32 }
 0x292   : > { %v2572_v12 = vsel %vm2570_vm0, %v2571_v60, %v2567_v38  ;;  %v2648_v41 = vshrl.u32 %v5791_v55, %v7526_v49  ;;  %v2651_v2 = vshrl.u32 %v5792_v58, %v7526_v49  ;;  %v2654_v14 = vshrl.u32 %v5793_v61, %v7526_v49 }
 0x293   : > { %v2443_v22 = vsel %vm2322_vm14, %v2442_v28, %v2441_v4  ;;  %v2573_v31 = vadd.s32 %v2572_v12, %v2568_v62  ;;  %v2657_v63 = vshrl.u32 %v5794_v1, %v7526_v49  ;;  %v2653_v27 = vshll.u32 %v5792_v58, %v2644_v32 }
 0x294   : > { %v2446_v36 = vsel %vm7515_vm15, %v7213_v16, %v2443_v22  ;;  %v2659_v51 = vshll.u32 %v5794_v1, %v2644_v32  ;;  %v2660_v46 = vshrl.u32 %v5795_v3, %v7526_v49  ;;  %v2638_v56 = vor.u32 8388608, %v2637_v13 }
 0x295   : > { %v2448_v44 = vmul.f32 %v2446_v36, %v2446_v36  ;;  %v2574_v40 = vadd.s32 536870912, %v2573_v31  ;;  %v2658_v43 = vor.u32 %v2657_v63, %v2656_v26  ;;  %v7550_v37 = vor.u32 %v2648_v41, %v2647_v21 }
 0x296   : > { %v7552_v25 = vor.u32 %v2651_v2, %v2650_v15  ;;  %v7554_v11 = vor.u32 %v2654_v14, %v2653_v27  ;;  %v2661_v33 = vor.u32 %v2660_v46, %v2659_v51  ;;  %vm2665_vm1 = vcmp.lt.s32.totalorder %v7528_v34, 4 }
 0x297   : > { %v2449_v8 = vmul.f32 -0.001358992, %v2448_v44  ;;  %v2456_v5 = vmul.f32 -0.00019511016, %v2448_v44  ;;  %v7556_v10 = vshrl.u32 %v2574_v40, 30  ;;  %v407_v47 = vmul.f32 %v7287_v45, %v307_v53 }
 0x298   : > { %v2464_v39 = vadd.s32 3, %v2447_v35  ;;  %vm2662_vm2 = vcmp.lt.s32.totalorder %v7528_v34, 1  ;;  %v2671_v42 = vsel %vm2665_vm1, %v2658_v43, 920167782  ;;  %vm2664_vm3 = vcmp.lt.s32.totalorder %v7528_v34, 3 }
 0x299   : > { %v2450_v57 = vadd.f32 0.041655596, %v2449_v8  ;;  %v2457_v9 = vadd.f32 0.008332121, %v2456_v5  ;;  %v2576_v29 = vshll.u32 %v7556_v10, 30  ;;  %v2670_v18 = vsel %vm2662_vm2, %v7550_v37, %v7552_v25 }
 0x29a   : > { %v2672_v30 = vsel %vm2664_vm3, %v7554_v11, %v2671_v42  ;;  %v2675_v7 = vsel %vm2665_vm1, %v2661_v33, 1326507024  ;;  %v7574_v20 = vshll.u32 %v2638_v56, 8  ;;  %v2674_v4 = vsel %vm2662_vm2, %v7552_v25, %v7554_v11 }
 0x29b   : > { %v2451_v38 = vmul.f32 %v2450_v57, %v2448_v44  ;;  %v2458_v32 = vmul.f32 %v2457_v9, %v2448_v44  ;;  %v2577_v6 = vsub.s32 %v2573_v31, %v2576_v29  ;;  %v7581_v62 = vadd.f32 %v7299_v23, %v408_v50 }
 0x29c   : > { %v2465_v35 = vand.u32 3, %v2464_v39  ;;  %vm2663_vm4 = vcmp.lt.s32.totalorder %v7528_v34, 2  ;;  %v2676_v60 = vsel %vm2664_vm3, %v2658_v43, %v2675_v7  ;;  %v7587_v15 = vadd.f32 %v7299_v23, %v407_v47 }
 0x29d   : > { %v2452_v13 = vadd.f32 -0.4999988, %v2451_v38  ;;  %v2459_v28 = vadd.f32 -0.16666654, %v2458_v32  ;;  %vm2578_vm5 = vcmp.lt.s32.totalorder %v2577_v6, 0  ;;  %v2579_v21 = vsub.s32 0, %v2577_v6 }
 0x29e   : > { %v2673_v12 = vsel %vm2663_vm4, %v2670_v18, %v2672_v30  ;;  %v2677_v50 = vsel %vm2663_vm4, %v2674_v4, %v2676_v60  ;;  %v2680_v41 = vshrl.u32 %v7574_v20, 16  ;;  %vm2463_vm6 = vweird.f32 %v7213_v16 }
 0x29f   : > { %v2453_v2 = vmul.f32 %v2452_v13, %v2448_v44  ;;  %v2460_v26 = vmul.f32 %v2459_v28, %v2448_v44  ;;  %v2580_v22 = vsel %vm2578_vm5, %v2579_v21, %v2577_v6  ;;  %v2681_v31 = vand.u32 65535, %v2677_v50 }
 0x2a0   : > { %vm2466_vm8 = vcmp.lt.s32.totalorder %v2465_v35, 2  ;;  %v2581_v14 = vclz %v2580_v22  ;;  %v2679_v63 = vand.u32 65535, %v7574_v20  ;;  %v2682_v27 = vshrl.u32 %v2677_v50, 16 }
 0x2a1   : > { %v2454_v51 = vadd.f32 1.0, %v2453_v2  ;;  %v2461_v46 = vadd.f32 1.0, %v2460_v26  ;;  %v7596_v53 = vmul.u32 %v2681_v31, %v2680_v41  ;;  %v2704_v40 = vshrl.u32 %v2673_v12, 16 }
 0x2a2   : > { %vm2467_vm7 = vcmp.eq.s32.totalorder %v2465_v35, 0  ;;  %vm2470_vm9 = vcmp.eq.s32.totalorder %v2465_v35, 2  ;;  %v2569_v56 = vadd.s32 %v7510_v54, %v7504_v59  ;;  %v5584_v44 = vadd.s32 4294967294, %v2581_v14 }
 0x2a3   : > { %v2462_v43 = vmul.f32 %v2461_v46, %v2446_v36  ;;  %v2471_v33 = vxor.u32 2147483648, %v2454_v51  ;;  %v2684_v8 = vmul.u32 %v2682_v27, %v2679_v63  ;;  %v2703_v5 = vand.u32 65535, %v2673_v12 }
 0x2a4   : > { %vm5585_vm10 = vcmp.lt.s32.totalorder %v5584_v44, 0  ;;  %v2683_v47 = vmul.u32 %v2681_v31, %v2679_v63  ;;  %v2686_v39 = vmul.u32 %v2682_v27, %v2680_v41  ;;  %v2689_v42 = vshll.u32 %v7596_v53, 16 }
 0x2a5   : > { %v2468_v57 = vxor.u32 2147483648, %v2462_v43  ;;  %v2584_v9 = vsel %vm5585_vm10, 0, %v5584_v44  ;;  %v2687_v29 = vshll.u32 %v2684_v8, 16  ;;  %v2706_v18 = vmul.u32 %v2704_v40, %v2679_v63 }
 0x2a6   : > { %v2472_v30 = vsel %vm2470_vm9, %v2471_v33, %v2462_v43  ;;  %vm2477_vm11 = vcmp.lt.s32.totalorder %v7197_v48, 0  ;;  %v2585_v7 = vsub.s32 32, %v2584_v9  ;;  %v2586_v38 = vshll.u32 %v2577_v6, %v2584_v9 }
 0x2a7   : > { %v2589_v59 = vsub.s32 4294967266, %v2584_v9  ;;  %v2469_v54 = vsel %vm2467_vm7, %v2454_v51, %v2468_v57  ;;  %vm2691_vm12 = vc.u32 %v2683_v47, %v2687_v29  ;;  %v2693_v36 = vadd.s32 %v2687_v29, %v2683_v47 }
 0x2a8   : > { %v2707_v32 = vmul.u32 %v2703_v5, %v2680_v41  ;;  %v2473_v4 = vsel %vm2466_vm8, %v2469_v54, %v2472_v30  ;;  %v2587_v60 = vshrl.u32 %v2569_v56, %v2585_v7  ;;  %v2692_v28 = vsel %vm2691_vm12, 1, %v5789_v0 }
 0x2a9   : > { %v2590_v13 = vadd.s32 127, %v2589_v59  ;;  %v2474_v21 = vsel %vm2463_vm6, nan, %v2473_v4  ;;  %v2694_v12 = vadd.s32 %v2692_v28, %v2686_v39  ;;  %vm2695_vm14 = vc.u32 %v2693_v36, %v2689_v42  ;;  %v317_v4 = vpop.permute.xlu2 %316 }
 0x2aa   : > { %v2705_v50 = vmul.u32 %v2703_v5, %v2679_v63  ;;  %vm7609_vm13 = vcmp.le.f32.partialorder %v2475_v19, 0.7853982  ;;  %v2588_v2 = vor.u32 %v2587_v60, %v2586_v38  ;;  %v2696_v35 = vsel %vm2695_vm14, 1, %v5789_v0  ;;  %5432 = vst [vmem:[%s6199_s9 + $0x60] sm:$0xff] %v2474_v21 }
 0x2ab   : > { %v2591_v26 = vshll.u32 %v2590_v13, 23  ;;  %v2709_v22 = vshll.u32 %v2706_v18, 16  ;;  %v2599_v31 = vsub.s32 4, %v7556_v10  ;;  %v2688_v14 = vshrl.u32 %v2684_v8, 16 }
 0x2ac   : > { %v2698_v16 = vadd.s32 %v2696_v35, %v2694_v12  ;;  %v2708_v27 = vmul.u32 %v2704_v40, %v2680_v41  ;;  %v2711_v46 = vshll.u32 %v2707_v32, 16  ;;  %v2595_v56 = vcvt.s32.f32 %v2588_v2 }
 0x2ad   : > { %v2592_v51 = vor.u32 4788187, %v2591_v26  ;;  %vm2713_vm15 = vc.u32 %v2705_v50, %v2709_v22  ;;  %v2715_v63 = vadd.s32 %v2709_v22, %v2705_v50  ;;  %v2667_v19 = vsel %vm2665_vm1, %v7554_v11, 2102212464 }
 0x2ae   : > { %v2699_v44 = vadd.s32 %v2698_v16, %v2688_v14  ;;  %v2714_v43 = vsel %vm2713_vm15, 1, %v5789_v0  ;;  %v2785_v47 = vand.u32 2147483647, %v7587_v15  ;;  %v2600_v41 = vsel %vm2477_vm11, %v2599_v31, %v7556_v10 }
 0x2af   : > { %v2593_v33 = vand.u32 2147483647, %v2592_v51  ;;  %v2716_v5 = vadd.s32 %v2714_v43, %v2708_v27  ;;  %vm2717_vm0 = vc.u32 %v2715_v63, %v2711_v46  ;;  %v2646_v40 = vshrl.u32 %v5790_v52, %v7526_v49 }
 0x2b0   : > { %v2690_v8 = vshrl.u32 %v7596_v53, 16  ;;  %v2718_v39 = vsel %vm2717_vm0, 1, %v5789_v0  ;;  %v2710_v42 = vshrl.u32 %v2706_v18, 16  ;;  %v2788_v9 = vand.u32 2139095040, %v7587_v15 }
 0x2b1   : > { %v2596_v11 = vmul.f32 %v2595_v56, %v2593_v33  ;;  %v2720_v57 = vadd.s32 %v2718_v39, %v2716_v5  ;;  %v2666_v29 = vsel %vm2662_vm2, %v2646_v40, %v7550_v37  ;;  %v2668_v10 = vsel %vm2664_vm3, %v7552_v25, %v2667_v19 }
 0x2b2   : > { %v2700_v30 = vadd.s32 %v2699_v44, %v2690_v8  ;;  %v2712_v7 = vshrl.u32 %v2707_v32, 16  ;;  %v2789_v53 = vshrl.u32 %v2788_v9, 23  ;;  %v2792_v59 = vand.u32 8388607, %v2785_v47 }
 0x2b3   : > { %v2597_v49 = vxor.u32 2147483648, %v2596_v11  ;;  %v2721_v38 = vadd.s32 %v2720_v57, %v2710_v42  ;;  %v2602_v18 = vsel %vm7609_vm13, 0, %v2600_v41  ;;  %v2719_v54 = vadd.s32 %v2715_v63, %v2711_v46 }
 0x2b4   : > { %v2943_v36 = vand.u32 2139095040, %v7581_v62  ;;  %v2669_v25 = vsel %vm2663_vm4, %v2666_v29, %v2668_v10  ;;  %v5589_v60 = vadd.s32 4294967169, %v2789_v53  ;;  %v2793_v12 = vor.u32 8388608, %v2792_v59 }
 0x2b5   : > { %v2598_v37 = vsel %vm2477_vm11, %v2597_v49, %v2596_v11  ;;  %v2722_v32 = vadd.s32 %v2721_v38, %v2712_v7  ;;  %vm2725_vm1 = vc.u32 %v2700_v30, %v2719_v54  ;;  %v409_v2 = vmul.f32 %v7287_v45, %v317_v4 }
 0x2b6   : > { %v2601_v13 = vsel %vm7609_vm13, %v7197_v48, %v2598_v37  ;;  %v2795_v50 = vadd.s32 1, %v5589_v60  ;;  %v2619_v26 = vadd.s32 3, %v2602_v18  ;;  %v2723_v35 = vmul.u32 %v7574_v20, %v2669_v25 }
 0x2b7   : > { %v2603_v28 = vmul.f32 %v2601_v13, %v2601_v13  ;;  %v2726_v21 = vadd.s32 1, %v2722_v32  ;;  %v2944_v22 = vshrl.u32 %v2943_v36, 23  ;;  %v2940_v6 = vand.u32 2147483647, %v7581_v62 }
 0x2b8   : > { %vm2796_vm2 = vcmp.gt.s32.totalorder %v2795_v50, 0  ;;  %v7650_v56 = vshll.u32 %v2793_v12, 8  ;;  %v2620_v19 = vand.u32 3, %v2619_v26  ;;  %v7653_v43 = vadd.f32 %v7299_v23, %v409_v2 }
 0x2b9   : > { %v2604_v31 = vmul.f32 -0.001358992, %v2603_v28  ;;  %v2611_v34 = vmul.f32 -0.00019511016, %v2603_v28  ;;  %v2727_v14 = vsel %vm2725_vm1, %v2726_v21, %v2722_v32  ;;  %v2797_v27 = vsel %vm2796_vm2, %v2795_v50, 0 }
 0x2ba   : > { %v2728_v16 = vadd.s32 %v2727_v14, %v2723_v35  ;;  %v2799_v63 = vand.u32 31, %v2797_v27  ;;  %v5592_v45 = vadd.s32 4294967169, %v2944_v22  ;;  %vm2632_vm3 = vcmp.lt.s32.totalorder %v7302_v17, 0 }
 0x2bb   : > { %v2605_v51 = vadd.f32 0.041655596, %v2604_v31  ;;  %v2612_v46 = vadd.f32 0.008332121, %v2611_v34  ;;  %v7656_v41 = vadd.s32 %v2719_v54, %v2700_v30  ;;  %v7660_v8 = vand.u32 8388607, %v2940_v6 }
 0x2bc   : > { %v2729_v44 = vadd.s32 536870912, %v2728_v16  ;;  %v2800_v5 = vsub.s32 32, %v2799_v63  ;;  %v7663_v42 = vand.u32 65535, %v7650_v56  ;;  %v7666_v23 = vshrl.u32 %v7650_v56, 16 }
 0x2bd   : > { %v2606_v20 = vmul.f32 %v2605_v51, %v2603_v28  ;;  %v2613_v33 = vmul.f32 %v2612_v46, %v2603_v28  ;;  %vm2622_vm4 = vcmp.eq.s32.totalorder %v2620_v19, 0  ;;  %vm2625_vm5 = vcmp.eq.s32.totalorder %v2620_v19, 2 }
 0x2be   : > { %v2730_v40 = vshrl.u32 %v2729_v44, 30  ;;  %v7668_v9 = vshrl.u32 %v2797_v27, 5  ;;  %v2803_v29 = vshrl.u32 %v5791_v55, %v2800_v5  ;;  %v7671_v10 = vadd.s32 1, %v5592_v45 }
 0x2bf   : > { %v2607_v39 = vadd.f32 -0.4999988, %v2606_v20  ;;  %v2614_v11 = vadd.f32 -0.16666654, %v2613_v33  ;;  %vm2621_vm6 = vcmp.lt.s32.totalorder %v2620_v19, 2  ;;  %v2802_v49 = vshll.u32 %v5790_v52, %v2799_v63 }
 0x2c0   : > { %v2731_v57 = vshll.u32 %v2730_v40, 30  ;;  %v2806_v38 = vshrl.u32 %v5792_v58, %v2800_v5  ;;  %vm2618_vm8 = vweird.f32 %v7197_v48  ;;  %v2805_v59 = vshll.u32 %v5791_v55, %v2799_v63 }
 0x2c1   : > { %v2608_v30 = vmul.f32 %v2607_v39, %v2603_v28  ;;  %v2615_v7 = vmul.f32 %v2614_v11, %v2603_v28  ;;  %v2809_v18 = vshrl.u32 %v5793_v61, %v2800_v5  ;;  %v2812_v54 = vshrl.u32 %v5794_v1, %v2800_v5 }
 0x2c2   : > { %v7676_v53 = vsub.s32 %v2728_v16, %v2731_v57  ;;  %v2754_v37 = vsub.s32 4, %v2730_v40  ;;  %v2808_v25 = vshll.u32 %v5792_v58, %v2799_v63  ;;  %v2804_v60 = vor.u32 %v2803_v29, %v2802_v49 }
 0x2c3   : > { %v2609_v36 = vadd.f32 1.0, %v2608_v30  ;;  %v2616_v4 = vadd.f32 1.0, %v2615_v7  ;;  %v2811_v28 = vshll.u32 %v5793_v61, %v2799_v63  ;;  %v2807_v50 = vor.u32 %v2806_v38, %v2805_v59 }
 0x2c4   : > { %vm2733_vm7 = vcmp.lt.s32.totalorder %v7676_v53, 0  ;;  %v2734_v32 = vsub.s32 0, %v7676_v53  ;;  %v2815_v2 = vshrl.u32 %v5795_v3, %v2800_v5  ;;  %v2810_v35 = vor.u32 %v2809_v18, %v2808_v25 }
 0x2c5   : > { %v2617_v21 = vmul.f32 %v2616_v4, %v2601_v13  ;;  %v2626_v12 = vxor.u32 2147483648, %v2609_v36  ;;  %v2813_v22 = vor.u32 %v2812_v54, %v2811_v28  ;;  %v2814_v31 = vshll.u32 %v5794_v1, %v2799_v63 }
 0x2c6   : > { %v2735_v26 = vsel %vm2733_vm7, %v2734_v32, %v7676_v53  ;;  %v7690_v16 = vsel %vm2632_vm3, %v2754_v37, %v2730_v40  ;;  %v2801_v27 = vshrl.u32 %v5790_v52, %v2800_v5  ;;  %vm7695_vm9 = vcmp.le.f32.partialorder %v2630_v24, 0.7853982 }
 0x2c7   : > { %v2623_v34 = vxor.u32 2147483648, %v2617_v21  ;;  %v2736_v14 = vclz %v2735_v26  ;;  %v2816_v51 = vor.u32 %v2815_v2, %v2814_v31  ;;  %vm2817_vm10 = vcmp.lt.s32.totalorder %v7668_v9, 1 }
 0x2c8   : > { %vm2818_vm11 = vcmp.lt.s32.totalorder %v7668_v9, 2  ;;  %vm2819_vm12 = vcmp.lt.s32.totalorder %v7668_v9, 3  ;;  %v2627_v63 = vsel %vm2625_vm5, %v2626_v12, %v2617_v21  ;;  %vm2820_vm14 = vcmp.lt.s32.totalorder %v7668_v9, 4 }
 0x2c9   : > { %v2624_v46 = vsel %vm2622_vm4, %v2609_v36, %v2623_v34  ;;  %v5587_v44 = vadd.s32 4294967294, %v2736_v14  ;;  %v2822_v45 = vsel %vm2820_vm14, %v2810_v35, 2102212464  ;;  %v2825_v20 = vsel %vm2817_vm10, %v2804_v60, %v2807_v50 }
 0x2ca   : > { %v2628_v24 = vsel %vm2621_vm6, %v2624_v46, %v2627_v63  ;;  %v2826_v33 = vsel %vm2820_vm14, %v2813_v22, 920167782  ;;  %v2821_v40 = vsel %vm2817_vm10, %v2801_v27, %v2804_v60  ;;  %v2829_v57 = vsel %vm2817_vm10, %v2807_v50, %v2810_v35 }
 0x2cb   : > { %v2629_v5 = vsel %vm2618_vm8, nan, %v2628_v24  ;;  %vm5588_vm13 = vcmp.lt.s32.totalorder %v5587_v44, 0  ;;  %v2827_v39 = vsel %vm2819_vm12, %v2810_v35, %v2826_v33  ;;  %v2830_v29 = vsel %vm2820_vm14, %v2816_v51, 1326507024 }
 0x2cc   : > { %v2739_v11 = vsel %vm5588_vm13, 0, %v5587_v44  ;;  %v2828_v19 = vsel %vm2818_vm11, %v2825_v20, %v2827_v39  ;;  %5433 = vst [vmem:[%s6199_s9 + $0x68] sm:$0xff] %v2629_v5  ;;  %v2823_v48 = vsel %vm2819_vm12, %v2807_v50, %v2822_v45  ;;  %v2831_v49 = vsel %vm2819_vm12, %v2813_v22, %v2830_v29 }
 0x2cd   : > { %v2740_v30 = vsub.s32 32, %v2739_v11  ;;  %v2744_v7 = vsub.s32 4294967266, %v2739_v11  ;;  %v2741_v38 = vshll.u32 %v7676_v53, %v2739_v11  ;;  %v2832_v59 = vsel %vm2818_vm11, %v2829_v57, %v2831_v49 }
 0x2ce   : > { %v2858_v18 = vand.u32 65535, %v2828_v19  ;;  %v2859_v54 = vshrl.u32 %v2828_v19, 16  ;;  %v2836_v37 = vand.u32 65535, %v2832_v59  ;;  %v2837_v25 = vshrl.u32 %v2832_v59, 16 }
 0x2cf   : > { %v2742_v36 = vshrl.u32 %v7656_v41, %v2740_v30  ;;  %v2745_v4 = vadd.s32 127, %v2744_v7  ;;  %v2948_v28 = vor.u32 8388608, %v7660_v8  ;;  %vm2951_vm15 = vcmp.gt.s32.totalorder %v7671_v10, 0 }
 0x2d0   : > { %v2861_v32 = vmul.u32 %v2859_v54, %v7663_v42  ;;  %v2862_v60 = vmul.u32 %v2858_v18, %v7666_v23  ;;  %v2757_v12 = vsel %vm7695_vm9, 0, %v7690_v16  ;;  %v2839_v50 = vmul.u32 %v2837_v25, %v7663_v42 }
 0x2d1   : > { %v2743_v21 = vor.u32 %v2742_v36, %v2741_v38  ;;  %v2746_v53 = vshll.u32 %v2745_v4, 23  ;;  %v7737_v41 = vsel %vm2818_vm11, %v2821_v40, %v2823_v48  ;;  %v2840_v2 = vmul.u32 %v2836_v37, %v7666_v23 }
 0x2d2   : > { %v2860_v26 = vmul.u32 %v2858_v18, %v7663_v42  ;;  %v2864_v35 = vshll.u32 %v2861_v32, 16  ;;  %v2838_v31 = vmul.u32 %v2836_v37, %v7663_v42  ;;  %v2842_v34 = vshll.u32 %v2839_v50, 16 }
 0x2d3   : > { %v2747_v22 = vor.u32 4788187, %v2746_v53  ;;  %v2863_v14 = vmul.u32 %v2859_v54, %v7666_v23  ;;  %v2750_v27 = vcvt.s32.f32 %v2743_v21  ;;  %v2841_v16 = vmul.u32 %v2837_v25, %v7666_v23 }
 0x2d4   : > { %v2844_v51 = vshll.u32 %v2840_v2, 16  ;;  %v2866_v46 = vshll.u32 %v2862_v60, 16  ;;  %vm2846_vm0 = vc.u32 %v2838_v31, %v2842_v34  ;;  %v2848_v9 = vadd.s32 %v2842_v34, %v2838_v31 }
 0x2d5   : > { %v2748_v63 = vand.u32 2147483647, %v2747_v22  ;;  %vm2868_vm1 = vc.u32 %v2860_v26, %v2864_v35  ;;  %v2847_v44 = vsel %vm2846_vm0, 1, %v5789_v0  ;;  %v2870_v45 = vadd.s32 %v2864_v35, %v2860_v26 }
 0x2d6   : > { %v2869_v24 = vsel %vm2868_vm1, 1, %v5789_v0  ;;  %v2952_v42 = vsel %vm2951_vm15, %v7671_v10, 0  ;;  %v2849_v33 = vadd.s32 %v2847_v44, %v2841_v16  ;;  %vm2850_vm2 = vc.u32 %v2848_v9, %v2844_v51 }
 0x2d7   : > { %v2751_v20 = vmul.f32 %v2750_v27, %v2748_v63  ;;  %v2871_v5 = vadd.s32 %v2869_v24, %v2863_v14  ;;  %v2843_v23 = vshrl.u32 %v2839_v50, 16  ;;  %v2851_v40 = vsel %vm2850_vm2, 1, %v5789_v0 }
 0x2d8   : > { %vm2872_vm4 = vc.u32 %v2870_v45, %v2866_v46  ;;  %v3098_v39 = vand.u32 2139095040, %v7653_v43  ;;  %v2853_v19 = vadd.s32 %v2851_v40, %v2849_v33  ;;  %v2954_v29 = vand.u32 31, %v2952_v42 }
 0x2d9   : > { %v2752_v11 = vxor.u32 2147483648, %v2751_v20  ;;  %v2873_v57 = vsel %vm2872_vm4, 1, %v5789_v0  ;;  %v2774_v30 = vadd.s32 3, %v2757_v12  ;;  %v2865_v7 = vshrl.u32 %v2861_v32, 16 }
 0x2da   : > { %v2875_v48 = vadd.s32 %v2873_v57, %v2871_v5  ;;  %v2878_v10 = vmul.u32 %v7650_v56, %v7737_v41  ;;  %v2845_v38 = vshrl.u32 %v2840_v2, 16  ;;  %v2854_v59 = vadd.s32 %v2853_v19, %v2843_v23 }
 0x2db   : > { %v2753_v49 = vsel %vm2632_vm3, %v2752_v11, %v2751_v20  ;;  %v7756_v18 = vsub.s32 32, %v2954_v29  ;;  %v2867_v36 = vshrl.u32 %v2862_v60, 16  ;;  %v7761_v4 = vadd.s32 %v2870_v45, %v2866_v46 }
 0x2dc   : > { %v2756_v54 = vsel %vm7695_vm9, %v7302_v17, %v2753_v49  ;;  %v2876_v37 = vadd.s32 %v2875_v48, %v2865_v7  ;;  %v7763_v32 = vadd.s32 %v2854_v59, %v2845_v38  ;;  %v7765_v21 = vshrl.u32 %v2952_v42, 5 }
 0x2dd   : > { %v2758_v25 = vmul.f32 %v2756_v54, %v2756_v54  ;;  %v2958_v56 = vshrl.u32 %v5791_v55, %v7756_v18  ;;  %v2957_v12 = vshll.u32 %v5790_v52, %v2954_v29  ;;  %v2961_v50 = vshrl.u32 %v5792_v58, %v7756_v18 }
 0x2de   : > { %v2877_v53 = vadd.s32 %v2876_v37, %v2867_v36  ;;  %v2964_v13 = vshrl.u32 %v5793_v61, %v7756_v18  ;;  %vm2880_vm3 = vc.u32 %v7763_v32, %v7761_v4  ;;  %v2960_v2 = vshll.u32 %v5791_v55, %v2954_v29 }
 0x2df   : > { %v2759_v60 = vmul.f32 -0.001358992, %v2758_v25  ;;  %v2766_v41 = vmul.f32 -0.00019511016, %v2758_v25  ;;  %v7777_v35 = vor.u32 %v2958_v56, %v2957_v12  ;;  %v2963_v22 = vshll.u32 %v5792_v58, %v2954_v29 }
 0x2e0   : > { %v2881_v26 = vadd.s32 1, %v2877_v53  ;;  %v2966_v31 = vshll.u32 %v5793_v61, %v2954_v29  ;;  %v7781_v27 = vor.u32 %v2961_v50, %v2960_v2  ;;  %v2967_v16 = vshrl.u32 %v5794_v1, %v7756_v18 }
 0x2e1   : > { %v2760_v34 = vadd.f32 0.041655596, %v2759_v60  ;;  %v2767_v14 = vadd.f32 0.008332121, %v2766_v41  ;;  %v2965_v46 = vor.u32 %v2964_v13, %v2963_v22  ;;  %v2969_v63 = vshll.u32 %v5794_v1, %v2954_v29 }
 0x2e2   : > { %v2882_v51 = vsel %vm2880_vm3, %v2881_v26, %v2877_v53  ;;  %v2970_v9 = vshrl.u32 %v5795_v3, %v7756_v18  ;;  %v2968_v42 = vor.u32 %v2967_v16, %v2966_v31  ;;  %v2775_v20 = vand.u32 3, %v2774_v30 }
 0x2e3   : > { %v2761_v44 = vmul.f32 %v2760_v34, %v2758_v25  ;;  %v2768_v24 = vmul.f32 %v2767_v14, %v2758_v25  ;;  %v2883_v45 = vadd.s32 %v2882_v51, %v2878_v10  ;;  %vm2972_vm5 = vcmp.lt.s32.totalorder %v7765_v21, 1 }
 0x2e4   : > { %v2971_v33 = vor.u32 %v2970_v9, %v2969_v63  ;;  %vm2974_vm6 = vcmp.lt.s32.totalorder %v7765_v21, 3  ;;  %vm2975_vm8 = vcmp.lt.s32.totalorder %v7765_v21, 4  ;;  %v2980_v11 = vsel %vm2972_vm5, %v7777_v35, %v7781_v27 }
 0x2e5   : > { %v2762_v5 = vadd.f32 -0.4999988, %v2761_v44  ;;  %v2769_v23 = vadd.f32 -0.16666654, %v2768_v24  ;;  %v2884_v40 = vadd.s32 536870912, %v2883_v45  ;;  %v2984_v57 = vsel %vm2972_vm5, %v7781_v27, %v2965_v46 }
 0x2e6   : > { %v2981_v19 = vsel %vm2975_vm8, %v2968_v42, 920167782  ;;  %v2985_v29 = vsel %vm2975_vm8, %v2971_v33, 1326507024  ;;  %vm2773_vm7 = vweird.f32 %v7302_v17  ;;  %vm2973_vm9 = vcmp.lt.s32.totalorder %v7765_v21, 2 }
 0x2e7   : > { %v2763_v30 = vmul.f32 %v2762_v5, %v2758_v25  ;;  %v2770_v7 = vmul.f32 %v2769_v23, %v2758_v25  ;;  %v7802_v48 = vshrl.u32 %v2884_v40, 30  ;;  %v2982_v10 = vsel %vm2974_vm6, %v2965_v46, %v2981_v19  ;;  %v7860_v21 = vld [vmem:[%s9715_s1] ss:$0 sm:$0xff] }
 0x2e8   : > { %v2986_v49 = vsel %vm2974_vm6, %v2968_v42, %v2985_v29  ;;  %v7812_v38 = vshll.u32 %v2948_v28, 8  ;;  %v2983_v25 = vsel %vm2973_vm9, %v2980_v11, %v2982_v10  ;;  %vm2776_vm10 = vcmp.lt.s32.totalorder %v2775_v20, 2 }
 0x2e9   : > { %v2764_v59 = vadd.f32 1.0, %v2763_v30  ;;  %v2771_v36 = vadd.f32 1.0, %v2770_v7  ;;  %v2886_v37 = vshll.u32 %v7802_v48, 30  ;;  %vm2777_vm11 = vcmp.eq.s32.totalorder %v2775_v20, 0 }
 0x2ea   : > { %v2987_v56 = vsel %vm2973_vm9, %v2984_v57, %v2986_v49  ;;  %v3099_v53 = vshrl.u32 %v3098_v39, 23  ;;  %vm2780_vm12 = vcmp.eq.s32.totalorder %v2775_v20, 2  ;;  %v2989_v50 = vand.u32 65535, %v7812_v38 }
 0x2eb   : > { %v2772_v12 = vmul.f32 %v2771_v36, %v2756_v54  ;;  %v2781_v8 = vxor.u32 2147483648, %v2764_v59  ;;  %v2887_v28 = vsub.s32 %v2883_v45, %v2886_v37  ;;  %v2991_v13 = vand.u32 65535, %v2987_v56 }
 0x2ec   : > { %v2992_v60 = vshrl.u32 %v2987_v56, 16  ;;  %v3014_v41 = vshrl.u32 %v2983_v25, 16  ;;  %v2990_v22 = vshrl.u32 %v7812_v38, 16  ;;  %v2956_v31 = vshrl.u32 %v5790_v52, %v7756_v18 }
 0x2ed   : > { %v2778_v2 = vxor.u32 2147483648, %v2772_v12  ;;  %vm2888_vm14 = vcmp.lt.s32.totalorder %v2887_v28, 0  ;;  %v2889_v26 = vsub.s32 0, %v2887_v28  ;;  %v2977_v39 = vsel %vm2975_vm8, %v2965_v46, 2102212464 }
 0x2ee   : > { %v2994_v54 = vmul.u32 %v2992_v60, %v2989_v50  ;;  %v3013_v34 = vand.u32 65535, %v2983_v25  ;;  %v2782_v16 = vsel %vm2780_vm12, %v2781_v8, %v2772_v12  ;;  %v2995_v63 = vmul.u32 %v2991_v13, %v2990_v22 }
 0x2ef   : > { %v2779_v14 = vsel %vm2777_vm11, %v2764_v59, %v2778_v2  ;;  %v2890_v51 = vsel %vm2888_vm14, %v2889_v26, %v2887_v28  ;;  %v3016_v45 = vmul.u32 %v3014_v41, %v2989_v50  ;;  %v2879_v46 = vadd.s32 %v7761_v4, %v7763_v32 }
 0x2f0   : > { %v2783_v9 = vsel %vm2776_vm10, %v2779_v14, %v2782_v16  ;;  %v2891_v44 = vclz %v2890_v51  ;;  %v2997_v24 = vshll.u32 %v2994_v54, 16  ;;  %v2976_v42 = vsel %vm2972_vm5, %v2956_v31, %v7777_v35 }
 0x2f1   : > { %v2784_v18 = vsel %vm2773_vm7, nan, %v2783_v9  ;;  %v2993_v33 = vmul.u32 %v2991_v13, %v2989_v50  ;;  %v2978_v20 = vsel %vm2974_vm6, %v7781_v27, %v2977_v39  ;;  %v2996_v23 = vmul.u32 %v2992_v60, %v2990_v22 }
 0x2f2   : > { %v5590_v5 = vadd.s32 4294967294, %v2891_v44  ;;  %v3015_v40 = vmul.u32 %v3013_v34, %v2989_v50  ;;  %5434 = vst [vmem:[%s6199_s9 + $0x70] sm:$0xff] %v2784_v18  ;;  %v2999_v11 = vshll.u32 %v2995_v63, 16  ;;  %v3017_v19 = vmul.u32 %v3013_v34, %v2990_v22 }
 0x2f3   : > { %vm3001_vm13 = vc.u32 %v2993_v33, %v2997_v24  ;;  %v3003_v17 = vadd.s32 %v2997_v24, %v2993_v33  ;;  %v2998_v57 = vshrl.u32 %v2994_v54, 16  ;;  %v3019_v32 = vshll.u32 %v3016_v45, 16  ;;  %v327_v54 = vpop.permute.xlu1 %326 }
 0x2f4   : > { %vm5591_vm15 = vcmp.lt.s32.totalorder %v5590_v5, 0  ;;  %v3002_v4 = vsel %vm3001_vm13, 1, %v5789_v0  ;;  %v3018_v30 = vmul.u32 %v3014_v41, %v2990_v22  ;;  %v3021_v49 = vshll.u32 %v3017_v19, 16 }
 0x2f5   : > { %v2894_v29 = vsel %vm5591_vm15, 0, %v5590_v5  ;;  %v3004_v35 = vadd.s32 %v3002_v4, %v2996_v23  ;;  %vm3005_vm0 = vc.u32 %v3003_v17, %v2999_v11  ;;  %vm3023_vm1 = vc.u32 %v3015_v40, %v3019_v32 }
 0x2f6   : > { %v2895_v7 = vsub.s32 32, %v2894_v29  ;;  %v2899_v10 = vsub.s32 4294967266, %v2894_v29  ;;  %v3006_v27 = vsel %vm3005_vm0, 1, %v5789_v0  ;;  %v2896_v59 = vshll.u32 %v2887_v28, %v2894_v29 }
 0x2f7   : > { %v3008_v36 = vadd.s32 %v3006_v27, %v3004_v35  ;;  %v3025_v37 = vadd.s32 %v3019_v32, %v3015_v40  ;;  %v3024_v12 = vsel %vm3023_vm1, 1, %v5789_v0  ;;  %v5595_v8 = vadd.s32 4294967169, %v3099_v53 }
 0x2f8   : > { %v2897_v25 = vshrl.u32 %v2879_v46, %v2895_v7  ;;  %v2900_v56 = vadd.s32 127, %v2899_v10  ;;  %v2909_v50 = vsub.s32 4, %v7802_v48  ;;  %v3026_v60 = vadd.s32 %v3024_v12, %v3018_v30 }
 0x2f9   : > { %v3009_v13 = vadd.s32 %v3008_v36, %v2998_v57  ;;  %vm3027_vm2 = vc.u32 %v3025_v37, %v3021_v49  ;;  %v3000_v26 = vshrl.u32 %v2995_v63, 16  ;;  %vm2787_vm4 = vcmp.lt.s32.totalorder %v7587_v15, 0 }
 0x2fa   : > { %v2898_v41 = vor.u32 %v2897_v25, %v2896_v59  ;;  %v2901_v2 = vshll.u32 %v2900_v56, 23  ;;  %v3028_v22 = vsel %vm3027_vm2, 1, %v5789_v0  ;;  %v3020_v28 = vshrl.u32 %v3016_v45, 16  ;;  %v322_v25 = vpop.permute.xlu0 %321 }
 0x2fb   : > { %v3030_v31 = vadd.s32 %v3028_v22, %v3026_v60  ;;  %v3105_v39 = vadd.s32 1, %v5595_v8  ;;  %v2979_v53 = vsel %vm2973_vm9, %v2976_v42, %v2978_v20  ;;  %v7849_v14 = vadd.s32 %v3009_v13, %v3000_v26 }
 0x2fc   : > { %v2902_v34 = vor.u32 4788187, %v2901_v2  ;;  %v3095_v16 = vand.u32 2147483647, %v7653_v43  ;;  %v2910_v51 = vsel %vm2787_vm4, %v2909_v50, %v7802_v48  ;;  %v3022_v63 = vshrl.u32 %v3017_v19, 16 }
 0x2fd   : > { %v3031_v9 = vadd.s32 %v3030_v31, %v3020_v28  ;;  %vm3106_vm3 = vcmp.gt.s32.totalorder %v3105_v39, 0  ;;  %v2905_v24 = vcvt.s32.f32 %v2898_v41  ;;  %v7855_v45 = vadd.s32 %v3025_v37, %v3021_v49 }
 0x2fe   : > { %v2903_v44 = vand.u32 2147483647, %v2902_v34  ;;  %v3107_v18 = vsel %vm3106_vm3, %v3105_v39, 0  ;;  %v411_v46 = vmul.f32 %v7860_v21, %v327_v54  ;;  %vm7865_vm5 = vcmp.le.f32.partialorder %v2785_v47, 0.7853982 }
 0x2ff   : > { %v3032_v42 = vadd.s32 %v3031_v9, %v3022_v63  ;;  %v3109_v33 = vand.u32 31, %v3107_v18  ;;  %v3033_v20 = vmul.u32 %v7812_v38, %v2979_v53  ;;  %vm3035_vm6 = vc.u32 %v7849_v14, %v7855_v45 }
 0x300   : > { %v2906_v5 = vmul.f32 %v2905_v24, %v2903_v44  ;;  %v2912_v23 = vsel %vm7865_vm5, 0, %v2910_v51  ;;  %v3102_v11 = vand.u32 8388607, %v3095_v16  ;;  %v7878_v47 = vshrl.u32 %v3107_v18, 5 }
 0x301   : > { %v3036_v40 = vadd.s32 1, %v3032_v42  ;;  %v7876_v17 = vsub.s32 32, %v3109_v33  ;;  %v3112_v57 = vshll.u32 %v5790_v52, %v3109_v33  ;;  %v3115_v4 = vshll.u32 %v5791_v55, %v3109_v33 }
 0x302   : > { %v2907_v19 = vxor.u32 2147483648, %v2906_v5  ;;  %v3121_v35 = vshll.u32 %v5793_v61, %v3109_v33  ;;  %v3118_v59 = vshll.u32 %v5792_v58, %v3109_v33  ;;  %v3124_v36 = vshll.u32 %v5794_v1, %v3109_v33 }
 0x303   : > { %v3037_v38 = vsel %vm3035_vm6, %v3036_v40, %v3032_v42  ;;  %v3113_v32 = vshrl.u32 %v5791_v55, %v7876_v17  ;;  %v3116_v29 = vshrl.u32 %v5792_v58, %v7876_v17  ;;  %v3119_v10 = vshrl.u32 %v5793_v61, %v7876_v17 }
 0x304   : > { %v2908_v30 = vsel %vm2787_vm4, %v2907_v19, %v2906_v5  ;;  %v3038_v7 = vadd.s32 %v3037_v38, %v3033_v20  ;;  %v3122_v27 = vshrl.u32 %v5794_v1, %v7876_v17  ;;  %v3125_v37 = vshrl.u32 %v5795_v3, %v7876_v17  ;;  %v7939_v5 = vld [vmem:[%s9716_s2] ss:$0 sm:$0xff] }
 0x305   : > { %v7896_v49 = vsel %vm7865_vm5, %v7587_v15, %v2908_v30  ;;  %v3103_v8 = vor.u32 8388608, %v3102_v11  ;;  %v7904_v13 = vor.u32 %v3113_v32, %v3112_v57  ;;  %v7906_v60 = vor.u32 %v3116_v29, %v3115_v4 }
 0x306   : > { %v2913_v56 = vmul.f32 %v7896_v49, %v7896_v49  ;;  %v3039_v12 = vadd.s32 536870912, %v3038_v7  ;;  %v3123_v50 = vor.u32 %v3122_v27, %v3121_v35  ;;  %v7908_v41 = vor.u32 %v3119_v10, %v3118_v59 }
 0x307   : > { %v3126_v2 = vor.u32 %v3125_v37, %v3124_v36  ;;  %vm3130_vm8 = vcmp.lt.s32.totalorder %v7878_v47, 4  ;;  %v410_v31 = vmul.f32 %v7860_v21, %v322_v25  ;;  %v2929_v39 = vadd.s32 3, %v2912_v23 }
 0x308   : > { %v2914_v26 = vmul.f32 -0.001358992, %v2913_v56  ;;  %v2921_v22 = vmul.f32 -0.00019511016, %v2913_v56  ;;  %v7910_v28 = vshrl.u32 %v3039_v12, 30  ;;  %vm3127_vm7 = vcmp.lt.s32.totalorder %v7878_v47, 1 }
 0x309   : > { %v3136_v54 = vsel %vm3130_vm8, %v3123_v50, 920167782  ;;  %vm3129_vm9 = vcmp.lt.s32.totalorder %v7878_v47, 3  ;;  %v3135_v63 = vsel %vm3127_vm7, %v7904_v13, %v7906_v60  ;;  %v3140_v44 = vsel %vm3130_vm8, %v3126_v2, 1326507024 }
 0x30a   : > { %v2915_v34 = vadd.f32 0.041655596, %v2914_v26  ;;  %v2922_v53 = vadd.f32 0.008332121, %v2921_v22  ;;  %v3041_v51 = vshll.u32 %v7910_v28, 30  ;;  %v3137_v9 = vsel %vm3129_vm9, %v7908_v41, %v3136_v54 }
 0x30b   : > { %v7928_v24 = vshll.u32 %v3103_v8, 8  ;;  %v3139_v48 = vsel %vm3127_vm7, %v7906_v60, %v7908_v41  ;;  %v7942_v20 = vadd.f32 %v7939_v5, %v411_v46  ;;  %v2930_v23 = vand.u32 3, %v2929_v39 }
 0x30c   : > { %v2916_v18 = vmul.f32 %v2915_v34, %v2913_v56  ;;  %v2923_v42 = vmul.f32 %v2922_v53, %v2913_v56  ;;  %v7930_v33 = vsub.s32 %v3038_v7, %v3041_v51  ;;  %vm3128_vm10 = vcmp.lt.s32.totalorder %v7878_v47, 2 }
 0x30d   : > { %v3141_v40 = vsel %vm3129_vm9, %v3123_v50, %v3140_v44  ;;  %v7950_v4 = vadd.f32 %v7939_v5, %v410_v31  ;;  %v3138_v38 = vsel %vm3128_vm10, %v3135_v63, %v3137_v9  ;;  %v3145_v32 = vshrl.u32 %v7928_v24, 16 }
 0x30e   : > { %v2917_v11 = vadd.f32 -0.4999988, %v2916_v18  ;;  %v2924_v19 = vadd.f32 -0.16666654, %v2923_v42  ;;  %vm3043_vm11 = vcmp.lt.s32.totalorder %v7930_v33, 0  ;;  %v3044_v57 = vsub.s32 0, %v7930_v33 }
 0x30f   : > { %v3142_v46 = vsel %vm3128_vm10, %v3139_v48, %v3141_v40  ;;  %vm2928_vm12 = vweird.f32 %v7587_v15  ;;  %vm2931_vm14 = vcmp.lt.s32.totalorder %v2930_v23, 2  ;;  %v3144_v27 = vand.u32 65535, %v7928_v24 }
 0x310   : > { %v2918_v29 = vmul.f32 %v2917_v11, %v2913_v56  ;;  %v2925_v35 = vmul.f32 %v2924_v19, %v2913_v56  ;;  %v3045_v30 = vsel %vm3043_vm11, %v3044_v57, %v7930_v33  ;;  %v3146_v7 = vand.u32 65535, %v3142_v46 }
 0x311   : > { %v3046_v10 = vclz %v3045_v30  ;;  %v3147_v59 = vshrl.u32 %v3142_v46, 16  ;;  %v3169_v12 = vshrl.u32 %v3138_v38, 16  ;;  %vm2932_vm13 = vcmp.eq.s32.totalorder %v2930_v23, 0 }
 0x312   : > { %v2919_v36 = vadd.f32 1.0, %v2918_v29  ;;  %v2926_v37 = vadd.f32 1.0, %v2925_v35  ;;  %v7960_v25 = vmul.u32 %v3146_v7, %v3145_v32  ;;  %vm2935_vm15 = vcmp.eq.s32.totalorder %v2930_v23, 2 }
 0x313   : > { %v3034_v56 = vadd.s32 %v7855_v45, %v7849_v14  ;;  %v5593_v8 = vadd.s32 4294967294, %v3046_v10  ;;  %v3149_v26 = vmul.u32 %v3147_v59, %v3144_v27  ;;  %v3168_v22 = vand.u32 65535, %v3138_v38 }
 0x314   : > { %v2927_v50 = vmul.f32 %v2926_v37, %v7896_v49  ;;  %v2936_v2 = vxor.u32 2147483648, %v2919_v36  ;;  %v3148_v31 = vmul.u32 %v3146_v7, %v3144_v27  ;;  %v3151_v39 = vmul.u32 %v3147_v59, %v3145_v32 }
 0x315   : > { %vm5594_vm0 = vcmp.lt.s32.totalorder %v5593_v8, 0  ;;  %v3154_v54 = vshll.u32 %v7960_v25, 16  ;;  %v3152_v51 = vshll.u32 %v3149_v26, 16  ;;  %v3171_v63 = vmul.u32 %v3169_v12, %v3144_v27 }
 0x316   : > { %v2933_v34 = vxor.u32 2147483648, %v2927_v50  ;;  %v3049_v53 = vsel %vm5594_vm0, 0, %v5593_v8  ;;  %v2937_v9 = vsel %vm2935_vm15, %v2936_v2, %v2927_v50  ;;  %vm2942_vm1 = vcmp.lt.s32.totalorder %v7581_v62, 0 }
 0x317   : > { %v3050_v44 = vsub.s32 32, %v3049_v53  ;;  %v3051_v14 = vshll.u32 %v7930_v33, %v3049_v53  ;;  %v3054_v45 = vsub.s32 4294967266, %v3049_v53  ;;  %vm3156_vm2 = vc.u32 %v3148_v31, %v3152_v51 }
 0x318   : > { %v2934_v49 = vsel %vm2932_vm13, %v2919_v36, %v2933_v34  ;;  %v3158_v18 = vadd.s32 %v3152_v51, %v3148_v31  ;;  %v3172_v42 = vmul.u32 %v3168_v22, %v3145_v32  ;;  %v3157_v19 = vsel %vm3156_vm2, 1, %v5789_v0 }
 0x319   : > { %v2938_v48 = vsel %vm2931_vm14, %v2934_v49, %v2937_v9  ;;  %v3052_v40 = vshrl.u32 %v3034_v56, %v3050_v44  ;;  %v3055_v11 = vadd.s32 127, %v3054_v45  ;;  %v3159_v38 = vadd.s32 %v3157_v19, %v3151_v39 }
 0x31a   : > { %v2939_v57 = vsel %vm2928_vm12, nan, %v2938_v48  ;;  %vm3160_vm4 = vc.u32 %v3158_v18, %v3154_v54  ;;  %v3170_v46 = vmul.u32 %v3168_v22, %v3144_v27  ;;  %vm7975_vm3 = vcmp.le.f32.partialorder %v2940_v6, 0.7853982  ;;  %v332_v48 = vpop.permute.xlu2 %331 }
 0x31b   : > { %v3053_v29 = vor.u32 %v3052_v40, %v3051_v14  ;;  %v3056_v35 = vshll.u32 %v3055_v11, 23  ;;  %v3161_v23 = vsel %vm3160_vm4, 1, %v5789_v0  ;;  %v3174_v30 = vshll.u32 %v3171_v63, 16  ;;  %5435 = vst [vmem:[%s6199_s9 + $0x78] sm:$0xff] %v2939_v57 }
 0x31c   : > { %v3064_v7 = vsub.s32 4, %v7910_v28  ;;  %v3153_v10 = vshrl.u32 %v3149_v26, 16  ;;  %v3163_v15 = vadd.s32 %v3161_v23, %v3159_v38  ;;  %v3173_v59 = vmul.u32 %v3169_v12, %v3145_v32 }
 0x31d   : > { %v3057_v36 = vor.u32 4788187, %v3056_v35  ;;  %v3176_v37 = vshll.u32 %v3172_v42, 16  ;;  %vm3178_vm5 = vc.u32 %v3170_v46, %v3174_v30  ;;  %v3180_v27 = vadd.s32 %v3174_v30, %v3170_v46 }
 0x31e   : > { %v3060_v56 = vcvt.s32.f32 %v3053_v29  ;;  %v3132_v6 = vsel %vm3130_vm8, %v7908_v41, 2102212464  ;;  %v3164_v8 = vadd.s32 %v3163_v15, %v3153_v10  ;;  %v3179_v50 = vsel %vm3178_vm5, 1, %v5789_v0 }
 0x31f   : > { %v3058_v2 = vand.u32 2147483647, %v3057_v36  ;;  %v3181_v22 = vadd.s32 %v3179_v50, %v3173_v59  ;;  %vm3182_vm6 = vc.u32 %v3180_v27, %v3176_v37  ;;  %v3250_v31 = vand.u32 2147483647, %v7950_v4 }
 0x320   : > { %v3065_v32 = vsel %vm2942_vm1, %v3064_v7, %v7910_v28  ;;  %v3111_v12 = vshrl.u32 %v5790_v52, %v7876_v17  ;;  %v3155_v26 = vshrl.u32 %v7960_v25, 16  ;;  %v3183_v39 = vsel %vm3182_vm6, 1, %v5789_v0 }
 0x321   : > { %v3061_v41 = vmul.f32 %v3060_v56, %v3058_v2  ;;  %v3175_v54 = vshrl.u32 %v3171_v63, 16  ;;  %v3185_v34 = vadd.s32 %v3183_v39, %v3181_v22  ;;  %v3253_v53 = vand.u32 2139095040, %v7950_v4 }
 0x322   : > { %v3131_v51 = vsel %vm3127_vm7, %v3111_v12, %v7904_v13  ;;  %v3133_v28 = vsel %vm3129_vm9, %v7906_v60, %v3132_v6  ;;  %v3165_v9 = vadd.s32 %v3164_v8, %v3155_v26  ;;  %v3177_v44 = vshrl.u32 %v3172_v42, 16 }
 0x323   : > { %v3062_v17 = vxor.u32 2147483648, %v3061_v41  ;;  %v3186_v14 = vadd.s32 %v3185_v34, %v3175_v54  ;;  %v3254_v25 = vshrl.u32 %v3253_v53, 23  ;;  %v3257_v45 = vand.u32 8388607, %v3250_v31 }
 0x324   : > { %v3067_v63 = vsel %vm7975_vm3, 0, %v3065_v32  ;;  %v3184_v49 = vadd.s32 %v3180_v27, %v3176_v37  ;;  %v3408_v18 = vand.u32 2139095040, %v7942_v20  ;;  %v3134_v60 = vsel %vm3128_vm10, %v3131_v51, %v3133_v28 }
 0x325   : > { %v3063_v13 = vsel %vm2942_vm1, %v3062_v17, %v3061_v41  ;;  %v3187_v42 = vadd.s32 %v3186_v14, %v3177_v44  ;;  %v5598_v40 = vadd.s32 4294967169, %v3254_v25  ;;  %v3258_v38 = vor.u32 8388608, %v3257_v45 }
 0x326   : > { %v3066_v11 = vsel %vm7975_vm3, %v7581_v62, %v3063_v13  ;;  %vm3190_vm8 = vc.u32 %v3165_v9, %v3184_v49  ;;  %v412_v29 = vmul.f32 %v7860_v21, %v332_v48  ;;  %v3084_v35 = vadd.s32 3, %v3067_v63 }
 0x327   : > { %v3068_v19 = vmul.f32 %v3066_v11, %v3066_v11  ;;  %v3191_v57 = vadd.s32 1, %v3187_v42  ;;  %v3260_v46 = vadd.s32 1, %v5598_v40  ;;  %v3188_v23 = vmul.u32 %v7928_v24, %v3134_v60 }
 0x328   : > { %v3409_v30 = vshrl.u32 %v3408_v18, 23  ;;  %v3405_v33 = vand.u32 2147483647, %v7942_v20  ;;  %v8016_v56 = vshll.u32 %v3258_v38, 8  ;;  %v3085_v6 = vand.u32 3, %v3084_v35 }
 0x329   : > { %v3069_v7 = vmul.f32 -0.001358992, %v3068_v19  ;;  %v3076_v47 = vmul.f32 -0.00019511016, %v3068_v19  ;;  %v3192_v10 = vsel %vm3190_vm8, %v3191_v57, %v3187_v42  ;;  %vm3261_vm7 = vcmp.gt.s32.totalorder %v3260_v46, 0 }
 0x32a   : > { %v3193_v15 = vadd.s32 %v3192_v10, %v3188_v23  ;;  %v3262_v59 = vsel %vm3261_vm7, %v3260_v46, 0  ;;  %v5601_v50 = vadd.s32 4294967169, %v3409_v30  ;;  %v8019_v2 = vadd.f32 %v7939_v5, %v412_v29 }
 0x32b   : > { %v3070_v36 = vadd.f32 0.041655596, %v3069_v7  ;;  %v3077_v37 = vadd.f32 0.008332121, %v3076_v47  ;;  %v3264_v27 = vand.u32 31, %v3262_v59  ;;  %vm3097_vm9 = vcmp.lt.s32.totalorder %v7653_v43, 0 }
 0x32c   : > { %v3194_v8 = vadd.s32 536870912, %v3193_v15  ;;  %v8022_v12 = vadd.s32 %v3184_v49, %v3165_v9  ;;  %v8026_v39 = vand.u32 8388607, %v3405_v33  ;;  %v8029_v34 = vand.u32 65535, %v8016_v56 }
 0x32d   : > { %v3071_v24 = vmul.f32 %v3070_v36, %v3068_v19  ;;  %v3078_v22 = vmul.f32 %v3077_v37, %v3068_v19  ;;  %v3265_v32 = vsub.s32 32, %v3264_v27  ;;  %v8032_v53 = vshrl.u32 %v8016_v56, 16 }
 0x32e   : > { %v3195_v26 = vshrl.u32 %v3194_v8, 30  ;;  %vm3087_vm10 = vcmp.eq.s32.totalorder %v3085_v6, 0  ;;  %vm3090_vm11 = vcmp.eq.s32.totalorder %v3085_v6, 2  ;;  %v8034_v28 = vshrl.u32 %v3262_v59, 5 }
 0x32f   : > { %v3072_v41 = vadd.f32 -0.4999988, %v3071_v24  ;;  %v3079_v54 = vadd.f32 -0.16666654, %v3078_v22  ;;  %v3268_v9 = vshrl.u32 %v5791_v55, %v3265_v32  ;;  %v8037_v44 = vadd.s32 1, %v5601_v50 }
 0x330   : > { %v3196_v51 = vshll.u32 %v3195_v26, 30  ;;  %vm3086_vm12 = vcmp.lt.s32.totalorder %v3085_v6, 2  ;;  %v3267_v25 = vshll.u32 %v5790_v52, %v3264_v27  ;;  %v3271_v45 = vshrl.u32 %v5792_v58, %v3265_v32 }
 0x331   : > { %v3073_v17 = vmul.f32 %v3072_v41, %v3068_v19  ;;  %v3080_v14 = vmul.f32 %v3079_v54, %v3068_v19  ;;  %vm3083_vm14 = vweird.f32 %v7581_v62  ;;  %v3270_v49 = vshll.u32 %v5791_v55, %v3264_v27 }
 0x332   : > { %v8042_v63 = vsub.s32 %v3193_v15, %v3196_v51  ;;  %v3274_v18 = vshrl.u32 %v5793_v61, %v3265_v32  ;;  %v3277_v48 = vshrl.u32 %v5794_v1, %v3265_v32  ;;  %v3219_v42 = vsub.s32 4, %v3195_v26 }
 0x333   : > { %v3074_v13 = vadd.f32 1.0, %v3073_v17  ;;  %v3081_v60 = vadd.f32 1.0, %v3080_v14  ;;  %v3273_v40 = vshll.u32 %v5792_v58, %v3264_v27  ;;  %v3269_v57 = vor.u32 %v3268_v9, %v3267_v25 }
 0x334   : > { %vm3198_vm13 = vcmp.lt.s32.totalorder %v8042_v63, 0  ;;  %v3199_v19 = vsub.s32 0, %v8042_v63  ;;  %v3276_v38 = vshll.u32 %v5793_v61, %v3264_v27  ;;  %v3272_v35 = vor.u32 %v3271_v45, %v3270_v49 }
 0x335   : > { %v3082_v46 = vmul.f32 %v3081_v60, %v3066_v11  ;;  %v3091_v29 = vxor.u32 2147483648, %v3074_v13  ;;  %v3280_v23 = vshrl.u32 %v5795_v3, %v3265_v32  ;;  %v3275_v7 = vor.u32 %v3274_v18, %v3273_v40 }
 0x336   : > { %v3200_v30 = vsel %vm3198_vm13, %v3199_v19, %v8042_v63  ;;  %v3278_v47 = vor.u32 %v3277_v48, %v3276_v38  ;;  %v3279_v10 = vshll.u32 %v5794_v1, %v3264_v27  ;;  %v8056_v36 = vsel %vm3097_vm9, %v3219_v42, %v3195_v26 }
 0x337   : > { %v3088_v15 = vxor.u32 2147483648, %v3082_v46  ;;  %v3201_v59 = vclz %v3200_v30  ;;  %v3266_v37 = vshrl.u32 %v5790_v52, %v3265_v32  ;;  %vm8061_vm15 = vcmp.le.f32.partialorder %v3095_v16, 0.7853982 }
 0x338   : > { %v3281_v8 = vor.u32 %v3280_v23, %v3279_v10  ;;  %vm3282_vm0 = vcmp.lt.s32.totalorder %v8034_v28, 1  ;;  %vm3283_vm1 = vcmp.lt.s32.totalorder %v8034_v28, 2  ;;  %vm3284_vm2 = vcmp.lt.s32.totalorder %v8034_v28, 3 }
 0x339   : > { %v3089_v27 = vsel %vm3087_vm10, %v3074_v13, %v3088_v15  ;;  %v3092_v50 = vsel %vm3090_vm11, %v3091_v29, %v3082_v46  ;;  %v5596_v24 = vadd.s32 4294967294, %v3201_v59  ;;  %vm3285_vm4 = vcmp.lt.s32.totalorder %v8034_v28, 4 }
 0x33a   : > { %v3093_v16 = vsel %vm3086_vm12, %v3089_v27, %v3092_v50  ;;  %v3287_v22 = vsel %vm3285_vm4, %v3275_v7, 2102212464  ;;  %v3290_v32 = vsel %vm3282_vm0, %v3269_v57, %v3272_v35  ;;  %v3291_v26 = vsel %vm3285_vm4, %v3278_v47, 920167782 }
 0x33b   : > { %v3094_v41 = vsel %vm3083_vm14, nan, %v3093_v16  ;;  %vm5597_vm3 = vcmp.lt.s32.totalorder %v5596_v24, 0  ;;  %v3286_v54 = vsel %vm3282_vm0, %v3266_v37, %v3269_v57  ;;  %v3292_v51 = vsel %vm3284_vm2, %v3275_v7, %v3291_v26 }
 0x33c   : > { %v3204_v9 = vsel %vm5597_vm3, 0, %v5596_v24  ;;  %v3293_v6 = vsel %vm3283_vm1, %v3290_v32, %v3292_v51  ;;  %v3294_v17 = vsel %vm3282_vm0, %v3272_v35, %v3275_v7  ;;  %v3295_v14 = vsel %vm3285_vm4, %v3281_v8, 1326507024  ;;  %5436 = vst [vmem:[%s6199_s9 + $0x80] sm:$0xff] %v3094_v41 }
 0x33d   : > { %v3205_v25 = vsub.s32 32, %v3204_v9  ;;  %v3209_v45 = vsub.s32 4294967266, %v3204_v9  ;;  %v3288_v62 = vsel %vm3284_vm2, %v3272_v35, %v3287_v22  ;;  %v3296_v49 = vsel %vm3284_vm2, %v3278_v47, %v3295_v14 }
 0x33e   : > { %v3206_v18 = vshll.u32 %v8042_v63, %v3204_v9  ;;  %v3297_v48 = vsel %vm3283_vm1, %v3294_v17, %v3296_v49  ;;  %v3323_v13 = vand.u32 65535, %v3293_v6  ;;  %v3324_v60 = vshrl.u32 %v3293_v6, 16 }
 0x33f   : > { %v3207_v42 = vshrl.u32 %v8022_v12, %v3205_v25  ;;  %v3210_v40 = vadd.s32 127, %v3209_v45  ;;  %v3301_v19 = vand.u32 65535, %v3297_v48  ;;  %v3302_v57 = vshrl.u32 %v3297_v48, 16 }
 0x340   : > { %v3326_v38 = vmul.u32 %v3324_v60, %v8029_v34  ;;  %v3327_v46 = vmul.u32 %v3323_v13, %v8032_v53  ;;  %v3413_v29 = vor.u32 8388608, %v8026_v39  ;;  %vm3416_vm5 = vcmp.gt.s32.totalorder %v8037_v44, 0 }
 0x341   : > { %v3208_v35 = vor.u32 %v3207_v42, %v3206_v18  ;;  %v3211_v63 = vshll.u32 %v3210_v40, 23  ;;  %v3222_v23 = vsel %vm8061_vm15, 0, %v8056_v36  ;;  %v3304_v30 = vmul.u32 %v3302_v57, %v8029_v34 }
 0x342   : > { %v8103_v12 = vsel %vm3283_vm1, %v3286_v54, %v3288_v62  ;;  %v3305_v7 = vmul.u32 %v3301_v19, %v8032_v53  ;;  %v3325_v47 = vmul.u32 %v3323_v13, %v8029_v34  ;;  %v3329_v10 = vshll.u32 %v3326_v38, 16 }
 0x343   : > { %v3212_v15 = vor.u32 4788187, %v3211_v63  ;;  %v3303_v59 = vmul.u32 %v3301_v19, %v8029_v34  ;;  %v3307_v37 = vshll.u32 %v3304_v30, 16  ;;  %v3328_v8 = vmul.u32 %v3324_v60, %v8032_v53 }
 0x344   : > { %v3215_v27 = vcvt.s32.f32 %v3208_v35  ;;  %v3306_v36 = vmul.u32 %v3302_v57, %v8032_v53  ;;  %v3309_v50 = vshll.u32 %v3305_v7, 16  ;;  %v3331_v24 = vshll.u32 %v3327_v46, 16 }
 0x345   : > { %v3213_v16 = vand.u32 2147483647, %v3212_v15  ;;  %vm3311_vm6 = vc.u32 %v3303_v59, %v3307_v37  ;;  %v3313_v28 = vadd.s32 %v3307_v37, %v3303_v59  ;;  %vm3333_vm8 = vc.u32 %v3325_v47, %v3329_v10 }
 0x346   : > { %v3312_v22 = vsel %vm3311_vm6, 1, %v5789_v0  ;;  %v3334_v32 = vsel %vm3333_vm8, 1, %v5789_v0  ;;  %v3335_v26 = vadd.s32 %v3329_v10, %v3325_v47  ;;  %v3417_v34 = vsel %vm3416_vm5, %v8037_v44, 0 }
 0x347   : > { %v3216_v41 = vmul.f32 %v3215_v27, %v3213_v16  ;;  %v3314_v54 = vadd.s32 %v3312_v22, %v3306_v36  ;;  %vm3315_vm7 = vc.u32 %v3313_v28, %v3309_v50  ;;  %v3336_v51 = vadd.s32 %v3334_v32, %v3328_v8 }
 0x348   : > { %v3308_v53 = vshrl.u32 %v3304_v30, 16  ;;  %v3316_v9 = vsel %vm3315_vm7, 1, %v5789_v0  ;;  %vm3337_vm10 = vc.u32 %v3335_v26, %v3331_v24  ;;  %v3563_v6 = vand.u32 2139095040, %v8019_v2 }
 0x349   : > { %v3217_v17 = vxor.u32 2147483648, %v3216_v41  ;;  %v3318_v14 = vadd.s32 %v3316_v9, %v3314_v54  ;;  %v3338_v25 = vsel %vm3337_vm10, 1, %v5789_v0  ;;  %v3419_v45 = vand.u32 31, %v3417_v34 }
 0x34a   : > { %v3239_v62 = vadd.s32 3, %v3222_v23  ;;  %v3330_v49 = vshrl.u32 %v3326_v38, 16  ;;  %v3340_v18 = vadd.s32 %v3338_v25, %v3336_v51  ;;  %v3343_v44 = vmul.u32 %v8016_v56, %v8103_v12 }
 0x34b   : > { %v3218_v48 = vsel %vm3097_vm9, %v3217_v17, %v3216_v41  ;;  %v3310_v13 = vshrl.u32 %v3305_v7, 16  ;;  %v3319_v60 = vadd.s32 %v3318_v14, %v3308_v53  ;;  %v8122_v42 = vsub.s32 32, %v3419_v45 }
 0x34c   : > { %v3221_v40 = vsel %vm8061_vm15, %v7653_v43, %v3218_v48  ;;  %v3332_v19 = vshrl.u32 %v3327_v46, 16  ;;  %v8127_v57 = vadd.s32 %v3335_v26, %v3331_v24  ;;  %v3341_v35 = vadd.s32 %v3340_v18, %v3330_v49 }
 0x34d   : > { %v3223_v38 = vmul.f32 %v3221_v40, %v3221_v40  ;;  %v8129_v63 = vadd.s32 %v3319_v60, %v3310_v13  ;;  %v8131_v23 = vshrl.u32 %v3417_v34, 5  ;;  %v3423_v56 = vshrl.u32 %v5791_v55, %v8122_v42 }
 0x34e   : > { %v3342_v30 = vadd.s32 %v3341_v35, %v3332_v19  ;;  %v3422_v12 = vshll.u32 %v5790_v52, %v3419_v45  ;;  %v3426_v7 = vshrl.u32 %v5792_v58, %v8122_v42  ;;  %v3429_v11 = vshrl.u32 %v5793_v61, %v8122_v42 }
 0x34f   : > { %v3224_v46 = vmul.f32 -0.001358992, %v3223_v38  ;;  %v3231_v47 = vmul.f32 -0.00019511016, %v3223_v38  ;;  %vm3345_vm9 = vc.u32 %v8129_v63, %v8127_v57  ;;  %v3425_v10 = vshll.u32 %v5791_v55, %v3419_v45 }
 0x350   : > { %v3346_v15 = vadd.s32 1, %v3342_v30  ;;  %v8143_v59 = vor.u32 %v3423_v56, %v3422_v12  ;;  %v3428_v37 = vshll.u32 %v5792_v58, %v3419_v45  ;;  %v3431_v8 = vshll.u32 %v5793_v61, %v3419_v45 }
 0x351   : > { %v3225_v27 = vadd.f32 0.041655596, %v3224_v46  ;;  %v3232_v36 = vadd.f32 0.008332121, %v3231_v47  ;;  %v8147_v50 = vor.u32 %v3426_v7, %v3425_v10  ;;  %v3432_v24 = vshrl.u32 %v5794_v1, %v8122_v42 }
 0x352   : > { %v3347_v16 = vsel %vm3345_vm9, %v3346_v15, %v3342_v30  ;;  %v3430_v28 = vor.u32 %v3429_v11, %v3428_v37  ;;  %v3434_v22 = vshll.u32 %v5794_v1, %v3419_v45  ;;  %v3435_v32 = vshrl.u32 %v5795_v3, %v8122_v42 }
 0x353   : > { %v3226_v26 = vmul.f32 %v3225_v27, %v3223_v38  ;;  %v3233_v34 = vmul.f32 %v3232_v36, %v3223_v38  ;;  %v3348_v41 = vadd.s32 %v3347_v16, %v3343_v44  ;;  %v3433_v54 = vor.u32 %v3432_v24, %v3431_v8 }
 0x354   : > { %v3240_v51 = vand.u32 3, %v3239_v62  ;;  %v3436_v53 = vor.u32 %v3435_v32, %v3434_v22  ;;  %vm3437_vm11 = vcmp.lt.s32.totalorder %v8131_v23, 1  ;;  %vm3439_vm12 = vcmp.lt.s32.totalorder %v8131_v23, 3 }
 0x355   : > { %v3227_v9 = vadd.f32 -0.4999988, %v3226_v26  ;;  %v3234_v17 = vadd.f32 -0.16666654, %v3233_v34  ;;  %v3349_v14 = vadd.s32 536870912, %v3348_v41  ;;  %vm3440_vm14 = vcmp.lt.s32.totalorder %v8131_v23, 4 }
 0x356   : > { %v3445_v25 = vsel %vm3437_vm11, %v8143_v59, %v8147_v50  ;;  %v3446_v45 = vsel %vm3440_vm14, %v3433_v54, 920167782  ;;  %v3449_v62 = vsel %vm3437_vm11, %v8147_v50, %v3430_v28  ;;  %v3450_v49 = vsel %vm3440_vm14, %v3436_v53, 1326507024 }
 0x357   : > { %v3228_v18 = vmul.f32 %v3227_v9, %v3223_v38  ;;  %v3235_v44 = vmul.f32 %v3234_v17, %v3223_v38  ;;  %v8168_v48 = vshrl.u32 %v3349_v14, 30  ;;  %v3447_v13 = vsel %vm3439_vm12, %v3430_v28, %v3446_v45 }
 0x358   : > { %vm3238_vm13 = vweird.f32 %v7653_v43  ;;  %vm3438_vm15 = vcmp.lt.s32.totalorder %v8131_v23, 2  ;;  %v3451_v60 = vsel %vm3439_vm12, %v3433_v54, %v3450_v49  ;;  %v8178_v19 = vshll.u32 %v3413_v29, 8 }
 0x359   : > { %v3229_v35 = vadd.f32 1.0, %v3228_v18  ;;  %v3236_v56 = vadd.f32 1.0, %v3235_v44  ;;  %v3351_v38 = vshll.u32 %v8168_v48, 30  ;;  %v3448_v30 = vsel %vm3438_vm15, %v3445_v25, %v3447_v13 }
 0x35a   : > { %vm3241_vm0 = vcmp.lt.s32.totalorder %v3240_v51, 2  ;;  %vm3242_vm1 = vcmp.eq.s32.totalorder %v3240_v51, 0  ;;  %v3452_v12 = vsel %vm3438_vm15, %v3449_v62, %v3451_v60  ;;  %v3564_v7 = vshrl.u32 %v3563_v6, 23 }
 0x35b   : > { %v3237_v11 = vmul.f32 %v3236_v56, %v3221_v40  ;;  %vm3245_vm2 = vcmp.eq.s32.totalorder %v3240_v51, 2  ;;  %v3246_v39 = vxor.u32 2147483648, %v3229_v35  ;;  %v3352_v29 = vsub.s32 %v3348_v41, %v3351_v38 }
 0x35c   : > { %v3454_v46 = vand.u32 65535, %v8178_v19  ;;  %v3456_v47 = vand.u32 65535, %v3452_v12  ;;  %v3457_v10 = vshrl.u32 %v3452_v12, 16  ;;  %v3479_v15 = vshrl.u32 %v3448_v30, 16 }
 0x35d   : > { %v3243_v37 = vxor.u32 2147483648, %v3237_v11  ;;  %vm3353_vm4 = vcmp.lt.s32.totalorder %v3352_v29, 0  ;;  %v3354_v8 = vsub.s32 0, %v3352_v29  ;;  %v3455_v27 = vshrl.u32 %v8178_v19, 16 }
 0x35e   : > { %v3421_v36 = vshrl.u32 %v5790_v52, %v8122_v42  ;;  %v3442_v6 = vsel %vm3440_vm14, %v3430_v28, 2102212464  ;;  %v3459_v40 = vmul.u32 %v3457_v10, %v3454_v46  ;;  %v3478_v24 = vand.u32 65535, %v3448_v30 }
 0x35f   : > { %v3244_v16 = vsel %vm3242_vm1, %v3229_v35, %v3243_v37  ;;  %v3247_v22 = vsel %vm3245_vm2, %v3246_v39, %v3237_v11  ;;  %v3355_v32 = vsel %vm3353_vm4, %v3354_v8, %v3352_v29  ;;  %v3460_v26 = vmul.u32 %v3456_v47, %v3455_v27 }
 0x360   : > { %v3248_v34 = vsel %vm3241_vm0, %v3244_v16, %v3247_v22  ;;  %v3356_v41 = vclz %v3355_v32  ;;  %v3462_v54 = vshll.u32 %v3459_v40, 16  ;;  %v3481_v53 = vmul.u32 %v3479_v15, %v3454_v46  ;;  %v342_v16 = vpop.permute.xlu1 %341 }
 0x361   : > { %v3249_v42 = vsel %vm3238_vm13, nan, %v3248_v34  ;;  %v3344_v28 = vadd.s32 %v8127_v57, %v8129_v63  ;;  %v3441_v9 = vsel %vm3437_vm11, %v3421_v36, %v8143_v59  ;;  %v3458_v17 = vmul.u32 %v3456_v47, %v3454_v46 }
 0x362   : > { %v5599_v14 = vadd.s32 4294967294, %v3356_v41  ;;  %v3443_v51 = vsel %vm3439_vm12, %v8147_v50, %v3442_v6  ;;  %v3461_v25 = vmul.u32 %v3457_v10, %v3455_v27  ;;  %v3480_v45 = vmul.u32 %v3478_v24, %v3454_v46  ;;  %5437 = vst [vmem:[%s6199_s9 + $0x88] sm:$0xff] %v3249_v42 }
 0x363   : > { %v3464_v62 = vshll.u32 %v3460_v26, 16  ;;  %vm3466_vm3 = vc.u32 %v3458_v17, %v3462_v54  ;;  %v3468_v43 = vadd.s32 %v3462_v54, %v3458_v17  ;;  %v3482_v49 = vmul.u32 %v3478_v24, %v3455_v27 }
 0x364   : > { %vm5600_vm5 = vcmp.lt.s32.totalorder %v5599_v14, 0  ;;  %v3463_v18 = vshrl.u32 %v3459_v40, 16  ;;  %v3467_v57 = vsel %vm3466_vm3, 1, %v5789_v0  ;;  %v3484_v63 = vshll.u32 %v3481_v53, 16 }
 0x365   : > { %v3359_v44 = vsel %vm5600_vm5, 0, %v5599_v14  ;;  %v3469_v59 = vadd.s32 %v3467_v57, %v3461_v25  ;;  %vm3470_vm6 = vc.u32 %v3468_v43, %v3464_v62  ;;  %v3483_v13 = vmul.u32 %v3479_v15, %v3455_v27 }
 0x366   : > { %v3360_v60 = vsub.s32 32, %v3359_v44  ;;  %v3364_v35 = vsub.s32 4294967266, %v3359_v44  ;;  %v3471_v50 = vsel %vm3470_vm6, 1, %v5789_v0  ;;  %v3486_v56 = vshll.u32 %v3482_v49, 16 }
 0x367   : > { %v3361_v38 = vshll.u32 %v3352_v29, %v3359_v44  ;;  %v3473_v30 = vadd.s32 %v3471_v50, %v3469_v59  ;;  %vm3488_vm8 = vc.u32 %v3480_v45, %v3484_v63  ;;  %v3490_v12 = vadd.s32 %v3484_v63, %v3480_v45 }
 0x368   : > { %v3362_v11 = vshrl.u32 %v3344_v28, %v3360_v60  ;;  %v3365_v39 = vadd.s32 127, %v3364_v35  ;;  %v3489_v46 = vsel %vm3488_vm8, 1, %v5789_v0  ;;  %v5604_v47 = vadd.s32 4294967169, %v3564_v7 }
 0x369   : > { %v3374_v10 = vsub.s32 4, %v8168_v48  ;;  %v3474_v37 = vadd.s32 %v3473_v30, %v3463_v18  ;;  %v3491_v8 = vadd.s32 %v3489_v46, %v3483_v13  ;;  %vm3492_vm7 = vc.u32 %v3490_v12, %v3486_v56 }
 0x36a   : > { %v3363_v15 = vor.u32 %v3362_v11, %v3361_v38  ;;  %v3366_v27 = vshll.u32 %v3365_v39, 23  ;;  %v3465_v36 = vshrl.u32 %v3460_v26, 16  ;;  %v3493_v6 = vsel %vm3492_vm7, 1, %v5789_v0  ;;  %v337_v39 = vpop.permute.xlu0 %336 }
 0x36b   : > { %vm3252_vm10 = vcmp.lt.s32.totalorder %v7950_v4, 0  ;;  %v3485_v29 = vshrl.u32 %v3481_v53, 16  ;;  %v3495_v40 = vadd.s32 %v3493_v6, %v3491_v8  ;;  %v3570_v24 = vadd.s32 1, %v5604_v47 }
 0x36c   : > { %v3367_v22 = vor.u32 4788187, %v3366_v27  ;;  %v3444_v7 = vsel %vm3438_vm15, %v3441_v9, %v3443_v51  ;;  %v8215_v32 = vadd.s32 %v3474_v37, %v3465_v36  ;;  %v3560_v34 = vand.u32 2147483647, %v8019_v2 }
 0x36d   : > { %v3375_v26 = vsel %vm3252_vm10, %v3374_v10, %v8168_v48  ;;  %v3487_v41 = vshrl.u32 %v3482_v49, 16  ;;  %v3496_v54 = vadd.s32 %v3495_v40, %v3485_v29  ;;  %vm3571_vm9 = vcmp.gt.s32.totalorder %v3570_v24, 0 }
 0x36e   : > { %v3368_v42 = vand.u32 2147483647, %v3367_v22  ;;  %v3370_v53 = vcvt.s32.f32 %v3363_v15  ;;  %v8221_v28 = vadd.s32 %v3490_v12, %v3486_v56  ;;  %v3572_v17 = vsel %vm3571_vm9, %v3570_v24, 0 }
 0x36f   : > { %v414_v14 = vmul.f32 %v7860_v21, %v342_v16  ;;  %v3497_v23 = vadd.s32 %v3496_v54, %v3487_v41  ;;  %v3574_v9 = vand.u32 31, %v3572_v17  ;;  %vm8226_vm11 = vcmp.le.f32.partialorder %v3250_v31, 0.7853982 }
 0x370   : > { %v3371_v25 = vmul.f32 %v3370_v53, %v3368_v42  ;;  %v3498_v48 = vmul.u32 %v8178_v19, %v3444_v7  ;;  %vm3500_vm12 = vc.u32 %v8215_v32, %v8221_v28  ;;  %v3377_v45 = vsel %vm8226_vm11, 0, %v3375_v26 }
 0x371   : > { %v3501_v62 = vadd.s32 1, %v3497_v23  ;;  %v3567_v43 = vand.u32 8388607, %v3560_v34  ;;  %v8237_v49 = vsub.s32 32, %v3574_v9  ;;  %v8239_v31 = vshrl.u32 %v3572_v17, 5 }
 0x372   : > { %v3372_v18 = vxor.u32 2147483648, %v3371_v25  ;;  %v3577_v57 = vshll.u32 %v5790_v52, %v3574_v9  ;;  %v3580_v63 = vshll.u32 %v5791_v55, %v3574_v9  ;;  %v3586_v13 = vshll.u32 %v5793_v61, %v3574_v9 }
 0x373   : > { %v3502_v19 = vsel %vm3500_vm12, %v3501_v62, %v3497_v23  ;;  %v3578_v44 = vshrl.u32 %v5791_v55, %v8237_v49  ;;  %v3581_v59 = vshrl.u32 %v5792_v58, %v8237_v49  ;;  %v3584_v50 = vshrl.u32 %v5793_v61, %v8237_v49 }
 0x374   : > { %v3373_v60 = vsel %vm3252_vm10, %v3372_v18, %v3371_v25  ;;  %v3503_v35 = vadd.s32 %v3502_v19, %v3498_v48  ;;  %v3587_v56 = vshrl.u32 %v5794_v1, %v8237_v49  ;;  %v3583_v30 = vshll.u32 %v5792_v58, %v3574_v9 }
 0x375   : > { %v3376_v38 = vsel %vm8226_vm11, %v7950_v4, %v3373_v60  ;;  %v3589_v12 = vshll.u32 %v5794_v1, %v3574_v9  ;;  %v3590_v11 = vshrl.u32 %v5795_v3, %v8237_v49  ;;  %v3568_v10 = vor.u32 8388608, %v3567_v43 }
 0x376   : > { %v3378_v46 = vmul.f32 %v3376_v38, %v3376_v38  ;;  %v3504_v47 = vadd.s32 536870912, %v3503_v35  ;;  %v3588_v37 = vor.u32 %v3587_v56, %v3586_v13  ;;  %v8261_v8 = vor.u32 %v3578_v44, %v3577_v57 }
 0x377   : > { %v8263_v15 = vor.u32 %v3581_v59, %v3580_v63  ;;  %v8265_v27 = vor.u32 %v3584_v50, %v3583_v30  ;;  %v3591_v36 = vor.u32 %v3590_v11, %v3589_v12  ;;  %vm3595_vm14 = vcmp.lt.s32.totalorder %v8239_v31, 4 }
 0x378   : > { %v3379_v6 = vmul.f32 -0.001358992, %v3378_v46  ;;  %v3386_v29 = vmul.f32 -0.00019511016, %v3378_v46  ;;  %v8267_v40 = vshrl.u32 %v3504_v47, 30  ;;  %v413_v24 = vmul.f32 %v7860_v21, %v337_v39 }
 0x379   : > { %v3394_v16 = vadd.s32 3, %v3377_v45  ;;  %vm3592_vm13 = vcmp.lt.s32.totalorder %v8239_v31, 1  ;;  %v3601_v22 = vsel %vm3595_vm14, %v3588_v37, 920167782  ;;  %vm3594_vm15 = vcmp.lt.s32.totalorder %v8239_v31, 3 }
 0x37a   : > { %v3380_v7 = vadd.f32 0.041655596, %v3379_v6  ;;  %v3387_v26 = vadd.f32 0.008332121, %v3386_v29  ;;  %v3506_v41 = vshll.u32 %v8267_v40, 30  ;;  %v3600_v54 = vsel %vm3592_vm13, %v8261_v8, %v8263_v15 }
 0x37b   : > { %v3602_v21 = vsel %vm3594_vm15, %v8265_v27, %v3601_v22  ;;  %v3605_v42 = vsel %vm3595_vm14, %v3591_v36, 1326507024  ;;  %v8285_v53 = vshll.u32 %v3568_v10, 8  ;;  %v3604_v51 = vsel %vm3592_vm13, %v8263_v15, %v8265_v27 }
 0x37c   : > { %v3381_v17 = vmul.f32 %v3380_v7, %v3378_v46  ;;  %v3388_v23 = vmul.f32 %v3387_v26, %v3378_v46  ;;  %v3507_v9 = vsub.s32 %v3503_v35, %v3506_v41  ;;  %v8292_v25 = vadd.f32 %v7939_v5, %v414_v14 }
 0x37d   : > { %v3395_v48 = vand.u32 3, %v3394_v16  ;;  %vm3593_vm0 = vcmp.lt.s32.totalorder %v8239_v31, 2  ;;  %v3606_v45 = vsel %vm3594_vm15, %v3588_v37, %v3605_v42  ;;  %v8298_v57 = vadd.f32 %v7939_v5, %v413_v24 }
 0x37e   : > { %v3382_v62 = vadd.f32 -0.4999988, %v3381_v17  ;;  %v3389_v43 = vadd.f32 -0.16666654, %v3388_v23  ;;  %vm3508_vm1 = vcmp.lt.s32.totalorder %v3507_v9, 0  ;;  %v3509_v18 = vsub.s32 0, %v3507_v9 }
 0x37f   : > { %v3603_v63 = vsel %vm3593_vm0, %v3600_v54, %v3602_v21  ;;  %v3607_v14 = vsel %vm3593_vm0, %v3604_v51, %v3606_v45  ;;  %v3610_v19 = vshrl.u32 %v8285_v53, 16  ;;  %vm3393_vm2 = vweird.f32 %v7950_v4 }
 0x380   : > { %v3383_v44 = vmul.f32 %v3382_v62, %v3378_v46  ;;  %v3390_v59 = vmul.f32 %v3389_v43, %v3378_v46  ;;  %v3510_v13 = vsel %vm3508_vm1, %v3509_v18, %v3507_v9  ;;  %v3611_v60 = vand.u32 65535, %v3607_v14 }
 0x381   : > { %vm3396_vm4 = vcmp.lt.s32.totalorder %v3395_v48, 2  ;;  %v3511_v35 = vclz %v3510_v13  ;;  %v3609_v50 = vand.u32 65535, %v8285_v53  ;;  %v3612_v5 = vshrl.u32 %v3607_v14, 16 }
 0x382   : > { %v3384_v56 = vadd.f32 1.0, %v3383_v44  ;;  %v3391_v30 = vadd.f32 1.0, %v3390_v59  ;;  %v8307_v12 = vmul.u32 %v3611_v60, %v3610_v19  ;;  %v3634_v11 = vshrl.u32 %v3603_v63, 16 }
 0x383   : > { %vm3397_vm3 = vcmp.eq.s32.totalorder %v3395_v48, 0  ;;  %vm3400_vm5 = vcmp.eq.s32.totalorder %v3395_v48, 2  ;;  %v3499_v39 = vadd.s32 %v8221_v28, %v8215_v32  ;;  %v5602_v46 = vadd.s32 4294967294, %v3511_v35 }
 0x384   : > { %v3392_v47 = vmul.f32 %v3391_v30, %v3376_v38  ;;  %v3401_v10 = vxor.u32 2147483648, %v3384_v56  ;;  %v3614_v37 = vmul.u32 %v3612_v5, %v3609_v50  ;;  %v3633_v36 = vand.u32 65535, %v3603_v63 }
 0x385   : > { %vm5603_vm6 = vcmp.lt.s32.totalorder %v5602_v46, 0  ;;  %v3613_v6 = vmul.u32 %v3611_v60, %v3609_v50  ;;  %v3616_v29 = vmul.u32 %v3612_v5, %v3610_v19  ;;  %v3619_v24 = vshll.u32 %v8307_v12, 16 }
 0x386   : > { %v3398_v16 = vxor.u32 2147483648, %v3392_v47  ;;  %v3514_v22 = vsel %vm5603_vm6, 0, %v5602_v46  ;;  %v3617_v7 = vshll.u32 %v3614_v37, 16  ;;  %v3636_v26 = vmul.u32 %v3634_v11, %v3609_v50 }
 0x387   : > { %v3402_v41 = vsel %vm3400_vm5, %v3401_v10, %v3392_v47  ;;  %vm3407_vm8 = vcmp.lt.s32.totalorder %v7942_v20, 0  ;;  %v3515_v54 = vsub.s32 32, %v3514_v22  ;;  %v3516_v21 = vshll.u32 %v3507_v9, %v3514_v22 }
 0x388   : > { %v3519_v32 = vsub.s32 4294967266, %v3514_v22  ;;  %v3399_v28 = vsel %vm3397_vm3, %v3384_v56, %v3398_v16  ;;  %vm3621_vm7 = vc.u32 %v3613_v6, %v3617_v7  ;;  %v3623_v38 = vadd.s32 %v3617_v7, %v3613_v6 }
 0x389   : > { %v3637_v42 = vmul.u32 %v3633_v36, %v3610_v19  ;;  %v3403_v17 = vsel %vm3396_vm4, %v3399_v28, %v3402_v41  ;;  %v3517_v23 = vshrl.u32 %v3499_v39, %v3515_v54  ;;  %v3622_v45 = vsel %vm3621_vm7, 1, %v5789_v0  ;;  %v347_v28 = vpop.permute.xlu2 %346 }
 0x38a   : > { %v3520_v51 = vadd.s32 127, %v3519_v32  ;;  %v3404_v62 = vsel %vm3393_vm2, nan, %v3403_v17  ;;  %v3624_v43 = vadd.s32 %v3622_v45, %v3616_v29  ;;  %vm3625_vm10 = vc.u32 %v3623_v38, %v3619_v24 }
 0x38b   : > { %v3635_v18 = vmul.u32 %v3633_v36, %v3609_v50  ;;  %vm8320_vm9 = vcmp.le.f32.partialorder %v3405_v33, 0.7853982  ;;  %v3518_v63 = vor.u32 %v3517_v23, %v3516_v21  ;;  %v3626_v48 = vsel %vm3625_vm10, 1, %v5789_v0  ;;  %5438 = vst [vmem:[%s6199_s9 + $0x90] sm:$0xff] %v3404_v62 }
 0x38c   : > { %v3521_v14 = vshll.u32 %v3520_v51, 23  ;;  %v3639_v44 = vshll.u32 %v3636_v26, 16  ;;  %v3529_v59 = vsub.s32 4, %v8267_v40  ;;  %v3618_v13 = vshrl.u32 %v3614_v37, 16 }
 0x38d   : > { %v3628_v4 = vadd.s32 %v3626_v48, %v3624_v43  ;;  %v3638_v60 = vmul.u32 %v3634_v11, %v3610_v19  ;;  %v3641_v5 = vshll.u32 %v3637_v42, 16  ;;  %v3525_v56 = vcvt.s32.f32 %v3518_v63  ;;  %v8361_v43 = vld [vmem:[%s9715_s1] ss:$0 sm:$0xff] }
 0x38e   : > { %v3522_v35 = vor.u32 4788187, %v3521_v14  ;;  %vm3643_vm11 = vc.u32 %v3635_v18, %v3639_v44  ;;  %v3645_v50 = vadd.s32 %v3639_v44, %v3635_v18  ;;  %v3597_v33 = vsel %vm3595_vm14, %v8265_v27, 2102212464 }
 0x38f   : > { %v3629_v30 = vadd.s32 %v3628_v4, %v3618_v13  ;;  %v3644_v39 = vsel %vm3643_vm11, 1, %v5789_v0  ;;  %v3715_v10 = vand.u32 2147483647, %v8298_v57  ;;  %v3530_v19 = vsel %vm3407_vm8, %v3529_v59, %v8267_v40 }
 0x390   : > { %v3523_v46 = vand.u32 2147483647, %v3522_v35  ;;  %v3646_v47 = vadd.s32 %v3644_v39, %v3638_v60  ;;  %vm3647_vm12 = vc.u32 %v3645_v50, %v3641_v5  ;;  %v3576_v11 = vshrl.u32 %v5790_v52, %v8237_v49 }
 0x391   : > { %v3620_v37 = vshrl.u32 %v8307_v12, 16  ;;  %v3648_v36 = vsel %vm3647_vm12, 1, %v5789_v0  ;;  %v3640_v6 = vshrl.u32 %v3636_v26, 16  ;;  %v3718_v24 = vand.u32 2139095040, %v8298_v57 }
 0x392   : > { %v3526_v27 = vmul.f32 %v3525_v56, %v3523_v46  ;;  %v3650_v29 = vadd.s32 %v3648_v36, %v3646_v47  ;;  %v3596_v16 = vsel %vm3592_vm13, %v3576_v11, %v8261_v8  ;;  %v3598_v40 = vsel %vm3594_vm15, %v8263_v15, %v3597_v33 }
 0x393   : > { %v3630_v22 = vadd.s32 %v3629_v30, %v3620_v37  ;;  %v3642_v7 = vshrl.u32 %v3637_v42, 16  ;;  %v3719_v12 = vshrl.u32 %v3718_v24, 23  ;;  %v3722_v54 = vand.u32 8388607, %v3715_v10 }
 0x394   : > { %v3527_v49 = vxor.u32 2147483648, %v3526_v27  ;;  %v3651_v41 = vadd.s32 %v3650_v29, %v3640_v6  ;;  %v3532_v26 = vsel %vm8320_vm9, 0, %v3530_v19  ;;  %v3649_v21 = vadd.s32 %v3645_v50, %v3641_v5 }
 0x395   : > { %v3873_v32 = vand.u32 2139095040, %v8292_v25  ;;  %v3599_v15 = vsel %vm3593_vm0, %v3596_v16, %v3598_v40  ;;  %v5607_v42 = vadd.s32 4294967169, %v3719_v12  ;;  %v3723_v45 = vor.u32 8388608, %v3722_v54 }
 0x396   : > { %v3528_v8 = vsel %vm3407_vm8, %v3527_v49, %v3526_v27  ;;  %v3652_v38 = vadd.s32 %v3651_v41, %v3642_v7  ;;  %vm3655_vm14 = vc.u32 %v3630_v22, %v3649_v21  ;;  %v415_v18 = vmul.f32 %v8361_v43, %v347_v28 }
 0x397   : > { %v3531_v17 = vsel %vm8320_vm9, %v7942_v20, %v3528_v8  ;;  %v3725_v62 = vadd.s32 1, %v5607_v42  ;;  %v3549_v31 = vadd.s32 3, %v3532_v26  ;;  %v3653_v63 = vmul.u32 %v8285_v53, %v3599_v15  ;;  %v8373_v53 = vld [vmem:[%s9716_s2] ss:$0 sm:$0xff] }
 0x398   : > { %v3533_v23 = vmul.f32 %v3531_v17, %v3531_v17  ;;  %v3656_v51 = vadd.s32 1, %v3652_v38  ;;  %v3874_v14 = vshrl.u32 %v3873_v32, 23  ;;  %v3870_v4 = vand.u32 2147483647, %v8292_v25 }
 0x399   : > { %vm3726_vm13 = vcmp.gt.s32.totalorder %v3725_v62, 0  ;;  %v8366_v50 = vshll.u32 %v3723_v45, 8  ;;  %v8368_v56 = vand.u32 3, %v3549_v31  ;;  %v8376_v39 = vadd.f32 %v8373_v53, %v415_v18 }
 0x39a   : > { %v3534_v48 = vmul.f32 -0.001358992, %v3533_v23  ;;  %v3541_v44 = vmul.f32 -0.00019511016, %v3533_v23  ;;  %v3657_v9 = vsel %vm3655_vm14, %v3656_v51, %v3652_v38  ;;  %v3727_v13 = vsel %vm3726_vm13, %v3725_v62, 0 }
 0x39b   : > { %v3658_v59 = vadd.s32 %v3657_v9, %v3653_v63  ;;  %v3729_v5 = vand.u32 31, %v3727_v13  ;;  %v5610_v30 = vadd.s32 4294967169, %v3874_v14  ;;  %vm3562_vm15 = vcmp.lt.s32.totalorder %v8019_v2, 0 }
 0x39c   : > { %v3535_v60 = vadd.f32 0.041655596, %v3534_v48  ;;  %v3542_v35 = vadd.f32 0.008332121, %v3541_v44  ;;  %v8379_v11 = vadd.s32 %v3649_v21, %v3630_v22  ;;  %v8383_v36 = vand.u32 8388607, %v3870_v4 }
 0x39d   : > { %v3659_v33 = vadd.s32 536870912, %v3658_v59  ;;  %v3730_v19 = vsub.s32 32, %v3729_v5  ;;  %v8386_v29 = vand.u32 65535, %v8366_v50  ;;  %v8389_v24 = vshrl.u32 %v8366_v50, 16 }
 0x39e   : > { %v3536_v46 = vmul.f32 %v3535_v60, %v3533_v23  ;;  %v3543_v47 = vmul.f32 %v3542_v35, %v3533_v23  ;;  %vm3552_vm0 = vcmp.eq.s32.totalorder %v8368_v56, 0  ;;  %vm3555_vm1 = vcmp.eq.s32.totalorder %v8368_v56, 2 }
 0x39f   : > { %v3660_v37 = vshrl.u32 %v3659_v33, 30  ;;  %v8393_v40 = vshrl.u32 %v3727_v13, 5  ;;  %v3733_v22 = vshrl.u32 %v5791_v55, %v3730_v19  ;;  %v8396_v7 = vadd.s32 1, %v5610_v30 }
 0x3a0   : > { %v3537_v27 = vadd.f32 -0.4999988, %v3536_v46  ;;  %v3544_v6 = vadd.f32 -0.16666654, %v3543_v47  ;;  %vm3551_vm2 = vcmp.lt.s32.totalorder %v8368_v56, 2  ;;  %v3732_v12 = vshll.u32 %v5790_v52, %v3729_v5 }
 0x3a1   : > { %v3661_v16 = vshll.u32 %v3660_v37, 30  ;;  %v3736_v54 = vshrl.u32 %v5792_v58, %v3730_v19  ;;  %vm3548_vm4 = vweird.f32 %v7942_v20  ;;  %v3735_v21 = vshll.u32 %v5791_v55, %v3729_v5 }
 0x3a2   : > { %v3538_v49 = vmul.f32 %v3537_v27, %v3533_v23  ;;  %v3545_v41 = vmul.f32 %v3544_v6, %v3533_v23  ;;  %v3739_v32 = vshrl.u32 %v5793_v61, %v3730_v19  ;;  %v3742_v28 = vshrl.u32 %v5794_v1, %v3730_v19 }
 0x3a3   : > { %v8402_v26 = vsub.s32 %v3658_v59, %v3661_v16  ;;  %v3684_v38 = vsub.s32 4, %v3660_v37  ;;  %v3738_v42 = vshll.u32 %v5792_v58, %v3729_v5  ;;  %v3734_v51 = vor.u32 %v3733_v22, %v3732_v12 }
 0x3a4   : > { %v3539_v8 = vadd.f32 1.0, %v3538_v49  ;;  %v3546_v15 = vadd.f32 1.0, %v3545_v41  ;;  %v3741_v45 = vshll.u32 %v5793_v61, %v3729_v5  ;;  %v3737_v31 = vor.u32 %v3736_v54, %v3735_v21 }
 0x3a5   : > { %vm3663_vm3 = vcmp.lt.s32.totalorder %v8402_v26, 0  ;;  %v3664_v23 = vsub.s32 0, %v8402_v26  ;;  %v3745_v63 = vshrl.u32 %v5795_v3, %v3730_v19  ;;  %v3740_v48 = vor.u32 %v3739_v32, %v3738_v42 }
 0x3a6   : > { %v3547_v62 = vmul.f32 %v3546_v15, %v3531_v17  ;;  %v3556_v18 = vxor.u32 2147483648, %v3539_v8  ;;  %v3743_v44 = vor.u32 %v3742_v28, %v3741_v45  ;;  %v3744_v9 = vshll.u32 %v5794_v1, %v3729_v5 }
 0x3a7   : > { %v3665_v14 = vsel %vm3663_vm3, %v3664_v23, %v8402_v26  ;;  %v8416_v60 = vsel %vm3562_vm15, %v3684_v38, %v3660_v37  ;;  %v3731_v35 = vshrl.u32 %v5790_v52, %v3730_v19  ;;  %vm8421_vm5 = vcmp.le.f32.partialorder %v3560_v34, 0.7853982 }
 0x3a8   : > { %v3553_v59 = vxor.u32 2147483648, %v3547_v62  ;;  %v3666_v13 = vclz %v3665_v14  ;;  %v3746_v33 = vor.u32 %v3745_v63, %v3744_v9  ;;  %vm3747_vm6 = vcmp.lt.s32.totalorder %v8393_v40, 1 }
 0x3a9   : > { %vm3748_vm8 = vcmp.lt.s32.totalorder %v8393_v40, 2  ;;  %vm3749_vm7 = vcmp.lt.s32.totalorder %v8393_v40, 3  ;;  %v3557_v30 = vsel %vm3555_vm1, %v3556_v18, %v3547_v62  ;;  %vm3750_vm10 = vcmp.lt.s32.totalorder %v8393_v40, 4 }
 0x3aa   : > { %v3554_v5 = vsel %vm3552_vm0, %v3539_v8, %v3553_v59  ;;  %v5605_v46 = vadd.s32 4294967294, %v3666_v13  ;;  %v3752_v47 = vsel %vm3750_vm10, %v3740_v48, 2102212464  ;;  %v3755_v19 = vsel %vm3747_vm6, %v3734_v51, %v3737_v31 }
 0x3ab   : > { %v3558_v34 = vsel %vm3551_vm2, %v3554_v5, %v3557_v30  ;;  %v3756_v37 = vsel %vm3750_vm10, %v3743_v44, 920167782  ;;  %v3751_v6 = vsel %vm3747_vm6, %v3731_v35, %v3734_v51  ;;  %v3759_v49 = vsel %vm3747_vm6, %v3737_v31, %v3740_v48 }
 0x3ac   : > { %v3559_v27 = vsel %vm3548_vm4, nan, %v3558_v34  ;;  %vm5606_vm9 = vcmp.lt.s32.totalorder %v5605_v46, 0  ;;  %v3757_v16 = vsel %vm3749_vm7, %v3740_v48, %v3756_v37  ;;  %v3760_v41 = vsel %vm3750_vm10, %v3746_v33, 1326507024 }
 0x3ad   : > { %v3669_v22 = vsel %vm5606_vm9, 0, %v5605_v46  ;;  %v3758_v56 = vsel %vm3748_vm8, %v3755_v19, %v3757_v16  ;;  %5439 = vst [vmem:[%s6199_s9 + $0x98] sm:$0xff] %v3559_v27  ;;  %v3753_v20 = vsel %vm3749_vm7, %v3737_v31, %v3752_v47  ;;  %v3761_v21 = vsel %vm3749_vm7, %v3743_v44, %v3760_v41 }
 0x3ae   : > { %v3670_v12 = vsub.s32 32, %v3669_v22  ;;  %v3674_v54 = vsub.s32 4294967266, %v3669_v22  ;;  %v3671_v32 = vshll.u32 %v8402_v26, %v3669_v22  ;;  %v3762_v28 = vsel %vm3748_vm8, %v3759_v49, %v3761_v21 }
 0x3af   : > { %v3788_v8 = vand.u32 65535, %v3758_v56  ;;  %v3789_v15 = vshrl.u32 %v3758_v56, 16  ;;  %v3766_v23 = vand.u32 65535, %v3762_v28  ;;  %v3767_v51 = vshrl.u32 %v3762_v28, 16 }
 0x3b0   : > { %v3672_v38 = vshrl.u32 %v8379_v11, %v3670_v12  ;;  %v3675_v42 = vadd.s32 127, %v3674_v54  ;;  %v3878_v18 = vor.u32 8388608, %v8383_v36  ;;  %vm3881_vm11 = vcmp.gt.s32.totalorder %v8396_v7, 0 }
 0x3b1   : > { %v3791_v45 = vmul.u32 %v3789_v15, %v8386_v29  ;;  %v3792_v62 = vmul.u32 %v3788_v8, %v8389_v24  ;;  %v3687_v63 = vsel %vm8421_vm5, 0, %v8416_v60  ;;  %v3769_v14 = vmul.u32 %v3767_v51, %v8386_v29 }
 0x3b2   : > { %v3673_v31 = vor.u32 %v3672_v38, %v3671_v32  ;;  %v3676_v26 = vshll.u32 %v3675_v42, 23  ;;  %v8466_v11 = vsel %vm3748_vm8, %v3751_v6, %v3753_v20  ;;  %v3770_v48 = vmul.u32 %v3766_v23, %v8389_v24 }
 0x3b3   : > { %v3790_v44 = vmul.u32 %v3788_v8, %v8386_v29  ;;  %v3794_v9 = vshll.u32 %v3791_v45, 16  ;;  %v3768_v13 = vmul.u32 %v3766_v23, %v8386_v29  ;;  %v3772_v35 = vshll.u32 %v3769_v14, 16 }
 0x3b4   : > { %v3677_v59 = vor.u32 4788187, %v3676_v26  ;;  %v3793_v33 = vmul.u32 %v3789_v15, %v8389_v24  ;;  %v3680_v5 = vcvt.s32.f32 %v3673_v31  ;;  %v3771_v60 = vmul.u32 %v3767_v51, %v8389_v24 }
 0x3b5   : > { %v3774_v30 = vshll.u32 %v3770_v48, 16  ;;  %v3796_v46 = vshll.u32 %v3792_v62, 16  ;;  %vm3776_vm12 = vc.u32 %v3768_v13, %v3772_v35  ;;  %v3778_v40 = vadd.s32 %v3772_v35, %v3768_v13 }
 0x3b6   : > { %v3678_v34 = vand.u32 2147483647, %v3677_v59  ;;  %vm3798_vm14 = vc.u32 %v3790_v44, %v3794_v9  ;;  %v3777_v47 = vsel %vm3776_vm12, 1, %v5789_v0  ;;  %v3800_v37 = vadd.s32 %v3794_v9, %v3790_v44 }
 0x3b7   : > { %v3799_v19 = vsel %vm3798_vm14, 1, %v5789_v0  ;;  %v3882_v29 = vsel %vm3881_vm11, %v8396_v7, 0  ;;  %v3779_v6 = vadd.s32 %v3777_v47, %v3771_v60  ;;  %vm3780_vm13 = vc.u32 %v3778_v40, %v3774_v30 }
 0x3b8   : > { %v3681_v27 = vmul.f32 %v3680_v5, %v3678_v34  ;;  %v3801_v16 = vadd.s32 %v3799_v19, %v3793_v33  ;;  %v3773_v24 = vshrl.u32 %v3769_v14, 16  ;;  %v3781_v22 = vsel %vm3780_vm13, 1, %v5789_v0 }
 0x3b9   : > { %vm3802_vm0 = vc.u32 %v3800_v37, %v3796_v46  ;;  %v4028_v56 = vand.u32 2139095040, %v8376_v39  ;;  %v3783_v41 = vadd.s32 %v3781_v22, %v3779_v6  ;;  %v3884_v54 = vand.u32 31, %v3882_v29 }
 0x3ba   : > { %v3682_v49 = vxor.u32 2147483648, %v3681_v27  ;;  %v3803_v12 = vsel %vm3802_vm0, 1, %v5789_v0  ;;  %v3704_v20 = vadd.s32 3, %v3687_v63  ;;  %v3795_v21 = vshrl.u32 %v3791_v45, 16 }
 0x3bb   : > { %v3805_v32 = vadd.s32 %v3803_v12, %v3801_v16  ;;  %v3808_v7 = vmul.u32 %v8366_v50, %v8466_v11  ;;  %v3775_v8 = vshrl.u32 %v3770_v48, 16  ;;  %v3784_v15 = vadd.s32 %v3783_v41, %v3773_v24 }
 0x3bc   : > { %v3683_v28 = vsel %vm3562_vm15, %v3682_v49, %v3681_v27  ;;  %v8485_v38 = vsub.s32 32, %v3884_v54  ;;  %v3797_v23 = vshrl.u32 %v3792_v62, 16  ;;  %v8490_v51 = vadd.s32 %v3800_v37, %v3796_v46 }
 0x3bd   : > { %v3686_v42 = vsel %vm8421_vm5, %v8019_v2, %v3683_v28  ;;  %v3806_v31 = vadd.s32 %v3805_v32, %v3795_v21  ;;  %v8492_v26 = vadd.s32 %v3784_v15, %v3775_v8  ;;  %v8494_v63 = vshrl.u32 %v3882_v29, 5 }
 0x3be   : > { %v3688_v45 = vmul.f32 %v3686_v42, %v3686_v42  ;;  %v3888_v50 = vshrl.u32 %v5791_v55, %v8485_v38  ;;  %v3887_v11 = vshll.u32 %v5790_v52, %v3884_v54  ;;  %v3891_v48 = vshrl.u32 %v5792_v58, %v8485_v38 }
 0x3bf   : > { %v3807_v14 = vadd.s32 %v3806_v31, %v3797_v23  ;;  %v3894_v17 = vshrl.u32 %v5793_v61, %v8485_v38  ;;  %vm3810_vm15 = vc.u32 %v8492_v26, %v8490_v51  ;;  %v3890_v9 = vshll.u32 %v5791_v55, %v3884_v54 }
 0x3c0   : > { %v3689_v62 = vmul.f32 -0.001358992, %v3688_v45  ;;  %v3696_v44 = vmul.f32 -0.00019511016, %v3688_v45  ;;  %v8506_v13 = vor.u32 %v3888_v50, %v3887_v11  ;;  %v3893_v35 = vshll.u32 %v5792_v58, %v3884_v54 }
 0x3c1   : > { %v3811_v59 = vadd.s32 1, %v3807_v14  ;;  %v3896_v33 = vshll.u32 %v5793_v61, %v3884_v54  ;;  %v8510_v30 = vor.u32 %v3891_v48, %v3890_v9  ;;  %v3897_v46 = vshrl.u32 %v5794_v1, %v8485_v38 }
 0x3c2   : > { %v3690_v5 = vadd.f32 0.041655596, %v3689_v62  ;;  %v3697_v60 = vadd.f32 0.008332121, %v3696_v44  ;;  %v3895_v40 = vor.u32 %v3894_v17, %v3893_v35  ;;  %v3899_v47 = vshll.u32 %v5794_v1, %v3884_v54 }
 0x3c3   : > { %v3812_v34 = vsel %vm3810_vm15, %v3811_v59, %v3807_v14  ;;  %v3900_v19 = vshrl.u32 %v5795_v3, %v8485_v38  ;;  %v3898_v6 = vor.u32 %v3897_v46, %v3896_v33  ;;  %v3705_v16 = vand.u32 3, %v3704_v20 }
 0x3c4   : > { %v3691_v37 = vmul.f32 %v3690_v5, %v3688_v45  ;;  %v3698_v29 = vmul.f32 %v3697_v60, %v3688_v45  ;;  %v3813_v27 = vadd.s32 %v3812_v34, %v3808_v7  ;;  %vm3902_vm1 = vcmp.lt.s32.totalorder %v8494_v63, 1 }
 0x3c5   : > { %v3901_v24 = vor.u32 %v3900_v19, %v3899_v47  ;;  %vm3904_vm2 = vcmp.lt.s32.totalorder %v8494_v63, 3  ;;  %vm3905_vm4 = vcmp.lt.s32.totalorder %v8494_v63, 4  ;;  %v3910_v12 = vsel %vm3902_vm1, %v8506_v13, %v8510_v30 }
 0x3c6   : > { %v3692_v22 = vadd.f32 -0.4999988, %v3691_v37  ;;  %v3699_v49 = vadd.f32 -0.16666654, %v3698_v29  ;;  %v3814_v41 = vadd.s32 536870912, %v3813_v27  ;;  %v3914_v20 = vsel %vm3902_vm1, %v8510_v30, %v3895_v40 }
 0x3c7   : > { %v3911_v54 = vsel %vm3905_vm4, %v3898_v6, 920167782  ;;  %v3915_v21 = vsel %vm3905_vm4, %v3901_v24, 1326507024  ;;  %vm3703_vm3 = vweird.f32 %v8019_v2  ;;  %vm3903_vm5 = vcmp.lt.s32.totalorder %v8494_v63, 2 }
 0x3c8   : > { %v3693_v32 = vmul.f32 %v3692_v22, %v3688_v45  ;;  %v3700_v7 = vmul.f32 %v3699_v49, %v3688_v45  ;;  %v8531_v28 = vshrl.u32 %v3814_v41, 30  ;;  %v3912_v8 = vsel %vm3904_vm2, %v3895_v40, %v3911_v54 }
 0x3c9   : > { %v3916_v15 = vsel %vm3904_vm2, %v3898_v6, %v3915_v21  ;;  %v8541_v23 = vshll.u32 %v3878_v18, 8  ;;  %v3913_v14 = vsel %vm3903_vm5, %v3910_v12, %v3912_v8  ;;  %vm3706_vm6 = vcmp.lt.s32.totalorder %v3705_v16, 2 }
 0x3ca   : > { %v3694_v31 = vadd.f32 1.0, %v3693_v32  ;;  %v3701_v50 = vadd.f32 1.0, %v3700_v7  ;;  %v3816_v45 = vshll.u32 %v8531_v28, 30  ;;  %vm3707_vm8 = vcmp.eq.s32.totalorder %v3705_v16, 0 }
 0x3cb   : > { %v3917_v11 = vsel %vm3903_vm5, %v3914_v20, %v3916_v15  ;;  %v4029_v48 = vshrl.u32 %v4028_v56, 23  ;;  %vm3710_vm7 = vcmp.eq.s32.totalorder %v3705_v16, 2  ;;  %v3919_v62 = vand.u32 65535, %v8541_v23 }
 0x3cc   : > { %v3702_v17 = vmul.f32 %v3701_v50, %v3686_v42  ;;  %v3711_v36 = vxor.u32 2147483648, %v3694_v31  ;;  %v3817_v18 = vsub.s32 %v3813_v27, %v3816_v45  ;;  %v3921_v44 = vand.u32 65535, %v3917_v11 }
 0x3cd   : > { %v3922_v9 = vshrl.u32 %v3917_v11, 16  ;;  %v3944_v59 = vshrl.u32 %v3913_v14, 16  ;;  %v3920_v5 = vshrl.u32 %v8541_v23, 16  ;;  %v3886_v60 = vshrl.u32 %v5790_v52, %v8485_v38 }
 0x3ce   : > { %v3708_v35 = vxor.u32 2147483648, %v3702_v17  ;;  %vm3818_vm10 = vcmp.lt.s32.totalorder %v3817_v18, 0  ;;  %v3819_v33 = vsub.s32 0, %v3817_v18  ;;  %v3907_v56 = vsel %vm3905_vm4, %v3895_v40, 2102212464 }
 0x3cf   : > { %v3924_v42 = vmul.u32 %v3922_v9, %v3919_v62  ;;  %v3943_v46 = vand.u32 65535, %v3913_v14  ;;  %v3712_v47 = vsel %vm3710_vm7, %v3711_v36, %v3702_v17  ;;  %v3925_v37 = vmul.u32 %v3921_v44, %v3920_v5 }
 0x3d0   : > { %v3709_v34 = vsel %vm3707_vm8, %v3694_v31, %v3708_v35  ;;  %v3820_v19 = vsel %vm3818_vm10, %v3819_v33, %v3817_v18  ;;  %v3946_v24 = vmul.u32 %v3944_v59, %v3919_v62  ;;  %v3809_v40 = vadd.s32 %v8490_v51, %v8492_v26 }
 0x3d1   : > { %v3713_v29 = vsel %vm3706_vm6, %v3709_v34, %v3712_v47  ;;  %v3821_v27 = vclz %v3820_v19  ;;  %v3927_v6 = vshll.u32 %v3924_v42, 16  ;;  %v3906_v22 = vsel %vm3902_vm1, %v3886_v60, %v8506_v13  ;;  %v357_v34 = vpop.permute.xlu1 %356 }
 0x3d2   : > { %v3714_v38 = vsel %vm3703_vm3, nan, %v3713_v29  ;;  %v3923_v49 = vmul.u32 %v3921_v44, %v3919_v62  ;;  %v3908_v16 = vsel %vm3904_vm2, %v8510_v30, %v3907_v56  ;;  %v3926_v12 = vmul.u32 %v3922_v9, %v3920_v5 }
 0x3d3   : > { %v5608_v41 = vadd.s32 4294967294, %v3821_v27  ;;  %v3945_v54 = vmul.u32 %v3943_v46, %v3919_v62  ;;  %5440 = vst [vmem:[%s6199_s9 + $0xa0] sm:$0xff] %v3714_v38  ;;  %v3929_v20 = vshll.u32 %v3925_v37, 16  ;;  %v3947_v21 = vmul.u32 %v3943_v46, %v3920_v5 }
 0x3d4   : > { %vm3931_vm9 = vc.u32 %v3923_v49, %v3927_v6  ;;  %v3933_v2 = vadd.s32 %v3927_v6, %v3923_v49  ;;  %v3928_v32 = vshrl.u32 %v3924_v42, 16  ;;  %v3949_v26 = vshll.u32 %v3946_v24, 16 }
 0x3d5   : > { %vm5609_vm11 = vcmp.lt.s32.totalorder %v5608_v41, 0  ;;  %v3932_v51 = vsel %vm3931_vm9, 1, %v5789_v0  ;;  %v3948_v8 = vmul.u32 %v3944_v59, %v3920_v5  ;;  %v3951_v50 = vshll.u32 %v3947_v21, 16 }
 0x3d6   : > { %v3824_v7 = vsel %vm5609_vm11, 0, %v5608_v41  ;;  %v3934_v13 = vadd.s32 %v3932_v51, %v3926_v12  ;;  %vm3935_vm12 = vc.u32 %v3933_v2, %v3929_v20  ;;  %vm3953_vm14 = vc.u32 %v3945_v54, %v3949_v26 }
 0x3d7   : > { %v3825_v15 = vsub.s32 32, %v3824_v7  ;;  %v3829_v31 = vsub.s32 4294967266, %v3824_v7  ;;  %v3936_v30 = vsel %vm3935_vm12, 1, %v5789_v0  ;;  %v3826_v45 = vshll.u32 %v3817_v18, %v3824_v7 }
 0x3d8   : > { %v3938_v14 = vadd.s32 %v3936_v30, %v3934_v13  ;;  %v3955_v11 = vadd.s32 %v3949_v26, %v3945_v54  ;;  %v3954_v62 = vsel %vm3953_vm14, 1, %v5789_v0  ;;  %v5613_v44 = vadd.s32 4294967169, %v4029_v48 }
 0x3d9   : > { %v3827_v17 = vshrl.u32 %v3809_v40, %v3825_v15  ;;  %v3830_v36 = vadd.s32 127, %v3829_v31  ;;  %v3839_v9 = vsub.s32 4, %v8531_v28  ;;  %v3956_v33 = vadd.s32 %v3954_v62, %v3948_v8 }
 0x3da   : > { %v3939_v35 = vadd.s32 %v3938_v14, %v3928_v32  ;;  %vm3957_vm13 = vc.u32 %v3955_v11, %v3951_v50  ;;  %v3930_v60 = vshrl.u32 %v3925_v37, 16  ;;  %vm3717_vm0 = vcmp.lt.s32.totalorder %v8298_v57, 0 }
 0x3db   : > { %v3828_v59 = vor.u32 %v3827_v17, %v3826_v45  ;;  %v3831_v5 = vshll.u32 %v3830_v36, 23  ;;  %v3958_v56 = vsel %vm3957_vm13, 1, %v5789_v0  ;;  %v3950_v18 = vshrl.u32 %v3946_v24, 16  ;;  %v352_v36 = vpop.permute.xlu0 %351 }
 0x3dc   : > { %v3960_v42 = vadd.s32 %v3958_v56, %v3956_v33  ;;  %v4035_v46 = vadd.s32 1, %v5613_v44  ;;  %v3909_v48 = vsel %vm3903_vm5, %v3906_v22, %v3908_v16  ;;  %v8578_v19 = vadd.s32 %v3939_v35, %v3930_v60 }
 0x3dd   : > { %v3832_v47 = vor.u32 4788187, %v3831_v5  ;;  %v4025_v29 = vand.u32 2147483647, %v8376_v39  ;;  %v3840_v37 = vsel %vm3717_vm0, %v3839_v9, %v8531_v28  ;;  %v3952_v27 = vshrl.u32 %v3947_v21, 16 }
 0x3de   : > { %v3961_v6 = vadd.s32 %v3960_v42, %v3950_v18  ;;  %vm4036_vm15 = vcmp.gt.s32.totalorder %v4035_v46, 0  ;;  %v3835_v24 = vcvt.s32.f32 %v3828_v59  ;;  %v8584_v40 = vadd.s32 %v3955_v11, %v3951_v50 }
 0x3df   : > { %v3833_v38 = vand.u32 2147483647, %v3832_v47  ;;  %v4037_v49 = vsel %vm4036_vm15, %v4035_v46, 0  ;;  %v417_v41 = vmul.f32 %v8361_v43, %v357_v34  ;;  %vm8589_vm1 = vcmp.le.f32.partialorder %v3715_v10, 0.7853982 }
 0x3e0   : > { %v3962_v63 = vadd.s32 %v3961_v6, %v3952_v27  ;;  %v4039_v22 = vand.u32 31, %v4037_v49  ;;  %v3963_v28 = vmul.u32 %v8541_v23, %v3909_v48  ;;  %vm3965_vm2 = vc.u32 %v8578_v19, %v8584_v40 }
 0x3e1   : > { %v3836_v12 = vmul.f32 %v3835_v24, %v3833_v38  ;;  %v3842_v54 = vsel %vm8589_vm1, 0, %v3840_v37  ;;  %v4032_v2 = vand.u32 8388607, %v4025_v29  ;;  %v8602_v10 = vshrl.u32 %v4037_v49, 5 }
 0x3e2   : > { %v3966_v20 = vadd.s32 1, %v3962_v63  ;;  %v8600_v21 = vsub.s32 32, %v4039_v22  ;;  %v4042_v51 = vshll.u32 %v5790_v52, %v4039_v22  ;;  %v4045_v26 = vshll.u32 %v5791_v55, %v4039_v22 }
 0x3e3   : > { %v3837_v32 = vxor.u32 2147483648, %v3836_v12  ;;  %v4051_v8 = vshll.u32 %v5793_v61, %v4039_v22  ;;  %v4048_v14 = vshll.u32 %v5792_v58, %v4039_v22  ;;  %v4054_v11 = vshll.u32 %v5794_v1, %v4039_v22 }
 0x3e4   : > { %v3967_v23 = vsel %vm3965_vm2, %v3966_v20, %v3962_v63  ;;  %v4043_v7 = vshrl.u32 %v5791_v55, %v8600_v21  ;;  %v4046_v13 = vshrl.u32 %v5792_v58, %v8600_v21  ;;  %v4049_v30 = vshrl.u32 %v5793_v61, %v8600_v21 }
 0x3e5   : > { %v3838_v15 = vsel %vm3717_vm0, %v3837_v32, %v3836_v12  ;;  %v3968_v31 = vadd.s32 %v3967_v23, %v3963_v28  ;;  %v4052_v50 = vshrl.u32 %v5794_v1, %v8600_v21  ;;  %v4055_v17 = vshrl.u32 %v5795_v3, %v8600_v21 }
 0x3e6   : > { %v3841_v45 = vsel %vm8589_vm1, %v8298_v57, %v3838_v15  ;;  %v4033_v9 = vor.u32 8388608, %v4032_v2  ;;  %v8624_v33 = vor.u32 %v4043_v7, %v4042_v51  ;;  %v8626_v59 = vor.u32 %v4046_v13, %v4045_v26 }
 0x3e7   : > { %v3843_v62 = vmul.f32 %v3841_v45, %v3841_v45  ;;  %v3969_v44 = vadd.s32 536870912, %v3968_v31  ;;  %v4053_v35 = vor.u32 %v4052_v50, %v4051_v8  ;;  %v8628_v5 = vor.u32 %v4049_v30, %v4048_v14 }
 0x3e8   : > { %v4056_v60 = vor.u32 %v4055_v17, %v4054_v11  ;;  %vm4060_vm4 = vcmp.lt.s32.totalorder %v8602_v10, 4  ;;  %v416_v46 = vmul.f32 %v8361_v43, %v352_v36  ;;  %v3859_v34 = vadd.s32 3, %v3842_v54 }
 0x3e9   : > { %v3844_v56 = vmul.f32 -0.001358992, %v3843_v62  ;;  %v3851_v18 = vmul.f32 -0.00019511016, %v3843_v62  ;;  %v8630_v42 = vshrl.u32 %v3969_v44, 30  ;;  %vm4057_vm3 = vcmp.lt.s32.totalorder %v8602_v10, 1 }
 0x3ea   : > { %v4066_v47 = vsel %vm4060_vm4, %v4053_v35, 920167782  ;;  %vm4059_vm5 = vcmp.lt.s32.totalorder %v8602_v10, 3  ;;  %v4065_v6 = vsel %vm4057_vm3, %v8624_v33, %v8626_v59  ;;  %v4070_v24 = vsel %vm4060_vm4, %v4056_v60, 1326507024 }
 0x3eb   : > { %v3845_v48 = vadd.f32 0.041655596, %v3844_v56  ;;  %v3852_v37 = vadd.f32 0.008332121, %v3851_v18  ;;  %v3971_v27 = vshll.u32 %v8630_v42, 30  ;;  %v4067_v38 = vsel %vm4059_vm5, %v8628_v5, %v4066_v47 }
 0x3ec   : > { %v8648_v49 = vshll.u32 %v4033_v9, 8  ;;  %v4069_v12 = vsel %vm4057_vm3, %v8626_v59, %v8628_v5  ;;  %v8655_v28 = vadd.f32 %v8373_v53, %v417_v41  ;;  %v3860_v54 = vand.u32 3, %v3859_v34 }
 0x3ed   : > { %v3846_v63 = vmul.f32 %v3845_v48, %v3843_v62  ;;  %v3853_v22 = vmul.f32 %v3852_v37, %v3843_v62  ;;  %v3972_v16 = vsub.s32 %v3968_v31, %v3971_v27  ;;  %vm4058_vm6 = vcmp.lt.s32.totalorder %v8602_v10, 2 }
 0x3ee   : > { %v4071_v20 = vsel %vm4059_vm5, %v4053_v35, %v4070_v24  ;;  %v8661_v26 = vadd.f32 %v8373_v53, %v416_v46  ;;  %v4068_v23 = vsel %vm4058_vm6, %v4065_v6, %v4067_v38  ;;  %v4075_v7 = vshrl.u32 %v8648_v49, 16 }
 0x3ef   : > { %v3847_v2 = vadd.f32 -0.4999988, %v3846_v63  ;;  %v3854_v32 = vadd.f32 -0.16666654, %v3853_v22  ;;  %vm3973_vm8 = vcmp.lt.s32.totalorder %v3972_v16, 0  ;;  %v3974_v51 = vsub.s32 0, %v3972_v16 }
 0x3f0   : > { %v4072_v41 = vsel %vm4058_vm6, %v4069_v12, %v4071_v20  ;;  %vm3858_vm7 = vweird.f32 %v8298_v57  ;;  %vm3861_vm10 = vcmp.lt.s32.totalorder %v3860_v54, 2  ;;  %v4074_v50 = vand.u32 65535, %v8648_v49 }
 0x3f1   : > { %v3848_v13 = vmul.f32 %v3847_v2, %v3843_v62  ;;  %v3855_v8 = vmul.f32 %v3854_v32, %v3843_v62  ;;  %v3975_v15 = vsel %vm3973_vm8, %v3974_v51, %v3972_v16  ;;  %v4076_v31 = vand.u32 65535, %v4072_v41 }
 0x3f2   : > { %v3976_v30 = vclz %v3975_v15  ;;  %v4077_v14 = vshrl.u32 %v4072_v41, 16  ;;  %v4099_v44 = vshrl.u32 %v4068_v23, 16  ;;  %vm3862_vm9 = vcmp.eq.s32.totalorder %v3860_v54, 0 }
 0x3f3   : > { %v3849_v11 = vadd.f32 1.0, %v3848_v13  ;;  %v3856_v17 = vadd.f32 1.0, %v3855_v8  ;;  %v8670_v36 = vmul.u32 %v4076_v31, %v4075_v7  ;;  %vm3865_vm11 = vcmp.eq.s32.totalorder %v3860_v54, 2 }
 0x3f4   : > { %v3964_v9 = vadd.s32 %v8584_v40, %v8578_v19  ;;  %v5611_v62 = vadd.s32 4294967294, %v3976_v30  ;;  %v4079_v56 = vmul.u32 %v4077_v14, %v4074_v50  ;;  %v4098_v18 = vand.u32 65535, %v4068_v23 }
 0x3f5   : > { %v3857_v35 = vmul.f32 %v3856_v17, %v3841_v45  ;;  %v3866_v60 = vxor.u32 2147483648, %v3849_v11  ;;  %v4078_v46 = vmul.u32 %v4076_v31, %v4074_v50  ;;  %v4081_v34 = vmul.u32 %v4077_v14, %v4075_v7 }
 0x3f6   : > { %vm5612_vm12 = vcmp.lt.s32.totalorder %v5611_v62, 0  ;;  %v4084_v47 = vshll.u32 %v8670_v36, 16  ;;  %v4082_v27 = vshll.u32 %v4079_v56, 16  ;;  %v4101_v6 = vmul.u32 %v4099_v44, %v4074_v50 }
 0x3f7   : > { %v3863_v48 = vxor.u32 2147483648, %v3857_v35  ;;  %v3979_v37 = vsel %vm5612_vm12, 0, %v5611_v62  ;;  %v3867_v38 = vsel %vm3865_vm11, %v3866_v60, %v3857_v35  ;;  %vm3872_vm14 = vcmp.lt.s32.totalorder %v8292_v25, 0 }
 0x3f8   : > { %v3980_v24 = vsub.s32 32, %v3979_v37  ;;  %v3981_v63 = vshll.u32 %v3972_v16, %v3979_v37  ;;  %v3984_v19 = vsub.s32 4294967266, %v3979_v37  ;;  %vm4086_vm13 = vc.u32 %v4078_v46, %v4082_v27 }
 0x3f9   : > { %v3864_v40 = vsel %vm3862_vm9, %v3849_v11, %v3863_v48  ;;  %v4088_v45 = vadd.s32 %v4082_v27, %v4078_v46  ;;  %v4102_v22 = vmul.u32 %v4098_v18, %v4075_v7  ;;  %v4087_v32 = vsel %vm4086_vm13, 1, %v5789_v0 }
 0x3fa   : > { %v3868_v12 = vsel %vm3861_vm10, %v3864_v40, %v3867_v38  ;;  %v3982_v20 = vshrl.u32 %v3964_v9, %v3980_v24  ;;  %v3985_v2 = vadd.s32 127, %v3984_v19  ;;  %v4089_v23 = vadd.s32 %v4087_v32, %v4081_v34 }
 0x3fb   : > { %v3869_v51 = vsel %vm3858_vm7, nan, %v3868_v12  ;;  %vm4090_vm0 = vc.u32 %v4088_v45, %v4084_v47  ;;  %v4100_v41 = vmul.u32 %v4098_v18, %v4074_v50  ;;  %vm8683_vm15 = vcmp.le.f32.partialorder %v3870_v4, 0.7853982  ;;  %v362_v12 = vpop.permute.xlu2 %361 }
 0x3fc   : > { %v3983_v13 = vor.u32 %v3982_v20, %v3981_v63  ;;  %v3986_v8 = vshll.u32 %v3985_v2, 23  ;;  %v4091_v54 = vsel %vm4090_vm0, 1, %v5789_v0  ;;  %v4104_v15 = vshll.u32 %v4101_v6, 16  ;;  %5441 = vst [vmem:[%s6199_s9 + $0xa8] sm:$0xff] %v3869_v51 }
 0x3fd   : > { %v3994_v31 = vsub.s32 4, %v8630_v42  ;;  %v4083_v30 = vshrl.u32 %v4079_v56, 16  ;;  %v4093_v57 = vadd.s32 %v4091_v54, %v4089_v23  ;;  %v4103_v14 = vmul.u32 %v4099_v44, %v4075_v7 }
 0x3fe   : > { %v3987_v11 = vor.u32 4788187, %v3986_v8  ;;  %v4106_v17 = vshll.u32 %v4102_v22, 16  ;;  %vm4108_vm1 = vc.u32 %v4100_v41, %v4104_v15  ;;  %v4110_v50 = vadd.s32 %v4104_v15, %v4100_v41 }
 0x3ff   : > { %v3990_v9 = vcvt.s32.f32 %v3983_v13  ;;  %v4062_v4 = vsel %vm4060_vm4, %v8628_v5, 2102212464  ;;  %v4094_v62 = vadd.s32 %v4093_v57, %v4083_v30  ;;  %v4109_v35 = vsel %vm4108_vm1, 1, %v5789_v0 }
 0x400   : > { %v3988_v60 = vand.u32 2147483647, %v3987_v11  ;;  %v4111_v18 = vadd.s32 %v4109_v35, %v4103_v14  ;;  %vm4112_vm2 = vc.u32 %v4110_v50, %v4106_v17  ;;  %v4180_v46 = vand.u32 2147483647, %v8661_v26 }
 0x401   : > { %v3995_v7 = vsel %vm3872_vm14, %v3994_v31, %v8630_v42  ;;  %v4041_v44 = vshrl.u32 %v5790_v52, %v8600_v21  ;;  %v4085_v56 = vshrl.u32 %v8670_v36, 16  ;;  %v4113_v34 = vsel %vm4112_vm2, 1, %v5789_v0 }
 0x402   : > { %v3991_v5 = vmul.f32 %v3990_v9, %v3988_v60  ;;  %v4105_v47 = vshrl.u32 %v4101_v6, 16  ;;  %v4115_v48 = vadd.s32 %v4113_v34, %v4111_v18  ;;  %v4183_v37 = vand.u32 2139095040, %v8661_v26 }
 0x403   : > { %v4061_v27 = vsel %vm4057_vm3, %v4041_v44, %v8624_v33  ;;  %v4063_v42 = vsel %vm4059_vm5, %v8626_v59, %v4062_v4  ;;  %v4095_v38 = vadd.s32 %v4094_v62, %v4085_v56  ;;  %v4107_v24 = vshrl.u32 %v4102_v22, 16 }
 0x404   : > { %v3992_v21 = vxor.u32 2147483648, %v3991_v5  ;;  %v4116_v63 = vadd.s32 %v4115_v48, %v4105_v47  ;;  %v4184_v36 = vshrl.u32 %v4183_v37, 23  ;;  %v4187_v19 = vand.u32 8388607, %v4180_v46 }
 0x405   : > { %v3997_v6 = vsel %vm8683_vm15, 0, %v3995_v7  ;;  %v4114_v40 = vadd.s32 %v4110_v50, %v4106_v17  ;;  %v4338_v45 = vand.u32 2139095040, %v8655_v28  ;;  %v4064_v59 = vsel %vm4058_vm6, %v4061_v27, %v4063_v42 }
 0x406   : > { %v3993_v33 = vsel %vm3872_vm14, %v3992_v21, %v3991_v5  ;;  %v4117_v22 = vadd.s32 %v4116_v63, %v4107_v24  ;;  %v5616_v20 = vadd.s32 4294967169, %v4184_v36  ;;  %v4188_v23 = vor.u32 8388608, %v4187_v19 }
 0x407   : > { %v3996_v2 = vsel %vm8683_vm15, %v8292_v25, %v3993_v33  ;;  %vm4120_vm4 = vc.u32 %v4095_v38, %v4114_v40  ;;  %v418_v13 = vmul.f32 %v8361_v43, %v362_v12  ;;  %v4014_v8 = vadd.s32 3, %v3997_v6 }
 0x408   : > { %v3998_v32 = vmul.f32 %v3996_v2, %v3996_v2  ;;  %v4121_v51 = vadd.s32 1, %v4117_v22  ;;  %v4190_v41 = vadd.s32 1, %v5616_v20  ;;  %v4118_v54 = vmul.u32 %v8648_v49, %v4064_v59 }
 0x409   : > { %v4339_v15 = vshrl.u32 %v4338_v45, 23  ;;  %v4335_v16 = vand.u32 2147483647, %v8655_v28  ;;  %v8724_v9 = vshll.u32 %v4188_v23, 8  ;;  %v4015_v4 = vand.u32 3, %v4014_v8 }
 0x40a   : > { %v3999_v31 = vmul.f32 -0.001358992, %v3998_v32  ;;  %v4006_v10 = vmul.f32 -0.00019511016, %v3998_v32  ;;  %v4122_v30 = vsel %vm4120_vm4, %v4121_v51, %v4117_v22  ;;  %vm4191_vm3 = vcmp.gt.s32.totalorder %v4190_v41, 0 }
 0x40b   : > { %v4123_v57 = vadd.s32 %v4122_v30, %v4118_v54  ;;  %v4192_v14 = vsel %vm4191_vm3, %v4190_v41, 0  ;;  %v5619_v43 = vadd.s32 4294967169, %v4339_v15  ;;  %v8727_v35 = vadd.f32 %v8373_v53, %v418_v13 }
 0x40c   : > { %v4000_v11 = vadd.f32 0.041655596, %v3999_v31  ;;  %v4007_v17 = vadd.f32 0.008332121, %v4006_v10  ;;  %v4194_v50 = vand.u32 31, %v4192_v14  ;;  %vm4027_vm5 = vcmp.lt.s32.totalorder %v8376_v39, 0 }
 0x40d   : > { %v4124_v62 = vadd.s32 536870912, %v4123_v57  ;;  %v8730_v7 = vadd.s32 %v4114_v40, %v4095_v38  ;;  %v8734_v56 = vand.u32 8388607, %v4335_v16  ;;  %v8737_v47 = vand.u32 65535, %v8724_v9 }
 0x40e   : > { %v4001_v49 = vmul.f32 %v4000_v11, %v3998_v32  ;;  %v4008_v60 = vmul.f32 %v4007_v17, %v3998_v32  ;;  %v4195_v18 = vsub.s32 32, %v4194_v50  ;;  %v8740_v53 = vshrl.u32 %v8724_v9, 16 }
 0x40f   : > { %v4125_v44 = vshrl.u32 %v4124_v62, 30  ;;  %vm4017_vm6 = vcmp.eq.s32.totalorder %v4015_v4, 0  ;;  %vm4020_vm8 = vcmp.eq.s32.totalorder %v4015_v4, 2  ;;  %v8742_v37 = vshrl.u32 %v4192_v14, 5 }
 0x410   : > { %v4002_v34 = vadd.f32 -0.4999988, %v4001_v49  ;;  %v4009_v5 = vadd.f32 -0.16666654, %v4008_v60  ;;  %v4198_v27 = vshrl.u32 %v5791_v55, %v4195_v18  ;;  %v8745_v42 = vadd.s32 1, %v5619_v43 }
 0x411   : > { %v4126_v48 = vshll.u32 %v4125_v44, 30  ;;  %vm4016_vm7 = vcmp.lt.s32.totalorder %v4015_v4, 2  ;;  %v4197_v21 = vshll.u32 %v5790_v52, %v4194_v50  ;;  %v4201_v63 = vshrl.u32 %v5792_v58, %v4195_v18 }
 0x412   : > { %v4003_v38 = vmul.f32 %v4002_v34, %v3998_v32  ;;  %v4010_v24 = vmul.f32 %v4009_v5, %v3998_v32  ;;  %vm4013_vm10 = vweird.f32 %v8292_v25  ;;  %v4200_v19 = vshll.u32 %v5791_v55, %v4194_v50 }
 0x413   : > { %v8750_v36 = vsub.s32 %v4123_v57, %v4126_v48  ;;  %v4204_v6 = vshrl.u32 %v5793_v61, %v4195_v18  ;;  %v4207_v40 = vshrl.u32 %v5794_v1, %v4195_v18  ;;  %v4149_v33 = vsub.s32 4, %v4125_v44 }
 0x414   : > { %v4004_v45 = vadd.f32 1.0, %v4003_v38  ;;  %v4011_v12 = vadd.f32 1.0, %v4010_v24  ;;  %v4203_v59 = vshll.u32 %v5792_v58, %v4194_v50  ;;  %v4199_v20 = vor.u32 %v4198_v27, %v4197_v21 }
 0x415   : > { %vm4128_vm9 = vcmp.lt.s32.totalorder %v8750_v36, 0  ;;  %v4129_v22 = vsub.s32 0, %v8750_v36  ;;  %v4206_v32 = vshll.u32 %v5793_v61, %v4194_v50  ;;  %v4202_v41 = vor.u32 %v4201_v63, %v4200_v19 }
 0x416   : > { %v4012_v51 = vmul.f32 %v4011_v12, %v3996_v2  ;;  %v4021_v23 = vxor.u32 2147483648, %v4004_v45  ;;  %v4210_v13 = vshrl.u32 %v5795_v3, %v4195_v18  ;;  %v4205_v54 = vor.u32 %v4204_v6, %v4203_v59 }
 0x417   : > { %v4130_v8 = vsel %vm4128_vm9, %v4129_v22, %v8750_v36  ;;  %v4208_v15 = vor.u32 %v4207_v40, %v4206_v32  ;;  %v4209_v31 = vshll.u32 %v5794_v1, %v4194_v50  ;;  %v8764_v57 = vsel %vm4027_vm5, %v4149_v33, %v4125_v44 }
 0x418   : > { %v4018_v10 = vxor.u32 2147483648, %v4012_v51  ;;  %v4131_v30 = vclz %v4130_v8  ;;  %v4196_v14 = vshrl.u32 %v5790_v52, %v4195_v18  ;;  %vm8769_vm11 = vcmp.le.f32.partialorder %v4025_v29, 0.7853982 }
 0x419   : > { %v4211_v11 = vor.u32 %v4210_v13, %v4209_v31  ;;  %vm4212_vm12 = vcmp.lt.s32.totalorder %v8742_v37, 1  ;;  %vm4213_vm14 = vcmp.lt.s32.totalorder %v8742_v37, 2  ;;  %vm4214_vm13 = vcmp.lt.s32.totalorder %v8742_v37, 3 }
 0x41a   : > { %v4019_v17 = vsel %vm4017_vm6, %v4004_v45, %v4018_v10  ;;  %v4022_v50 = vsel %vm4020_vm8, %v4021_v23, %v4012_v51  ;;  %v5614_v62 = vadd.s32 4294967294, %v4131_v30  ;;  %vm4215_vm0 = vcmp.lt.s32.totalorder %v8742_v37, 4 }
 0x41b   : > { %v4023_v29 = vsel %vm4016_vm7, %v4019_v17, %v4022_v50  ;;  %v4217_v43 = vsel %vm4215_vm0, %v4205_v54, 2102212464  ;;  %v4220_v49 = vsel %vm4212_vm12, %v4199_v20, %v4202_v41  ;;  %v4221_v60 = vsel %vm4215_vm0, %v4208_v15, 920167782 }
 0x41c   : > { %v4024_v18 = vsel %vm4013_vm10, nan, %v4023_v29  ;;  %vm5615_vm15 = vcmp.lt.s32.totalorder %v5614_v62, 0  ;;  %v4216_v44 = vsel %vm4212_vm12, %v4196_v14, %v4199_v20  ;;  %v4222_v34 = vsel %vm4214_vm13, %v4205_v54, %v4221_v60 }
 0x41d   : > { %v4134_v5 = vsel %vm5615_vm15, 0, %v5614_v62  ;;  %v4223_v4 = vsel %vm4213_vm14, %v4220_v49, %v4222_v34  ;;  %v4224_v48 = vsel %vm4212_vm12, %v4202_v41, %v4205_v54  ;;  %v4225_v27 = vsel %vm4215_vm0, %v4211_v11, 1326507024  ;;  %5442 = vst [vmem:[%s6199_s9 + $0xb0] sm:$0xff] %v4024_v18 }
 0x41e   : > { %v4135_v38 = vsub.s32 32, %v4134_v5  ;;  %v4139_v24 = vsub.s32 4294967266, %v4134_v5  ;;  %v4218_v25 = vsel %vm4214_vm13, %v4202_v41, %v4217_v43  ;;  %v4226_v21 = vsel %vm4214_vm13, %v4208_v15, %v4225_v27 }
 0x41f   : > { %v4136_v63 = vshll.u32 %v8750_v36, %v4134_v5  ;;  %v4227_v19 = vsel %vm4213_vm14, %v4224_v48, %v4226_v21  ;;  %v4253_v6 = vand.u32 65535, %v4223_v4  ;;  %v4254_v40 = vshrl.u32 %v4223_v4, 16 }
 0x420   : > { %v4137_v45 = vshrl.u32 %v8730_v7, %v4135_v38  ;;  %v4140_v12 = vadd.s32 127, %v4139_v24  ;;  %v4231_v33 = vand.u32 65535, %v4227_v19  ;;  %v4232_v59 = vshrl.u32 %v4227_v19, 16 }
 0x421   : > { %v4256_v22 = vmul.u32 %v4254_v40, %v8737_v47  ;;  %v4257_v20 = vmul.u32 %v4253_v6, %v8740_v53  ;;  %v4343_v32 = vor.u32 8388608, %v8734_v56  ;;  %vm4346_vm1 = vcmp.gt.s32.totalorder %v8745_v42, 0 }
 0x422   : > { %v4138_v51 = vor.u32 %v4137_v45, %v4136_v63  ;;  %v4141_v36 = vshll.u32 %v4140_v12, 23  ;;  %v4152_v23 = vsel %vm8769_vm11, 0, %v8764_v57  ;;  %v4234_v41 = vmul.u32 %v4232_v59, %v8737_v47 }
 0x423   : > { %v8811_v7 = vsel %vm4213_vm14, %v4216_v44, %v4218_v25  ;;  %v4235_v13 = vmul.u32 %v4231_v33, %v8740_v53  ;;  %v4255_v8 = vmul.u32 %v4253_v6, %v8737_v47  ;;  %v4259_v54 = vshll.u32 %v4256_v22, 16 }
 0x424   : > { %v4142_v15 = vor.u32 4788187, %v4141_v36  ;;  %v4233_v31 = vmul.u32 %v4231_v33, %v8737_v47  ;;  %v4237_v10 = vshll.u32 %v4234_v41, 16  ;;  %v4258_v30 = vmul.u32 %v4254_v40, %v8740_v53 }
 0x425   : > { %v4145_v14 = vcvt.s32.f32 %v4138_v51  ;;  %v4236_v57 = vmul.u32 %v4232_v59, %v8740_v53  ;;  %v4239_v11 = vshll.u32 %v4235_v13, 16  ;;  %v4261_v17 = vshll.u32 %v4257_v20, 16 }
 0x426   : > { %v4143_v50 = vand.u32 2147483647, %v4142_v15  ;;  %vm4241_vm2 = vc.u32 %v4233_v31, %v4237_v10  ;;  %v4243_v37 = vadd.s32 %v4237_v10, %v4233_v31  ;;  %vm4263_vm4 = vc.u32 %v4255_v8, %v4259_v54 }
 0x427   : > { %v4242_v62 = vsel %vm4241_vm2, 1, %v5789_v0  ;;  %v4264_v29 = vsel %vm4263_vm4, 1, %v5789_v0  ;;  %v4265_v43 = vadd.s32 %v4259_v54, %v4255_v8  ;;  %v4347_v47 = vsel %vm4346_vm1, %v8745_v42, 0 }
 0x428   : > { %v4146_v49 = vmul.f32 %v4145_v14, %v4143_v50  ;;  %v4244_v60 = vadd.s32 %v4242_v62, %v4236_v57  ;;  %vm4245_vm3 = vc.u32 %v4243_v37, %v4239_v11  ;;  %v4266_v18 = vadd.s32 %v4264_v29, %v4258_v30 }
 0x429   : > { %v4238_v53 = vshrl.u32 %v4234_v41, 16  ;;  %v4246_v44 = vsel %vm4245_vm3, 1, %v5789_v0  ;;  %vm4267_vm6 = vc.u32 %v4265_v43, %v4261_v17  ;;  %v4493_v34 = vand.u32 2139095040, %v8727_v35 }
 0x42a   : > { %v4147_v5 = vxor.u32 2147483648, %v4146_v49  ;;  %v4248_v4 = vadd.s32 %v4246_v44, %v4244_v60  ;;  %v4268_v48 = vsel %vm4267_vm6, 1, %v5789_v0  ;;  %v4349_v27 = vand.u32 31, %v4347_v47 }
 0x42b   : > { %v4169_v38 = vadd.s32 3, %v4152_v23  ;;  %v4260_v24 = vshrl.u32 %v4256_v22, 16  ;;  %v4270_v25 = vadd.s32 %v4268_v48, %v4266_v18  ;;  %v4273_v42 = vmul.u32 %v8724_v9, %v8811_v7 }
 0x42c   : > { %v4148_v21 = vsel %vm4027_vm5, %v4147_v5, %v4146_v49  ;;  %v4240_v63 = vshrl.u32 %v4235_v13, 16  ;;  %v4249_v19 = vadd.s32 %v4248_v4, %v4238_v53  ;;  %v8830_v6 = vsub.s32 32, %v4349_v27 }
 0x42d   : > { %v4151_v40 = vsel %vm8769_vm11, %v8376_v39, %v4148_v21  ;;  %v4262_v45 = vshrl.u32 %v4257_v20, 16  ;;  %v8835_v12 = vadd.s32 %v4265_v43, %v4261_v17  ;;  %v4271_v33 = vadd.s32 %v4270_v25, %v4260_v24 }
 0x42e   : > { %v4153_v59 = vmul.f32 %v4151_v40, %v4151_v40  ;;  %v8837_v22 = vadd.s32 %v4249_v19, %v4240_v63  ;;  %v8839_v51 = vshrl.u32 %v4347_v47, 5  ;;  %v4353_v9 = vshrl.u32 %v5791_v55, %v8830_v6 }
 0x42f   : > { %v4272_v36 = vadd.s32 %v4271_v33, %v4262_v45  ;;  %v4352_v23 = vshll.u32 %v5790_v52, %v4349_v27  ;;  %v4356_v41 = vshrl.u32 %v5792_v58, %v8830_v6  ;;  %v4359_v2 = vshrl.u32 %v5793_v61, %v8830_v6 }
 0x430   : > { %v4154_v20 = vmul.f32 -0.001358992, %v4153_v59  ;;  %v4161_v7 = vmul.f32 -0.00019511016, %v4153_v59  ;;  %vm4275_vm5 = vc.u32 %v8837_v22, %v8835_v12  ;;  %v4355_v13 = vshll.u32 %v5791_v55, %v4349_v27 }
 0x431   : > { %v4276_v8 = vadd.s32 1, %v4272_v36  ;;  %v8851_v54 = vor.u32 %v4353_v9, %v4352_v23  ;;  %v4358_v15 = vshll.u32 %v5792_v58, %v4349_v27  ;;  %v4361_v31 = vshll.u32 %v5793_v61, %v4349_v27 }
 0x432   : > { %v4155_v10 = vadd.f32 0.041655596, %v4154_v20  ;;  %v4162_v30 = vadd.f32 0.008332121, %v4161_v7  ;;  %v8855_v14 = vor.u32 %v4356_v41, %v4355_v13  ;;  %v4362_v57 = vshrl.u32 %v5794_v1, %v8830_v6 }
 0x433   : > { %v4277_v11 = vsel %vm4275_vm5, %v4276_v8, %v4272_v36  ;;  %v4360_v17 = vor.u32 %v4359_v2, %v4358_v15  ;;  %v4364_v50 = vshll.u32 %v5794_v1, %v4349_v27  ;;  %v4365_v37 = vshrl.u32 %v5795_v3, %v8830_v6 }
 0x434   : > { %v4156_v62 = vmul.f32 %v4155_v10, %v4153_v59  ;;  %v4163_v29 = vmul.f32 %v4162_v30, %v4153_v59  ;;  %v4278_v43 = vadd.s32 %v4277_v11, %v4273_v42  ;;  %v4363_v47 = vor.u32 %v4362_v57, %v4361_v31 }
 0x435   : > { %v4170_v49 = vand.u32 3, %v4169_v38  ;;  %v4366_v60 = vor.u32 %v4365_v37, %v4364_v50  ;;  %vm4367_vm8 = vcmp.lt.s32.totalorder %v8839_v51, 1  ;;  %vm4369_vm7 = vcmp.lt.s32.totalorder %v8839_v51, 3 }
 0x436   : > { %v4157_v18 = vadd.f32 -0.4999988, %v4156_v62  ;;  %v4164_v53 = vadd.f32 -0.16666654, %v4163_v29  ;;  %v4279_v44 = vadd.s32 536870912, %v4278_v43  ;;  %vm4370_vm10 = vcmp.lt.s32.totalorder %v8839_v51, 4 }
 0x437   : > { %v4375_v5 = vsel %vm4367_vm8, %v8851_v54, %v8855_v14  ;;  %v4376_v4 = vsel %vm4370_vm10, %v4363_v47, 920167782  ;;  %v4379_v48 = vsel %vm4367_vm8, %v8855_v14, %v4360_v17  ;;  %v4380_v27 = vsel %vm4370_vm10, %v4366_v60, 1326507024 }
 0x438   : > { %v4158_v38 = vmul.f32 %v4157_v18, %v4153_v59  ;;  %v4165_v24 = vmul.f32 %v4164_v53, %v4153_v59  ;;  %v8876_v25 = vshrl.u32 %v4279_v44, 30  ;;  %v4377_v42 = vsel %vm4369_vm7, %v4360_v17, %v4376_v4 }
 0x439   : > { %vm4168_vm9 = vweird.f32 %v8376_v39  ;;  %vm4368_vm11 = vcmp.lt.s32.totalorder %v8839_v51, 2  ;;  %v4381_v21 = vsel %vm4369_vm7, %v4363_v47, %v4380_v27  ;;  %v8886_v63 = vshll.u32 %v4343_v32, 8  ;;  %v8934_v51 = vld [vmem:[%s9715_s1] ss:$0 sm:$0xff] }
 0x43a   : > { %v4159_v19 = vadd.f32 1.0, %v4158_v38  ;;  %v4166_v45 = vadd.f32 1.0, %v4165_v24  ;;  %v4281_v33 = vshll.u32 %v8876_v25, 30  ;;  %v4378_v59 = vsel %vm4368_vm11, %v4375_v5, %v4377_v42 }
 0x43b   : > { %vm4171_vm12 = vcmp.lt.s32.totalorder %v4170_v49, 2  ;;  %vm4172_vm14 = vcmp.eq.s32.totalorder %v4170_v49, 0  ;;  %v4382_v9 = vsel %vm4368_vm11, %v4379_v48, %v4381_v21  ;;  %v4494_v36 = vshrl.u32 %v4493_v34, 23 }
 0x43c   : > { %v4167_v23 = vmul.f32 %v4166_v45, %v4151_v40  ;;  %vm4175_vm13 = vcmp.eq.s32.totalorder %v4170_v49, 2  ;;  %v4176_v56 = vxor.u32 2147483648, %v4159_v19  ;;  %v4282_v32 = vsub.s32 %v4278_v43, %v4281_v33 }
 0x43d   : > { %v4384_v41 = vand.u32 65535, %v8886_v63  ;;  %v4386_v2 = vand.u32 65535, %v4382_v9  ;;  %v4387_v20 = vshrl.u32 %v4382_v9, 16  ;;  %v4409_v7 = vshrl.u32 %v4378_v59, 16 }
 0x43e   : > { %v4173_v13 = vxor.u32 2147483648, %v4167_v23  ;;  %vm4283_vm0 = vcmp.lt.s32.totalorder %v4282_v32, 0  ;;  %v4284_v8 = vsub.s32 0, %v4282_v32  ;;  %v4385_v15 = vshrl.u32 %v8886_v63, 16 }
 0x43f   : > { %v4351_v31 = vshrl.u32 %v5790_v52, %v8830_v6  ;;  %v4372_v34 = vsel %vm4370_vm10, %v4360_v17, 2102212464  ;;  %v4389_v40 = vmul.u32 %v4387_v20, %v4384_v41  ;;  %v4408_v10 = vand.u32 65535, %v4378_v59 }
 0x440   : > { %v4174_v30 = vsel %vm4172_vm14, %v4159_v19, %v4173_v13  ;;  %v4177_v57 = vsel %vm4175_vm13, %v4176_v56, %v4167_v23  ;;  %v4285_v11 = vsel %vm4283_vm0, %v4284_v8, %v4282_v32  ;;  %v4390_v50 = vmul.u32 %v4386_v2, %v4385_v15 }
 0x441   : > { %v4178_v37 = vsel %vm4171_vm12, %v4174_v30, %v4177_v57  ;;  %v4286_v62 = vclz %v4285_v11  ;;  %v4392_v29 = vshll.u32 %v4389_v40, 16  ;;  %v4411_v43 = vmul.u32 %v4409_v7, %v4384_v41 }
 0x442   : > { %v4179_v6 = vsel %vm4168_vm9, nan, %v4178_v37  ;;  %v4274_v17 = vadd.s32 %v8835_v12, %v8837_v22  ;;  %v4371_v47 = vsel %vm4367_vm8, %v4351_v31, %v8851_v54  ;;  %v4388_v60 = vmul.u32 %v4386_v2, %v4384_v41 }
 0x443   : > { %v5617_v18 = vadd.s32 4294967294, %v4286_v62  ;;  %v4373_v49 = vsel %vm4369_vm7, %v8855_v14, %v4372_v34  ;;  %v4391_v53 = vmul.u32 %v4387_v20, %v4385_v15  ;;  %v4410_v44 = vmul.u32 %v4408_v10, %v4384_v41  ;;  %5443 = vst [vmem:[%s6199_s9 + $0xb8] sm:$0xff] %v4179_v6 }
 0x444   : > { %v4394_v5 = vshll.u32 %v4390_v50, 16  ;;  %vm4396_vm15 = vc.u32 %v4388_v60, %v4392_v29  ;;  %v4398_v39 = vadd.s32 %v4392_v29, %v4388_v60  ;;  %v4412_v4 = vmul.u32 %v4408_v10, %v4385_v15 }
 0x445   : > { %vm5618_vm1 = vcmp.lt.s32.totalorder %v5617_v18, 0  ;;  %v4393_v48 = vshrl.u32 %v4389_v40, 16  ;;  %v4397_v12 = vsel %vm4396_vm15, 1, %v5789_v0  ;;  %v4414_v22 = vshll.u32 %v4411_v43, 16  ;;  %v372_v40 = vpop.permute.xlu1 %371 }
 0x446   : > { %v4289_v27 = vsel %vm5618_vm1, 0, %v5617_v18  ;;  %v4399_v54 = vadd.s32 %v4397_v12, %v4391_v53  ;;  %vm4400_vm2 = vc.u32 %v4398_v39, %v4394_v5  ;;  %v4413_v38 = vmul.u32 %v4409_v7, %v4385_v15 }
 0x447   : > { %v4290_v24 = vsub.s32 32, %v4289_v27  ;;  %v4294_v42 = vsub.s32 4294967266, %v4289_v27  ;;  %v4401_v14 = vsel %vm4400_vm2, 1, %v5789_v0  ;;  %v4416_v21 = vshll.u32 %v4412_v4, 16 }
 0x448   : > { %v4291_v19 = vshll.u32 %v4282_v32, %v4289_v27  ;;  %v4403_v45 = vadd.s32 %v4401_v14, %v4399_v54  ;;  %vm4418_vm4 = vc.u32 %v4410_v44, %v4414_v22  ;;  %v4420_v33 = vadd.s32 %v4414_v22, %v4410_v44 }
 0x449   : > { %v4292_v59 = vshrl.u32 %v4274_v17, %v4290_v24  ;;  %v4295_v9 = vadd.s32 127, %v4294_v42  ;;  %v4419_v23 = vsel %vm4418_vm4, 1, %v5789_v0  ;;  %v5622_v56 = vadd.s32 4294967169, %v4494_v36 }
 0x44a   : > { %v4304_v41 = vsub.s32 4, %v8876_v25  ;;  %v4404_v2 = vadd.s32 %v4403_v45, %v4393_v48  ;;  %v4421_v20 = vadd.s32 %v4419_v23, %v4413_v38  ;;  %vm4422_vm3 = vc.u32 %v4420_v33, %v4416_v21 }
 0x44b   : > { %v4293_v7 = vor.u32 %v4292_v59, %v4291_v19  ;;  %v4296_v13 = vshll.u32 %v4295_v9, 23  ;;  %v4395_v8 = vshrl.u32 %v4390_v50, 16  ;;  %v4423_v15 = vsel %vm4422_vm3, 1, %v5789_v0  ;;  %v367_v59 = vpop.permute.xlu0 %366 }
 0x44c   : > { %vm4182_vm6 = vcmp.lt.s32.totalorder %v8661_v26, 0  ;;  %v4415_v32 = vshrl.u32 %v4411_v43, 16  ;;  %v4425_v31 = vadd.s32 %v4423_v15, %v4421_v20  ;;  %v4500_v34 = vadd.s32 1, %v5622_v56 }
 0x44d   : > { %v4297_v10 = vor.u32 4788187, %v4296_v13  ;;  %v4374_v36 = vsel %vm4368_vm11, %v4371_v47, %v4373_v49  ;;  %v8923_v30 = vadd.s32 %v4404_v2, %v4395_v8  ;;  %v4490_v57 = vand.u32 2147483647, %v8727_v35 }
 0x44e   : > { %v4305_v11 = vsel %vm4182_vm6, %v4304_v41, %v8876_v25  ;;  %v4417_v50 = vshrl.u32 %v4412_v4, 16  ;;  %v4426_v37 = vadd.s32 %v4425_v31, %v4415_v32  ;;  %vm4501_vm5 = vcmp.gt.s32.totalorder %v4500_v34, 0 }
 0x44f   : > { %v4298_v62 = vand.u32 2147483647, %v4297_v10  ;;  %v4300_v29 = vcvt.s32.f32 %v4293_v7  ;;  %v8929_v43 = vadd.s32 %v4420_v33, %v4416_v21  ;;  %v4502_v6 = vsel %vm4501_vm5, %v4500_v34, 0 }
 0x450   : > { %v420_v17 = vmul.f32 %v8934_v51, %v372_v40  ;;  %v4427_v47 = vadd.s32 %v4426_v37, %v4417_v50  ;;  %v4504_v60 = vand.u32 31, %v4502_v6  ;;  %vm8939_vm8 = vcmp.le.f32.partialorder %v4180_v46, 0.7853982 }
 0x451   : > { %v4301_v18 = vmul.f32 %v4300_v29, %v4298_v62  ;;  %v4428_v49 = vmul.u32 %v8886_v63, %v4374_v36  ;;  %vm4430_vm7 = vc.u32 %v8923_v30, %v8929_v43  ;;  %v4307_v53 = vsel %vm8939_vm8, 0, %v4305_v11 }
 0x452   : > { %v4431_v44 = vadd.s32 1, %v4427_v47  ;;  %v4497_v5 = vand.u32 8388607, %v4490_v57  ;;  %v8950_v39 = vsub.s32 32, %v4504_v60  ;;  %v8952_v46 = vshrl.u32 %v4502_v6, 5 }
 0x453   : > { %v4302_v4 = vxor.u32 2147483648, %v4301_v18  ;;  %v4507_v48 = vshll.u32 %v5790_v52, %v4504_v60  ;;  %v4510_v12 = vshll.u32 %v5791_v55, %v4504_v60  ;;  %v4516_v54 = vshll.u32 %v5793_v61, %v4504_v60 }
 0x454   : > { %v4432_v63 = vsel %vm4430_vm7, %v4431_v44, %v4427_v47  ;;  %v4508_v22 = vshrl.u32 %v5791_v55, %v8950_v39  ;;  %v4511_v27 = vshrl.u32 %v5792_v58, %v8950_v39  ;;  %v4514_v42 = vshrl.u32 %v5793_v61, %v8950_v39 }
 0x455   : > { %v4303_v38 = vsel %vm4182_vm6, %v4302_v4, %v4301_v18  ;;  %v4433_v24 = vadd.s32 %v4432_v63, %v4428_v49  ;;  %v4517_v14 = vshrl.u32 %v5794_v1, %v8950_v39  ;;  %v4513_v19 = vshll.u32 %v5792_v58, %v4504_v60  ;;  %v9013_v18 = vld [vmem:[%s9716_s2] ss:$0 sm:$0xff] }
 0x456   : > { %v8970_v21 = vsel %vm8939_vm8, %v8661_v26, %v4303_v38  ;;  %v4519_v45 = vshll.u32 %v5794_v1, %v4504_v60  ;;  %v4520_v33 = vshrl.u32 %v5795_v3, %v8950_v39  ;;  %v4498_v56 = vor.u32 8388608, %v4497_v5 }
 0x457   : > { %v4308_v9 = vmul.f32 %v8970_v21, %v8970_v21  ;;  %v4434_v23 = vadd.s32 536870912, %v4433_v24  ;;  %v4518_v41 = vor.u32 %v4517_v14, %v4516_v54  ;;  %v8978_v2 = vor.u32 %v4508_v22, %v4507_v48 }
 0x458   : > { %v8980_v20 = vor.u32 %v4511_v27, %v4510_v12  ;;  %v8982_v7 = vor.u32 %v4514_v42, %v4513_v19  ;;  %v4521_v13 = vor.u32 %v4520_v33, %v4519_v45  ;;  %vm4525_vm10 = vcmp.lt.s32.totalorder %v8952_v46, 4 }
 0x459   : > { %v4309_v8 = vmul.f32 -0.001358992, %v4308_v9  ;;  %v4316_v15 = vmul.f32 -0.00019511016, %v4308_v9  ;;  %v8984_v32 = vshrl.u32 %v4434_v23, 30  ;;  %v419_v31 = vmul.f32 %v8934_v51, %v367_v59 }
 0x45a   : > { %v4324_v34 = vadd.s32 3, %v4307_v53  ;;  %vm4522_vm9 = vcmp.lt.s32.totalorder %v8952_v46, 1  ;;  %v4531_v40 = vsel %vm4525_vm10, %v4518_v41, 920167782  ;;  %vm4524_vm11 = vcmp.lt.s32.totalorder %v8952_v46, 3 }
 0x45b   : > { %v4310_v10 = vadd.f32 0.041655596, %v4309_v8  ;;  %v4317_v36 = vadd.f32 0.008332121, %v4316_v15  ;;  %v4436_v11 = vshll.u32 %v8984_v32, 30  ;;  %v4530_v50 = vsel %vm4522_vm9, %v8978_v2, %v8980_v20 }
 0x45c   : > { %v4532_v37 = vsel %vm4524_vm11, %v8982_v7, %v4531_v40  ;;  %v4535_v62 = vsel %vm4525_vm10, %v4521_v13, 1326507024  ;;  %v9002_v29 = vshll.u32 %v4498_v56, 8  ;;  %v4534_v25 = vsel %vm4522_vm9, %v8980_v20, %v8982_v7 }
 0x45d   : > { %v4311_v6 = vmul.f32 %v4310_v10, %v4308_v9  ;;  %v4318_v47 = vmul.f32 %v4317_v36, %v4308_v9  ;;  %v9004_v60 = vsub.s32 %v4433_v24, %v4436_v11  ;;  %v9016_v49 = vadd.f32 %v9013_v18, %v420_v17 }
 0x45e   : > { %v4325_v53 = vand.u32 3, %v4324_v34  ;;  %vm4523_vm12 = vcmp.lt.s32.totalorder %v8952_v46, 2  ;;  %v4536_v44 = vsel %vm4524_vm11, %v4518_v41, %v4535_v62  ;;  %v9024_v12 = vadd.f32 %v9013_v18, %v419_v31 }
 0x45f   : > { %v4312_v5 = vadd.f32 -0.4999988, %v4311_v6  ;;  %v4319_v4 = vadd.f32 -0.16666654, %v4318_v47  ;;  %vm4438_vm14 = vcmp.lt.s32.totalorder %v9004_v60, 0  ;;  %v4439_v48 = vsub.s32 0, %v9004_v60 }
 0x460   : > { %v4533_v63 = vsel %vm4523_vm12, %v4530_v50, %v4532_v37  ;;  %v4537_v17 = vsel %vm4523_vm12, %v4534_v25, %v4536_v44  ;;  %v4540_v22 = vshrl.u32 %v9002_v29, 16  ;;  %vm4323_vm13 = vweird.f32 %v8661_v26 }
 0x461   : > { %v4313_v27 = vmul.f32 %v4312_v5, %v4308_v9  ;;  %v4320_v54 = vmul.f32 %v4319_v4, %v4308_v9  ;;  %v4440_v38 = vsel %vm4438_vm14, %v4439_v48, %v9004_v60  ;;  %v4541_v24 = vand.u32 65535, %v4537_v17 }
 0x462   : > { %vm4326_vm0 = vcmp.lt.s32.totalorder %v4325_v53, 2  ;;  %v4441_v42 = vclz %v4440_v38  ;;  %v4539_v14 = vand.u32 65535, %v9002_v29  ;;  %v4542_v19 = vshrl.u32 %v4537_v17, 16 }
 0x463   : > { %v4314_v45 = vadd.f32 1.0, %v4313_v27  ;;  %v4321_v33 = vadd.f32 1.0, %v4320_v54  ;;  %v9034_v59 = vmul.u32 %v4541_v24, %v4540_v22  ;;  %v4564_v23 = vshrl.u32 %v4533_v63, 16 }
 0x464   : > { %vm4327_vm15 = vcmp.eq.s32.totalorder %v4325_v53, 0  ;;  %vm4330_vm1 = vcmp.eq.s32.totalorder %v4325_v53, 2  ;;  %v4429_v9 = vadd.s32 %v8929_v43, %v8923_v30  ;;  %v5620_v56 = vadd.s32 4294967294, %v4441_v42 }
 0x465   : > { %v4322_v41 = vmul.f32 %v4321_v33, %v8970_v21  ;;  %v4331_v13 = vxor.u32 2147483648, %v4314_v45  ;;  %v4544_v8 = vmul.u32 %v4542_v19, %v4539_v14  ;;  %v4563_v15 = vand.u32 65535, %v4533_v63 }
 0x466   : > { %vm5621_vm2 = vcmp.lt.s32.totalorder %v5620_v56, 0  ;;  %v4543_v31 = vmul.u32 %v4541_v24, %v4539_v14  ;;  %v4546_v34 = vmul.u32 %v4542_v19, %v4540_v22  ;;  %v4549_v40 = vshll.u32 %v9034_v59, 16 }
 0x467   : > { %v4328_v10 = vxor.u32 2147483648, %v4322_v41  ;;  %v4444_v36 = vsel %vm5621_vm2, 0, %v5620_v56  ;;  %v4547_v11 = vshll.u32 %v4544_v8, 16  ;;  %v4566_v50 = vmul.u32 %v4564_v23, %v4539_v14 }
 0x468   : > { %v4332_v37 = vsel %vm4330_vm1, %v4331_v13, %v4322_v41  ;;  %vm4337_vm4 = vcmp.lt.s32.totalorder %v8655_v28, 0  ;;  %v4445_v62 = vsub.s32 32, %v4444_v36  ;;  %v4446_v30 = vshll.u32 %v9004_v60, %v4444_v36 }
 0x469   : > { %v4449_v43 = vsub.s32 4294967266, %v4444_v36  ;;  %v4329_v21 = vsel %vm4327_vm15, %v4314_v45, %v4328_v10  ;;  %vm4551_vm3 = vc.u32 %v4543_v31, %v4547_v11  ;;  %v4553_v6 = vadd.s32 %v4547_v11, %v4543_v31 }
 0x46a   : > { %v4567_v47 = vmul.u32 %v4563_v15, %v4540_v22  ;;  %v4333_v25 = vsel %vm4326_vm0, %v4329_v21, %v4332_v37  ;;  %v4447_v44 = vshrl.u32 %v4429_v9, %v4445_v62  ;;  %v4552_v4 = vsel %vm4551_vm3, 1, %v5789_v0 }
 0x46b   : > { %v4450_v5 = vadd.s32 127, %v4449_v43  ;;  %v4334_v48 = vsel %vm4323_vm13, nan, %v4333_v25  ;;  %v4554_v63 = vadd.s32 %v4552_v4, %v4546_v34  ;;  %vm4555_vm6 = vc.u32 %v4553_v6, %v4549_v40  ;;  %v377_v25 = vpop.permute.xlu2 %376 }
 0x46c   : > { %v4565_v17 = vmul.u32 %v4563_v15, %v4539_v14  ;;  %vm9049_vm5 = vcmp.le.f32.partialorder %v4335_v16, 0.7853982  ;;  %v4448_v27 = vor.u32 %v4447_v44, %v4446_v30  ;;  %v4556_v53 = vsel %vm4555_vm6, 1, %v5789_v0  ;;  %5444 = vst [vmem:[%s6199_s9 + $0xc0] sm:$0xff] %v4334_v48 }
 0x46d   : > { %v4451_v54 = vshll.u32 %v4450_v5, 23  ;;  %v4569_v38 = vshll.u32 %v4566_v50, 16  ;;  %v4459_v24 = vsub.s32 4, %v8984_v32  ;;  %v4548_v42 = vshrl.u32 %v4544_v8, 16 }
 0x46e   : > { %v4558_v26 = vadd.s32 %v4556_v53, %v4554_v63  ;;  %v4568_v19 = vmul.u32 %v4564_v23, %v4540_v22  ;;  %v4571_v33 = vshll.u32 %v4567_v47, 16  ;;  %v4455_v9 = vcvt.s32.f32 %v4448_v27 }
 0x46f   : > { %v4452_v45 = vor.u32 4788187, %v4451_v54  ;;  %vm4573_vm8 = vc.u32 %v4565_v17, %v4569_v38  ;;  %v4575_v14 = vadd.s32 %v4569_v38, %v4565_v17  ;;  %v4527_v16 = vsel %vm4525_vm10, %v8982_v7, 2102212464 }
 0x470   : > { %v4559_v56 = vadd.s32 %v4558_v26, %v4548_v42  ;;  %v4574_v41 = vsel %vm4573_vm8, 1, %v5789_v0  ;;  %v4645_v31 = vand.u32 2147483647, %v9024_v12  ;;  %v4460_v22 = vsel %vm4337_vm4, %v4459_v24, %v8984_v32 }
 0x471   : > { %v4453_v13 = vand.u32 2147483647, %v4452_v45  ;;  %v4576_v15 = vadd.s32 %v4574_v41, %v4568_v19  ;;  %vm4577_vm7 = vc.u32 %v4575_v14, %v4571_v33  ;;  %v4506_v23 = vshrl.u32 %v5790_v52, %v8950_v39 }
 0x472   : > { %v4550_v8 = vshrl.u32 %v9034_v59, 16  ;;  %v4578_v34 = vsel %vm4577_vm7, 1, %v5789_v0  ;;  %v4570_v40 = vshrl.u32 %v4566_v50, 16  ;;  %v4648_v36 = vand.u32 2139095040, %v9024_v12 }
 0x473   : > { %v4456_v7 = vmul.f32 %v4455_v9, %v4453_v13  ;;  %v4580_v10 = vadd.s32 %v4578_v34, %v4576_v15  ;;  %v4526_v11 = vsel %vm4522_vm9, %v4506_v23, %v8978_v2  ;;  %v4528_v32 = vsel %vm4524_vm11, %v8980_v20, %v4527_v16 }
 0x474   : > { %v4560_v37 = vadd.s32 %v4559_v56, %v4550_v8  ;;  %v4572_v62 = vshrl.u32 %v4567_v47, 16  ;;  %v4649_v59 = vshrl.u32 %v4648_v36, 23  ;;  %v4652_v43 = vand.u32 8388607, %v4645_v31 }
 0x475   : > { %v4457_v39 = vxor.u32 2147483648, %v4456_v7  ;;  %v4581_v30 = vadd.s32 %v4580_v10, %v4570_v40  ;;  %v4462_v50 = vsel %vm9049_vm5, 0, %v4460_v22  ;;  %v4579_v21 = vadd.s32 %v4575_v14, %v4571_v33 }
 0x476   : > { %v4803_v6 = vand.u32 2139095040, %v9016_v49  ;;  %v4529_v20 = vsel %vm4523_vm12, %v4526_v11, %v4528_v32  ;;  %v5625_v44 = vadd.s32 4294967169, %v4649_v59  ;;  %v4653_v63 = vor.u32 8388608, %v4652_v43 }
 0x477   : > { %v4458_v2 = vsel %vm4337_vm4, %v4457_v39, %v4456_v7  ;;  %v4582_v47 = vadd.s32 %v4581_v30, %v4572_v62  ;;  %vm4585_vm10 = vc.u32 %v4560_v37, %v4579_v21  ;;  %v421_v27 = vmul.f32 %v8934_v51, %v377_v25 }
 0x478   : > { %v4461_v5 = vsel %vm9049_vm5, %v8655_v28, %v4458_v2  ;;  %v4655_v17 = vadd.s32 1, %v5625_v44  ;;  %v4479_v54 = vadd.s32 3, %v4462_v50  ;;  %v4583_v53 = vmul.u32 %v9002_v29, %v4529_v20 }
 0x479   : > { %v4463_v4 = vmul.f32 %v4461_v5, %v4461_v5  ;;  %v4586_v48 = vadd.s32 1, %v4582_v47  ;;  %v4804_v38 = vshrl.u32 %v4803_v6, 23  ;;  %v4800_v60 = vand.u32 2147483647, %v9016_v49 }
 0x47a   : > { %vm4656_vm9 = vcmp.gt.s32.totalorder %v4655_v17, 0  ;;  %v9090_v9 = vshll.u32 %v4653_v63, 8  ;;  %v4480_v16 = vand.u32 3, %v4479_v54  ;;  %v9093_v13 = vadd.f32 %v9013_v18, %v421_v27 }
 0x47b   : > { %v4464_v24 = vmul.f32 -0.001358992, %v4463_v4  ;;  %v4471_v46 = vmul.f32 -0.00019511016, %v4463_v4  ;;  %v4587_v42 = vsel %vm4585_vm10, %v4586_v48, %v4582_v47  ;;  %v4657_v19 = vsel %vm4656_vm9, %v4655_v17, 0 }
 0x47c   : > { %v4588_v26 = vadd.s32 %v4587_v42, %v4583_v53  ;;  %v4659_v14 = vand.u32 31, %v4657_v19  ;;  %v5628_v41 = vadd.s32 4294967169, %v4804_v38  ;;  %vm4492_vm11 = vcmp.lt.s32.totalorder %v8727_v35, 0 }
 0x47d   : > { %v4465_v45 = vadd.f32 0.041655596, %v4464_v24  ;;  %v4472_v33 = vadd.f32 0.008332121, %v4471_v46  ;;  %v9096_v23 = vadd.s32 %v4579_v21, %v4560_v37  ;;  %v9100_v34 = vand.u32 8388607, %v4800_v60 }
 0x47e   : > { %v4589_v56 = vadd.s32 536870912, %v4588_v26  ;;  %v4660_v22 = vsub.s32 32, %v4659_v14  ;;  %v9103_v10 = vand.u32 65535, %v9090_v9  ;;  %v9106_v36 = vshrl.u32 %v9090_v9, 16 }
 0x47f   : > { %v4466_v29 = vmul.f32 %v4465_v45, %v4463_v4  ;;  %v4473_v15 = vmul.f32 %v4472_v33, %v4463_v4  ;;  %vm4482_vm12 = vcmp.eq.s32.totalorder %v4480_v16, 0  ;;  %vm4485_vm14 = vcmp.eq.s32.totalorder %v4480_v16, 2 }
 0x480   : > { %v4590_v8 = vshrl.u32 %v4589_v56, 30  ;;  %v9108_v32 = vshrl.u32 %v4657_v19, 5  ;;  %v4663_v37 = vshrl.u32 %v5791_v55, %v4660_v22  ;;  %v9111_v62 = vadd.s32 1, %v5628_v41 }
 0x481   : > { %v4467_v7 = vadd.f32 -0.4999988, %v4466_v29  ;;  %v4474_v40 = vadd.f32 -0.16666654, %v4473_v15  ;;  %vm4481_vm13 = vcmp.lt.s32.totalorder %v4480_v16, 2  ;;  %v4662_v59 = vshll.u32 %v5790_v52, %v4659_v14 }
 0x482   : > { %v4591_v11 = vshll.u32 %v4590_v8, 30  ;;  %v4666_v43 = vshrl.u32 %v5792_v58, %v4660_v22  ;;  %vm4478_vm0 = vweird.f32 %v8655_v28  ;;  %v4665_v21 = vshll.u32 %v5791_v55, %v4659_v14 }
 0x483   : > { %v4468_v39 = vmul.f32 %v4467_v7, %v4463_v4  ;;  %v4475_v30 = vmul.f32 %v4474_v40, %v4463_v4  ;;  %v4669_v6 = vshrl.u32 %v5793_v61, %v4660_v22  ;;  %v4672_v25 = vshrl.u32 %v5794_v1, %v4660_v22 }
 0x484   : > { %v9116_v50 = vsub.s32 %v4588_v26, %v4591_v11  ;;  %v4614_v47 = vsub.s32 4, %v4590_v8  ;;  %v4668_v44 = vshll.u32 %v5792_v58, %v4659_v14  ;;  %v4664_v48 = vor.u32 %v4663_v37, %v4662_v59 }
 0x485   : > { %v4469_v2 = vadd.f32 1.0, %v4468_v39  ;;  %v4476_v20 = vadd.f32 1.0, %v4475_v30  ;;  %v4671_v63 = vshll.u32 %v5793_v61, %v4659_v14  ;;  %v4667_v54 = vor.u32 %v4666_v43, %v4665_v21 }
 0x486   : > { %vm4593_vm15 = vcmp.lt.s32.totalorder %v9116_v50, 0  ;;  %v4594_v4 = vsub.s32 0, %v9116_v50  ;;  %v4675_v53 = vshrl.u32 %v5795_v3, %v4660_v22  ;;  %v4670_v24 = vor.u32 %v4669_v6, %v4668_v44 }
 0x487   : > { %v4477_v17 = vmul.f32 %v4476_v20, %v4461_v5  ;;  %v4486_v27 = vxor.u32 2147483648, %v4469_v2  ;;  %v4673_v46 = vor.u32 %v4672_v25, %v4671_v63  ;;  %v4674_v42 = vshll.u32 %v5794_v1, %v4659_v14 }
 0x488   : > { %v4595_v38 = vsel %vm4593_vm15, %v4594_v4, %v9116_v50  ;;  %v9130_v45 = vsel %vm4492_vm11, %v4614_v47, %v4590_v8  ;;  %v4661_v33 = vshrl.u32 %v5790_v52, %v4660_v22  ;;  %vm9135_vm1 = vcmp.le.f32.partialorder %v4490_v57, 0.7853982 }
 0x489   : > { %v4483_v26 = vxor.u32 2147483648, %v4477_v17  ;;  %v4596_v19 = vclz %v4595_v38  ;;  %v4676_v56 = vor.u32 %v4675_v53, %v4674_v42  ;;  %vm4677_vm2 = vcmp.lt.s32.totalorder %v9108_v32, 1 }
 0x48a   : > { %vm4678_vm4 = vcmp.lt.s32.totalorder %v9108_v32, 2  ;;  %vm4679_vm3 = vcmp.lt.s32.totalorder %v9108_v32, 3  ;;  %v4487_v41 = vsel %vm4485_vm14, %v4486_v27, %v4477_v17  ;;  %vm4680_vm6 = vcmp.lt.s32.totalorder %v9108_v32, 4 }
 0x48b   : > { %v4484_v14 = vsel %vm4482_vm12, %v4469_v2, %v4483_v26  ;;  %v5623_v29 = vadd.s32 4294967294, %v4596_v19  ;;  %v4682_v15 = vsel %vm4680_vm6, %v4670_v24, 2102212464  ;;  %v4685_v22 = vsel %vm4677_vm2, %v4664_v48, %v4667_v54 }
 0x48c   : > { %v4488_v57 = vsel %vm4481_vm13, %v4484_v14, %v4487_v41  ;;  %v4686_v8 = vsel %vm4680_vm6, %v4673_v46, 920167782  ;;  %v4681_v40 = vsel %vm4677_vm2, %v4661_v33, %v4664_v48  ;;  %v4689_v39 = vsel %vm4677_vm2, %v4667_v54, %v4670_v24 }
 0x48d   : > { %v4489_v7 = vsel %vm4478_vm0, nan, %v4488_v57  ;;  %vm5624_vm5 = vcmp.lt.s32.totalorder %v5623_v29, 0  ;;  %v4687_v11 = vsel %vm4679_vm3, %v4670_v24, %v4686_v8  ;;  %v4690_v30 = vsel %vm4680_vm6, %v4676_v56, 1326507024 }
 0x48e   : > { %v4599_v37 = vsel %vm5624_vm5, 0, %v5623_v29  ;;  %v4688_v16 = vsel %vm4678_vm4, %v4685_v22, %v4687_v11  ;;  %5445 = vst [vmem:[%s6199_s9 + $0xc8] sm:$0xff] %v4489_v7  ;;  %v4683_v28 = vsel %vm4679_vm3, %v4667_v54, %v4682_v15  ;;  %v4691_v21 = vsel %vm4679_vm3, %v4673_v46, %v4690_v30 }
 0x48f   : > { %v4600_v59 = vsub.s32 32, %v4599_v37  ;;  %v4604_v43 = vsub.s32 4294967266, %v4599_v37  ;;  %v4601_v6 = vshll.u32 %v9116_v50, %v4599_v37  ;;  %v4692_v25 = vsel %vm4678_vm4, %v4689_v39, %v4691_v21 }
 0x490   : > { %v4718_v2 = vand.u32 65535, %v4688_v16  ;;  %v4719_v20 = vshrl.u32 %v4688_v16, 16  ;;  %v4696_v4 = vand.u32 65535, %v4692_v25  ;;  %v4697_v48 = vshrl.u32 %v4692_v25, 16 }
 0x491   : > { %v4602_v47 = vshrl.u32 %v9096_v23, %v4600_v59  ;;  %v4605_v44 = vadd.s32 127, %v4604_v43  ;;  %v4808_v27 = vor.u32 8388608, %v9100_v34  ;;  %vm4811_vm8 = vcmp.gt.s32.totalorder %v9111_v62, 0 }
 0x492   : > { %v4721_v63 = vmul.u32 %v4719_v20, %v9103_v10  ;;  %v4722_v17 = vmul.u32 %v4718_v2, %v9106_v36  ;;  %v4617_v53 = vsel %vm9135_vm1, 0, %v9130_v45  ;;  %v4699_v38 = vmul.u32 %v4697_v48, %v9103_v10 }
 0x493   : > { %v4603_v54 = vor.u32 %v4602_v47, %v4601_v6  ;;  %v4606_v50 = vshll.u32 %v4605_v44, 23  ;;  %v9177_v23 = vsel %vm4678_vm4, %v4681_v40, %v4683_v28  ;;  %v4700_v24 = vmul.u32 %v4696_v4, %v9106_v36 }
 0x494   : > { %v4720_v46 = vmul.u32 %v4718_v2, %v9103_v10  ;;  %v4724_v42 = vshll.u32 %v4721_v63, 16  ;;  %v4698_v19 = vmul.u32 %v4696_v4, %v9103_v10  ;;  %v4702_v33 = vshll.u32 %v4699_v38, 16 }
 0x495   : > { %v4607_v26 = vor.u32 4788187, %v4606_v50  ;;  %v4723_v56 = vmul.u32 %v4719_v20, %v9106_v36  ;;  %v4610_v14 = vcvt.s32.f32 %v4603_v54  ;;  %v4701_v45 = vmul.u32 %v4697_v48, %v9106_v36 }
 0x496   : > { %v4704_v41 = vshll.u32 %v4700_v24, 16  ;;  %v4726_v29 = vshll.u32 %v4722_v17, 16  ;;  %vm4706_vm7 = vc.u32 %v4698_v19, %v4702_v33  ;;  %v4708_v32 = vadd.s32 %v4702_v33, %v4698_v19 }
 0x497   : > { %v4608_v57 = vand.u32 2147483647, %v4607_v26  ;;  %vm4728_vm10 = vc.u32 %v4720_v46, %v4724_v42  ;;  %v4707_v15 = vsel %vm4706_vm7, 1, %v5789_v0  ;;  %v4730_v8 = vadd.s32 %v4724_v42, %v4720_v46 }
 0x498   : > { %v4729_v22 = vsel %vm4728_vm10, 1, %v5789_v0  ;;  %v4812_v10 = vsel %vm4811_vm8, %v9111_v62, 0  ;;  %v4709_v40 = vadd.s32 %v4707_v15, %v4701_v45  ;;  %vm4710_vm9 = vc.u32 %v4708_v32, %v4704_v41 }
 0x499   : > { %v4611_v7 = vmul.f32 %v4610_v14, %v4608_v57  ;;  %v4731_v11 = vadd.s32 %v4729_v22, %v4723_v56  ;;  %v4703_v36 = vshrl.u32 %v4699_v38, 16  ;;  %v4711_v37 = vsel %vm4710_vm9, 1, %v5789_v0 }
 0x49a   : > { %vm4732_vm12 = vc.u32 %v4730_v8, %v4726_v29  ;;  %v4958_v16 = vand.u32 2139095040, %v9093_v13  ;;  %v4713_v30 = vadd.s32 %v4711_v37, %v4709_v40  ;;  %v4814_v43 = vand.u32 31, %v4812_v10 }
 0x49b   : > { %v4612_v39 = vxor.u32 2147483648, %v4611_v7  ;;  %v4733_v59 = vsel %vm4732_vm12, 1, %v5789_v0  ;;  %v4634_v28 = vadd.s32 3, %v4617_v53  ;;  %v4725_v21 = vshrl.u32 %v4721_v63, 16 }
 0x49c   : > { %v4735_v6 = vadd.s32 %v4733_v59, %v4731_v11  ;;  %v4738_v62 = vmul.u32 %v9090_v9, %v9177_v23  ;;  %v4705_v2 = vshrl.u32 %v4700_v24, 16  ;;  %v4714_v20 = vadd.s32 %v4713_v30, %v4703_v36 }
 0x49d   : > { %v4613_v25 = vsel %vm4492_vm11, %v4612_v39, %v4611_v7  ;;  %v9196_v47 = vsub.s32 32, %v4814_v43  ;;  %v4727_v4 = vshrl.u32 %v4722_v17, 16  ;;  %v9201_v48 = vadd.s32 %v4730_v8, %v4726_v29 }
 0x49e   : > { %v4616_v44 = vsel %vm9135_vm1, %v8727_v35, %v4613_v25  ;;  %v4736_v54 = vadd.s32 %v4735_v6, %v4725_v21  ;;  %v9203_v50 = vadd.s32 %v4714_v20, %v4705_v2  ;;  %v9205_v53 = vshrl.u32 %v4812_v10, 5 }
 0x49f   : > { %v4618_v63 = vmul.f32 %v4616_v44, %v4616_v44  ;;  %v4818_v9 = vshrl.u32 %v5791_v55, %v9196_v47  ;;  %v4817_v23 = vshll.u32 %v5790_v52, %v4814_v43  ;;  %v4821_v24 = vshrl.u32 %v5792_v58, %v9196_v47 }
 0x4a0   : > { %v4737_v38 = vadd.s32 %v4736_v54, %v4727_v4  ;;  %v4824_v5 = vshrl.u32 %v5793_v61, %v9196_v47  ;;  %vm4740_vm11 = vc.u32 %v9203_v50, %v9201_v48  ;;  %v4820_v42 = vshll.u32 %v5791_v55, %v4814_v43 }
 0x4a1   : > { %v4619_v17 = vmul.f32 -0.001358992, %v4618_v63  ;;  %v4626_v46 = vmul.f32 -0.00019511016, %v4618_v63  ;;  %v9217_v19 = vor.u32 %v4818_v9, %v4817_v23  ;;  %v4823_v33 = vshll.u32 %v5792_v58, %v4814_v43 }
 0x4a2   : > { %v4741_v26 = vadd.s32 1, %v4737_v38  ;;  %v4826_v56 = vshll.u32 %v5793_v61, %v4814_v43  ;;  %v9221_v41 = vor.u32 %v4821_v24, %v4820_v42  ;;  %v4827_v29 = vshrl.u32 %v5794_v1, %v9196_v47 }
 0x4a3   : > { %v4620_v14 = vadd.f32 0.041655596, %v4619_v17  ;;  %v4627_v45 = vadd.f32 0.008332121, %v4626_v46  ;;  %v4825_v32 = vor.u32 %v4824_v5, %v4823_v33  ;;  %v4829_v15 = vshll.u32 %v5794_v1, %v4814_v43 }
 0x4a4   : > { %v4742_v57 = vsel %vm4740_vm11, %v4741_v26, %v4737_v38  ;;  %v4830_v22 = vshrl.u32 %v5795_v3, %v9196_v47  ;;  %v4828_v40 = vor.u32 %v4827_v29, %v4826_v56  ;;  %v4635_v11 = vand.u32 3, %v4634_v28 }
 0x4a5   : > { %v4621_v8 = vmul.f32 %v4620_v14, %v4618_v63  ;;  %v4628_v10 = vmul.f32 %v4627_v45, %v4618_v63  ;;  %v4743_v7 = vadd.s32 %v4742_v57, %v4738_v62  ;;  %vm4832_vm14 = vcmp.lt.s32.totalorder %v9205_v53, 1 }
 0x4a6   : > { %v4831_v36 = vor.u32 %v4830_v22, %v4829_v15  ;;  %vm4834_vm13 = vcmp.lt.s32.totalorder %v9205_v53, 3  ;;  %vm4835_vm0 = vcmp.lt.s32.totalorder %v9205_v53, 4  ;;  %v4840_v59 = vsel %vm4832_vm14, %v9217_v19, %v9221_v41 }
 0x4a7   : > { %v4622_v37 = vadd.f32 -0.4999988, %v4621_v8  ;;  %v4629_v39 = vadd.f32 -0.16666654, %v4628_v10  ;;  %v4744_v30 = vadd.s32 536870912, %v4743_v7  ;;  %v4844_v28 = vsel %vm4832_vm14, %v9221_v41, %v4825_v32 }
 0x4a8   : > { %v4841_v43 = vsel %vm4835_vm0, %v4828_v40, 920167782  ;;  %v4845_v21 = vsel %vm4835_vm0, %v4831_v36, 1326507024  ;;  %vm4633_vm15 = vweird.f32 %v8727_v35  ;;  %vm4833_vm1 = vcmp.lt.s32.totalorder %v9205_v53, 2 }
 0x4a9   : > { %v4623_v6 = vmul.f32 %v4622_v37, %v4618_v63  ;;  %v4630_v62 = vmul.f32 %v4629_v39, %v4618_v63  ;;  %v9242_v25 = vshrl.u32 %v4744_v30, 30  ;;  %v4842_v2 = vsel %vm4834_vm13, %v4825_v32, %v4841_v43 }
 0x4aa   : > { %v4846_v20 = vsel %vm4834_vm13, %v4828_v40, %v4845_v21  ;;  %v9252_v4 = vshll.u32 %v4808_v27, 8  ;;  %v4843_v38 = vsel %vm4833_vm1, %v4840_v59, %v4842_v2  ;;  %vm4636_vm2 = vcmp.lt.s32.totalorder %v4635_v11, 2 }
 0x4ab   : > { %v4624_v54 = vadd.f32 1.0, %v4623_v6  ;;  %v4631_v9 = vadd.f32 1.0, %v4630_v62  ;;  %v4746_v63 = vshll.u32 %v9242_v25, 30  ;;  %vm4637_vm4 = vcmp.eq.s32.totalorder %v4635_v11, 0 }
 0x4ac   : > { %v4847_v23 = vsel %vm4833_vm1, %v4844_v28, %v4846_v20  ;;  %v4959_v24 = vshrl.u32 %v4958_v16, 23  ;;  %vm4640_vm3 = vcmp.eq.s32.totalorder %v4635_v11, 2  ;;  %v4849_v17 = vand.u32 65535, %v9252_v4 }
 0x4ad   : > { %v4632_v5 = vmul.f32 %v4631_v9, %v4616_v44  ;;  %v4641_v34 = vxor.u32 2147483648, %v4624_v54  ;;  %v4747_v27 = vsub.s32 %v4743_v7, %v4746_v63  ;;  %v4851_v46 = vand.u32 65535, %v4847_v23 }
 0x4ae   : > { %v4852_v42 = vshrl.u32 %v4847_v23, 16  ;;  %v4874_v26 = vshrl.u32 %v4843_v38, 16  ;;  %v4850_v14 = vshrl.u32 %v9252_v4, 16  ;;  %v4816_v45 = vshrl.u32 %v5790_v52, %v9196_v47 }
 0x4af   : > { %v4638_v33 = vxor.u32 2147483648, %v4632_v5  ;;  %vm4748_vm6 = vcmp.lt.s32.totalorder %v4747_v27, 0  ;;  %v4749_v56 = vsub.s32 0, %v4747_v27  ;;  %v4837_v16 = vsel %vm4835_vm0, %v4825_v32, 2102212464 }
 0x4b0   : > { %v4854_v44 = vmul.u32 %v4852_v42, %v4849_v17  ;;  %v4873_v29 = vand.u32 65535, %v4843_v38  ;;  %v4642_v15 = vsel %vm4640_vm3, %v4641_v34, %v4632_v5  ;;  %v4855_v8 = vmul.u32 %v4851_v46, %v4850_v14 }
 0x4b1   : > { %v4639_v57 = vsel %vm4637_vm4, %v4624_v54, %v4638_v33  ;;  %v4750_v22 = vsel %vm4748_vm6, %v4749_v56, %v4747_v27  ;;  %v4876_v36 = vmul.u32 %v4874_v26, %v4849_v17  ;;  %v4739_v32 = vadd.s32 %v9201_v48, %v9203_v50 }
 0x4b2   : > { %v4643_v10 = vsel %vm4636_vm2, %v4639_v57, %v4642_v15  ;;  %v4751_v7 = vclz %v4750_v22  ;;  %v4857_v40 = vshll.u32 %v4854_v44, 16  ;;  %v4836_v37 = vsel %vm4832_vm14, %v4816_v45, %v9217_v19  ;;  %v387_v57 = vpop.permute.xlu1 %386 }
 0x4b3   : > { %v4644_v47 = vsel %vm4633_vm15, nan, %v4643_v10  ;;  %v4853_v39 = vmul.u32 %v4851_v46, %v4849_v17  ;;  %v4838_v11 = vsel %vm4834_vm13, %v9221_v41, %v4837_v16  ;;  %v4856_v59 = vmul.u32 %v4852_v42, %v4850_v14 }
 0x4b4   : > { %v5626_v30 = vadd.s32 4294967294, %v4751_v7  ;;  %v4875_v43 = vmul.u32 %v4873_v29, %v4849_v17  ;;  %5446 = vst [vmem:[%s6199_s9 + $0xd0] sm:$0xff] %v4644_v47  ;;  %v4859_v28 = vshll.u32 %v4855_v8, 16  ;;  %v4877_v21 = vmul.u32 %v4873_v29, %v4850_v14 }
 0x4b5   : > { %vm4861_vm5 = vc.u32 %v4853_v39, %v4857_v40  ;;  %v4863_v35 = vadd.s32 %v4857_v40, %v4853_v39  ;;  %v4858_v6 = vshrl.u32 %v4854_v44, 16  ;;  %v4879_v50 = vshll.u32 %v4876_v36, 16 }
 0x4b6   : > { %vm5627_vm8 = vcmp.lt.s32.totalorder %v5626_v30, 0  ;;  %v4862_v48 = vsel %vm4861_vm5, 1, %v5789_v0  ;;  %v4878_v2 = vmul.u32 %v4874_v26, %v4850_v14  ;;  %v4881_v9 = vshll.u32 %v4877_v21, 16 }
 0x4b7   : > { %v4754_v62 = vsel %vm5627_vm8, 0, %v5626_v30  ;;  %v4864_v19 = vadd.s32 %v4862_v48, %v4856_v59  ;;  %vm4865_vm7 = vc.u32 %v4863_v35, %v4859_v28  ;;  %vm4883_vm10 = vc.u32 %v4875_v43, %v4879_v50 }
 0x4b8   : > { %v4755_v20 = vsub.s32 32, %v4754_v62  ;;  %v4759_v54 = vsub.s32 4294967266, %v4754_v62  ;;  %v4866_v41 = vsel %vm4865_vm7, 1, %v5789_v0  ;;  %v4756_v63 = vshll.u32 %v4747_v27, %v4754_v62 }
 0x4b9   : > { %v4868_v38 = vadd.s32 %v4866_v41, %v4864_v19  ;;  %v4885_v23 = vadd.s32 %v4879_v50, %v4875_v43  ;;  %v4884_v17 = vsel %vm4883_vm10, 1, %v5789_v0  ;;  %v5631_v46 = vadd.s32 4294967169, %v4959_v24 }
 0x4ba   : > { %v4757_v5 = vshrl.u32 %v4739_v32, %v4755_v20  ;;  %v4760_v34 = vadd.s32 127, %v4759_v54  ;;  %v4769_v42 = vsub.s32 4, %v9242_v25  ;;  %v4886_v56 = vadd.s32 %v4884_v17, %v4878_v2 }
 0x4bb   : > { %v4869_v33 = vadd.s32 %v4868_v38, %v4858_v6  ;;  %vm4887_vm9 = vc.u32 %v4885_v23, %v4881_v9  ;;  %v4860_v45 = vshrl.u32 %v4855_v8, 16  ;;  %vm4647_vm12 = vcmp.lt.s32.totalorder %v9024_v12, 0 }
 0x4bc   : > { %v4758_v26 = vor.u32 %v4757_v5, %v4756_v63  ;;  %v4761_v14 = vshll.u32 %v4760_v34, 23  ;;  %v4888_v16 = vsel %vm4887_vm9, 1, %v5789_v0  ;;  %v4880_v27 = vshrl.u32 %v4876_v36, 16  ;;  %v382_v34 = vpop.permute.xlu0 %381 }
 0x4bd   : > { %v4890_v44 = vadd.s32 %v4888_v16, %v4886_v56  ;;  %v4965_v29 = vadd.s32 1, %v5631_v46  ;;  %v4839_v24 = vsel %vm4833_vm1, %v4836_v37, %v4838_v11  ;;  %v9289_v22 = vadd.s32 %v4869_v33, %v4860_v45 }
 0x4be   : > { %v4762_v15 = vor.u32 4788187, %v4761_v14  ;;  %v4955_v10 = vand.u32 2147483647, %v9093_v13  ;;  %v4770_v8 = vsel %vm4647_vm12, %v4769_v42, %v9242_v25  ;;  %v4882_v7 = vshrl.u32 %v4877_v21, 16 }
 0x4bf   : > { %v4891_v40 = vadd.s32 %v4890_v44, %v4880_v27  ;;  %vm4966_vm11 = vcmp.gt.s32.totalorder %v4965_v29, 0  ;;  %v4765_v36 = vcvt.s32.f32 %v4758_v26  ;;  %v9295_v32 = vadd.s32 %v4885_v23, %v4881_v9 }
 0x4c0   : > { %v4763_v47 = vand.u32 2147483647, %v4762_v15  ;;  %v4967_v39 = vsel %vm4966_vm11, %v4965_v29, 0  ;;  %v423_v30 = vmul.f32 %v8934_v51, %v387_v57  ;;  %vm9300_vm14 = vcmp.le.f32.partialorder %v4645_v31, 0.7853982 }
 0x4c1   : > { %v4892_v53 = vadd.s32 %v4891_v40, %v4882_v7  ;;  %v4969_v37 = vand.u32 31, %v4967_v39  ;;  %v4893_v25 = vmul.u32 %v9252_v4, %v4839_v24  ;;  %vm4895_vm13 = vc.u32 %v9289_v22, %v9295_v32 }
 0x4c2   : > { %v4766_v59 = vmul.f32 %v4765_v36, %v4763_v47  ;;  %v4772_v43 = vsel %vm9300_vm14, 0, %v4770_v8  ;;  %v4962_v35 = vand.u32 8388607, %v4955_v10  ;;  %v9313_v31 = vshrl.u32 %v4967_v39, 5 }
 0x4c3   : > { %v4896_v28 = vadd.s32 1, %v4892_v53  ;;  %v9311_v21 = vsub.s32 32, %v4969_v37  ;;  %v4972_v48 = vshll.u32 %v5790_v52, %v4969_v37  ;;  %v4975_v50 = vshll.u32 %v5791_v55, %v4969_v37 }
 0x4c4   : > { %v4767_v6 = vxor.u32 2147483648, %v4766_v59  ;;  %v4981_v2 = vshll.u32 %v5793_v61, %v4969_v37  ;;  %v4978_v38 = vshll.u32 %v5792_v58, %v4969_v37  ;;  %v4984_v23 = vshll.u32 %v5794_v1, %v4969_v37 }
 0x4c5   : > { %v4897_v4 = vsel %vm4895_vm13, %v4896_v28, %v4892_v53  ;;  %v4973_v62 = vshrl.u32 %v5791_v55, %v9311_v21  ;;  %v4976_v19 = vshrl.u32 %v5792_v58, %v9311_v21  ;;  %v4979_v41 = vshrl.u32 %v5793_v61, %v9311_v21 }
 0x4c6   : > { %v4768_v20 = vsel %vm4647_vm12, %v4767_v6, %v4766_v59  ;;  %v4898_v54 = vadd.s32 %v4897_v4, %v4893_v25  ;;  %v4982_v9 = vshrl.u32 %v5794_v1, %v9311_v21  ;;  %v4985_v5 = vshrl.u32 %v5795_v3, %v9311_v21 }
 0x4c7   : > { %v4771_v63 = vsel %vm9300_vm14, %v9024_v12, %v4768_v20  ;;  %v4963_v42 = vor.u32 8388608, %v4962_v35  ;;  %v9335_v56 = vor.u32 %v4973_v62, %v4972_v48  ;;  %v9337_v26 = vor.u32 %v4976_v19, %v4975_v50 }
 0x4c8   : > { %v4773_v17 = vmul.f32 %v4771_v63, %v4771_v63  ;;  %v4899_v46 = vadd.s32 536870912, %v4898_v54  ;;  %v4983_v33 = vor.u32 %v4982_v9, %v4981_v2  ;;  %v9339_v14 = vor.u32 %v4979_v41, %v4978_v38 }
 0x4c9   : > { %v4986_v45 = vor.u32 %v4985_v5, %v4984_v23  ;;  %vm4990_vm0 = vcmp.lt.s32.totalorder %v9313_v31, 4  ;;  %v422_v29 = vmul.f32 %v8934_v51, %v382_v34  ;;  %v4789_v57 = vadd.s32 3, %v4772_v43 }
 0x4ca   : > { %v4774_v16 = vmul.f32 -0.001358992, %v4773_v17  ;;  %v4781_v27 = vmul.f32 -0.00019511016, %v4773_v17  ;;  %v9341_v44 = vshrl.u32 %v4899_v46, 30  ;;  %vm4987_vm15 = vcmp.lt.s32.totalorder %v9313_v31, 1 }
 0x4cb   : > { %v4996_v15 = vsel %vm4990_vm0, %v4983_v33, 920167782  ;;  %vm4989_vm1 = vcmp.lt.s32.totalorder %v9313_v31, 3  ;;  %v4995_v40 = vsel %vm4987_vm15, %v9335_v56, %v9337_v26  ;;  %v5000_v47 = vsel %vm4990_vm0, %v4986_v45, 1326507024 }
 0x4cc   : > { %v4775_v24 = vadd.f32 0.041655596, %v4774_v16  ;;  %v4782_v8 = vadd.f32 0.008332121, %v4781_v27  ;;  %v4901_v7 = vshll.u32 %v9341_v44, 30  ;;  %v4997_v51 = vsel %vm4989_vm1, %v9339_v14, %v4996_v15 }
 0x4cd   : > { %v9359_v36 = vshll.u32 %v4963_v42, 8  ;;  %v4999_v11 = vsel %vm4987_vm15, %v9337_v26, %v9339_v14  ;;  %v9366_v59 = vadd.f32 %v9013_v18, %v423_v30  ;;  %v4790_v25 = vand.u32 3, %v4789_v57 }
 0x4ce   : > { %v4776_v39 = vmul.f32 %v4775_v24, %v4773_v17  ;;  %v4783_v53 = vmul.f32 %v4782_v8, %v4773_v17  ;;  %v4902_v37 = vsub.s32 %v4898_v54, %v4901_v7  ;;  %vm4988_vm2 = vcmp.lt.s32.totalorder %v9313_v31, 2 }
 0x4cf   : > { %v5001_v43 = vsel %vm4989_vm1, %v4983_v33, %v5000_v47  ;;  %v9372_v48 = vadd.f32 %v9013_v18, %v422_v29  ;;  %v4998_v50 = vsel %vm4988_vm2, %v4995_v40, %v4997_v51  ;;  %v5005_v4 = vshrl.u32 %v9359_v36, 16 }
 0x4d0   : > { %v4777_v28 = vadd.f32 -0.4999988, %v4776_v39  ;;  %v4784_v35 = vadd.f32 -0.16666654, %v4783_v53  ;;  %vm4903_vm4 = vcmp.lt.s32.totalorder %v4902_v37, 0  ;;  %v4904_v6 = vsub.s32 0, %v4902_v37 }
 0x4d1   : > { %v5002_v30 = vsel %vm4988_vm2, %v4999_v11, %v5001_v43  ;;  %vm4788_vm3 = vweird.f32 %v9024_v12  ;;  %vm4791_vm6 = vcmp.lt.s32.totalorder %v4790_v25, 2  ;;  %v5004_v41 = vand.u32 65535, %v9359_v36 }
 0x4d2   : > { %v4778_v62 = vmul.f32 %v4777_v28, %v4773_v17  ;;  %v4785_v19 = vmul.f32 %v4784_v35, %v4773_v17  ;;  %v4905_v2 = vsel %vm4903_vm4, %v4904_v6, %v4902_v37  ;;  %v5006_v20 = vand.u32 65535, %v5002_v30 }
 0x4d3   : > { %v4906_v54 = vclz %v4905_v2  ;;  %v5007_v18 = vshrl.u32 %v5002_v30, 16  ;;  %v5029_v5 = vshrl.u32 %v4998_v50, 16  ;;  %vm4792_vm5 = vcmp.eq.s32.totalorder %v4790_v25, 0 }
 0x4d4   : > { %v4779_v9 = vadd.f32 1.0, %v4778_v62  ;;  %v4786_v38 = vadd.f32 1.0, %v4785_v19  ;;  %v9381_v23 = vmul.u32 %v5006_v20, %v5005_v4  ;;  %vm4795_vm8 = vcmp.eq.s32.totalorder %v4790_v25, 2 }
 0x4d5   : > { %v4894_v34 = vadd.s32 %v9295_v32, %v9289_v22  ;;  %v5629_v17 = vadd.s32 4294967294, %v4906_v54  ;;  %v5009_v33 = vmul.u32 %v5007_v18, %v5004_v41  ;;  %v5028_v45 = vand.u32 65535, %v4998_v50 }
 0x4d6   : > { %v4787_v46 = vmul.f32 %v4786_v38, %v4771_v63  ;;  %v4796_v42 = vxor.u32 2147483648, %v4779_v9  ;;  %v5008_v16 = vmul.u32 %v5006_v20, %v5004_v41  ;;  %v5011_v27 = vmul.u32 %v5007_v18, %v5005_v4 }
 0x4d7   : > { %vm5630_vm7 = vcmp.lt.s32.totalorder %v5629_v17, 0  ;;  %v5014_v29 = vshll.u32 %v9381_v23, 16  ;;  %v5012_v24 = vshll.u32 %v5009_v33, 16  ;;  %v5031_v8 = vmul.u32 %v5029_v5, %v5004_v41 }
 0x4d8   : > { %v4793_v57 = vxor.u32 2147483648, %v4787_v46  ;;  %v4909_v15 = vsel %vm5630_vm7, 0, %v5629_v17  ;;  %v4797_v7 = vsel %vm4795_vm8, %v4796_v42, %v4787_v46  ;;  %vm4802_vm10 = vcmp.lt.s32.totalorder %v9016_v49, 0 }
 0x4d9   : > { %v4910_v40 = vsub.s32 32, %v4909_v15  ;;  %v4911_v51 = vshll.u32 %v4902_v37, %v4909_v15  ;;  %v4914_v22 = vsub.s32 4294967266, %v4909_v15  ;;  %vm5016_vm9 = vc.u32 %v5008_v16, %v5012_v24 }
 0x4da   : > { %v4794_v32 = vsel %vm4792_vm5, %v4779_v9, %v4793_v57  ;;  %v5018_v63 = vadd.s32 %v5012_v24, %v5008_v16  ;;  %v5032_v47 = vmul.u32 %v5028_v45, %v5005_v4  ;;  %v5017_v43 = vsel %vm5016_vm9, 1, %v5789_v0 }
 0x4db   : > { %v4798_v39 = vsel %vm4791_vm6, %v4794_v32, %v4797_v7  ;;  %v4912_v53 = vshrl.u32 %v4894_v34, %v4910_v40  ;;  %v4915_v11 = vadd.s32 127, %v4914_v22  ;;  %v5019_v35 = vadd.s32 %v5017_v43, %v5011_v27 }
 0x4dc   : > { %v4799_v28 = vsel %vm4788_vm3, nan, %v4798_v39  ;;  %vm5020_vm12 = vc.u32 %v5018_v63, %v5014_v29  ;;  %v5030_v6 = vmul.u32 %v5028_v45, %v5004_v41  ;;  %vm9394_vm11 = vcmp.le.f32.partialorder %v4800_v60, 0.7853982 }
 0x4dd   : > { %v4913_v50 = vor.u32 %v4912_v53, %v4911_v51  ;;  %v4916_v30 = vshll.u32 %v4915_v11, 23  ;;  %v5021_v25 = vsel %vm5020_vm12, 1, %v5789_v0  ;;  %v5034_v62 = vshll.u32 %v5031_v8, 16  ;;  %5447 = vst [vmem:[%s6199_s9 + $0xd8] sm:$0xff] %v4799_v28 }
 0x4de   : > { %v4924_v19 = vsub.s32 4, %v9341_v44  ;;  %v5013_v2 = vshrl.u32 %v5009_v33, 16  ;;  %v5023_v12 = vadd.s32 %v5021_v25, %v5019_v35  ;;  %v5033_v20 = vmul.u32 %v5029_v5, %v5005_v4 }
 0x4df   : > { %v4917_v54 = vor.u32 4788187, %v4916_v30  ;;  %v5036_v18 = vshll.u32 %v5032_v47, 16  ;;  %vm5038_vm14 = vc.u32 %v5030_v6, %v5034_v62  ;;  %v5040_v41 = vadd.s32 %v5034_v62, %v5030_v6 }
 0x4e0   : > { %v4920_v9 = vcvt.s32.f32 %v4913_v50  ;;  %v4992_v60 = vsel %vm4990_vm0, %v9339_v14, 2102212464  ;;  %v5024_v38 = vadd.s32 %v5023_v12, %v5013_v2  ;;  %v5039_v34 = vsel %vm5038_vm14, 1, %v5789_v0 }
 0x4e1   : > { %v4918_v17 = vand.u32 2147483647, %v4917_v54  ;;  %v5041_v46 = vadd.s32 %v5039_v34, %v5033_v20  ;;  %vm5042_vm13 = vc.u32 %v5040_v41, %v5036_v18  ;;  %v5110_v42 = vand.u32 2147483647, %v9372_v48 }
 0x4e2   : > { %v4925_v4 = vsel %vm4802_vm10, %v4924_v19, %v9341_v44  ;;  %v4971_v5 = vshrl.u32 %v5790_v52, %v9311_v21  ;;  %v5015_v33 = vshrl.u32 %v9381_v23, 16  ;;  %v5043_v45 = vsel %vm5042_vm13, 1, %v5789_v0 }
 0x4e3   : > { %v4921_v14 = vmul.f32 %v4920_v9, %v4918_v17  ;;  %v5035_v16 = vshrl.u32 %v5031_v8, 16  ;;  %v5045_v27 = vadd.s32 %v5043_v45, %v5041_v46  ;;  %v5113_v29 = vand.u32 2139095040, %v9372_v48 }
 0x4e4   : > { %v4991_v57 = vsel %vm4987_vm15, %v4971_v5, %v9335_v56  ;;  %v4993_v44 = vsel %vm4989_vm1, %v9337_v26, %v4992_v60  ;;  %v5025_v15 = vadd.s32 %v5024_v38, %v5015_v33  ;;  %v5037_v24 = vshrl.u32 %v5032_v47, 16 }
 0x4e5   : > { %v4922_v21 = vxor.u32 2147483648, %v4921_v14  ;;  %v5046_v7 = vadd.s32 %v5045_v27, %v5035_v16  ;;  %v5114_v23 = vshrl.u32 %v5113_v29, 23  ;;  %v5117_v40 = vand.u32 8388607, %v5110_v42 }
 0x4e6   : > { %v4927_v8 = vsel %vm9394_vm11, 0, %v4925_v4  ;;  %v5044_v51 = vadd.s32 %v5040_v41, %v5036_v18  ;;  %v5268_v22 = vand.u32 2139095040, %v9366_v59  ;;  %v4994_v26 = vsel %vm4988_vm2, %v4991_v57, %v4993_v44 }
 0x4e7   : > { %v4923_v56 = vsel %vm4802_vm10, %v4922_v21, %v4921_v14  ;;  %v5047_v32 = vadd.s32 %v5046_v7, %v5037_v24  ;;  %v5634_v63 = vadd.s32 4294967169, %v5114_v23  ;;  %v5118_v11 = vor.u32 8388608, %v5117_v40 }
 0x4e8   : > { %v4926_v47 = vsel %vm9394_vm11, %v9016_v49, %v4923_v56  ;;  %vm5050_vm0 = vc.u32 %v5025_v15, %v5044_v51  ;;  %v4944_v28 = vadd.s32 3, %v4927_v8  ;;  %v5048_v35 = vmul.u32 %v9359_v36, %v4994_v26 }
 0x4e9   : > { %v4928_v39 = vmul.f32 %v4926_v47, %v4926_v47  ;;  %v5051_v53 = vadd.s32 1, %v5047_v32  ;;  %v5120_v43 = vadd.s32 1, %v5634_v63  ;;  %v5269_v6 = vshrl.u32 %v5268_v22, 23 }
 0x4ea   : > { %v9433_v37 = vshll.u32 %v5118_v11, 8  ;;  %v4945_v20 = vand.u32 3, %v4944_v28  ;;  %vm4957_vm1 = vcmp.lt.s32.totalorder %v9093_v13, 0  ;;  %v9436_v36 = vadd.s32 %v5044_v51, %v5025_v15 }
 0x4eb   : > { %v4929_v50 = vmul.f32 -0.001358992, %v4928_v39  ;;  %v4936_v30 = vmul.f32 -0.00019511016, %v4928_v39  ;;  %v5052_v25 = vsel %vm5050_vm0, %v5051_v53, %v5047_v32  ;;  %vm5121_vm15 = vcmp.gt.s32.totalorder %v5120_v43, 0 }
 0x4ec   : > { %v5053_v31 = vadd.s32 %v5052_v25, %v5048_v35  ;;  %v5122_v62 = vsel %vm5121_vm15, %v5120_v43, 0  ;;  %v5637_v18 = vadd.s32 4294967169, %v5269_v6  ;;  %v5265_v34 = vand.u32 2147483647, %v9366_v59 }
 0x4ed   : > { %v4930_v19 = vadd.f32 0.041655596, %v4929_v50  ;;  %v4937_v2 = vadd.f32 0.008332121, %v4936_v30  ;;  %v5124_v12 = vand.u32 31, %v5122_v62  ;;  %v9440_v4 = vand.u32 65535, %v9433_v37 }
 0x4ee   : > { %v5054_v54 = vadd.s32 536870912, %v5053_v31  ;;  %v9443_v5 = vshrl.u32 %v9433_v37, 16  ;;  %vm4947_vm2 = vcmp.eq.s32.totalorder %v4945_v20, 0  ;;  %vm4950_vm4 = vcmp.eq.s32.totalorder %v4945_v20, 2 }
 0x4ef   : > { %v4931_v41 = vmul.f32 %v4930_v19, %v4928_v39  ;;  %v4938_v9 = vmul.f32 %v4937_v2, %v4928_v39  ;;  %v5125_v60 = vsub.s32 32, %v5124_v12  ;;  %v9445_v45 = vshrl.u32 %v5122_v62, 5 }
 0x4f0   : > { %v5055_v38 = vshrl.u32 %v5054_v54, 30  ;;  %v9448_v16 = vadd.s32 1, %v5637_v18  ;;  %vm4946_vm3 = vcmp.lt.s32.totalorder %v4945_v20, 2  ;;  %v5127_v57 = vshll.u32 %v5790_v52, %v5124_v12 }
 0x4f1   : > { %v4932_v17 = vadd.f32 -0.4999988, %v4931_v41  ;;  %v4939_v46 = vadd.f32 -0.16666654, %v4938_v9  ;;  %v5128_v14 = vshrl.u32 %v5791_v55, %v5125_v60  ;;  %v5131_v44 = vshrl.u32 %v5792_v58, %v5125_v60 }
 0x4f2   : > { %v5056_v33 = vshll.u32 %v5055_v38, 30  ;;  %vm4943_vm6 = vweird.f32 %v9016_v49  ;;  %v5130_v24 = vshll.u32 %v5791_v55, %v5124_v12  ;;  %v5134_v21 = vshrl.u32 %v5793_v61, %v5125_v60 }
 0x4f3   : > { %v4933_v27 = vmul.f32 %v4932_v17, %v4928_v39  ;;  %v4940_v29 = vmul.f32 %v4939_v46, %v4928_v39  ;;  %v5137_v7 = vshrl.u32 %v5794_v1, %v5125_v60  ;;  %v5079_v8 = vsub.s32 4, %v5055_v38 }
 0x4f4   : > { %v9453_v15 = vsub.s32 %v5053_v31, %v5056_v33  ;;  %v5133_v51 = vshll.u32 %v5792_v58, %v5124_v12  ;;  %v5129_v56 = vor.u32 %v5128_v14, %v5127_v57  ;;  %v5136_v26 = vshll.u32 %v5793_v61, %v5124_v12 }
 0x4f5   : > { %v4934_v23 = vadd.f32 1.0, %v4933_v27  ;;  %v4941_v40 = vadd.f32 1.0, %v4940_v29  ;;  %v5132_v39 = vor.u32 %v5131_v44, %v5130_v24  ;;  %v5140_v53 = vshrl.u32 %v5795_v3, %v5125_v60 }
 0x4f6   : > { %vm5058_vm5 = vcmp.lt.s32.totalorder %v9453_v15, 0  ;;  %v5059_v22 = vsub.s32 0, %v9453_v15  ;;  %v5135_v43 = vor.u32 %v5134_v21, %v5133_v51  ;;  %v5138_v28 = vor.u32 %v5137_v7, %v5136_v26 }
 0x4f7   : > { %v4942_v32 = vmul.f32 %v4941_v40, %v4926_v47  ;;  %v4951_v63 = vxor.u32 2147483648, %v4934_v23  ;;  %v5139_v35 = vshll.u32 %v5794_v1, %v5124_v12  ;;  %v9467_v30 = vsel %vm4957_vm1, %v5079_v8, %v5055_v38 }
 0x4f8   : > { %v5060_v11 = vsel %vm5058_vm5, %v5059_v22, %v9453_v15  ;;  %v5126_v25 = vshrl.u32 %v5790_v52, %v5125_v60  ;;  %vm9472_vm8 = vcmp.le.f32.partialorder %v4955_v10, 0.7853982  ;;  %vm5142_vm7 = vcmp.lt.s32.totalorder %v9445_v45, 1 }
 0x4f9   : > { %v4948_v6 = vxor.u32 2147483648, %v4942_v32  ;;  %v5061_v50 = vclz %v5060_v11  ;;  %v5141_v31 = vor.u32 %v5140_v53, %v5139_v35  ;;  %vm5143_vm10 = vcmp.lt.s32.totalorder %v9445_v45, 2 }
 0x4fa   : > { %vm5144_vm9 = vcmp.lt.s32.totalorder %v9445_v45, 3  ;;  %v4952_v19 = vsel %vm4950_vm4, %v4951_v63, %v4942_v32  ;;  %vm5145_vm12 = vcmp.lt.s32.totalorder %v9445_v45, 4  ;;  %v5150_v54 = vsel %vm5142_vm7, %v5129_v56, %v5132_v39 }
 0x4fb   : > { %v4949_v62 = vsel %vm4947_vm2, %v4934_v23, %v4948_v6  ;;  %v5632_v2 = vadd.s32 4294967294, %v5061_v50  ;;  %v5147_v12 = vsel %vm5145_vm12, %v5135_v43, 2102212464  ;;  %v5151_v18 = vsel %vm5145_vm12, %v5138_v28, 920167782 }
 0x4fc   : > { %v4953_v10 = vsel %vm4946_vm3, %v4949_v62, %v4952_v19  ;;  %v5146_v9 = vsel %vm5142_vm7, %v5126_v25, %v5129_v56  ;;  %v5152_v60 = vsel %vm5144_vm9, %v5135_v43, %v5151_v18  ;;  %v5154_v17 = vsel %vm5142_vm7, %v5132_v39, %v5135_v43 }
 0x4fd   : > { %v4954_v41 = vsel %vm4943_vm6, nan, %v4953_v10  ;;  %vm5633_vm11 = vcmp.lt.s32.totalorder %v5632_v2, 0  ;;  %v5153_v20 = vsel %vm5143_vm10, %v5150_v54, %v5152_v60  ;;  %v5155_v46 = vsel %vm5145_vm12, %v5141_v31, 1326507024 }
 0x4fe   : > { %v5064_v38 = vsel %vm5633_vm11, 0, %v5632_v2  ;;  %5448 = vst [vmem:[%s6199_s9 + $0xe0] sm:$0xff] %v4954_v41  ;;  %v5148_v49 = vsel %vm5144_vm9, %v5132_v39, %v5147_v12  ;;  %v5156_v27 = vsel %vm5144_vm9, %v5138_v28, %v5155_v46  ;;  %v5183_v44 = vand.u32 65535, %v5153_v20 }
 0x4ff   : > { %v5065_v33 = vsub.s32 32, %v5064_v38  ;;  %v5069_v14 = vsub.s32 4294967266, %v5064_v38  ;;  %v5066_v29 = vshll.u32 %v9453_v15, %v5064_v38  ;;  %v5157_v57 = vsel %vm5143_vm10, %v5154_v17, %v5156_v27 }
 0x500   : > { %v5184_v24 = vshrl.u32 %v5153_v20, 16  ;;  %v5161_v23 = vand.u32 65535, %v5157_v57  ;;  %v5162_v40 = vshrl.u32 %v5157_v57, 16  ;;  %v5187_v51 = vmul.u32 %v5183_v44, %v9443_v5 }
 0x501   : > { %v5067_v21 = vshrl.u32 %v9436_v36, %v5065_v33  ;;  %v5070_v7 = vadd.s32 127, %v5069_v14  ;;  %v9508_v22 = vand.u32 8388607, %v5265_v34  ;;  %vm5276_vm14 = vcmp.gt.s32.totalorder %v9448_v16, 0 }
 0x502   : > { %v5186_v8 = vmul.u32 %v5184_v24, %v9440_v4  ;;  %v5082_v26 = vsel %vm9472_vm8, 0, %v9467_v30  ;;  %v5164_v36 = vmul.u32 %v5162_v40, %v9440_v4  ;;  %v9517_v32 = vsel %vm5143_vm10, %v5146_v9, %v5148_v49 }
 0x503   : > { %v5068_v15 = vor.u32 %v5067_v21, %v5066_v29  ;;  %v5071_v56 = vshll.u32 %v5070_v7, 23  ;;  %v5165_v63 = vmul.u32 %v5161_v23, %v9443_v5  ;;  %v5185_v39 = vmul.u32 %v5183_v44, %v9440_v4 }
 0x504   : > { %v5189_v53 = vshll.u32 %v5186_v8, 16  ;;  %v5163_v43 = vmul.u32 %v5161_v23, %v9440_v4  ;;  %v5167_v28 = vshll.u32 %v5164_v36, 16  ;;  %v5188_v35 = vmul.u32 %v5184_v24, %v9443_v5 }
 0x505   : > { %v5072_v11 = vor.u32 4788187, %v5071_v56  ;;  %v5075_v6 = vcvt.s32.f32 %v5068_v15  ;;  %v5166_v50 = vmul.u32 %v5162_v40, %v9443_v5  ;;  %v5169_v30 = vshll.u32 %v5165_v63, 16 }
 0x506   : > { %v5191_v25 = vshll.u32 %v5187_v51, 16  ;;  %vm5171_vm13 = vc.u32 %v5163_v43, %v5167_v28  ;;  %v5173_v45 = vadd.s32 %v5167_v28, %v5163_v43  ;;  %vm5193_vm0 = vc.u32 %v5185_v39, %v5189_v53 }
 0x507   : > { %v5073_v31 = vand.u32 2147483647, %v5072_v11  ;;  %v5172_v62 = vsel %vm5171_vm13, 1, %v5789_v0  ;;  %v5194_v19 = vsel %vm5193_vm0, 1, %v5789_v0  ;;  %v5195_v2 = vadd.s32 %v5189_v53, %v5185_v39 }
 0x508   : > { %v5277_v4 = vsel %vm5276_vm14, %v9448_v16, 0  ;;  %v5174_v12 = vadd.s32 %v5172_v62, %v5166_v50  ;;  %vm5175_vm15 = vc.u32 %v5173_v45, %v5169_v30  ;;  %v5196_v54 = vadd.s32 %v5194_v19, %v5188_v35 }
 0x509   : > { %v5076_v10 = vmul.f32 %v5075_v6, %v5073_v31  ;;  %v5168_v5 = vshrl.u32 %v5164_v36, 16  ;;  %v5176_v18 = vsel %vm5175_vm15, 1, %v5789_v0  ;;  %vm5197_vm2 = vc.u32 %v5195_v2, %v5191_v25 }
 0x50a   : > { %v5273_v41 = vor.u32 8388608, %v9508_v22  ;;  %v5178_v60 = vadd.s32 %v5176_v18, %v5174_v12  ;;  %v5198_v38 = vsel %vm5197_vm2, 1, %v5789_v0  ;;  %v5279_v20 = vand.u32 31, %v5277_v4 }
 0x50b   : > { %v5077_v9 = vxor.u32 2147483648, %v5076_v10  ;;  %v5099_v17 = vadd.s32 3, %v5082_v26  ;;  %v5190_v46 = vshrl.u32 %v5186_v8, 16  ;;  %v5200_v33 = vadd.s32 %v5198_v38, %v5196_v54 }
 0x50c   : > { %v5203_v16 = vmul.u32 %v9433_v37, %v9517_v32  ;;  %v5170_v49 = vshrl.u32 %v5165_v63, 16  ;;  %v5179_v27 = vadd.s32 %v5178_v60, %v5168_v5  ;;  %v9536_v29 = vsub.s32 32, %v5279_v20 }
 0x50d   : > { %v5078_v14 = vsel %vm4957_vm1, %v5077_v9, %v5076_v10  ;;  %v5192_v44 = vshrl.u32 %v5187_v51, 16  ;;  %v9541_v24 = vadd.s32 %v5195_v2, %v5191_v25  ;;  %v5201_v21 = vadd.s32 %v5200_v33, %v5190_v46 }
 0x50e   : > { %v5081_v57 = vsel %vm9472_vm8, %v9093_v13, %v5078_v14  ;;  %v9543_v23 = vadd.s32 %v5179_v27, %v5170_v49  ;;  %v9545_v40 = vshrl.u32 %v5277_v4, 5  ;;  %v5283_v37 = vshrl.u32 %v5791_v55, %v9536_v29 }
 0x50f   : > { %v5083_v7 = vmul.f32 %v5081_v57, %v5081_v57  ;;  %v5202_v8 = vadd.s32 %v5201_v21, %v5192_v44  ;;  %v5282_v15 = vshll.u32 %v5790_v52, %v5279_v20  ;;  %v5286_v56 = vshrl.u32 %v5792_v58, %v9536_v29 }
 0x510   : > { %v5289_v47 = vshrl.u32 %v5793_v61, %v9536_v29  ;;  %vm5205_vm1 = vc.u32 %v9543_v23, %v9541_v24  ;;  %v5285_v36 = vshll.u32 %v5791_v55, %v5279_v20  ;;  %v5288_v39 = vshll.u32 %v5792_v58, %v5279_v20 }
 0x511   : > { %v5084_v51 = vmul.f32 -0.001358992, %v5083_v7  ;;  %v5091_v26 = vmul.f32 -0.00019511016, %v5083_v7  ;;  %v5206_v32 = vadd.s32 1, %v5202_v8  ;;  %v9557_v63 = vor.u32 %v5283_v37, %v5282_v15 }
 0x512   : > { %v5291_v53 = vshll.u32 %v5793_v61, %v5279_v20  ;;  %v9561_v28 = vor.u32 %v5286_v56, %v5285_v36  ;;  %v5292_v35 = vshrl.u32 %v5794_v1, %v9536_v29  ;;  %v9565_v50 = vor.u32 %v5289_v47, %v5288_v39 }
 0x513   : > { %v5085_v11 = vadd.f32 0.041655596, %v5084_v51  ;;  %v5092_v43 = vadd.f32 0.008332121, %v5091_v26  ;;  %v5207_v6 = vsel %vm5205_vm1, %v5206_v32, %v5202_v8  ;;  %v5294_v30 = vshll.u32 %v5794_v1, %v5279_v20 }
 0x514   : > { %v5295_v55 = vshrl.u32 %v5795_v3, %v9536_v29  ;;  %v5208_v58 = vadd.s32 %v5207_v6, %v5203_v16  ;;  %v5293_v45 = vor.u32 %v5292_v35, %v5291_v53  ;;  %v5100_v61 = vand.u32 3, %v5099_v17 }
 0x515   : > { %v5086_v25 = vmul.f32 %v5085_v11, %v5083_v7  ;;  %v5093_v31 = vmul.f32 %v5092_v43, %v5083_v7  ;;  %vm5297_vm4 = vcmp.lt.s32.totalorder %v9545_v40, 1  ;;  %vm5299_vm3 = vcmp.lt.s32.totalorder %v9545_v40, 3 }
 0x516   : > { %v5296_v62 = vor.u32 %v5295_v55, %v5294_v30  ;;  %v5209_v4 = vadd.s32 536870912, %v5208_v58  ;;  %vm5300_vm6 = vcmp.lt.s32.totalorder %v9545_v40, 4  ;;  %v5305_v1 = vsel %vm5297_vm4, %v9557_v63, %v9561_v28 }
 0x517   : > { %v5087_v19 = vadd.f32 -0.4999988, %v5086_v25  ;;  %v5094_v2 = vadd.f32 -0.16666654, %v5093_v31  ;;  %v5306_v3 = vsel %vm5300_vm6, %v5293_v45, 920167782  ;;  %v5309_v10 = vsel %vm5297_vm4, %v9561_v28, %v9565_v50 }
 0x518   : > { %v5310_v12 = vsel %vm5300_vm6, %v5296_v62, 1326507024  ;;  %v9585_v18 = vshrl.u32 %v5209_v4, 30  ;;  %v5307_v9 = vsel %vm5299_vm3, %v9565_v50, %v5306_v3  ;;  %vm5298_vm5 = vcmp.lt.s32.totalorder %v9545_v40, 2 }
 0x519   : > { %v5088_v54 = vmul.f32 %v5087_v19, %v5083_v7  ;;  %v5095_v5 = vmul.f32 %v5094_v2, %v5083_v7  ;;  %v5311_v60 = vsel %vm5299_vm3, %v5293_v45, %v5310_v12  ;;  %v9595_v38 = vshll.u32 %v5273_v41, 8 }
 0x51a   : > { %v5211_v46 = vshll.u32 %v9585_v18, 30  ;;  %v5308_v33 = vsel %vm5298_vm5, %v5305_v1, %v5307_v9  ;;  %vm5098_vm8 = vweird.f32 %v9093_v13  ;;  %v5312_v16 = vsel %vm5298_vm5, %v5309_v10, %v5311_v60 }
 0x51b   : > { %v5089_v20 = vadd.f32 1.0, %v5088_v54  ;;  %v5096_v17 = vadd.f32 1.0, %v5095_v5  ;;  %vm5101_vm7 = vcmp.lt.s32.totalorder %v5100_v61, 2  ;;  %v5314_v22 = vand.u32 65535, %v9595_v38 }
 0x51c   : > { %v5212_v27 = vsub.s32 %v5208_v58, %v5211_v46  ;;  %v5316_v41 = vand.u32 65535, %v5312_v16  ;;  %v5317_v44 = vshrl.u32 %v5312_v16, 16  ;;  %v5339_v21 = vshrl.u32 %v5308_v33, 16 }
 0x51d   : > { %v5097_v14 = vmul.f32 %v5096_v17, %v5081_v57  ;;  %v5106_v49 = vxor.u32 2147483648, %v5089_v20  ;;  %v5315_v8 = vshrl.u32 %v9595_v38, 16  ;;  %vm5102_vm9 = vcmp.eq.s32.totalorder %v5100_v61, 0 }
 0x51e   : > { %vm5213_vm10 = vcmp.lt.s32.totalorder %v5212_v27, 0  ;;  %v5214_v37 = vsub.s32 0, %v5212_v27  ;;  %vm5105_vm12 = vcmp.eq.s32.totalorder %v5100_v61, 2  ;;  %v5319_v15 = vmul.u32 %v5317_v44, %v5314_v22 }
 0x51f   : > { %v5103_v7 = vxor.u32 2147483648, %v5097_v14  ;;  %v5338_v56 = vand.u32 65535, %v5308_v33  ;;  %v5107_v57 = vsel %vm5105_vm12, %v5106_v49, %v5097_v14  ;;  %v5320_v26 = vmul.u32 %v5316_v41, %v5315_v8 }
 0x520   : > { %v5215_v51 = vsel %vm5213_vm10, %v5214_v37, %v5212_v27  ;;  %v5322_v39 = vshll.u32 %v5319_v15, 16  ;;  %v5341_v53 = vmul.u32 %v5339_v21, %v5314_v22  ;;  %v5318_v43 = vmul.u32 %v5316_v41, %v5314_v22 }
 0x521   : > { %v5104_v47 = vsel %vm5102_vm9, %v5089_v20, %v5103_v7  ;;  %v5216_v32 = vclz %v5215_v51  ;;  %v5204_v35 = vadd.s32 %v9541_v24, %v9543_v23  ;;  %v5281_v30 = vshrl.u32 %v5790_v52, %v9536_v29 }
 0x522   : > { %v5108_v36 = vsel %vm5101_vm7, %v5104_v47, %v5107_v57  ;;  %v5321_v55 = vmul.u32 %v5317_v44, %v5315_v8  ;;  %v5324_v25 = vshll.u32 %v5320_v26, 16  ;;  %vm5326_vm11 = vc.u32 %v5318_v43, %v5322_v39 }
 0x523   : > { %v5109_v11 = vsel %vm5098_vm8, nan, %v5108_v36  ;;  %v5635_v6 = vadd.s32 4294967294, %v5216_v32  ;;  %v5328_v31 = vadd.s32 %v5322_v39, %v5318_v43  ;;  %v5342_v58 = vmul.u32 %v5338_v56, %v5315_v8 }
 0x524   : > { %5449 = vst [vmem:[%s6199_s9 + $0xe8] sm:$0xff] %v5109_v11  ;;  %v5327_v45 = vsel %vm5326_vm11, 1, %v5789_v0  ;;  %v5340_v61 = vmul.u32 %v5338_v56, %v5314_v22  ;;  %v5344_v13 = vshll.u32 %v5341_v53, 16  ;;  %v5323_v19 = vshrl.u32 %v5319_v15, 16 }
 0x525   : > { %vm5636_vm14 = vcmp.lt.s32.totalorder %v5635_v6, 0  ;;  %v5329_v2 = vadd.s32 %v5327_v45, %v5321_v55  ;;  %vm5330_vm13 = vc.u32 %v5328_v31, %v5324_v25  ;;  %v5343_v52 = vmul.u32 %v5339_v21, %v5315_v8 }
 0x526   : > { %v5219_v62 = vsel %vm5636_vm14, 0, %v5635_v6  ;;  %v5331_v4 = vsel %vm5330_vm13, 1, %v5789_v0  ;;  %v5346_v1 = vshll.u32 %v5342_v58, 16  ;;  %vm5348_vm0 = vc.u32 %v5340_v61, %v5344_v13 }
 0x527   : > { %v5220_v24 = vsub.s32 32, %v5219_v62  ;;  %v5224_v23 = vsub.s32 4294967266, %v5219_v62  ;;  %v5333_v29 = vadd.s32 %v5331_v4, %v5329_v2  ;;  %v5350_v3 = vadd.s32 %v5344_v13, %v5340_v61 }
 0x528   : > { %v5221_v10 = vshll.u32 %v5212_v27, %v5219_v62  ;;  %v5349_v5 = vsel %vm5348_vm0, 1, %v5789_v0  ;;  %v5302_v9 = vsel %vm5300_vm6, %v9565_v50, 2102212464  ;;  %v5325_v33 = vshrl.u32 %v5320_v26, 16 }
 0x529   : > { %v5222_v12 = vshrl.u32 %v5204_v35, %v5220_v24  ;;  %v5225_v54 = vadd.s32 127, %v5224_v23  ;;  %v5334_v60 = vadd.s32 %v5333_v29, %v5323_v19  ;;  %v5351_v20 = vadd.s32 %v5349_v5, %v5343_v52 }
 0x52a   : > { %vm5352_vm15 = vc.u32 %v5350_v3, %v5346_v1  ;;  %v5345_v14 = vshrl.u32 %v5341_v53, 16  ;;  %v5301_v27 = vsel %vm5297_vm4, %v5281_v30, %v9557_v63  ;;  %v5303_v41 = vsel %vm5299_vm3, %v9561_v28, %v5302_v9 }
 0x52b   : > { %v5223_v17 = vor.u32 %v5222_v12, %v5221_v10  ;;  %v5226_v46 = vshll.u32 %v5225_v54, 23  ;;  %v5353_v16 = vsel %vm5352_vm15, 1, %v5789_v0  ;;  %v5335_v50 = vadd.s32 %v5334_v60, %v5325_v33 }
 0x52c   : > { %v5355_v49 = vadd.s32 %v5353_v16, %v5351_v20  ;;  %v5347_v44 = vshrl.u32 %v5342_v58, 16  ;;  %v5354_v8 = vadd.s32 %v5350_v3, %v5346_v1  ;;  %v5304_v0 = vsel %vm5298_vm5, %v5301_v27, %v5303_v41 }
 0x52d   : > { %v5227_v22 = vor.u32 4788187, %v5226_v46  ;;  %v5230_v37 = vcvt.s32.f32 %v5223_v17  ;;  %v5358_v63 = vmul.u32 %v9595_v38, %v5304_v0  ;;  %vm5112_vm1 = vcmp.lt.s32.totalorder %v9372_v48, 0 }
 0x52e   : > { %v5356_v21 = vadd.s32 %v5355_v49, %v5345_v14  ;;  %vm5360_vm2 = vc.u32 %v5335_v50, %v5354_v8  ;;  %v5234_v28 = vsub.s32 4, %v9585_v18  ;;  %vm9633_vm4 = vcmp.le.f32.partialorder %v5110_v42, 0.7853982 }
 0x52f   : > { %v5228_v7 = vand.u32 2147483647, %v5227_v22  ;;  %v5359_v54 = vadd.s32 %v5354_v8, %v5335_v50  ;;  %vm5253_vm7 = vweird.f32 %v9372_v48  ;;  %vm5267_vm9 = vcmp.lt.s32.totalorder %v9366_v59, 0 }
 0x530   : > { %v5357_v15 = vadd.s32 %v5356_v21, %v5347_v44  ;;  %v5235_v38 = vsel %vm5112_vm1, %v5234_v28, %v9585_v18  ;;  %vm5266_vm12 = vcmp.le.f32.partialorder %v5265_v34, 0.7853982  ;;  %vm5408_vm0 = vweird.f32 %v9366_v59 }
 0x531   : > { %v5231_v56 = vmul.f32 %v5230_v37, %v5228_v7  ;;  %v5237_v6 = vsel %vm9633_vm4, 0, %v5235_v38 }
 0x532   : > { %v5361_v47 = vadd.s32 1, %v5357_v15  ;;  %v5254_v45 = vadd.s32 3, %v5237_v6 }
 0x533   : > { %v5232_v57 = vxor.u32 2147483648, %v5231_v56 }
 0x534   : > { %v5362_v51 = vsel %vm5360_vm2, %v5361_v47, %v5357_v15  ;;  %v5255_v52 = vand.u32 3, %v5254_v45 }
 0x535   : > { %v5233_v40 = vsel %vm5112_vm1, %v5232_v57, %v5231_v56  ;;  %v5363_v36 = vadd.s32 %v5362_v51, %v5358_v63 }
 0x536   : > { %v5236_v32 = vsel %vm9633_vm4, %v9372_v48, %v5233_v40  ;;  %vm5257_vm5 = vcmp.eq.s32.totalorder %v5255_v52, 0  ;;  %vm5260_vm8 = vcmp.eq.s32.totalorder %v5255_v52, 2  ;;  %vm5256_vm10 = vcmp.lt.s32.totalorder %v5255_v52, 2 }
 0x537   : > { %v5238_v39 = vmul.f32 %v5236_v32, %v5236_v32  ;;  %v5364_v53 = vadd.s32 536870912, %v5363_v36 }
 0x539   : > { %v5239_v11 = vmul.f32 -0.001358992, %v5238_v39  ;;  %v5246_v43 = vmul.f32 -0.00019511016, %v5238_v39  ;;  %v5365_v35 = vshrl.u32 %v5364_v53, 30 }
 0x53b   : > { %v5240_v42 = vadd.f32 0.041655596, %v5239_v11  ;;  %v5247_v30 = vadd.f32 0.008332121, %v5246_v43  ;;  %v5366_v55 = vshll.u32 %v5365_v35, 30  ;;  %v5389_v7 = vsub.s32 4, %v5365_v35 }
 0x53d   : > { %v5241_v25 = vmul.f32 %v5240_v42, %v5238_v39  ;;  %v5248_v31 = vmul.f32 %v5247_v30, %v5238_v39  ;;  %v5367_v58 = vsub.s32 %v5363_v36, %v5366_v55  ;;  %v5390_v56 = vsel %vm5267_vm9, %v5389_v7, %v5365_v35 }
 0x53e   : > { %v5392_v63 = vsel %vm5266_vm12, 0, %v5390_v56 }
 0x53f   : > { %v5242_v61 = vadd.f32 -0.4999988, %v5241_v25  ;;  %v5249_v13 = vadd.f32 -0.16666654, %v5248_v31  ;;  %vm5368_vm3 = vcmp.lt.s32.totalorder %v5367_v58, 0  ;;  %v5369_v62 = vsub.s32 0, %v5367_v58 }
 0x540   : > { %v5409_v36 = vadd.s32 3, %v5392_v63 }
 0x541   : > { %v5243_v19 = vmul.f32 %v5242_v61, %v5238_v39  ;;  %v5250_v2 = vmul.f32 %v5249_v13, %v5238_v39  ;;  %v5370_v18 = vsel %vm5368_vm3, %v5369_v62, %v5367_v58 }
 0x542   : > { %v5371_v24 = vclz %v5370_v18  ;;  %v5410_v38 = vand.u32 3, %v5409_v36 }
 0x543   : > { %v5244_v23 = vadd.f32 1.0, %v5243_v19  ;;  %v5251_v4 = vadd.f32 1.0, %v5250_v2 }
 0x544   : > { %v5638_v29 = vadd.s32 4294967294, %v5371_v24  ;;  %vm5412_vm11 = vcmp.eq.s32.totalorder %v5410_v38, 0  ;;  %vm5415_vm14 = vcmp.eq.s32.totalorder %v5410_v38, 2  ;;  %vm5411_vm13 = vcmp.lt.s32.totalorder %v5410_v38, 2 }
 0x545   : > { %v5252_v1 = vmul.f32 %v5251_v4, %v5236_v32  ;;  %v5261_v3 = vxor.u32 2147483648, %v5244_v23 }
 0x546   : > { %vm5639_vm6 = vcmp.lt.s32.totalorder %v5638_v29, 0 }
 0x547   : > { %v5258_v10 = vxor.u32 2147483648, %v5252_v1  ;;  %v5374_v12 = vsel %vm5639_vm6, 0, %v5638_v29  ;;  %v5262_v20 = vsel %vm5260_vm8, %v5261_v3, %v5252_v1 }
 0x548   : > { %v5375_v5 = vsub.s32 32, %v5374_v12  ;;  %v5379_v9 = vsub.s32 4294967266, %v5374_v12  ;;  %v5376_v46 = vshll.u32 %v5367_v58, %v5374_v12 }
 0x549   : > { %v5259_v60 = vsel %vm5257_vm5, %v5244_v23, %v5258_v10 }
 0x54a   : > { %v5263_v17 = vsel %vm5256_vm10, %v5259_v60, %v5262_v20  ;;  %v5377_v33 = vshrl.u32 %v5359_v54, %v5375_v5  ;;  %v5380_v16 = vadd.s32 127, %v5379_v9 }
 0x54b   : > { %v5264_v14 = vsel %vm5253_vm7, nan, %v5263_v17 }
 0x54c   : > { %v5378_v49 = vor.u32 %v5377_v33, %v5376_v46  ;;  %v5381_v22 = vshll.u32 %v5380_v16, 23  ;;  %5450 = vst [vmem:[%s6199_s9 + $0xf0] sm:$0xff] %v5264_v14 }
 0x54e   : > { %v5382_v27 = vor.u32 4788187, %v5381_v22  ;;  %v5385_v44 = vcvt.s32.f32 %v5378_v49 }
 0x550   : > { %v5383_v41 = vand.u32 2147483647, %v5382_v27 }
 0x552   : > { %v5386_v21 = vmul.f32 %v5385_v44, %v5383_v41 }
 0x554   : > { %v5387_v50 = vxor.u32 2147483648, %v5386_v21 }
 0x556   : > { %v5388_v48 = vsel %vm5267_vm9, %v5387_v50, %v5386_v21 }
 0x557   : > { %v5391_v37 = vsel %vm5266_vm12, %v9366_v59, %v5388_v48 }
 0x558   : > { %v5393_v8 = vmul.f32 %v5391_v37, %v5391_v37 }
 0x55a   : > { %v5394_v0 = vmul.f32 -0.001358992, %v5393_v8  ;;  %v5401_v15 = vmul.f32 -0.00019511016, %v5393_v8 }
 0x55c   : > { %v5395_v47 = vadd.f32 0.041655596, %v5394_v0  ;;  %v5402_v57 = vadd.f32 0.008332121, %v5401_v15 }
 0x55e   : > { %v5396_v28 = vmul.f32 %v5395_v47, %v5393_v8  ;;  %v5403_v51 = vmul.f32 %v5402_v57, %v5393_v8 }
 0x560   : > { %v5397_v26 = vadd.f32 -0.4999988, %v5396_v28  ;;  %v5404_v40 = vadd.f32 -0.16666654, %v5403_v51 }
 0x562   : > { %v5398_v32 = vmul.f32 %v5397_v26, %v5393_v8  ;;  %v5405_v39 = vmul.f32 %v5404_v40, %v5393_v8 }
 0x564   : > { %v5399_v34 = vadd.f32 1.0, %v5398_v32  ;;  %v5406_v53 = vadd.f32 1.0, %v5405_v39 }
 0x566   : > { %v5407_v11 = vmul.f32 %v5406_v53, %v5391_v37  ;;  %v5416_v43 = vxor.u32 2147483648, %v5399_v34 }
 0x568   : > { %v5413_v6 = vxor.u32 2147483648, %v5407_v11  ;;  %v5417_v42 = vsel %vm5415_vm14, %v5416_v43, %v5407_v11 }
 0x569   : > { %5459 = sbr.rel (!%p5857_p5) target bundleno = 1421 (0x58d), region = 36 }
 0x56a   : > { %v5414_v35 = vsel %vm5412_vm11, %v5399_v34, %v5413_v6 }
 0x56b   : > { %v5418_v30 = vsel %vm5411_vm13, %v5414_v35, %v5417_v42 }
 0x56c   : > { %v5419_v55 = vsel %vm5408_vm0, nan, %v5418_v30 }
 0x56d   : > { %5451 = vst [vmem:[%s6199_s9 + $0xf8] sm:$0xff] %v5419_v55 }
 0x56e   : > { %s9786_s30 = smov (!%p5462_p11, %s5461_s30), 32 }
 0x56f   : > { %s5642_s4 = sshll.u32 %s9786_s30, 3 }
 0x570   : > { %s5465_s5 = ssub.s32 256, %s5642_s4 }
 0x571   : > { %s5466_s6 = sshll.u32 %s5465_s5, 4 }
 0x572   : > { %5467 = vsyncadd %s9653_s29, %s5466_s6  ;;  %p9662_p12 = scmp.ne.s32.totalorder %s5642_s4, 0  ;;  %s5649_s22 = sshll.u32 %s5840_s16, 8 }
 0x573   : > { %s5470_s10 = scalar_lea.hbm %s9717_s3, %s5649_s22  ;;  %s5472_s11 = sshll.u32 %s6199_s9, 4  ;;  %s9671_s11 = int_to_ptr.vmem [resolvable:$true] %s5472_s11 }
 0x574   : > { %s5474_s17 = sshll.u32 %s5470_s10, 4  ;;  %s5646_s19 = sshll.u32 %s9786_s30, 7  ;;  %s9673_s17 = int_to_ptr.hbm [resolvable:$true] %s5474_s17 }
 0x575   : > { %s5714_s20 = sshra.s32 %s9671_s11, 4  ;;  %s5716_s25 = sshrl.u32 %s5646_s19, 4  ;;  %s5715_s20 = int_to_ptr.vmem [resolvable:$true] %s5714_s20 }
 0x576   : > { %s5721_s26 = scalar_lea.vmem %s5715_s20, %s5716_s25  ;;  %s5796_s16 = smov [#allocation2]  }
 0x577   : > { %p5722_p13 = scmp.ne.s32.totalorder %s5715_s20, %s5721_s26  ;;  %s5725_s27 = scalar_lea.vmem %s5796_s16, 512 }
 0x578   : > { %p5727_p2 = scmp.lt.s32.totalorder %s5725_s27, %s5721_s26 }
 0x579   : > { %p5723_p0 = pnand %p5722_p13, %p9662_p12 }
 0x57b   : > { %p5724_p1 = pneg %p5723_p0 }
 0x57d   : > { %p5729_p3 = pnand %p5727_p2, %p5724_p1 }
 0x57f   : > { %5732 = shalt.err (!%p5729_p3)
}
 0x580   : > { %s5733_s9 = sshra.s32 %s9673_s17, 4  ;;  %s5744_s6 = scalar_lea.hbm %s9717_s3, 504  ;;  %s5734_s9 = int_to_ptr.hbm [resolvable:$true] %s5733_s9 }
 0x581   : > { %s5740_s28 = scalar_lea.hbm %s5734_s9, %s5716_s25  ;;  %p5745_p8 = scmp.lt.s32.totalorder %s5734_s9, %s9717_s3 }
 0x582   : > { %p5741_p4 = scmp.ne.s32.totalorder %s5734_s9, %s5740_s28  ;;  %p5746_p9 = scmp.lt.s32.totalorder %s5744_s6, %s5740_s28 }
 0x584   : > { %p5742_p5 = pnand %p5741_p4, %p9662_p12  ;;  %p5747_p10 = por %p5746_p9, %p5745_p8 }
 0x586   : > { %p5743_p7 = pneg %p5742_p5 }
 0x588   : > { %p5748_p11 = pnand %p5747_p10, %p5743_p7 }
 0x58a   : > { %5751 = shalt.err (!%p5748_p11)
}
 0x58b   : > { %s5797_s24 = smov 128   ;;  %s5798_s10 = smov 8  }
 0x58c   : > { %5480 = dma.vmem_to_hbm [thread:$0]  (%p9662_p12), %s9671_s11, %s5646_s19, %s9673_s17, %s9653_s29, %s5797_s24, %s5797_s24, %s5798_s10  }
 0x58d PF: > { %p5655_p13 = scmp.ge.s32.totalorder %s5787_s15, 2  ;;  %s5489_s20 = sand.u32 1, %s5775_s12  }
 0x58e   : > { %s5490_s25 = scalar_lea.sflag [#allocation3], %s5489_s20 }
 0x58f   : > { %p5652_p0 = pnand %p5655_p13, %p5861_p6 }
 0x591   : > { %p5653_p1 = pneg %p5652_p0 }
 0x593   : > { %5770 = dma.done.wait (%p5653_p1), %s5490_s25, 4096  }
 0x594   : > { %5772 = vsyncadd (%p5653_p1), %s5490_s25, 4294963200  ;;  %p13_p2 = scmp.ge.s32.totalorder %s5844_s18, 4   ;;  %s9781_s12 = smov %s5779_s13 }
 0x595   : > { %s9782_s13 = smov %s5783_s14  ;;  %s9783_s14 = smov %s5855_s21 }
 0x596   : > { %s9784_s15 = smov %s5844_s18  ;;  %15 = sbr.rel (!%p13_p2) target bundleno = 3 (0x3), region = 67 }
 0x59b   :  { %5496 = vsyncpa [#allocation3], 1 }
 0x59c   :  { %5498 = vsyncpa [#allocation3 + $0x1], 1 }

</bundles_post_ra>
